<compile_context>
chip_gen: v7x
topology: tpu7x:2x2x1
jax: 0.10.0
libtpu: 0.0.40
codegen_flags: <defaults>
</compile_context>

<pallas_src>
import functools

import jax
import jax.numpy as jnp
from jax import lax
from jax.experimental import pallas as pl
from jax.experimental.pallas import tpu as pltpu


# ---------------------------------------------------------------------------
# exact-GELU helpers
# ---------------------------------------------------------------------------
def _erf_approx(z):
    """erf via Abramowitz & Stegun 7.1.26 (|abs err| <= 1.5e-7)."""
    a1, a2, a3, a4, a5 = (0.254829592, -0.284496736, 1.421413741,
                          -1.453152027, 1.061405429)
    p = 0.3275911
    az = jnp.abs(z)
    # Exact divide (EUP reciprocal + Newton).  approx=True reciprocal would be
    # marginally cheaper but eats into the 1e-3 tolerance margin.
    t = 1.0 / (1.0 + p * az)
    poly = ((((a5 * t + a4) * t + a3) * t + a2) * t + a1) * t
    y = 1.0 - poly * jnp.exp(-az * az)
    return jnp.where(z >= 0, y, -y)


def _gelu_exact(v):
    return 0.5 * v * (1.0 + _erf_approx(v * 0.7071067811865476))


# ---------------------------------------------------------------------------
# fused CFF kernel: LayerNorm -> Conv1(1x1) -> grouped 7x7 conv -> GELU
#                   -> Conv2(1x1, `scale` folded) -> + shortcut
#
# Activations are (channels, L) with L = Nb*H*W on the lane axis (lane-dense).
# Kernel channel layout: row j*C + g  <->  torch channel 2g + j.
# ---------------------------------------------------------------------------
def _cff_kernel(x_ref, w1_ref, b1_ref, wdw0_ref, wdw1_ref, bdw_ref,
                w2a_ref, w2b_ref, b2_ref, rowm_ref, colm_ref, o_ref,
                *, nf, h, w, eps):
    C = nf
    L = x_ref.shape[1]
    f32 = jnp.float32

    # ---- channels_first LayerNorm (gamma/beta folded into Conv1) ----
    x2 = x_ref[...].astype(f32)                            # (C, L) lane-dense
    mu = jnp.mean(x2, axis=0, keepdims=True)               # (1, L)
    var = jnp.mean((x2 - mu) ** 2, axis=0, keepdims=True)
    xn = (x2 - mu) * lax.rsqrt(var + eps)

    # ---- Conv1 (1x1): single MXU matmul, lane-dense N = L ----
    y = jnp.dot(w1_ref[...], xn,
                preferred_element_type=f32) + b1_ref[...]  # (2C, L)

    # ---- grouped 7x7 conv, lane-dense (roll + 0/1 masks; no padded scratch) --
    wdw0 = wdw0_ref[...]                                   # (2C, 49), j_in = 0
    wdw1 = wdw1_ref[...]                                   # (2C, 49), j_in = 1
    acc0 = jnp.zeros((C, L), f32)                          # out member j_out = 0
    acc1 = jnp.zeros((C, L), f32)                          # out member j_out = 1
    for kh in range(7):
        dh = kh - 3
        if dh == 0:
            y_h = y
        else:
            # shift whole rows; zero the rows whose source row is out of range
            y_h = pltpu.roll(y, shift=(-dh * w) % L, axis=1) * rowm_ref[kh:kh + 1, :]
        for kw in range(7):
            dw = kw - 3
            if dw == 0:
                m = y_h
            else:
                m = pltpu.roll(y_h, shift=(-dw) % L, axis=1) * colm_ref[kw:kw + 1, :]
            t = kh * 7 + kw
            m0 = m[:C, :]                                  # in member j_in = 0
            m1 = m[C:, :]                                  # in member j_in = 1
            wi0 = wdw0[:, t:t + 1]                         # (2C, 1) contiguous column
            wi1 = wdw1[:, t:t + 1]
            acc0 = acc0 + wi0[:C] * m0 + wi1[:C] * m1
            acc1 = acc1 + wi0[C:] * m0 + wi1[C:] * m1

    a0 = _gelu_exact(acc0 + bdw_ref[:C, :])
    a1 = _gelu_exact(acc1 + bdw_ref[C:, :])

    # ---- Conv2 (1x1, residual `scale` pre-folded) in two halves + shortcut ----
    out = (jnp.dot(w2a_ref[...], a0, preferred_element_type=f32)
           + jnp.dot(w2b_ref[...], a1, preferred_element_type=f32)
           + b2_ref[...])
    o_ref[...] = (out + x_ref[...].astype(f32)).astype(o_ref.dtype)


# ---------------------------------------------------------------------------
# wrapper: parameter folding / layout + pallas_call
# ---------------------------------------------------------------------------
def _pick_batch_block(n, max_nb=8):
    """Largest divisor of n that is <= max_nb while keeping >= 2 grid steps."""
    best = 1
    for nb in range(1, min(max_nb, n) + 1):
        if n % nb == 0 and (n // nb >= 2 or n == 1):
            best = nb
    return best


def cff_forward(x, params, *, eps=1e-6, max_images_per_step=8):
    """JAX/Pallas port of MMFSSR.CFF.forward."""
    n, c, h, w = x.shape
    i_feats = 2 * c
    hw = h * w
    f32 = jnp.float32

    ln_w = params["ln_w"].astype(f32)
    ln_b = params["ln_b"].astype(f32)
    w1 = params["w1"].reshape(i_feats, c).astype(f32)
    b1 = params["b1"].astype(f32)
    wdw = params["wdw"].astype(f32)                       # (2C, 2, 7, 7)
    bdw = params["bdw"].astype(f32)
    w2 = params["w2"].reshape(c, i_feats).astype(f32)
    b2 = params["b2"].astype(f32)
    scale = params["scale"].reshape(c).astype(f32)

    nb = _pick_batch_block(n, max_images_per_step)        # images per grid step
    L = nb * hw                                           # lane extent per step

    # Kernel-internal channel layout: row (j*C + g) <-> torch channel (2g + j).
    perm = jnp.arange(i_feats).reshape(c, 2).T.reshape(-1)

    # Fold LayerNorm affine into Conv1 (exact algebra on the parameters).
    w1f = w1 * ln_w[None, :]
    b1f = b1 + w1 @ ln_b
    w1p = w1f[perm]                                       # (2C, C)
    b1p = b1f[perm][:, None]                              # (2C, 1)

    # Grouped-conv taps: (2C, 49) per input member, row = j_out*C + g, col = tap.
    wdw_r = jnp.transpose(wdw.reshape(c, 2, 2, 49), (1, 0, 2, 3))   # (j_out, g, j_in, 49)
    wdw0 = wdw_r[:, :, 0, :].reshape(i_feats, 49)
    wdw1 = wdw_r[:, :, 1, :].reshape(i_feats, 49)
    bdwp = bdw[perm][:, None]                             # (2C, 1)

    # Fold the learned residual `scale` into Conv2 (exact algebra).
    w2p = (w2 * scale[:, None])[:, perm]                  # (C, 2C)
    w2a = w2p[:, :c]                                      # (C, C) j_in-member 0
    w2b = w2p[:, c:]                                      # (C, C) j_in-member 1
    b2s = (b2 * scale)[:, None]                           # (C, 1)

    # 0/1 validity masks for the 7x7 taps on the flattened (nb*H*W) lane axis.
    q = jnp.arange(L)
    hh = (q // w) % h
    ww = q % w
    row_masks = jnp.stack(
        [((hh + d >= 0) & (hh + d < h)) for d in range(-3, 4)]).astype(f32)   # (7, L)
    col_masks = jnp.stack(
        [((ww + d >= 0) & (ww + d < w)) for d in range(-3, 4)]).astype(f32)   # (7, L)

    # Lane-dense activation layout: NCHW -> (C, N*H*W)  (wrapper-side plumbing).
    x_t = jnp.transpose(x.reshape(n, c, hw), (1, 0, 2)).reshape(c, n * hw)

    kern = functools.partial(_cff_kernel, nf=c, h=h, w=w, eps=eps)

    grid = (n // nb,)
    blk = (c, L)

    flops = n * hw * (2 * i_feats * c            # Conv1
                      + 2 * i_feats * 2 * 49     # grouped 7x7 conv
                      + 2 * c * i_feats          # Conv2
                      + 24 * c)                  # LN / GELU poly / masks / epilogue
    transc = n * hw * (i_feats + 1)              # exp in GELU + rsqrt
    param_bytes = 4 * int(w1p.size + b1p.size + wdw0.size + wdw1.size + bdwp.size
                          + w2a.size + w2b.size + b2s.size
                          + row_masks.size + col_masks.size)
    bytes_acc = 2 * n * c * hw * x.dtype.itemsize + param_bytes

    blk_bytes = c * L * x.dtype.itemsize
    act_bytes = 8 * i_feats * L * 4              # y / rolled / accs / gelu temporaries
    vmem_limit = int(min(32 * 1024 * 1024,
                         max(16 * 1024 * 1024,
                             4 * blk_bytes + 2 * param_bytes + act_bytes)))

    out_t = pl.pallas_call(
        kern,
        out_shape=jax.ShapeDtypeStruct((c, n * hw), x.dtype),
        grid=grid,
        in_specs=[
            pl.BlockSpec(blk, lambda b: (0, b)),                 # x slab
            pl.BlockSpec((i_feats, c), lambda b: (0, 0)),        # w1 (LN folded)
            pl.BlockSpec((i_feats, 1), lambda b: (0, 0)),        # b1
            pl.BlockSpec((i_feats, 49), lambda b: (0, 0)),       # dw taps, j_in=0
            pl.BlockSpec((i_feats, 49), lambda b: (0, 0)),       # dw taps, j_in=1
            pl.BlockSpec((i_feats, 1), lambda b: (0, 0)),        # dw bias
            pl.BlockSpec((c, c), lambda b: (0, 0)),              # w2 half 0 (scale folded)
            pl.BlockSpec((c, c), lambda b: (0, 0)),              # w2 half 1
            pl.BlockSpec((c, 1), lambda b: (0, 0)),              # b2 * scale
            pl.BlockSpec((7, L), lambda b: (0, 0)),              # row masks
            pl.BlockSpec((7, L), lambda b: (0, 0)),              # col masks
        ],
        out_specs=pl.BlockSpec(blk, lambda b: (0, b)),
        compiler_params=pltpu.CompilerParams(
            dimension_semantics=("parallel",),
            vmem_limit_bytes=vmem_limit),
        cost_estimate=pl.CostEstimate(flops=int(flops),
                                      transcendentals=int(transc),
                                      bytes_accessed=int(bytes_acc)),
    )(x_t, w1p, b1p, wdw0, wdw1, bdwp, w2a, w2b, b2s, row_masks, col_masks)

    return jnp.transpose(out_t.reshape(c, n, hw), (1, 0, 2)).reshape(n, c, h, w)


# ---------------------------------------------------------------------------
# pure-JAX reference (mirrors the torch module) for validation
# ---------------------------------------------------------------------------
def _cff_reference(x, params, *, eps=1e-6):
    c = x.shape[1]
    u = jnp.mean(x, axis=1, keepdims=True)
    s = jnp.mean((x - u) ** 2, axis=1, keepdims=True)
    xn = (x - u) / jnp.sqrt(s + eps)
    xn = params["ln_w"][None, :, None, None] * xn + params["ln_b"][None, :, None, None]

    dn = ("NCHW", "OIHW", "NCHW")
    y = lax.conv_general_dilated(xn, params["w1"], (1, 1), "VALID",
                                 dimension_numbers=dn)
    y = y + params["b1"][None, :, None, None]
    z = lax.conv_general_dilated(y, params["wdw"], (1, 1), ((3, 3), (3, 3)),
                                 dimension_numbers=dn, feature_group_count=c)
    z = z + params["bdw"][None, :, None, None]
    a = 0.5 * z * (1.0 + lax.erf(z * (1.0 / jnp.sqrt(2.0))))   # exact GELU
    o = lax.conv_general_dilated(a, params["w2"], (1, 1), "VALID",
                                 dimension_numbers=dn)
    o = o + params["b2"][None, :, None, None]
    return o * params["scale"] + x


if __name__ == "__main__":
    key = jax.random.PRNGKey(0)
    N, C, H, W = 2, 8, 16, 16          # n_feats = 8 -> i_feats = 16
    I = 2 * C
    ks = jax.random.split(key, 10)

    params = {
        "ln_w": 1.0 + 0.1 * jax.random.normal(ks[0], (C,), jnp.float32),
        "ln_b": 0.1 * jax.random.normal(ks[1], (C,), jnp.float32),
        "w1":   jax.random.normal(ks[2], (I, C, 1, 1), jnp.float32) / jnp.sqrt(1.0 * C),
        "b1":   0.1 * jax.random.normal(ks[3], (I,), jnp.float32),
        "wdw":  jax.random.normal(ks[4], (I, 2, 7, 7), jnp.float32) / jnp.sqrt(2.0 * 49.0),
        "bdw":  0.1 * jax.random.normal(ks[5], (I,), jnp.float32),
        "w2":   jax.random.normal(ks[6], (C, I, 1, 1), jnp.float32) / jnp.sqrt(1.0 * I),
        "b2":   0.1 * jax.random.normal(ks[7], (C,), jnp.float32),
        # torch inits `scale` to zeros (output == shortcut exactly); use a random
        # value so the test actually exercises the conv path.
        "scale": 0.5 * jax.random.normal(ks[8], (1, C, 1, 1), jnp.float32),
    }
    x = jax.random.normal(ks[9], (N, C, H, W), jnp.float32)

    out = cff_forward(x, params)
    out = jax.block_until_ready(out)

    ref = _cff_reference(x, params)
    assert out.shape == x.shape, out.shape
    err = float(jnp.max(jnp.abs(out - ref)))
    assert err < 1e-3, err

    print("KERNEL_OK")
</pallas_src>

<mosaic_0001>
module attributes {stable_mosaic.version = 11 : i64} {
  func.func @_cff_kernel(%arg0: i32, %arg1: memref<8x256xf32, #tpu.memory_space<vmem>>, %arg2: memref<16x8xf32, #tpu.memory_space<vmem>>, %arg3: memref<16x1xf32, #tpu.memory_space<vmem>>, %arg4: memref<16x49xf32, #tpu.memory_space<vmem>>, %arg5: memref<16x49xf32, #tpu.memory_space<vmem>>, %arg6: memref<16x1xf32, #tpu.memory_space<vmem>>, %arg7: memref<8x8xf32, #tpu.memory_space<vmem>>, %arg8: memref<8x8xf32, #tpu.memory_space<vmem>>, %arg9: memref<8x1xf32, #tpu.memory_space<vmem>>, %arg10: memref<7x256xf32, #tpu.memory_space<vmem>>, %arg11: memref<7x256xf32, #tpu.memory_space<vmem>>, %arg12: memref<8x256xf32, #tpu.memory_space<vmem>>) attributes {dimension_semantics = [#tpu.dimension_semantics<parallel>], iteration_bounds = array<i64: 2>, scalar_prefetch = 0 : i64, scratch_operands = 0 : i64, tpu.core_type = #tpu.core_type<tc>, window_params = [{transform_indices = @transform_0, window_bounds = array<i64: 8, 256>}, {pipeline_mode = #tpu.pipeline_mode<synchronous>, transform_indices = @transform_1, window_bounds = array<i64: 16, 8>}, {pipeline_mode = #tpu.pipeline_mode<synchronous>, transform_indices = @transform_2, window_bounds = array<i64: 16, 1>}, {pipeline_mode = #tpu.pipeline_mode<synchronous>, transform_indices = @transform_3, window_bounds = array<i64: 16, 49>}, {pipeline_mode = #tpu.pipeline_mode<synchronous>, transform_indices = @transform_4, window_bounds = array<i64: 16, 49>}, {pipeline_mode = #tpu.pipeline_mode<synchronous>, transform_indices = @transform_5, window_bounds = array<i64: 16, 1>}, {pipeline_mode = #tpu.pipeline_mode<synchronous>, transform_indices = @transform_6, window_bounds = array<i64: 8, 8>}, {pipeline_mode = #tpu.pipeline_mode<synchronous>, transform_indices = @transform_7, window_bounds = array<i64: 8, 8>}, {pipeline_mode = #tpu.pipeline_mode<synchronous>, transform_indices = @transform_8, window_bounds = array<i64: 8, 1>}, {pipeline_mode = #tpu.pipeline_mode<synchronous>, transform_indices = @transform_9, window_bounds = array<i64: 7, 256>}, {pipeline_mode = #tpu.pipeline_mode<synchronous>, transform_indices = @transform_10, window_bounds = array<i64: 7, 256>}, {transform_indices = @transform_11, window_bounds = array<i64: 8, 256>}]} {
    %c0 = arith.constant 0 : index
    %c0_0 = arith.constant 0 : index
    %0 = vector.load %arg1[%c0, %c0_0] : memref<8x256xf32, #tpu.memory_space<vmem>>, vector<8x256xf32>
    %cst = arith.constant dense<0.000000e+00> : vector<256xf32>
    %1 = vector.multi_reduction <add>, %0, %cst [0] : vector<8x256xf32> to vector<256xf32>
    %2 = vector.shape_cast %1 : vector<256xf32> to vector<1x256xf32>
    %cst_1 = arith.constant 8.000000e+00 : f32
    %3 = vector.broadcast %cst_1 : f32 to vector<1x256xf32>
    %4 = arith.divf %2, %3 : vector<1x256xf32>
    %5 = vector.broadcast %4 : vector<1x256xf32> to vector<8x256xf32>
    %6 = arith.subf %0, %5 : vector<8x256xf32>
    %7 = arith.mulf %6, %6 : vector<8x256xf32>
    %cst_2 = arith.constant dense<0.000000e+00> : vector<256xf32>
    %8 = vector.multi_reduction <add>, %7, %cst_2 [0] : vector<8x256xf32> to vector<256xf32>
    %9 = vector.shape_cast %8 : vector<256xf32> to vector<1x256xf32>
    %cst_3 = arith.constant 8.000000e+00 : f32
    %10 = vector.broadcast %cst_3 : f32 to vector<1x256xf32>
    %11 = arith.divf %9, %10 : vector<1x256xf32>
    %12 = vector.broadcast %4 : vector<1x256xf32> to vector<8x256xf32>
    %13 = arith.subf %0, %12 : vector<8x256xf32>
    %cst_4 = arith.constant 9.99999997E-7 : f32
    %14 = vector.broadcast %cst_4 : f32 to vector<1x256xf32>
    %15 = arith.addf %11, %14 : vector<1x256xf32>
    %16 = math.rsqrt %15 : vector<1x256xf32>
    %17 = vector.broadcast %16 : vector<1x256xf32> to vector<8x256xf32>
    %18 = arith.mulf %13, %17 : vector<8x256xf32>
    %c0_5 = arith.constant 0 : index
    %c0_6 = arith.constant 0 : index
    %19 = vector.load %arg2[%c0_5, %c0_6] : memref<16x8xf32, #tpu.memory_space<vmem>>, vector<16x8xf32>
    %cst_7 = arith.constant dense<0.000000e+00> : vector<16x256xf32>
    %20 = tpu.matmul %19, %18, %cst_7 {dimension_numbers = #tpu.dot_dimension_numbers<[1], [0], [0], [1], [0, 0, 1, 1], [], []>} : vector<16x8xf32>, vector<8x256xf32>, vector<16x256xf32> -> vector<16x256xf32>
    %c0_8 = arith.constant 0 : index
    %c0_9 = arith.constant 0 : index
    %21 = vector.load %arg3[%c0_8, %c0_9] : memref<16x1xf32, #tpu.memory_space<vmem>>, vector<16x1xf32>
    %22 = vector.broadcast %21 : vector<16x1xf32> to vector<16x256xf32>
    %23 = arith.addf %20, %22 : vector<16x256xf32>
    %c0_10 = arith.constant 0 : index
    %c0_11 = arith.constant 0 : index
    %24 = vector.load %arg4[%c0_10, %c0_11] : memref<16x49xf32, #tpu.memory_space<vmem>>, vector<16x49xf32>
    %c0_12 = arith.constant 0 : index
    %c0_13 = arith.constant 0 : index
    %25 = vector.load %arg5[%c0_12, %c0_13] : memref<16x49xf32, #tpu.memory_space<vmem>>, vector<16x49xf32>
    %cst_14 = arith.constant 0.000000e+00 : f32
    %26 = vector.broadcast %cst_14 : f32 to vector<8x256xf32>
    %cst_15 = arith.constant 0.000000e+00 : f32
    %27 = vector.broadcast %cst_15 : f32 to vector<8x256xf32>
    %c48_i32 = arith.constant 48 : i32
    %28 = tpu.dynamic_rotate %23 by %c48_i32 dim 1 : vector<16x256xf32>, i32 -> vector<16x256xf32>
    %c0_16 = arith.constant 0 : index
    %c0_17 = arith.constant 0 : index
    %29 = vector.load %arg10[%c0_16, %c0_17] : memref<7x256xf32, #tpu.memory_space<vmem>>, vector<1x256xf32>
    %30 = vector.broadcast %29 : vector<1x256xf32> to vector<16x256xf32>
    %31 = arith.mulf %28, %30 : vector<16x256xf32>
    %c3_i32 = arith.constant 3 : i32
    %32 = tpu.dynamic_rotate %31 by %c3_i32 dim 1 : vector<16x256xf32>, i32 -> vector<16x256xf32>
    %c0_18 = arith.constant 0 : index
    %c0_19 = arith.constant 0 : index
    %33 = vector.load %arg11[%c0_18, %c0_19] : memref<7x256xf32, #tpu.memory_space<vmem>>, vector<1x256xf32>
    %34 = vector.broadcast %33 : vector<1x256xf32> to vector<16x256xf32>
    %35 = arith.mulf %32, %34 : vector<16x256xf32>
    %36 = vector.extract_strided_slice %35 {offsets = [0, 0], sizes = [8, 256], strides = [1, 1]} : vector<16x256xf32> to vector<8x256xf32>
    %37 = vector.extract_strided_slice %35 {offsets = [8, 0], sizes = [8, 256], strides = [1, 1]} : vector<16x256xf32> to vector<8x256xf32>
    %38 = vector.extract_strided_slice %24 {offsets = [0, 0], sizes = [16, 1], strides = [1, 1]} : vector<16x49xf32> to vector<16x1xf32>
    %39 = vector.extract_strided_slice %25 {offsets = [0, 0], sizes = [16, 1], strides = [1, 1]} : vector<16x49xf32> to vector<16x1xf32>
    %40 = vector.extract_strided_slice %38 {offsets = [0, 0], sizes = [8, 1], strides = [1, 1]} : vector<16x1xf32> to vector<8x1xf32>
    %41 = vector.broadcast %40 : vector<8x1xf32> to vector<8x256xf32>
    %42 = arith.mulf %41, %36 : vector<8x256xf32>
    %43 = arith.addf %26, %42 : vector<8x256xf32>
    %44 = vector.extract_strided_slice %39 {offsets = [0, 0], sizes = [8, 1], strides = [1, 1]} : vector<16x1xf32> to vector<8x1xf32>
    %45 = vector.broadcast %44 : vector<8x1xf32> to vector<8x256xf32>
    %46 = arith.mulf %45, %37 : vector<8x256xf32>
    %47 = arith.addf %43, %46 : vector<8x256xf32>
    %48 = vector.extract_strided_slice %38 {offsets = [8, 0], sizes = [8, 1], strides = [1, 1]} : vector<16x1xf32> to vector<8x1xf32>
    %49 = vector.broadcast %48 : vector<8x1xf32> to vector<8x256xf32>
    %50 = arith.mulf %49, %36 : vector<8x256xf32>
    %51 = arith.addf %27, %50 : vector<8x256xf32>
    %52 = vector.extract_strided_slice %39 {offsets = [8, 0], sizes = [8, 1], strides = [1, 1]} : vector<16x1xf32> to vector<8x1xf32>
    %53 = vector.broadcast %52 : vector<8x1xf32> to vector<8x256xf32>
    %54 = arith.mulf %53, %37 : vector<8x256xf32>
    %55 = arith.addf %51, %54 : vector<8x256xf32>
    %c2_i32 = arith.constant 2 : i32
    %56 = tpu.dynamic_rotate %31 by %c2_i32 dim 1 : vector<16x256xf32>, i32 -> vector<16x256xf32>
    %c1 = arith.constant 1 : index
    %c0_20 = arith.constant 0 : index
    %57 = vector.load %arg11[%c1, %c0_20] : memref<7x256xf32, #tpu.memory_space<vmem>>, vector<1x256xf32>
    %58 = vector.broadcast %57 : vector<1x256xf32> to vector<16x256xf32>
    %59 = arith.mulf %56, %58 : vector<16x256xf32>
    %60 = vector.extract_strided_slice %59 {offsets = [0, 0], sizes = [8, 256], strides = [1, 1]} : vector<16x256xf32> to vector<8x256xf32>
    %61 = vector.extract_strided_slice %59 {offsets = [8, 0], sizes = [8, 256], strides = [1, 1]} : vector<16x256xf32> to vector<8x256xf32>
    %62 = vector.extract_strided_slice %24 {offsets = [0, 1], sizes = [16, 1], strides = [1, 1]} : vector<16x49xf32> to vector<16x1xf32>
    %63 = vector.extract_strided_slice %25 {offsets = [0, 1], sizes = [16, 1], strides = [1, 1]} : vector<16x49xf32> to vector<16x1xf32>
    %64 = vector.extract_strided_slice %62 {offsets = [0, 0], sizes = [8, 1], strides = [1, 1]} : vector<16x1xf32> to vector<8x1xf32>
    %65 = vector.broadcast %64 : vector<8x1xf32> to vector<8x256xf32>
    %66 = arith.mulf %65, %60 : vector<8x256xf32>
    %67 = arith.addf %47, %66 : vector<8x256xf32>
    %68 = vector.extract_strided_slice %63 {offsets = [0, 0], sizes = [8, 1], strides = [1, 1]} : vector<16x1xf32> to vector<8x1xf32>
    %69 = vector.broadcast %68 : vector<8x1xf32> to vector<8x256xf32>
    %70 = arith.mulf %69, %61 : vector<8x256xf32>
    %71 = arith.addf %67, %70 : vector<8x256xf32>
    %72 = vector.extract_strided_slice %62 {offsets = [8, 0], sizes = [8, 1], strides = [1, 1]} : vector<16x1xf32> to vector<8x1xf32>
    %73 = vector.broadcast %72 : vector<8x1xf32> to vector<8x256xf32>
    %74 = arith.mulf %73, %60 : vector<8x256xf32>
    %75 = arith.addf %55, %74 : vector<8x256xf32>
    %76 = vector.extract_strided_slice %63 {offsets = [8, 0], sizes = [8, 1], strides = [1, 1]} : vector<16x1xf32> to vector<8x1xf32>
    %77 = vector.broadcast %76 : vector<8x1xf32> to vector<8x256xf32>
    %78 = arith.mulf %77, %61 : vector<8x256xf32>
    %79 = arith.addf %75, %78 : vector<8x256xf32>
    %c1_i32 = arith.constant 1 : i32
    %80 = tpu.dynamic_rotate %31 by %c1_i32 dim 1 : vector<16x256xf32>, i32 -> vector<16x256xf32>
    %c2 = arith.constant 2 : index
    %c0_21 = arith.constant 0 : index
    %81 = vector.load %arg11[%c2, %c0_21] : memref<7x256xf32, #tpu.memory_space<vmem>>, vector<1x256xf32>
    %82 = vector.broadcast %81 : vector<1x256xf32> to vector<16x256xf32>
    %83 = arith.mulf %80, %82 : vector<16x256xf32>
    %84 = vector.extract_strided_slice %83 {offsets = [0, 0], sizes = [8, 256], strides = [1, 1]} : vector<16x256xf32> to vector<8x256xf32>
    %85 = vector.extract_strided_slice %83 {offsets = [8, 0], sizes = [8, 256], strides = [1, 1]} : vector<16x256xf32> to vector<8x256xf32>
    %86 = vector.extract_strided_slice %24 {offsets = [0, 2], sizes = [16, 1], strides = [1, 1]} : vector<16x49xf32> to vector<16x1xf32>
    %87 = vector.extract_strided_slice %25 {offsets = [0, 2], sizes = [16, 1], strides = [1, 1]} : vector<16x49xf32> to vector<16x1xf32>
    %88 = vector.extract_strided_slice %86 {offsets = [0, 0], sizes = [8, 1], strides = [1, 1]} : vector<16x1xf32> to vector<8x1xf32>
    %89 = vector.broadcast %88 : vector<8x1xf32> to vector<8x256xf32>
    %90 = arith.mulf %89, %84 : vector<8x256xf32>
    %91 = arith.addf %71, %90 : vector<8x256xf32>
    %92 = vector.extract_strided_slice %87 {offsets = [0, 0], sizes = [8, 1], strides = [1, 1]} : vector<16x1xf32> to vector<8x1xf32>
    %93 = vector.broadcast %92 : vector<8x1xf32> to vector<8x256xf32>
    %94 = arith.mulf %93, %85 : vector<8x256xf32>
    %95 = arith.addf %91, %94 : vector<8x256xf32>
    %96 = vector.extract_strided_slice %86 {offsets = [8, 0], sizes = [8, 1], strides = [1, 1]} : vector<16x1xf32> to vector<8x1xf32>
    %97 = vector.broadcast %96 : vector<8x1xf32> to vector<8x256xf32>
    %98 = arith.mulf %97, %84 : vector<8x256xf32>
    %99 = arith.addf %79, %98 : vector<8x256xf32>
    %100 = vector.extract_strided_slice %87 {offsets = [8, 0], sizes = [8, 1], strides = [1, 1]} : vector<16x1xf32> to vector<8x1xf32>
    %101 = vector.broadcast %100 : vector<8x1xf32> to vector<8x256xf32>
    %102 = arith.mulf %101, %85 : vector<8x256xf32>
    %103 = arith.addf %99, %102 : vector<8x256xf32>
    %104 = vector.extract_strided_slice %31 {offsets = [0, 0], sizes = [8, 256], strides = [1, 1]} : vector<16x256xf32> to vector<8x256xf32>
    %105 = vector.extract_strided_slice %31 {offsets = [8, 0], sizes = [8, 256], strides = [1, 1]} : vector<16x256xf32> to vector<8x256xf32>
    %106 = vector.extract_strided_slice %24 {offsets = [0, 3], sizes = [16, 1], strides = [1, 1]} : vector<16x49xf32> to vector<16x1xf32>
    %107 = vector.extract_strided_slice %25 {offsets = [0, 3], sizes = [16, 1], strides = [1, 1]} : vector<16x49xf32> to vector<16x1xf32>
    %108 = vector.extract_strided_slice %106 {offsets = [0, 0], sizes = [8, 1], strides = [1, 1]} : vector<16x1xf32> to vector<8x1xf32>
    %109 = vector.broadcast %108 : vector<8x1xf32> to vector<8x256xf32>
    %110 = arith.mulf %109, %104 : vector<8x256xf32>
    %111 = arith.addf %95, %110 : vector<8x256xf32>
    %112 = vector.extract_strided_slice %107 {offsets = [0, 0], sizes = [8, 1], strides = [1, 1]} : vector<16x1xf32> to vector<8x1xf32>
    %113 = vector.broadcast %112 : vector<8x1xf32> to vector<8x256xf32>
    %114 = arith.mulf %113, %105 : vector<8x256xf32>
    %115 = arith.addf %111, %114 : vector<8x256xf32>
    %116 = vector.extract_strided_slice %106 {offsets = [8, 0], sizes = [8, 1], strides = [1, 1]} : vector<16x1xf32> to vector<8x1xf32>
    %117 = vector.broadcast %116 : vector<8x1xf32> to vector<8x256xf32>
    %118 = arith.mulf %117, %104 : vector<8x256xf32>
    %119 = arith.addf %103, %118 : vector<8x256xf32>
    %120 = vector.extract_strided_slice %107 {offsets = [8, 0], sizes = [8, 1], strides = [1, 1]} : vector<16x1xf32> to vector<8x1xf32>
    %121 = vector.broadcast %120 : vector<8x1xf32> to vector<8x256xf32>
    %122 = arith.mulf %121, %105 : vector<8x256xf32>
    %123 = arith.addf %119, %122 : vector<8x256xf32>
    %c255_i32 = arith.constant 255 : i32
    %124 = tpu.dynamic_rotate %31 by %c255_i32 dim 1 : vector<16x256xf32>, i32 -> vector<16x256xf32>
    %c4 = arith.constant 4 : index
    %c0_22 = arith.constant 0 : index
    %125 = vector.load %arg11[%c4, %c0_22] : memref<7x256xf32, #tpu.memory_space<vmem>>, vector<1x256xf32>
    %126 = vector.broadcast %125 : vector<1x256xf32> to vector<16x256xf32>
    %127 = arith.mulf %124, %126 : vector<16x256xf32>
    %128 = vector.extract_strided_slice %127 {offsets = [0, 0], sizes = [8, 256], strides = [1, 1]} : vector<16x256xf32> to vector<8x256xf32>
    %129 = vector.extract_strided_slice %127 {offsets = [8, 0], sizes = [8, 256], strides = [1, 1]} : vector<16x256xf32> to vector<8x256xf32>
    %130 = vector.extract_strided_slice %24 {offsets = [0, 4], sizes = [16, 1], strides = [1, 1]} : vector<16x49xf32> to vector<16x1xf32>
    %131 = vector.extract_strided_slice %25 {offsets = [0, 4], sizes = [16, 1], strides = [1, 1]} : vector<16x49xf32> to vector<16x1xf32>
    %132 = vector.extract_strided_slice %130 {offsets = [0, 0], sizes = [8, 1], strides = [1, 1]} : vector<16x1xf32> to vector<8x1xf32>
    %133 = vector.broadcast %132 : vector<8x1xf32> to vector<8x256xf32>
    %134 = arith.mulf %133, %128 : vector<8x256xf32>
    %135 = arith.addf %115, %134 : vector<8x256xf32>
    %136 = vector.extract_strided_slice %131 {offsets = [0, 0], sizes = [8, 1], strides = [1, 1]} : vector<16x1xf32> to vector<8x1xf32>
    %137 = vector.broadcast %136 : vector<8x1xf32> to vector<8x256xf32>
    %138 = arith.mulf %137, %129 : vector<8x256xf32>
    %139 = arith.addf %135, %138 : vector<8x256xf32>
    %140 = vector.extract_strided_slice %130 {offsets = [8, 0], sizes = [8, 1], strides = [1, 1]} : vector<16x1xf32> to vector<8x1xf32>
    %141 = vector.broadcast %140 : vector<8x1xf32> to vector<8x256xf32>
    %142 = arith.mulf %141, %128 : vector<8x256xf32>
    %143 = arith.addf %123, %142 : vector<8x256xf32>
    %144 = vector.extract_strided_slice %131 {offsets = [8, 0], sizes = [8, 1], strides = [1, 1]} : vector<16x1xf32> to vector<8x1xf32>
    %145 = vector.broadcast %144 : vector<8x1xf32> to vector<8x256xf32>
    %146 = arith.mulf %145, %129 : vector<8x256xf32>
    %147 = arith.addf %143, %146 : vector<8x256xf32>
    %c254_i32 = arith.constant 254 : i32
    %148 = tpu.dynamic_rotate %31 by %c254_i32 dim 1 : vector<16x256xf32>, i32 -> vector<16x256xf32>
    %c5 = arith.constant 5 : index
    %c0_23 = arith.constant 0 : index
    %149 = vector.load %arg11[%c5, %c0_23] : memref<7x256xf32, #tpu.memory_space<vmem>>, vector<1x256xf32>
    %150 = vector.broadcast %149 : vector<1x256xf32> to vector<16x256xf32>
    %151 = arith.mulf %148, %150 : vector<16x256xf32>
    %152 = vector.extract_strided_slice %151 {offsets = [0, 0], sizes = [8, 256], strides = [1, 1]} : vector<16x256xf32> to vector<8x256xf32>
    %153 = vector.extract_strided_slice %151 {offsets = [8, 0], sizes = [8, 256], strides = [1, 1]} : vector<16x256xf32> to vector<8x256xf32>
    %154 = vector.extract_strided_slice %24 {offsets = [0, 5], sizes = [16, 1], strides = [1, 1]} : vector<16x49xf32> to vector<16x1xf32>
    %155 = vector.extract_strided_slice %25 {offsets = [0, 5], sizes = [16, 1], strides = [1, 1]} : vector<16x49xf32> to vector<16x1xf32>
    %156 = vector.extract_strided_slice %154 {offsets = [0, 0], sizes = [8, 1], strides = [1, 1]} : vector<16x1xf32> to vector<8x1xf32>
    %157 = vector.broadcast %156 : vector<8x1xf32> to vector<8x256xf32>
    %158 = arith.mulf %157, %152 : vector<8x256xf32>
    %159 = arith.addf %139, %158 : vector<8x256xf32>
    %160 = vector.extract_strided_slice %155 {offsets = [0, 0], sizes = [8, 1], strides = [1, 1]} : vector<16x1xf32> to vector<8x1xf32>
    %161 = vector.broadcast %160 : vector<8x1xf32> to vector<8x256xf32>
    %162 = arith.mulf %161, %153 : vector<8x256xf32>
    %163 = arith.addf %159, %162 : vector<8x256xf32>
    %164 = vector.extract_strided_slice %154 {offsets = [8, 0], sizes = [8, 1], strides = [1, 1]} : vector<16x1xf32> to vector<8x1xf32>
    %165 = vector.broadcast %164 : vector<8x1xf32> to vector<8x256xf32>
    %166 = arith.mulf %165, %152 : vector<8x256xf32>
    %167 = arith.addf %147, %166 : vector<8x256xf32>
    %168 = vector.extract_strided_slice %155 {offsets = [8, 0], sizes = [8, 1], strides = [1, 1]} : vector<16x1xf32> to vector<8x1xf32>
    %169 = vector.broadcast %168 : vector<8x1xf32> to vector<8x256xf32>
    %170 = arith.mulf %169, %153 : vector<8x256xf32>
    %171 = arith.addf %167, %170 : vector<8x256xf32>
    %c253_i32 = arith.constant 253 : i32
    %172 = tpu.dynamic_rotate %31 by %c253_i32 dim 1 : vector<16x256xf32>, i32 -> vector<16x256xf32>
    %c6 = arith.constant 6 : index
    %c0_24 = arith.constant 0 : index
    %173 = vector.load %arg11[%c6, %c0_24] : memref<7x256xf32, #tpu.memory_space<vmem>>, vector<1x256xf32>
    %174 = vector.broadcast %173 : vector<1x256xf32> to vector<16x256xf32>
    %175 = arith.mulf %172, %174 : vector<16x256xf32>
    %176 = vector.extract_strided_slice %175 {offsets = [0, 0], sizes = [8, 256], strides = [1, 1]} : vector<16x256xf32> to vector<8x256xf32>
    %177 = vector.extract_strided_slice %175 {offsets = [8, 0], sizes = [8, 256], strides = [1, 1]} : vector<16x256xf32> to vector<8x256xf32>
    %178 = vector.extract_strided_slice %24 {offsets = [0, 6], sizes = [16, 1], strides = [1, 1]} : vector<16x49xf32> to vector<16x1xf32>
    %179 = vector.extract_strided_slice %25 {offsets = [0, 6], sizes = [16, 1], strides = [1, 1]} : vector<16x49xf32> to vector<16x1xf32>
    %180 = vector.extract_strided_slice %178 {offsets = [0, 0], sizes = [8, 1], strides = [1, 1]} : vector<16x1xf32> to vector<8x1xf32>
    %181 = vector.broadcast %180 : vector<8x1xf32> to vector<8x256xf32>
    %182 = arith.mulf %181, %176 : vector<8x256xf32>
    %183 = arith.addf %163, %182 : vector<8x256xf32>
    %184 = vector.extract_strided_slice %179 {offsets = [0, 0], sizes = [8, 1], strides = [1, 1]} : vector<16x1xf32> to vector<8x1xf32>
    %185 = vector.broadcast %184 : vector<8x1xf32> to vector<8x256xf32>
    %186 = arith.mulf %185, %177 : vector<8x256xf32>
    %187 = arith.addf %183, %186 : vector<8x256xf32>
    %188 = vector.extract_strided_slice %178 {offsets = [8, 0], sizes = [8, 1], strides = [1, 1]} : vector<16x1xf32> to vector<8x1xf32>
    %189 = vector.broadcast %188 : vector<8x1xf32> to vector<8x256xf32>
    %190 = arith.mulf %189, %176 : vector<8x256xf32>
    %191 = arith.addf %171, %190 : vector<8x256xf32>
    %192 = vector.extract_strided_slice %179 {offsets = [8, 0], sizes = [8, 1], strides = [1, 1]} : vector<16x1xf32> to vector<8x1xf32>
    %193 = vector.broadcast %192 : vector<8x1xf32> to vector<8x256xf32>
    %194 = arith.mulf %193, %177 : vector<8x256xf32>
    %195 = arith.addf %191, %194 : vector<8x256xf32>
    %c32_i32 = arith.constant 32 : i32
    %196 = tpu.dynamic_rotate %23 by %c32_i32 dim 1 : vector<16x256xf32>, i32 -> vector<16x256xf32>
    %c1_25 = arith.constant 1 : index
    %c0_26 = arith.constant 0 : index
    %197 = vector.load %arg10[%c1_25, %c0_26] : memref<7x256xf32, #tpu.memory_space<vmem>>, vector<1x256xf32>
    %198 = vector.broadcast %197 : vector<1x256xf32> to vector<16x256xf32>
    %199 = arith.mulf %196, %198 : vector<16x256xf32>
    %c3_i32_27 = arith.constant 3 : i32
    %200 = tpu.dynamic_rotate %199 by %c3_i32_27 dim 1 : vector<16x256xf32>, i32 -> vector<16x256xf32>
    %c0_28 = arith.constant 0 : index
    %c0_29 = arith.constant 0 : index
    %201 = vector.load %arg11[%c0_28, %c0_29] : memref<7x256xf32, #tpu.memory_space<vmem>>, vector<1x256xf32>
    %202 = vector.broadcast %201 : vector<1x256xf32> to vector<16x256xf32>
    %203 = arith.mulf %200, %202 : vector<16x256xf32>
    %204 = vector.extract_strided_slice %203 {offsets = [0, 0], sizes = [8, 256], strides = [1, 1]} : vector<16x256xf32> to vector<8x256xf32>
    %205 = vector.extract_strided_slice %203 {offsets = [8, 0], sizes = [8, 256], strides = [1, 1]} : vector<16x256xf32> to vector<8x256xf32>
    %206 = vector.extract_strided_slice %24 {offsets = [0, 7], sizes = [16, 1], strides = [1, 1]} : vector<16x49xf32> to vector<16x1xf32>
    %207 = vector.extract_strided_slice %25 {offsets = [0, 7], sizes = [16, 1], strides = [1, 1]} : vector<16x49xf32> to vector<16x1xf32>
    %208 = vector.extract_strided_slice %206 {offsets = [0, 0], sizes = [8, 1], strides = [1, 1]} : vector<16x1xf32> to vector<8x1xf32>
    %209 = vector.broadcast %208 : vector<8x1xf32> to vector<8x256xf32>
    %210 = arith.mulf %209, %204 : vector<8x256xf32>
    %211 = arith.addf %187, %210 : vector<8x256xf32>
    %212 = vector.extract_strided_slice %207 {offsets = [0, 0], sizes = [8, 1], strides = [1, 1]} : vector<16x1xf32> to vector<8x1xf32>
    %213 = vector.broadcast %212 : vector<8x1xf32> to vector<8x256xf32>
    %214 = arith.mulf %213, %205 : vector<8x256xf32>
    %215 = arith.addf %211, %214 : vector<8x256xf32>
    %216 = vector.extract_strided_slice %206 {offsets = [8, 0], sizes = [8, 1], strides = [1, 1]} : vector<16x1xf32> to vector<8x1xf32>
    %217 = vector.broadcast %216 : vector<8x1xf32> to vector<8x256xf32>
    %218 = arith.mulf %217, %204 : vector<8x256xf32>
    %219 = arith.addf %195, %218 : vector<8x256xf32>
    %220 = vector.extract_strided_slice %207 {offsets = [8, 0], sizes = [8, 1], strides = [1, 1]} : vector<16x1xf32> to vector<8x1xf32>
    %221 = vector.broadcast %220 : vector<8x1xf32> to vector<8x256xf32>
    %222 = arith.mulf %221, %205 : vector<8x256xf32>
    %223 = arith.addf %219, %222 : vector<8x256xf32>
    %c2_i32_30 = arith.constant 2 : i32
    %224 = tpu.dynamic_rotate %199 by %c2_i32_30 dim 1 : vector<16x256xf32>, i32 -> vector<16x256xf32>
    %c1_31 = arith.constant 1 : index
    %c0_32 = arith.constant 0 : index
    %225 = vector.load %arg11[%c1_31, %c0_32] : memref<7x256xf32, #tpu.memory_space<vmem>>, vector<1x256xf32>
    %226 = vector.broadcast %225 : vector<1x256xf32> to vector<16x256xf32>
    %227 = arith.mulf %224, %226 : vector<16x256xf32>
    %228 = vector.extract_strided_slice %227 {offsets = [0, 0], sizes = [8, 256], strides = [1, 1]} : vector<16x256xf32> to vector<8x256xf32>
    %229 = vector.extract_strided_slice %227 {offsets = [8, 0], sizes = [8, 256], strides = [1, 1]} : vector<16x256xf32> to vector<8x256xf32>
    %230 = vector.extract_strided_slice %24 {offsets = [0, 8], sizes = [16, 1], strides = [1, 1]} : vector<16x49xf32> to vector<16x1xf32>
    %231 = vector.extract_strided_slice %25 {offsets = [0, 8], sizes = [16, 1], strides = [1, 1]} : vector<16x49xf32> to vector<16x1xf32>
    %232 = vector.extract_strided_slice %230 {offsets = [0, 0], sizes = [8, 1], strides = [1, 1]} : vector<16x1xf32> to vector<8x1xf32>
    %233 = vector.broadcast %232 : vector<8x1xf32> to vector<8x256xf32>
    %234 = arith.mulf %233, %228 : vector<8x256xf32>
    %235 = arith.addf %215, %234 : vector<8x256xf32>
    %236 = vector.extract_strided_slice %231 {offsets = [0, 0], sizes = [8, 1], strides = [1, 1]} : vector<16x1xf32> to vector<8x1xf32>
    %237 = vector.broadcast %236 : vector<8x1xf32> to vector<8x256xf32>
    %238 = arith.mulf %237, %229 : vector<8x256xf32>
    %239 = arith.addf %235, %238 : vector<8x256xf32>
    %240 = vector.extract_strided_slice %230 {offsets = [8, 0], sizes = [8, 1], strides = [1, 1]} : vector<16x1xf32> to vector<8x1xf32>
    %241 = vector.broadcast %240 : vector<8x1xf32> to vector<8x256xf32>
    %242 = arith.mulf %241, %228 : vector<8x256xf32>
    %243 = arith.addf %223, %242 : vector<8x256xf32>
    %244 = vector.extract_strided_slice %231 {offsets = [8, 0], sizes = [8, 1], strides = [1, 1]} : vector<16x1xf32> to vector<8x1xf32>
    %245 = vector.broadcast %244 : vector<8x1xf32> to vector<8x256xf32>
    %246 = arith.mulf %245, %229 : vector<8x256xf32>
    %247 = arith.addf %243, %246 : vector<8x256xf32>
    %c1_i32_33 = arith.constant 1 : i32
    %248 = tpu.dynamic_rotate %199 by %c1_i32_33 dim 1 : vector<16x256xf32>, i32 -> vector<16x256xf32>
    %c2_34 = arith.constant 2 : index
    %c0_35 = arith.constant 0 : index
    %249 = vector.load %arg11[%c2_34, %c0_35] : memref<7x256xf32, #tpu.memory_space<vmem>>, vector<1x256xf32>
    %250 = vector.broadcast %249 : vector<1x256xf32> to vector<16x256xf32>
    %251 = arith.mulf %248, %250 : vector<16x256xf32>
    %252 = vector.extract_strided_slice %251 {offsets = [0, 0], sizes = [8, 256], strides = [1, 1]} : vector<16x256xf32> to vector<8x256xf32>
    %253 = vector.extract_strided_slice %251 {offsets = [8, 0], sizes = [8, 256], strides = [1, 1]} : vector<16x256xf32> to vector<8x256xf32>
    %254 = vector.extract_strided_slice %24 {offsets = [0, 9], sizes = [16, 1], strides = [1, 1]} : vector<16x49xf32> to vector<16x1xf32>
    %255 = vector.extract_strided_slice %25 {offsets = [0, 9], sizes = [16, 1], strides = [1, 1]} : vector<16x49xf32> to vector<16x1xf32>
    %256 = vector.extract_strided_slice %254 {offsets = [0, 0], sizes = [8, 1], strides = [1, 1]} : vector<16x1xf32> to vector<8x1xf32>
    %257 = vector.broadcast %256 : vector<8x1xf32> to vector<8x256xf32>
    %258 = arith.mulf %257, %252 : vector<8x256xf32>
    %259 = arith.addf %239, %258 : vector<8x256xf32>
    %260 = vector.extract_strided_slice %255 {offsets = [0, 0], sizes = [8, 1], strides = [1, 1]} : vector<16x1xf32> to vector<8x1xf32>
    %261 = vector.broadcast %260 : vector<8x1xf32> to vector<8x256xf32>
    %262 = arith.mulf %261, %253 : vector<8x256xf32>
    %263 = arith.addf %259, %262 : vector<8x256xf32>
    %264 = vector.extract_strided_slice %254 {offsets = [8, 0], sizes = [8, 1], strides = [1, 1]} : vector<16x1xf32> to vector<8x1xf32>
    %265 = vector.broadcast %264 : vector<8x1xf32> to vector<8x256xf32>
    %266 = arith.mulf %265, %252 : vector<8x256xf32>
    %267 = arith.addf %247, %266 : vector<8x256xf32>
    %268 = vector.extract_strided_slice %255 {offsets = [8, 0], sizes = [8, 1], strides = [1, 1]} : vector<16x1xf32> to vector<8x1xf32>
    %269 = vector.broadcast %268 : vector<8x1xf32> to vector<8x256xf32>
    %270 = arith.mulf %269, %253 : vector<8x256xf32>
    %271 = arith.addf %267, %270 : vector<8x256xf32>
    %272 = vector.extract_strided_slice %199 {offsets = [0, 0], sizes = [8, 256], strides = [1, 1]} : vector<16x256xf32> to vector<8x256xf32>
    %273 = vector.extract_strided_slice %199 {offsets = [8, 0], sizes = [8, 256], strides = [1, 1]} : vector<16x256xf32> to vector<8x256xf32>
    %274 = vector.extract_strided_slice %24 {offsets = [0, 10], sizes = [16, 1], strides = [1, 1]} : vector<16x49xf32> to vector<16x1xf32>
    %275 = vector.extract_strided_slice %25 {offsets = [0, 10], sizes = [16, 1], strides = [1, 1]} : vector<16x49xf32> to vector<16x1xf32>
    %276 = vector.extract_strided_slice %274 {offsets = [0, 0], sizes = [8, 1], strides = [1, 1]} : vector<16x1xf32> to vector<8x1xf32>
    %277 = vector.broadcast %276 : vector<8x1xf32> to vector<8x256xf32>
    %278 = arith.mulf %277, %272 : vector<8x256xf32>
    %279 = arith.addf %263, %278 : vector<8x256xf32>
    %280 = vector.extract_strided_slice %275 {offsets = [0, 0], sizes = [8, 1], strides = [1, 1]} : vector<16x1xf32> to vector<8x1xf32>
    %281 = vector.broadcast %280 : vector<8x1xf32> to vector<8x256xf32>
    %282 = arith.mulf %281, %273 : vector<8x256xf32>
    %283 = arith.addf %279, %282 : vector<8x256xf32>
    %284 = vector.extract_strided_slice %274 {offsets = [8, 0], sizes = [8, 1], strides = [1, 1]} : vector<16x1xf32> to vector<8x1xf32>
    %285 = vector.broadcast %284 : vector<8x1xf32> to vector<8x256xf32>
    %286 = arith.mulf %285, %272 : vector<8x256xf32>
    %287 = arith.addf %271, %286 : vector<8x256xf32>
    %288 = vector.extract_strided_slice %275 {offsets = [8, 0], sizes = [8, 1], strides = [1, 1]} : vector<16x1xf32> to vector<8x1xf32>
    %289 = vector.broadcast %288 : vector<8x1xf32> to vector<8x256xf32>
    %290 = arith.mulf %289, %273 : vector<8x256xf32>
    %291 = arith.addf %287, %290 : vector<8x256xf32>
    %c255_i32_36 = arith.constant 255 : i32
    %292 = tpu.dynamic_rotate %199 by %c255_i32_36 dim 1 : vector<16x256xf32>, i32 -> vector<16x256xf32>
    %c4_37 = arith.constant 4 : index
    %c0_38 = arith.constant 0 : index
    %293 = vector.load %arg11[%c4_37, %c0_38] : memref<7x256xf32, #tpu.memory_space<vmem>>, vector<1x256xf32>
    %294 = vector.broadcast %293 : vector<1x256xf32> to vector<16x256xf32>
    %295 = arith.mulf %292, %294 : vector<16x256xf32>
    %296 = vector.extract_strided_slice %295 {offsets = [0, 0], sizes = [8, 256], strides = [1, 1]} : vector<16x256xf32> to vector<8x256xf32>
    %297 = vector.extract_strided_slice %295 {offsets = [8, 0], sizes = [8, 256], strides = [1, 1]} : vector<16x256xf32> to vector<8x256xf32>
    %298 = vector.extract_strided_slice %24 {offsets = [0, 11], sizes = [16, 1], strides = [1, 1]} : vector<16x49xf32> to vector<16x1xf32>
    %299 = vector.extract_strided_slice %25 {offsets = [0, 11], sizes = [16, 1], strides = [1, 1]} : vector<16x49xf32> to vector<16x1xf32>
    %300 = vector.extract_strided_slice %298 {offsets = [0, 0], sizes = [8, 1], strides = [1, 1]} : vector<16x1xf32> to vector<8x1xf32>
    %301 = vector.broadcast %300 : vector<8x1xf32> to vector<8x256xf32>
    %302 = arith.mulf %301, %296 : vector<8x256xf32>
    %303 = arith.addf %283, %302 : vector<8x256xf32>
    %304 = vector.extract_strided_slice %299 {offsets = [0, 0], sizes = [8, 1], strides = [1, 1]} : vector<16x1xf32> to vector<8x1xf32>
    %305 = vector.broadcast %304 : vector<8x1xf32> to vector<8x256xf32>
    %306 = arith.mulf %305, %297 : vector<8x256xf32>
    %307 = arith.addf %303, %306 : vector<8x256xf32>
    %308 = vector.extract_strided_slice %298 {offsets = [8, 0], sizes = [8, 1], strides = [1, 1]} : vector<16x1xf32> to vector<8x1xf32>
    %309 = vector.broadcast %308 : vector<8x1xf32> to vector<8x256xf32>
    %310 = arith.mulf %309, %296 : vector<8x256xf32>
    %311 = arith.addf %291, %310 : vector<8x256xf32>
    %312 = vector.extract_strided_slice %299 {offsets = [8, 0], sizes = [8, 1], strides = [1, 1]} : vector<16x1xf32> to vector<8x1xf32>
    %313 = vector.broadcast %312 : vector<8x1xf32> to vector<8x256xf32>
    %314 = arith.mulf %313, %297 : vector<8x256xf32>
    %315 = arith.addf %311, %314 : vector<8x256xf32>
    %c254_i32_39 = arith.constant 254 : i32
    %316 = tpu.dynamic_rotate %199 by %c254_i32_39 dim 1 : vector<16x256xf32>, i32 -> vector<16x256xf32>
    %c5_40 = arith.constant 5 : index
    %c0_41 = arith.constant 0 : index
    %317 = vector.load %arg11[%c5_40, %c0_41] : memref<7x256xf32, #tpu.memory_space<vmem>>, vector<1x256xf32>
    %318 = vector.broadcast %317 : vector<1x256xf32> to vector<16x256xf32>
    %319 = arith.mulf %316, %318 : vector<16x256xf32>
    %320 = vector.extract_strided_slice %319 {offsets = [0, 0], sizes = [8, 256], strides = [1, 1]} : vector<16x256xf32> to vector<8x256xf32>
    %321 = vector.extract_strided_slice %319 {offsets = [8, 0], sizes = [8, 256], strides = [1, 1]} : vector<16x256xf32> to vector<8x256xf32>
    %322 = vector.extract_strided_slice %24 {offsets = [0, 12], sizes = [16, 1], strides = [1, 1]} : vector<16x49xf32> to vector<16x1xf32>
    %323 = vector.extract_strided_slice %25 {offsets = [0, 12], sizes = [16, 1], strides = [1, 1]} : vector<16x49xf32> to vector<16x1xf32>
    %324 = vector.extract_strided_slice %322 {offsets = [0, 0], sizes = [8, 1], strides = [1, 1]} : vector<16x1xf32> to vector<8x1xf32>
    %325 = vector.broadcast %324 : vector<8x1xf32> to vector<8x256xf32>
    %326 = arith.mulf %325, %320 : vector<8x256xf32>
    %327 = arith.addf %307, %326 : vector<8x256xf32>
    %328 = vector.extract_strided_slice %323 {offsets = [0, 0], sizes = [8, 1], strides = [1, 1]} : vector<16x1xf32> to vector<8x1xf32>
    %329 = vector.broadcast %328 : vector<8x1xf32> to vector<8x256xf32>
    %330 = arith.mulf %329, %321 : vector<8x256xf32>
    %331 = arith.addf %327, %330 : vector<8x256xf32>
    %332 = vector.extract_strided_slice %322 {offsets = [8, 0], sizes = [8, 1], strides = [1, 1]} : vector<16x1xf32> to vector<8x1xf32>
    %333 = vector.broadcast %332 : vector<8x1xf32> to vector<8x256xf32>
    %334 = arith.mulf %333, %320 : vector<8x256xf32>
    %335 = arith.addf %315, %334 : vector<8x256xf32>
    %336 = vector.extract_strided_slice %323 {offsets = [8, 0], sizes = [8, 1], strides = [1, 1]} : vector<16x1xf32> to vector<8x1xf32>
    %337 = vector.broadcast %336 : vector<8x1xf32> to vector<8x256xf32>
    %338 = arith.mulf %337, %321 : vector<8x256xf32>
    %339 = arith.addf %335, %338 : vector<8x256xf32>
    %c253_i32_42 = arith.constant 253 : i32
    %340 = tpu.dynamic_rotate %199 by %c253_i32_42 dim 1 : vector<16x256xf32>, i32 -> vector<16x256xf32>
    %c6_43 = arith.constant 6 : index
    %c0_44 = arith.constant 0 : index
    %341 = vector.load %arg11[%c6_43, %c0_44] : memref<7x256xf32, #tpu.memory_space<vmem>>, vector<1x256xf32>
    %342 = vector.broadcast %341 : vector<1x256xf32> to vector<16x256xf32>
    %343 = arith.mulf %340, %342 : vector<16x256xf32>
    %344 = vector.extract_strided_slice %343 {offsets = [0, 0], sizes = [8, 256], strides = [1, 1]} : vector<16x256xf32> to vector<8x256xf32>
    %345 = vector.extract_strided_slice %343 {offsets = [8, 0], sizes = [8, 256], strides = [1, 1]} : vector<16x256xf32> to vector<8x256xf32>
    %346 = vector.extract_strided_slice %24 {offsets = [0, 13], sizes = [16, 1], strides = [1, 1]} : vector<16x49xf32> to vector<16x1xf32>
    %347 = vector.extract_strided_slice %25 {offsets = [0, 13], sizes = [16, 1], strides = [1, 1]} : vector<16x49xf32> to vector<16x1xf32>
    %348 = vector.extract_strided_slice %346 {offsets = [0, 0], sizes = [8, 1], strides = [1, 1]} : vector<16x1xf32> to vector<8x1xf32>
    %349 = vector.broadcast %348 : vector<8x1xf32> to vector<8x256xf32>
    %350 = arith.mulf %349, %344 : vector<8x256xf32>
    %351 = arith.addf %331, %350 : vector<8x256xf32>
    %352 = vector.extract_strided_slice %347 {offsets = [0, 0], sizes = [8, 1], strides = [1, 1]} : vector<16x1xf32> to vector<8x1xf32>
    %353 = vector.broadcast %352 : vector<8x1xf32> to vector<8x256xf32>
    %354 = arith.mulf %353, %345 : vector<8x256xf32>
    %355 = arith.addf %351, %354 : vector<8x256xf32>
    %356 = vector.extract_strided_slice %346 {offsets = [8, 0], sizes = [8, 1], strides = [1, 1]} : vector<16x1xf32> to vector<8x1xf32>
    %357 = vector.broadcast %356 : vector<8x1xf32> to vector<8x256xf32>
    %358 = arith.mulf %357, %344 : vector<8x256xf32>
    %359 = arith.addf %339, %358 : vector<8x256xf32>
    %360 = vector.extract_strided_slice %347 {offsets = [8, 0], sizes = [8, 1], strides = [1, 1]} : vector<16x1xf32> to vector<8x1xf32>
    %361 = vector.broadcast %360 : vector<8x1xf32> to vector<8x256xf32>
    %362 = arith.mulf %361, %345 : vector<8x256xf32>
    %363 = arith.addf %359, %362 : vector<8x256xf32>
    %c16_i32 = arith.constant 16 : i32
    %364 = tpu.dynamic_rotate %23 by %c16_i32 dim 1 : vector<16x256xf32>, i32 -> vector<16x256xf32>
    %c2_45 = arith.constant 2 : index
    %c0_46 = arith.constant 0 : index
    %365 = vector.load %arg10[%c2_45, %c0_46] : memref<7x256xf32, #tpu.memory_space<vmem>>, vector<1x256xf32>
    %366 = vector.broadcast %365 : vector<1x256xf32> to vector<16x256xf32>
    %367 = arith.mulf %364, %366 : vector<16x256xf32>
    %c3_i32_47 = arith.constant 3 : i32
    %368 = tpu.dynamic_rotate %367 by %c3_i32_47 dim 1 : vector<16x256xf32>, i32 -> vector<16x256xf32>
    %c0_48 = arith.constant 0 : index
    %c0_49 = arith.constant 0 : index
    %369 = vector.load %arg11[%c0_48, %c0_49] : memref<7x256xf32, #tpu.memory_space<vmem>>, vector<1x256xf32>
    %370 = vector.broadcast %369 : vector<1x256xf32> to vector<16x256xf32>
    %371 = arith.mulf %368, %370 : vector<16x256xf32>
    %372 = vector.extract_strided_slice %371 {offsets = [0, 0], sizes = [8, 256], strides = [1, 1]} : vector<16x256xf32> to vector<8x256xf32>
    %373 = vector.extract_strided_slice %371 {offsets = [8, 0], sizes = [8, 256], strides = [1, 1]} : vector<16x256xf32> to vector<8x256xf32>
    %374 = vector.extract_strided_slice %24 {offsets = [0, 14], sizes = [16, 1], strides = [1, 1]} : vector<16x49xf32> to vector<16x1xf32>
    %375 = vector.extract_strided_slice %25 {offsets = [0, 14], sizes = [16, 1], strides = [1, 1]} : vector<16x49xf32> to vector<16x1xf32>
    %376 = vector.extract_strided_slice %374 {offsets = [0, 0], sizes = [8, 1], strides = [1, 1]} : vector<16x1xf32> to vector<8x1xf32>
    %377 = vector.broadcast %376 : vector<8x1xf32> to vector<8x256xf32>
    %378 = arith.mulf %377, %372 : vector<8x256xf32>
    %379 = arith.addf %355, %378 : vector<8x256xf32>
    %380 = vector.extract_strided_slice %375 {offsets = [0, 0], sizes = [8, 1], strides = [1, 1]} : vector<16x1xf32> to vector<8x1xf32>
    %381 = vector.broadcast %380 : vector<8x1xf32> to vector<8x256xf32>
    %382 = arith.mulf %381, %373 : vector<8x256xf32>
    %383 = arith.addf %379, %382 : vector<8x256xf32>
    %384 = vector.extract_strided_slice %374 {offsets = [8, 0], sizes = [8, 1], strides = [1, 1]} : vector<16x1xf32> to vector<8x1xf32>
    %385 = vector.broadcast %384 : vector<8x1xf32> to vector<8x256xf32>
    %386 = arith.mulf %385, %372 : vector<8x256xf32>
    %387 = arith.addf %363, %386 : vector<8x256xf32>
    %388 = vector.extract_strided_slice %375 {offsets = [8, 0], sizes = [8, 1], strides = [1, 1]} : vector<16x1xf32> to vector<8x1xf32>
    %389 = vector.broadcast %388 : vector<8x1xf32> to vector<8x256xf32>
    %390 = arith.mulf %389, %373 : vector<8x256xf32>
    %391 = arith.addf %387, %390 : vector<8x256xf32>
    %c2_i32_50 = arith.constant 2 : i32
    %392 = tpu.dynamic_rotate %367 by %c2_i32_50 dim 1 : vector<16x256xf32>, i32 -> vector<16x256xf32>
    %c1_51 = arith.constant 1 : index
    %c0_52 = arith.constant 0 : index
    %393 = vector.load %arg11[%c1_51, %c0_52] : memref<7x256xf32, #tpu.memory_space<vmem>>, vector<1x256xf32>
    %394 = vector.broadcast %393 : vector<1x256xf32> to vector<16x256xf32>
    %395 = arith.mulf %392, %394 : vector<16x256xf32>
    %396 = vector.extract_strided_slice %395 {offsets = [0, 0], sizes = [8, 256], strides = [1, 1]} : vector<16x256xf32> to vector<8x256xf32>
    %397 = vector.extract_strided_slice %395 {offsets = [8, 0], sizes = [8, 256], strides = [1, 1]} : vector<16x256xf32> to vector<8x256xf32>
    %398 = vector.extract_strided_slice %24 {offsets = [0, 15], sizes = [16, 1], strides = [1, 1]} : vector<16x49xf32> to vector<16x1xf32>
    %399 = vector.extract_strided_slice %25 {offsets = [0, 15], sizes = [16, 1], strides = [1, 1]} : vector<16x49xf32> to vector<16x1xf32>
    %400 = vector.extract_strided_slice %398 {offsets = [0, 0], sizes = [8, 1], strides = [1, 1]} : vector<16x1xf32> to vector<8x1xf32>
    %401 = vector.broadcast %400 : vector<8x1xf32> to vector<8x256xf32>
    %402 = arith.mulf %401, %396 : vector<8x256xf32>
    %403 = arith.addf %383, %402 : vector<8x256xf32>
    %404 = vector.extract_strided_slice %399 {offsets = [0, 0], sizes = [8, 1], strides = [1, 1]} : vector<16x1xf32> to vector<8x1xf32>
    %405 = vector.broadcast %404 : vector<8x1xf32> to vector<8x256xf32>
    %406 = arith.mulf %405, %397 : vector<8x256xf32>
    %407 = arith.addf %403, %406 : vector<8x256xf32>
    %408 = vector.extract_strided_slice %398 {offsets = [8, 0], sizes = [8, 1], strides = [1, 1]} : vector<16x1xf32> to vector<8x1xf32>
    %409 = vector.broadcast %408 : vector<8x1xf32> to vector<8x256xf32>
    %410 = arith.mulf %409, %396 : vector<8x256xf32>
    %411 = arith.addf %391, %410 : vector<8x256xf32>
    %412 = vector.extract_strided_slice %399 {offsets = [8, 0], sizes = [8, 1], strides = [1, 1]} : vector<16x1xf32> to vector<8x1xf32>
    %413 = vector.broadcast %412 : vector<8x1xf32> to vector<8x256xf32>
    %414 = arith.mulf %413, %397 : vector<8x256xf32>
    %415 = arith.addf %411, %414 : vector<8x256xf32>
    %c1_i32_53 = arith.constant 1 : i32
    %416 = tpu.dynamic_rotate %367 by %c1_i32_53 dim 1 : vector<16x256xf32>, i32 -> vector<16x256xf32>
    %c2_54 = arith.constant 2 : index
    %c0_55 = arith.constant 0 : index
    %417 = vector.load %arg11[%c2_54, %c0_55] : memref<7x256xf32, #tpu.memory_space<vmem>>, vector<1x256xf32>
    %418 = vector.broadcast %417 : vector<1x256xf32> to vector<16x256xf32>
    %419 = arith.mulf %416, %418 : vector<16x256xf32>
    %420 = vector.extract_strided_slice %419 {offsets = [0, 0], sizes = [8, 256], strides = [1, 1]} : vector<16x256xf32> to vector<8x256xf32>
    %421 = vector.extract_strided_slice %419 {offsets = [8, 0], sizes = [8, 256], strides = [1, 1]} : vector<16x256xf32> to vector<8x256xf32>
    %422 = vector.extract_strided_slice %24 {offsets = [0, 16], sizes = [16, 1], strides = [1, 1]} : vector<16x49xf32> to vector<16x1xf32>
    %423 = vector.extract_strided_slice %25 {offsets = [0, 16], sizes = [16, 1], strides = [1, 1]} : vector<16x49xf32> to vector<16x1xf32>
    %424 = vector.extract_strided_slice %422 {offsets = [0, 0], sizes = [8, 1], strides = [1, 1]} : vector<16x1xf32> to vector<8x1xf32>
    %425 = vector.broadcast %424 : vector<8x1xf32> to vector<8x256xf32>
    %426 = arith.mulf %425, %420 : vector<8x256xf32>
    %427 = arith.addf %407, %426 : vector<8x256xf32>
    %428 = vector.extract_strided_slice %423 {offsets = [0, 0], sizes = [8, 1], strides = [1, 1]} : vector<16x1xf32> to vector<8x1xf32>
    %429 = vector.broadcast %428 : vector<8x1xf32> to vector<8x256xf32>
    %430 = arith.mulf %429, %421 : vector<8x256xf32>
    %431 = arith.addf %427, %430 : vector<8x256xf32>
    %432 = vector.extract_strided_slice %422 {offsets = [8, 0], sizes = [8, 1], strides = [1, 1]} : vector<16x1xf32> to vector<8x1xf32>
    %433 = vector.broadcast %432 : vector<8x1xf32> to vector<8x256xf32>
    %434 = arith.mulf %433, %420 : vector<8x256xf32>
    %435 = arith.addf %415, %434 : vector<8x256xf32>
    %436 = vector.extract_strided_slice %423 {offsets = [8, 0], sizes = [8, 1], strides = [1, 1]} : vector<16x1xf32> to vector<8x1xf32>
    %437 = vector.broadcast %436 : vector<8x1xf32> to vector<8x256xf32>
    %438 = arith.mulf %437, %421 : vector<8x256xf32>
    %439 = arith.addf %435, %438 : vector<8x256xf32>
    %440 = vector.extract_strided_slice %367 {offsets = [0, 0], sizes = [8, 256], strides = [1, 1]} : vector<16x256xf32> to vector<8x256xf32>
    %441 = vector.extract_strided_slice %367 {offsets = [8, 0], sizes = [8, 256], strides = [1, 1]} : vector<16x256xf32> to vector<8x256xf32>
    %442 = vector.extract_strided_slice %24 {offsets = [0, 17], sizes = [16, 1], strides = [1, 1]} : vector<16x49xf32> to vector<16x1xf32>
    %443 = vector.extract_strided_slice %25 {offsets = [0, 17], sizes = [16, 1], strides = [1, 1]} : vector<16x49xf32> to vector<16x1xf32>
    %444 = vector.extract_strided_slice %442 {offsets = [0, 0], sizes = [8, 1], strides = [1, 1]} : vector<16x1xf32> to vector<8x1xf32>
    %445 = vector.broadcast %444 : vector<8x1xf32> to vector<8x256xf32>
    %446 = arith.mulf %445, %440 : vector<8x256xf32>
    %447 = arith.addf %431, %446 : vector<8x256xf32>
    %448 = vector.extract_strided_slice %443 {offsets = [0, 0], sizes = [8, 1], strides = [1, 1]} : vector<16x1xf32> to vector<8x1xf32>
    %449 = vector.broadcast %448 : vector<8x1xf32> to vector<8x256xf32>
    %450 = arith.mulf %449, %441 : vector<8x256xf32>
    %451 = arith.addf %447, %450 : vector<8x256xf32>
    %452 = vector.extract_strided_slice %442 {offsets = [8, 0], sizes = [8, 1], strides = [1, 1]} : vector<16x1xf32> to vector<8x1xf32>
    %453 = vector.broadcast %452 : vector<8x1xf32> to vector<8x256xf32>
    %454 = arith.mulf %453, %440 : vector<8x256xf32>
    %455 = arith.addf %439, %454 : vector<8x256xf32>
    %456 = vector.extract_strided_slice %443 {offsets = [8, 0], sizes = [8, 1], strides = [1, 1]} : vector<16x1xf32> to vector<8x1xf32>
    %457 = vector.broadcast %456 : vector<8x1xf32> to vector<8x256xf32>
    %458 = arith.mulf %457, %441 : vector<8x256xf32>
    %459 = arith.addf %455, %458 : vector<8x256xf32>
    %c255_i32_56 = arith.constant 255 : i32
    %460 = tpu.dynamic_rotate %367 by %c255_i32_56 dim 1 : vector<16x256xf32>, i32 -> vector<16x256xf32>
    %c4_57 = arith.constant 4 : index
    %c0_58 = arith.constant 0 : index
    %461 = vector.load %arg11[%c4_57, %c0_58] : memref<7x256xf32, #tpu.memory_space<vmem>>, vector<1x256xf32>
    %462 = vector.broadcast %461 : vector<1x256xf32> to vector<16x256xf32>
    %463 = arith.mulf %460, %462 : vector<16x256xf32>
    %464 = vector.extract_strided_slice %463 {offsets = [0, 0], sizes = [8, 256], strides = [1, 1]} : vector<16x256xf32> to vector<8x256xf32>
    %465 = vector.extract_strided_slice %463 {offsets = [8, 0], sizes = [8, 256], strides = [1, 1]} : vector<16x256xf32> to vector<8x256xf32>
    %466 = vector.extract_strided_slice %24 {offsets = [0, 18], sizes = [16, 1], strides = [1, 1]} : vector<16x49xf32> to vector<16x1xf32>
    %467 = vector.extract_strided_slice %25 {offsets = [0, 18], sizes = [16, 1], strides = [1, 1]} : vector<16x49xf32> to vector<16x1xf32>
    %468 = vector.extract_strided_slice %466 {offsets = [0, 0], sizes = [8, 1], strides = [1, 1]} : vector<16x1xf32> to vector<8x1xf32>
    %469 = vector.broadcast %468 : vector<8x1xf32> to vector<8x256xf32>
    %470 = arith.mulf %469, %464 : vector<8x256xf32>
    %471 = arith.addf %451, %470 : vector<8x256xf32>
    %472 = vector.extract_strided_slice %467 {offsets = [0, 0], sizes = [8, 1], strides = [1, 1]} : vector<16x1xf32> to vector<8x1xf32>
    %473 = vector.broadcast %472 : vector<8x1xf32> to vector<8x256xf32>
    %474 = arith.mulf %473, %465 : vector<8x256xf32>
    %475 = arith.addf %471, %474 : vector<8x256xf32>
    %476 = vector.extract_strided_slice %466 {offsets = [8, 0], sizes = [8, 1], strides = [1, 1]} : vector<16x1xf32> to vector<8x1xf32>
    %477 = vector.broadcast %476 : vector<8x1xf32> to vector<8x256xf32>
    %478 = arith.mulf %477, %464 : vector<8x256xf32>
    %479 = arith.addf %459, %478 : vector<8x256xf32>
    %480 = vector.extract_strided_slice %467 {offsets = [8, 0], sizes = [8, 1], strides = [1, 1]} : vector<16x1xf32> to vector<8x1xf32>
    %481 = vector.broadcast %480 : vector<8x1xf32> to vector<8x256xf32>
    %482 = arith.mulf %481, %465 : vector<8x256xf32>
    %483 = arith.addf %479, %482 : vector<8x256xf32>
    %c254_i32_59 = arith.constant 254 : i32
    %484 = tpu.dynamic_rotate %367 by %c254_i32_59 dim 1 : vector<16x256xf32>, i32 -> vector<16x256xf32>
    %c5_60 = arith.constant 5 : index
    %c0_61 = arith.constant 0 : index
    %485 = vector.load %arg11[%c5_60, %c0_61] : memref<7x256xf32, #tpu.memory_space<vmem>>, vector<1x256xf32>
    %486 = vector.broadcast %485 : vector<1x256xf32> to vector<16x256xf32>
    %487 = arith.mulf %484, %486 : vector<16x256xf32>
    %488 = vector.extract_strided_slice %487 {offsets = [0, 0], sizes = [8, 256], strides = [1, 1]} : vector<16x256xf32> to vector<8x256xf32>
    %489 = vector.extract_strided_slice %487 {offsets = [8, 0], sizes = [8, 256], strides = [1, 1]} : vector<16x256xf32> to vector<8x256xf32>
    %490 = vector.extract_strided_slice %24 {offsets = [0, 19], sizes = [16, 1], strides = [1, 1]} : vector<16x49xf32> to vector<16x1xf32>
    %491 = vector.extract_strided_slice %25 {offsets = [0, 19], sizes = [16, 1], strides = [1, 1]} : vector<16x49xf32> to vector<16x1xf32>
    %492 = vector.extract_strided_slice %490 {offsets = [0, 0], sizes = [8, 1], strides = [1, 1]} : vector<16x1xf32> to vector<8x1xf32>
    %493 = vector.broadcast %492 : vector<8x1xf32> to vector<8x256xf32>
    %494 = arith.mulf %493, %488 : vector<8x256xf32>
    %495 = arith.addf %475, %494 : vector<8x256xf32>
    %496 = vector.extract_strided_slice %491 {offsets = [0, 0], sizes = [8, 1], strides = [1, 1]} : vector<16x1xf32> to vector<8x1xf32>
    %497 = vector.broadcast %496 : vector<8x1xf32> to vector<8x256xf32>
    %498 = arith.mulf %497, %489 : vector<8x256xf32>
    %499 = arith.addf %495, %498 : vector<8x256xf32>
    %500 = vector.extract_strided_slice %490 {offsets = [8, 0], sizes = [8, 1], strides = [1, 1]} : vector<16x1xf32> to vector<8x1xf32>
    %501 = vector.broadcast %500 : vector<8x1xf32> to vector<8x256xf32>
    %502 = arith.mulf %501, %488 : vector<8x256xf32>
    %503 = arith.addf %483, %502 : vector<8x256xf32>
    %504 = vector.extract_strided_slice %491 {offsets = [8, 0], sizes = [8, 1], strides = [1, 1]} : vector<16x1xf32> to vector<8x1xf32>
    %505 = vector.broadcast %504 : vector<8x1xf32> to vector<8x256xf32>
    %506 = arith.mulf %505, %489 : vector<8x256xf32>
    %507 = arith.addf %503, %506 : vector<8x256xf32>
    %c253_i32_62 = arith.constant 253 : i32
    %508 = tpu.dynamic_rotate %367 by %c253_i32_62 dim 1 : vector<16x256xf32>, i32 -> vector<16x256xf32>
    %c6_63 = arith.constant 6 : index
    %c0_64 = arith.constant 0 : index
    %509 = vector.load %arg11[%c6_63, %c0_64] : memref<7x256xf32, #tpu.memory_space<vmem>>, vector<1x256xf32>
    %510 = vector.broadcast %509 : vector<1x256xf32> to vector<16x256xf32>
    %511 = arith.mulf %508, %510 : vector<16x256xf32>
    %512 = vector.extract_strided_slice %511 {offsets = [0, 0], sizes = [8, 256], strides = [1, 1]} : vector<16x256xf32> to vector<8x256xf32>
    %513 = vector.extract_strided_slice %511 {offsets = [8, 0], sizes = [8, 256], strides = [1, 1]} : vector<16x256xf32> to vector<8x256xf32>
    %514 = vector.extract_strided_slice %24 {offsets = [0, 20], sizes = [16, 1], strides = [1, 1]} : vector<16x49xf32> to vector<16x1xf32>
    %515 = vector.extract_strided_slice %25 {offsets = [0, 20], sizes = [16, 1], strides = [1, 1]} : vector<16x49xf32> to vector<16x1xf32>
    %516 = vector.extract_strided_slice %514 {offsets = [0, 0], sizes = [8, 1], strides = [1, 1]} : vector<16x1xf32> to vector<8x1xf32>
    %517 = vector.broadcast %516 : vector<8x1xf32> to vector<8x256xf32>
    %518 = arith.mulf %517, %512 : vector<8x256xf32>
    %519 = arith.addf %499, %518 : vector<8x256xf32>
    %520 = vector.extract_strided_slice %515 {offsets = [0, 0], sizes = [8, 1], strides = [1, 1]} : vector<16x1xf32> to vector<8x1xf32>
    %521 = vector.broadcast %520 : vector<8x1xf32> to vector<8x256xf32>
    %522 = arith.mulf %521, %513 : vector<8x256xf32>
    %523 = arith.addf %519, %522 : vector<8x256xf32>
    %524 = vector.extract_strided_slice %514 {offsets = [8, 0], sizes = [8, 1], strides = [1, 1]} : vector<16x1xf32> to vector<8x1xf32>
    %525 = vector.broadcast %524 : vector<8x1xf32> to vector<8x256xf32>
    %526 = arith.mulf %525, %512 : vector<8x256xf32>
    %527 = arith.addf %507, %526 : vector<8x256xf32>
    %528 = vector.extract_strided_slice %515 {offsets = [8, 0], sizes = [8, 1], strides = [1, 1]} : vector<16x1xf32> to vector<8x1xf32>
    %529 = vector.broadcast %528 : vector<8x1xf32> to vector<8x256xf32>
    %530 = arith.mulf %529, %513 : vector<8x256xf32>
    %531 = arith.addf %527, %530 : vector<8x256xf32>
    %c3_i32_65 = arith.constant 3 : i32
    %532 = tpu.dynamic_rotate %23 by %c3_i32_65 dim 1 : vector<16x256xf32>, i32 -> vector<16x256xf32>
    %c0_66 = arith.constant 0 : index
    %c0_67 = arith.constant 0 : index
    %533 = vector.load %arg11[%c0_66, %c0_67] : memref<7x256xf32, #tpu.memory_space<vmem>>, vector<1x256xf32>
    %534 = vector.broadcast %533 : vector<1x256xf32> to vector<16x256xf32>
    %535 = arith.mulf %532, %534 : vector<16x256xf32>
    %536 = vector.extract_strided_slice %535 {offsets = [0, 0], sizes = [8, 256], strides = [1, 1]} : vector<16x256xf32> to vector<8x256xf32>
    %537 = vector.extract_strided_slice %535 {offsets = [8, 0], sizes = [8, 256], strides = [1, 1]} : vector<16x256xf32> to vector<8x256xf32>
    %538 = vector.extract_strided_slice %24 {offsets = [0, 21], sizes = [16, 1], strides = [1, 1]} : vector<16x49xf32> to vector<16x1xf32>
    %539 = vector.extract_strided_slice %25 {offsets = [0, 21], sizes = [16, 1], strides = [1, 1]} : vector<16x49xf32> to vector<16x1xf32>
    %540 = vector.extract_strided_slice %538 {offsets = [0, 0], sizes = [8, 1], strides = [1, 1]} : vector<16x1xf32> to vector<8x1xf32>
    %541 = vector.broadcast %540 : vector<8x1xf32> to vector<8x256xf32>
    %542 = arith.mulf %541, %536 : vector<8x256xf32>
    %543 = arith.addf %523, %542 : vector<8x256xf32>
    %544 = vector.extract_strided_slice %539 {offsets = [0, 0], sizes = [8, 1], strides = [1, 1]} : vector<16x1xf32> to vector<8x1xf32>
    %545 = vector.broadcast %544 : vector<8x1xf32> to vector<8x256xf32>
    %546 = arith.mulf %545, %537 : vector<8x256xf32>
    %547 = arith.addf %543, %546 : vector<8x256xf32>
    %548 = vector.extract_strided_slice %538 {offsets = [8, 0], sizes = [8, 1], strides = [1, 1]} : vector<16x1xf32> to vector<8x1xf32>
    %549 = vector.broadcast %548 : vector<8x1xf32> to vector<8x256xf32>
    %550 = arith.mulf %549, %536 : vector<8x256xf32>
    %551 = arith.addf %531, %550 : vector<8x256xf32>
    %552 = vector.extract_strided_slice %539 {offsets = [8, 0], sizes = [8, 1], strides = [1, 1]} : vector<16x1xf32> to vector<8x1xf32>
    %553 = vector.broadcast %552 : vector<8x1xf32> to vector<8x256xf32>
    %554 = arith.mulf %553, %537 : vector<8x256xf32>
    %555 = arith.addf %551, %554 : vector<8x256xf32>
    %c2_i32_68 = arith.constant 2 : i32
    %556 = tpu.dynamic_rotate %23 by %c2_i32_68 dim 1 : vector<16x256xf32>, i32 -> vector<16x256xf32>
    %c1_69 = arith.constant 1 : index
    %c0_70 = arith.constant 0 : index
    %557 = vector.load %arg11[%c1_69, %c0_70] : memref<7x256xf32, #tpu.memory_space<vmem>>, vector<1x256xf32>
    %558 = vector.broadcast %557 : vector<1x256xf32> to vector<16x256xf32>
    %559 = arith.mulf %556, %558 : vector<16x256xf32>
    %560 = vector.extract_strided_slice %559 {offsets = [0, 0], sizes = [8, 256], strides = [1, 1]} : vector<16x256xf32> to vector<8x256xf32>
    %561 = vector.extract_strided_slice %559 {offsets = [8, 0], sizes = [8, 256], strides = [1, 1]} : vector<16x256xf32> to vector<8x256xf32>
    %562 = vector.extract_strided_slice %24 {offsets = [0, 22], sizes = [16, 1], strides = [1, 1]} : vector<16x49xf32> to vector<16x1xf32>
    %563 = vector.extract_strided_slice %25 {offsets = [0, 22], sizes = [16, 1], strides = [1, 1]} : vector<16x49xf32> to vector<16x1xf32>
    %564 = vector.extract_strided_slice %562 {offsets = [0, 0], sizes = [8, 1], strides = [1, 1]} : vector<16x1xf32> to vector<8x1xf32>
    %565 = vector.broadcast %564 : vector<8x1xf32> to vector<8x256xf32>
    %566 = arith.mulf %565, %560 : vector<8x256xf32>
    %567 = arith.addf %547, %566 : vector<8x256xf32>
    %568 = vector.extract_strided_slice %563 {offsets = [0, 0], sizes = [8, 1], strides = [1, 1]} : vector<16x1xf32> to vector<8x1xf32>
    %569 = vector.broadcast %568 : vector<8x1xf32> to vector<8x256xf32>
    %570 = arith.mulf %569, %561 : vector<8x256xf32>
    %571 = arith.addf %567, %570 : vector<8x256xf32>
    %572 = vector.extract_strided_slice %562 {offsets = [8, 0], sizes = [8, 1], strides = [1, 1]} : vector<16x1xf32> to vector<8x1xf32>
    %573 = vector.broadcast %572 : vector<8x1xf32> to vector<8x256xf32>
    %574 = arith.mulf %573, %560 : vector<8x256xf32>
    %575 = arith.addf %555, %574 : vector<8x256xf32>
    %576 = vector.extract_strided_slice %563 {offsets = [8, 0], sizes = [8, 1], strides = [1, 1]} : vector<16x1xf32> to vector<8x1xf32>
    %577 = vector.broadcast %576 : vector<8x1xf32> to vector<8x256xf32>
    %578 = arith.mulf %577, %561 : vector<8x256xf32>
    %579 = arith.addf %575, %578 : vector<8x256xf32>
    %c1_i32_71 = arith.constant 1 : i32
    %580 = tpu.dynamic_rotate %23 by %c1_i32_71 dim 1 : vector<16x256xf32>, i32 -> vector<16x256xf32>
    %c2_72 = arith.constant 2 : index
    %c0_73 = arith.constant 0 : index
    %581 = vector.load %arg11[%c2_72, %c0_73] : memref<7x256xf32, #tpu.memory_space<vmem>>, vector<1x256xf32>
    %582 = vector.broadcast %581 : vector<1x256xf32> to vector<16x256xf32>
    %583 = arith.mulf %580, %582 : vector<16x256xf32>
    %584 = vector.extract_strided_slice %583 {offsets = [0, 0], sizes = [8, 256], strides = [1, 1]} : vector<16x256xf32> to vector<8x256xf32>
    %585 = vector.extract_strided_slice %583 {offsets = [8, 0], sizes = [8, 256], strides = [1, 1]} : vector<16x256xf32> to vector<8x256xf32>
    %586 = vector.extract_strided_slice %24 {offsets = [0, 23], sizes = [16, 1], strides = [1, 1]} : vector<16x49xf32> to vector<16x1xf32>
    %587 = vector.extract_strided_slice %25 {offsets = [0, 23], sizes = [16, 1], strides = [1, 1]} : vector<16x49xf32> to vector<16x1xf32>
    %588 = vector.extract_strided_slice %586 {offsets = [0, 0], sizes = [8, 1], strides = [1, 1]} : vector<16x1xf32> to vector<8x1xf32>
    %589 = vector.broadcast %588 : vector<8x1xf32> to vector<8x256xf32>
    %590 = arith.mulf %589, %584 : vector<8x256xf32>
    %591 = arith.addf %571, %590 : vector<8x256xf32>
    %592 = vector.extract_strided_slice %587 {offsets = [0, 0], sizes = [8, 1], strides = [1, 1]} : vector<16x1xf32> to vector<8x1xf32>
    %593 = vector.broadcast %592 : vector<8x1xf32> to vector<8x256xf32>
    %594 = arith.mulf %593, %585 : vector<8x256xf32>
    %595 = arith.addf %591, %594 : vector<8x256xf32>
    %596 = vector.extract_strided_slice %586 {offsets = [8, 0], sizes = [8, 1], strides = [1, 1]} : vector<16x1xf32> to vector<8x1xf32>
    %597 = vector.broadcast %596 : vector<8x1xf32> to vector<8x256xf32>
    %598 = arith.mulf %597, %584 : vector<8x256xf32>
    %599 = arith.addf %579, %598 : vector<8x256xf32>
    %600 = vector.extract_strided_slice %587 {offsets = [8, 0], sizes = [8, 1], strides = [1, 1]} : vector<16x1xf32> to vector<8x1xf32>
    %601 = vector.broadcast %600 : vector<8x1xf32> to vector<8x256xf32>
    %602 = arith.mulf %601, %585 : vector<8x256xf32>
    %603 = arith.addf %599, %602 : vector<8x256xf32>
    %604 = vector.extract_strided_slice %23 {offsets = [0, 0], sizes = [8, 256], strides = [1, 1]} : vector<16x256xf32> to vector<8x256xf32>
    %605 = vector.extract_strided_slice %23 {offsets = [8, 0], sizes = [8, 256], strides = [1, 1]} : vector<16x256xf32> to vector<8x256xf32>
    %606 = vector.extract_strided_slice %24 {offsets = [0, 24], sizes = [16, 1], strides = [1, 1]} : vector<16x49xf32> to vector<16x1xf32>
    %607 = vector.extract_strided_slice %25 {offsets = [0, 24], sizes = [16, 1], strides = [1, 1]} : vector<16x49xf32> to vector<16x1xf32>
    %608 = vector.extract_strided_slice %606 {offsets = [0, 0], sizes = [8, 1], strides = [1, 1]} : vector<16x1xf32> to vector<8x1xf32>
    %609 = vector.broadcast %608 : vector<8x1xf32> to vector<8x256xf32>
    %610 = arith.mulf %609, %604 : vector<8x256xf32>
    %611 = arith.addf %595, %610 : vector<8x256xf32>
    %612 = vector.extract_strided_slice %607 {offsets = [0, 0], sizes = [8, 1], strides = [1, 1]} : vector<16x1xf32> to vector<8x1xf32>
    %613 = vector.broadcast %612 : vector<8x1xf32> to vector<8x256xf32>
    %614 = arith.mulf %613, %605 : vector<8x256xf32>
    %615 = arith.addf %611, %614 : vector<8x256xf32>
    %616 = vector.extract_strided_slice %606 {offsets = [8, 0], sizes = [8, 1], strides = [1, 1]} : vector<16x1xf32> to vector<8x1xf32>
    %617 = vector.broadcast %616 : vector<8x1xf32> to vector<8x256xf32>
    %618 = arith.mulf %617, %604 : vector<8x256xf32>
    %619 = arith.addf %603, %618 : vector<8x256xf32>
    %620 = vector.extract_strided_slice %607 {offsets = [8, 0], sizes = [8, 1], strides = [1, 1]} : vector<16x1xf32> to vector<8x1xf32>
    %621 = vector.broadcast %620 : vector<8x1xf32> to vector<8x256xf32>
    %622 = arith.mulf %621, %605 : vector<8x256xf32>
    %623 = arith.addf %619, %622 : vector<8x256xf32>
    %c255_i32_74 = arith.constant 255 : i32
    %624 = tpu.dynamic_rotate %23 by %c255_i32_74 dim 1 : vector<16x256xf32>, i32 -> vector<16x256xf32>
    %c4_75 = arith.constant 4 : index
    %c0_76 = arith.constant 0 : index
    %625 = vector.load %arg11[%c4_75, %c0_76] : memref<7x256xf32, #tpu.memory_space<vmem>>, vector<1x256xf32>
    %626 = vector.broadcast %625 : vector<1x256xf32> to vector<16x256xf32>
    %627 = arith.mulf %624, %626 : vector<16x256xf32>
    %628 = vector.extract_strided_slice %627 {offsets = [0, 0], sizes = [8, 256], strides = [1, 1]} : vector<16x256xf32> to vector<8x256xf32>
    %629 = vector.extract_strided_slice %627 {offsets = [8, 0], sizes = [8, 256], strides = [1, 1]} : vector<16x256xf32> to vector<8x256xf32>
    %630 = vector.extract_strided_slice %24 {offsets = [0, 25], sizes = [16, 1], strides = [1, 1]} : vector<16x49xf32> to vector<16x1xf32>
    %631 = vector.extract_strided_slice %25 {offsets = [0, 25], sizes = [16, 1], strides = [1, 1]} : vector<16x49xf32> to vector<16x1xf32>
    %632 = vector.extract_strided_slice %630 {offsets = [0, 0], sizes = [8, 1], strides = [1, 1]} : vector<16x1xf32> to vector<8x1xf32>
    %633 = vector.broadcast %632 : vector<8x1xf32> to vector<8x256xf32>
    %634 = arith.mulf %633, %628 : vector<8x256xf32>
    %635 = arith.addf %615, %634 : vector<8x256xf32>
    %636 = vector.extract_strided_slice %631 {offsets = [0, 0], sizes = [8, 1], strides = [1, 1]} : vector<16x1xf32> to vector<8x1xf32>
    %637 = vector.broadcast %636 : vector<8x1xf32> to vector<8x256xf32>
    %638 = arith.mulf %637, %629 : vector<8x256xf32>
    %639 = arith.addf %635, %638 : vector<8x256xf32>
    %640 = vector.extract_strided_slice %630 {offsets = [8, 0], sizes = [8, 1], strides = [1, 1]} : vector<16x1xf32> to vector<8x1xf32>
    %641 = vector.broadcast %640 : vector<8x1xf32> to vector<8x256xf32>
    %642 = arith.mulf %641, %628 : vector<8x256xf32>
    %643 = arith.addf %623, %642 : vector<8x256xf32>
    %644 = vector.extract_strided_slice %631 {offsets = [8, 0], sizes = [8, 1], strides = [1, 1]} : vector<16x1xf32> to vector<8x1xf32>
    %645 = vector.broadcast %644 : vector<8x1xf32> to vector<8x256xf32>
    %646 = arith.mulf %645, %629 : vector<8x256xf32>
    %647 = arith.addf %643, %646 : vector<8x256xf32>
    %c254_i32_77 = arith.constant 254 : i32
    %648 = tpu.dynamic_rotate %23 by %c254_i32_77 dim 1 : vector<16x256xf32>, i32 -> vector<16x256xf32>
    %c5_78 = arith.constant 5 : index
    %c0_79 = arith.constant 0 : index
    %649 = vector.load %arg11[%c5_78, %c0_79] : memref<7x256xf32, #tpu.memory_space<vmem>>, vector<1x256xf32>
    %650 = vector.broadcast %649 : vector<1x256xf32> to vector<16x256xf32>
    %651 = arith.mulf %648, %650 : vector<16x256xf32>
    %652 = vector.extract_strided_slice %651 {offsets = [0, 0], sizes = [8, 256], strides = [1, 1]} : vector<16x256xf32> to vector<8x256xf32>
    %653 = vector.extract_strided_slice %651 {offsets = [8, 0], sizes = [8, 256], strides = [1, 1]} : vector<16x256xf32> to vector<8x256xf32>
    %654 = vector.extract_strided_slice %24 {offsets = [0, 26], sizes = [16, 1], strides = [1, 1]} : vector<16x49xf32> to vector<16x1xf32>
    %655 = vector.extract_strided_slice %25 {offsets = [0, 26], sizes = [16, 1], strides = [1, 1]} : vector<16x49xf32> to vector<16x1xf32>
    %656 = vector.extract_strided_slice %654 {offsets = [0, 0], sizes = [8, 1], strides = [1, 1]} : vector<16x1xf32> to vector<8x1xf32>
    %657 = vector.broadcast %656 : vector<8x1xf32> to vector<8x256xf32>
    %658 = arith.mulf %657, %652 : vector<8x256xf32>
    %659 = arith.addf %639, %658 : vector<8x256xf32>
    %660 = vector.extract_strided_slice %655 {offsets = [0, 0], sizes = [8, 1], strides = [1, 1]} : vector<16x1xf32> to vector<8x1xf32>
    %661 = vector.broadcast %660 : vector<8x1xf32> to vector<8x256xf32>
    %662 = arith.mulf %661, %653 : vector<8x256xf32>
    %663 = arith.addf %659, %662 : vector<8x256xf32>
    %664 = vector.extract_strided_slice %654 {offsets = [8, 0], sizes = [8, 1], strides = [1, 1]} : vector<16x1xf32> to vector<8x1xf32>
    %665 = vector.broadcast %664 : vector<8x1xf32> to vector<8x256xf32>
    %666 = arith.mulf %665, %652 : vector<8x256xf32>
    %667 = arith.addf %647, %666 : vector<8x256xf32>
    %668 = vector.extract_strided_slice %655 {offsets = [8, 0], sizes = [8, 1], strides = [1, 1]} : vector<16x1xf32> to vector<8x1xf32>
    %669 = vector.broadcast %668 : vector<8x1xf32> to vector<8x256xf32>
    %670 = arith.mulf %669, %653 : vector<8x256xf32>
    %671 = arith.addf %667, %670 : vector<8x256xf32>
    %c253_i32_80 = arith.constant 253 : i32
    %672 = tpu.dynamic_rotate %23 by %c253_i32_80 dim 1 : vector<16x256xf32>, i32 -> vector<16x256xf32>
    %c6_81 = arith.constant 6 : index
    %c0_82 = arith.constant 0 : index
    %673 = vector.load %arg11[%c6_81, %c0_82] : memref<7x256xf32, #tpu.memory_space<vmem>>, vector<1x256xf32>
    %674 = vector.broadcast %673 : vector<1x256xf32> to vector<16x256xf32>
    %675 = arith.mulf %672, %674 : vector<16x256xf32>
    %676 = vector.extract_strided_slice %675 {offsets = [0, 0], sizes = [8, 256], strides = [1, 1]} : vector<16x256xf32> to vector<8x256xf32>
    %677 = vector.extract_strided_slice %675 {offsets = [8, 0], sizes = [8, 256], strides = [1, 1]} : vector<16x256xf32> to vector<8x256xf32>
    %678 = vector.extract_strided_slice %24 {offsets = [0, 27], sizes = [16, 1], strides = [1, 1]} : vector<16x49xf32> to vector<16x1xf32>
    %679 = vector.extract_strided_slice %25 {offsets = [0, 27], sizes = [16, 1], strides = [1, 1]} : vector<16x49xf32> to vector<16x1xf32>
    %680 = vector.extract_strided_slice %678 {offsets = [0, 0], sizes = [8, 1], strides = [1, 1]} : vector<16x1xf32> to vector<8x1xf32>
    %681 = vector.broadcast %680 : vector<8x1xf32> to vector<8x256xf32>
    %682 = arith.mulf %681, %676 : vector<8x256xf32>
    %683 = arith.addf %663, %682 : vector<8x256xf32>
    %684 = vector.extract_strided_slice %679 {offsets = [0, 0], sizes = [8, 1], strides = [1, 1]} : vector<16x1xf32> to vector<8x1xf32>
    %685 = vector.broadcast %684 : vector<8x1xf32> to vector<8x256xf32>
    %686 = arith.mulf %685, %677 : vector<8x256xf32>
    %687 = arith.addf %683, %686 : vector<8x256xf32>
    %688 = vector.extract_strided_slice %678 {offsets = [8, 0], sizes = [8, 1], strides = [1, 1]} : vector<16x1xf32> to vector<8x1xf32>
    %689 = vector.broadcast %688 : vector<8x1xf32> to vector<8x256xf32>
    %690 = arith.mulf %689, %676 : vector<8x256xf32>
    %691 = arith.addf %671, %690 : vector<8x256xf32>
    %692 = vector.extract_strided_slice %679 {offsets = [8, 0], sizes = [8, 1], strides = [1, 1]} : vector<16x1xf32> to vector<8x1xf32>
    %693 = vector.broadcast %692 : vector<8x1xf32> to vector<8x256xf32>
    %694 = arith.mulf %693, %677 : vector<8x256xf32>
    %695 = arith.addf %691, %694 : vector<8x256xf32>
    %c240_i32 = arith.constant 240 : i32
    %696 = tpu.dynamic_rotate %23 by %c240_i32 dim 1 : vector<16x256xf32>, i32 -> vector<16x256xf32>
    %c4_83 = arith.constant 4 : index
    %c0_84 = arith.constant 0 : index
    %697 = vector.load %arg10[%c4_83, %c0_84] : memref<7x256xf32, #tpu.memory_space<vmem>>, vector<1x256xf32>
    %698 = vector.broadcast %697 : vector<1x256xf32> to vector<16x256xf32>
    %699 = arith.mulf %696, %698 : vector<16x256xf32>
    %c3_i32_85 = arith.constant 3 : i32
    %700 = tpu.dynamic_rotate %699 by %c3_i32_85 dim 1 : vector<16x256xf32>, i32 -> vector<16x256xf32>
    %c0_86 = arith.constant 0 : index
    %c0_87 = arith.constant 0 : index
    %701 = vector.load %arg11[%c0_86, %c0_87] : memref<7x256xf32, #tpu.memory_space<vmem>>, vector<1x256xf32>
    %702 = vector.broadcast %701 : vector<1x256xf32> to vector<16x256xf32>
    %703 = arith.mulf %700, %702 : vector<16x256xf32>
    %704 = vector.extract_strided_slice %703 {offsets = [0, 0], sizes = [8, 256], strides = [1, 1]} : vector<16x256xf32> to vector<8x256xf32>
    %705 = vector.extract_strided_slice %703 {offsets = [8, 0], sizes = [8, 256], strides = [1, 1]} : vector<16x256xf32> to vector<8x256xf32>
    %706 = vector.extract_strided_slice %24 {offsets = [0, 28], sizes = [16, 1], strides = [1, 1]} : vector<16x49xf32> to vector<16x1xf32>
    %707 = vector.extract_strided_slice %25 {offsets = [0, 28], sizes = [16, 1], strides = [1, 1]} : vector<16x49xf32> to vector<16x1xf32>
    %708 = vector.extract_strided_slice %706 {offsets = [0, 0], sizes = [8, 1], strides = [1, 1]} : vector<16x1xf32> to vector<8x1xf32>
    %709 = vector.broadcast %708 : vector<8x1xf32> to vector<8x256xf32>
    %710 = arith.mulf %709, %704 : vector<8x256xf32>
    %711 = arith.addf %687, %710 : vector<8x256xf32>
    %712 = vector.extract_strided_slice %707 {offsets = [0, 0], sizes = [8, 1], strides = [1, 1]} : vector<16x1xf32> to vector<8x1xf32>
    %713 = vector.broadcast %712 : vector<8x1xf32> to vector<8x256xf32>
    %714 = arith.mulf %713, %705 : vector<8x256xf32>
    %715 = arith.addf %711, %714 : vector<8x256xf32>
    %716 = vector.extract_strided_slice %706 {offsets = [8, 0], sizes = [8, 1], strides = [1, 1]} : vector<16x1xf32> to vector<8x1xf32>
    %717 = vector.broadcast %716 : vector<8x1xf32> to vector<8x256xf32>
    %718 = arith.mulf %717, %704 : vector<8x256xf32>
    %719 = arith.addf %695, %718 : vector<8x256xf32>
    %720 = vector.extract_strided_slice %707 {offsets = [8, 0], sizes = [8, 1], strides = [1, 1]} : vector<16x1xf32> to vector<8x1xf32>
    %721 = vector.broadcast %720 : vector<8x1xf32> to vector<8x256xf32>
    %722 = arith.mulf %721, %705 : vector<8x256xf32>
    %723 = arith.addf %719, %722 : vector<8x256xf32>
    %c2_i32_88 = arith.constant 2 : i32
    %724 = tpu.dynamic_rotate %699 by %c2_i32_88 dim 1 : vector<16x256xf32>, i32 -> vector<16x256xf32>
    %c1_89 = arith.constant 1 : index
    %c0_90 = arith.constant 0 : index
    %725 = vector.load %arg11[%c1_89, %c0_90] : memref<7x256xf32, #tpu.memory_space<vmem>>, vector<1x256xf32>
    %726 = vector.broadcast %725 : vector<1x256xf32> to vector<16x256xf32>
    %727 = arith.mulf %724, %726 : vector<16x256xf32>
    %728 = vector.extract_strided_slice %727 {offsets = [0, 0], sizes = [8, 256], strides = [1, 1]} : vector<16x256xf32> to vector<8x256xf32>
    %729 = vector.extract_strided_slice %727 {offsets = [8, 0], sizes = [8, 256], strides = [1, 1]} : vector<16x256xf32> to vector<8x256xf32>
    %730 = vector.extract_strided_slice %24 {offsets = [0, 29], sizes = [16, 1], strides = [1, 1]} : vector<16x49xf32> to vector<16x1xf32>
    %731 = vector.extract_strided_slice %25 {offsets = [0, 29], sizes = [16, 1], strides = [1, 1]} : vector<16x49xf32> to vector<16x1xf32>
    %732 = vector.extract_strided_slice %730 {offsets = [0, 0], sizes = [8, 1], strides = [1, 1]} : vector<16x1xf32> to vector<8x1xf32>
    %733 = vector.broadcast %732 : vector<8x1xf32> to vector<8x256xf32>
    %734 = arith.mulf %733, %728 : vector<8x256xf32>
    %735 = arith.addf %715, %734 : vector<8x256xf32>
    %736 = vector.extract_strided_slice %731 {offsets = [0, 0], sizes = [8, 1], strides = [1, 1]} : vector<16x1xf32> to vector<8x1xf32>
    %737 = vector.broadcast %736 : vector<8x1xf32> to vector<8x256xf32>
    %738 = arith.mulf %737, %729 : vector<8x256xf32>
    %739 = arith.addf %735, %738 : vector<8x256xf32>
    %740 = vector.extract_strided_slice %730 {offsets = [8, 0], sizes = [8, 1], strides = [1, 1]} : vector<16x1xf32> to vector<8x1xf32>
    %741 = vector.broadcast %740 : vector<8x1xf32> to vector<8x256xf32>
    %742 = arith.mulf %741, %728 : vector<8x256xf32>
    %743 = arith.addf %723, %742 : vector<8x256xf32>
    %744 = vector.extract_strided_slice %731 {offsets = [8, 0], sizes = [8, 1], strides = [1, 1]} : vector<16x1xf32> to vector<8x1xf32>
    %745 = vector.broadcast %744 : vector<8x1xf32> to vector<8x256xf32>
    %746 = arith.mulf %745, %729 : vector<8x256xf32>
    %747 = arith.addf %743, %746 : vector<8x256xf32>
    %c1_i32_91 = arith.constant 1 : i32
    %748 = tpu.dynamic_rotate %699 by %c1_i32_91 dim 1 : vector<16x256xf32>, i32 -> vector<16x256xf32>
    %c2_92 = arith.constant 2 : index
    %c0_93 = arith.constant 0 : index
    %749 = vector.load %arg11[%c2_92, %c0_93] : memref<7x256xf32, #tpu.memory_space<vmem>>, vector<1x256xf32>
    %750 = vector.broadcast %749 : vector<1x256xf32> to vector<16x256xf32>
    %751 = arith.mulf %748, %750 : vector<16x256xf32>
    %752 = vector.extract_strided_slice %751 {offsets = [0, 0], sizes = [8, 256], strides = [1, 1]} : vector<16x256xf32> to vector<8x256xf32>
    %753 = vector.extract_strided_slice %751 {offsets = [8, 0], sizes = [8, 256], strides = [1, 1]} : vector<16x256xf32> to vector<8x256xf32>
    %754 = vector.extract_strided_slice %24 {offsets = [0, 30], sizes = [16, 1], strides = [1, 1]} : vector<16x49xf32> to vector<16x1xf32>
    %755 = vector.extract_strided_slice %25 {offsets = [0, 30], sizes = [16, 1], strides = [1, 1]} : vector<16x49xf32> to vector<16x1xf32>
    %756 = vector.extract_strided_slice %754 {offsets = [0, 0], sizes = [8, 1], strides = [1, 1]} : vector<16x1xf32> to vector<8x1xf32>
    %757 = vector.broadcast %756 : vector<8x1xf32> to vector<8x256xf32>
    %758 = arith.mulf %757, %752 : vector<8x256xf32>
    %759 = arith.addf %739, %758 : vector<8x256xf32>
    %760 = vector.extract_strided_slice %755 {offsets = [0, 0], sizes = [8, 1], strides = [1, 1]} : vector<16x1xf32> to vector<8x1xf32>
    %761 = vector.broadcast %760 : vector<8x1xf32> to vector<8x256xf32>
    %762 = arith.mulf %761, %753 : vector<8x256xf32>
    %763 = arith.addf %759, %762 : vector<8x256xf32>
    %764 = vector.extract_strided_slice %754 {offsets = [8, 0], sizes = [8, 1], strides = [1, 1]} : vector<16x1xf32> to vector<8x1xf32>
    %765 = vector.broadcast %764 : vector<8x1xf32> to vector<8x256xf32>
    %766 = arith.mulf %765, %752 : vector<8x256xf32>
    %767 = arith.addf %747, %766 : vector<8x256xf32>
    %768 = vector.extract_strided_slice %755 {offsets = [8, 0], sizes = [8, 1], strides = [1, 1]} : vector<16x1xf32> to vector<8x1xf32>
    %769 = vector.broadcast %768 : vector<8x1xf32> to vector<8x256xf32>
    %770 = arith.mulf %769, %753 : vector<8x256xf32>
    %771 = arith.addf %767, %770 : vector<8x256xf32>
    %772 = vector.extract_strided_slice %699 {offsets = [0, 0], sizes = [8, 256], strides = [1, 1]} : vector<16x256xf32> to vector<8x256xf32>
    %773 = vector.extract_strided_slice %699 {offsets = [8, 0], sizes = [8, 256], strides = [1, 1]} : vector<16x256xf32> to vector<8x256xf32>
    %774 = vector.extract_strided_slice %24 {offsets = [0, 31], sizes = [16, 1], strides = [1, 1]} : vector<16x49xf32> to vector<16x1xf32>
    %775 = vector.extract_strided_slice %25 {offsets = [0, 31], sizes = [16, 1], strides = [1, 1]} : vector<16x49xf32> to vector<16x1xf32>
    %776 = vector.extract_strided_slice %774 {offsets = [0, 0], sizes = [8, 1], strides = [1, 1]} : vector<16x1xf32> to vector<8x1xf32>
    %777 = vector.broadcast %776 : vector<8x1xf32> to vector<8x256xf32>
    %778 = arith.mulf %777, %772 : vector<8x256xf32>
    %779 = arith.addf %763, %778 : vector<8x256xf32>
    %780 = vector.extract_strided_slice %775 {offsets = [0, 0], sizes = [8, 1], strides = [1, 1]} : vector<16x1xf32> to vector<8x1xf32>
    %781 = vector.broadcast %780 : vector<8x1xf32> to vector<8x256xf32>
    %782 = arith.mulf %781, %773 : vector<8x256xf32>
    %783 = arith.addf %779, %782 : vector<8x256xf32>
    %784 = vector.extract_strided_slice %774 {offsets = [8, 0], sizes = [8, 1], strides = [1, 1]} : vector<16x1xf32> to vector<8x1xf32>
    %785 = vector.broadcast %784 : vector<8x1xf32> to vector<8x256xf32>
    %786 = arith.mulf %785, %772 : vector<8x256xf32>
    %787 = arith.addf %771, %786 : vector<8x256xf32>
    %788 = vector.extract_strided_slice %775 {offsets = [8, 0], sizes = [8, 1], strides = [1, 1]} : vector<16x1xf32> to vector<8x1xf32>
    %789 = vector.broadcast %788 : vector<8x1xf32> to vector<8x256xf32>
    %790 = arith.mulf %789, %773 : vector<8x256xf32>
    %791 = arith.addf %787, %790 : vector<8x256xf32>
    %c255_i32_94 = arith.constant 255 : i32
    %792 = tpu.dynamic_rotate %699 by %c255_i32_94 dim 1 : vector<16x256xf32>, i32 -> vector<16x256xf32>
    %c4_95 = arith.constant 4 : index
    %c0_96 = arith.constant 0 : index
    %793 = vector.load %arg11[%c4_95, %c0_96] : memref<7x256xf32, #tpu.memory_space<vmem>>, vector<1x256xf32>
    %794 = vector.broadcast %793 : vector<1x256xf32> to vector<16x256xf32>
    %795 = arith.mulf %792, %794 : vector<16x256xf32>
    %796 = vector.extract_strided_slice %795 {offsets = [0, 0], sizes = [8, 256], strides = [1, 1]} : vector<16x256xf32> to vector<8x256xf32>
    %797 = vector.extract_strided_slice %795 {offsets = [8, 0], sizes = [8, 256], strides = [1, 1]} : vector<16x256xf32> to vector<8x256xf32>
    %798 = vector.extract_strided_slice %24 {offsets = [0, 32], sizes = [16, 1], strides = [1, 1]} : vector<16x49xf32> to vector<16x1xf32>
    %799 = vector.extract_strided_slice %25 {offsets = [0, 32], sizes = [16, 1], strides = [1, 1]} : vector<16x49xf32> to vector<16x1xf32>
    %800 = vector.extract_strided_slice %798 {offsets = [0, 0], sizes = [8, 1], strides = [1, 1]} : vector<16x1xf32> to vector<8x1xf32>
    %801 = vector.broadcast %800 : vector<8x1xf32> to vector<8x256xf32>
    %802 = arith.mulf %801, %796 : vector<8x256xf32>
    %803 = arith.addf %783, %802 : vector<8x256xf32>
    %804 = vector.extract_strided_slice %799 {offsets = [0, 0], sizes = [8, 1], strides = [1, 1]} : vector<16x1xf32> to vector<8x1xf32>
    %805 = vector.broadcast %804 : vector<8x1xf32> to vector<8x256xf32>
    %806 = arith.mulf %805, %797 : vector<8x256xf32>
    %807 = arith.addf %803, %806 : vector<8x256xf32>
    %808 = vector.extract_strided_slice %798 {offsets = [8, 0], sizes = [8, 1], strides = [1, 1]} : vector<16x1xf32> to vector<8x1xf32>
    %809 = vector.broadcast %808 : vector<8x1xf32> to vector<8x256xf32>
    %810 = arith.mulf %809, %796 : vector<8x256xf32>
    %811 = arith.addf %791, %810 : vector<8x256xf32>
    %812 = vector.extract_strided_slice %799 {offsets = [8, 0], sizes = [8, 1], strides = [1, 1]} : vector<16x1xf32> to vector<8x1xf32>
    %813 = vector.broadcast %812 : vector<8x1xf32> to vector<8x256xf32>
    %814 = arith.mulf %813, %797 : vector<8x256xf32>
    %815 = arith.addf %811, %814 : vector<8x256xf32>
    %c254_i32_97 = arith.constant 254 : i32
    %816 = tpu.dynamic_rotate %699 by %c254_i32_97 dim 1 : vector<16x256xf32>, i32 -> vector<16x256xf32>
    %c5_98 = arith.constant 5 : index
    %c0_99 = arith.constant 0 : index
    %817 = vector.load %arg11[%c5_98, %c0_99] : memref<7x256xf32, #tpu.memory_space<vmem>>, vector<1x256xf32>
    %818 = vector.broadcast %817 : vector<1x256xf32> to vector<16x256xf32>
    %819 = arith.mulf %816, %818 : vector<16x256xf32>
    %820 = vector.extract_strided_slice %819 {offsets = [0, 0], sizes = [8, 256], strides = [1, 1]} : vector<16x256xf32> to vector<8x256xf32>
    %821 = vector.extract_strided_slice %819 {offsets = [8, 0], sizes = [8, 256], strides = [1, 1]} : vector<16x256xf32> to vector<8x256xf32>
    %822 = vector.extract_strided_slice %24 {offsets = [0, 33], sizes = [16, 1], strides = [1, 1]} : vector<16x49xf32> to vector<16x1xf32>
    %823 = vector.extract_strided_slice %25 {offsets = [0, 33], sizes = [16, 1], strides = [1, 1]} : vector<16x49xf32> to vector<16x1xf32>
    %824 = vector.extract_strided_slice %822 {offsets = [0, 0], sizes = [8, 1], strides = [1, 1]} : vector<16x1xf32> to vector<8x1xf32>
    %825 = vector.broadcast %824 : vector<8x1xf32> to vector<8x256xf32>
    %826 = arith.mulf %825, %820 : vector<8x256xf32>
    %827 = arith.addf %807, %826 : vector<8x256xf32>
    %828 = vector.extract_strided_slice %823 {offsets = [0, 0], sizes = [8, 1], strides = [1, 1]} : vector<16x1xf32> to vector<8x1xf32>
    %829 = vector.broadcast %828 : vector<8x1xf32> to vector<8x256xf32>
    %830 = arith.mulf %829, %821 : vector<8x256xf32>
    %831 = arith.addf %827, %830 : vector<8x256xf32>
    %832 = vector.extract_strided_slice %822 {offsets = [8, 0], sizes = [8, 1], strides = [1, 1]} : vector<16x1xf32> to vector<8x1xf32>
    %833 = vector.broadcast %832 : vector<8x1xf32> to vector<8x256xf32>
    %834 = arith.mulf %833, %820 : vector<8x256xf32>
    %835 = arith.addf %815, %834 : vector<8x256xf32>
    %836 = vector.extract_strided_slice %823 {offsets = [8, 0], sizes = [8, 1], strides = [1, 1]} : vector<16x1xf32> to vector<8x1xf32>
    %837 = vector.broadcast %836 : vector<8x1xf32> to vector<8x256xf32>
    %838 = arith.mulf %837, %821 : vector<8x256xf32>
    %839 = arith.addf %835, %838 : vector<8x256xf32>
    %c253_i32_100 = arith.constant 253 : i32
    %840 = tpu.dynamic_rotate %699 by %c253_i32_100 dim 1 : vector<16x256xf32>, i32 -> vector<16x256xf32>
    %c6_101 = arith.constant 6 : index
    %c0_102 = arith.constant 0 : index
    %841 = vector.load %arg11[%c6_101, %c0_102] : memref<7x256xf32, #tpu.memory_space<vmem>>, vector<1x256xf32>
    %842 = vector.broadcast %841 : vector<1x256xf32> to vector<16x256xf32>
    %843 = arith.mulf %840, %842 : vector<16x256xf32>
    %844 = vector.extract_strided_slice %843 {offsets = [0, 0], sizes = [8, 256], strides = [1, 1]} : vector<16x256xf32> to vector<8x256xf32>
    %845 = vector.extract_strided_slice %843 {offsets = [8, 0], sizes = [8, 256], strides = [1, 1]} : vector<16x256xf32> to vector<8x256xf32>
    %846 = vector.extract_strided_slice %24 {offsets = [0, 34], sizes = [16, 1], strides = [1, 1]} : vector<16x49xf32> to vector<16x1xf32>
    %847 = vector.extract_strided_slice %25 {offsets = [0, 34], sizes = [16, 1], strides = [1, 1]} : vector<16x49xf32> to vector<16x1xf32>
    %848 = vector.extract_strided_slice %846 {offsets = [0, 0], sizes = [8, 1], strides = [1, 1]} : vector<16x1xf32> to vector<8x1xf32>
    %849 = vector.broadcast %848 : vector<8x1xf32> to vector<8x256xf32>
    %850 = arith.mulf %849, %844 : vector<8x256xf32>
    %851 = arith.addf %831, %850 : vector<8x256xf32>
    %852 = vector.extract_strided_slice %847 {offsets = [0, 0], sizes = [8, 1], strides = [1, 1]} : vector<16x1xf32> to vector<8x1xf32>
    %853 = vector.broadcast %852 : vector<8x1xf32> to vector<8x256xf32>
    %854 = arith.mulf %853, %845 : vector<8x256xf32>
    %855 = arith.addf %851, %854 : vector<8x256xf32>
    %856 = vector.extract_strided_slice %846 {offsets = [8, 0], sizes = [8, 1], strides = [1, 1]} : vector<16x1xf32> to vector<8x1xf32>
    %857 = vector.broadcast %856 : vector<8x1xf32> to vector<8x256xf32>
    %858 = arith.mulf %857, %844 : vector<8x256xf32>
    %859 = arith.addf %839, %858 : vector<8x256xf32>
    %860 = vector.extract_strided_slice %847 {offsets = [8, 0], sizes = [8, 1], strides = [1, 1]} : vector<16x1xf32> to vector<8x1xf32>
    %861 = vector.broadcast %860 : vector<8x1xf32> to vector<8x256xf32>
    %862 = arith.mulf %861, %845 : vector<8x256xf32>
    %863 = arith.addf %859, %862 : vector<8x256xf32>
    %c224_i32 = arith.constant 224 : i32
    %864 = tpu.dynamic_rotate %23 by %c224_i32 dim 1 : vector<16x256xf32>, i32 -> vector<16x256xf32>
    %c5_103 = arith.constant 5 : index
    %c0_104 = arith.constant 0 : index
    %865 = vector.load %arg10[%c5_103, %c0_104] : memref<7x256xf32, #tpu.memory_space<vmem>>, vector<1x256xf32>
    %866 = vector.broadcast %865 : vector<1x256xf32> to vector<16x256xf32>
    %867 = arith.mulf %864, %866 : vector<16x256xf32>
    %c3_i32_105 = arith.constant 3 : i32
    %868 = tpu.dynamic_rotate %867 by %c3_i32_105 dim 1 : vector<16x256xf32>, i32 -> vector<16x256xf32>
    %c0_106 = arith.constant 0 : index
    %c0_107 = arith.constant 0 : index
    %869 = vector.load %arg11[%c0_106, %c0_107] : memref<7x256xf32, #tpu.memory_space<vmem>>, vector<1x256xf32>
    %870 = vector.broadcast %869 : vector<1x256xf32> to vector<16x256xf32>
    %871 = arith.mulf %868, %870 : vector<16x256xf32>
    %872 = vector.extract_strided_slice %871 {offsets = [0, 0], sizes = [8, 256], strides = [1, 1]} : vector<16x256xf32> to vector<8x256xf32>
    %873 = vector.extract_strided_slice %871 {offsets = [8, 0], sizes = [8, 256], strides = [1, 1]} : vector<16x256xf32> to vector<8x256xf32>
    %874 = vector.extract_strided_slice %24 {offsets = [0, 35], sizes = [16, 1], strides = [1, 1]} : vector<16x49xf32> to vector<16x1xf32>
    %875 = vector.extract_strided_slice %25 {offsets = [0, 35], sizes = [16, 1], strides = [1, 1]} : vector<16x49xf32> to vector<16x1xf32>
    %876 = vector.extract_strided_slice %874 {offsets = [0, 0], sizes = [8, 1], strides = [1, 1]} : vector<16x1xf32> to vector<8x1xf32>
    %877 = vector.broadcast %876 : vector<8x1xf32> to vector<8x256xf32>
    %878 = arith.mulf %877, %872 : vector<8x256xf32>
    %879 = arith.addf %855, %878 : vector<8x256xf32>
    %880 = vector.extract_strided_slice %875 {offsets = [0, 0], sizes = [8, 1], strides = [1, 1]} : vector<16x1xf32> to vector<8x1xf32>
    %881 = vector.broadcast %880 : vector<8x1xf32> to vector<8x256xf32>
    %882 = arith.mulf %881, %873 : vector<8x256xf32>
    %883 = arith.addf %879, %882 : vector<8x256xf32>
    %884 = vector.extract_strided_slice %874 {offsets = [8, 0], sizes = [8, 1], strides = [1, 1]} : vector<16x1xf32> to vector<8x1xf32>
    %885 = vector.broadcast %884 : vector<8x1xf32> to vector<8x256xf32>
    %886 = arith.mulf %885, %872 : vector<8x256xf32>
    %887 = arith.addf %863, %886 : vector<8x256xf32>
    %888 = vector.extract_strided_slice %875 {offsets = [8, 0], sizes = [8, 1], strides = [1, 1]} : vector<16x1xf32> to vector<8x1xf32>
    %889 = vector.broadcast %888 : vector<8x1xf32> to vector<8x256xf32>
    %890 = arith.mulf %889, %873 : vector<8x256xf32>
    %891 = arith.addf %887, %890 : vector<8x256xf32>
    %c2_i32_108 = arith.constant 2 : i32
    %892 = tpu.dynamic_rotate %867 by %c2_i32_108 dim 1 : vector<16x256xf32>, i32 -> vector<16x256xf32>
    %c1_109 = arith.constant 1 : index
    %c0_110 = arith.constant 0 : index
    %893 = vector.load %arg11[%c1_109, %c0_110] : memref<7x256xf32, #tpu.memory_space<vmem>>, vector<1x256xf32>
    %894 = vector.broadcast %893 : vector<1x256xf32> to vector<16x256xf32>
    %895 = arith.mulf %892, %894 : vector<16x256xf32>
    %896 = vector.extract_strided_slice %895 {offsets = [0, 0], sizes = [8, 256], strides = [1, 1]} : vector<16x256xf32> to vector<8x256xf32>
    %897 = vector.extract_strided_slice %895 {offsets = [8, 0], sizes = [8, 256], strides = [1, 1]} : vector<16x256xf32> to vector<8x256xf32>
    %898 = vector.extract_strided_slice %24 {offsets = [0, 36], sizes = [16, 1], strides = [1, 1]} : vector<16x49xf32> to vector<16x1xf32>
    %899 = vector.extract_strided_slice %25 {offsets = [0, 36], sizes = [16, 1], strides = [1, 1]} : vector<16x49xf32> to vector<16x1xf32>
    %900 = vector.extract_strided_slice %898 {offsets = [0, 0], sizes = [8, 1], strides = [1, 1]} : vector<16x1xf32> to vector<8x1xf32>
    %901 = vector.broadcast %900 : vector<8x1xf32> to vector<8x256xf32>
    %902 = arith.mulf %901, %896 : vector<8x256xf32>
    %903 = arith.addf %883, %902 : vector<8x256xf32>
    %904 = vector.extract_strided_slice %899 {offsets = [0, 0], sizes = [8, 1], strides = [1, 1]} : vector<16x1xf32> to vector<8x1xf32>
    %905 = vector.broadcast %904 : vector<8x1xf32> to vector<8x256xf32>
    %906 = arith.mulf %905, %897 : vector<8x256xf32>
    %907 = arith.addf %903, %906 : vector<8x256xf32>
    %908 = vector.extract_strided_slice %898 {offsets = [8, 0], sizes = [8, 1], strides = [1, 1]} : vector<16x1xf32> to vector<8x1xf32>
    %909 = vector.broadcast %908 : vector<8x1xf32> to vector<8x256xf32>
    %910 = arith.mulf %909, %896 : vector<8x256xf32>
    %911 = arith.addf %891, %910 : vector<8x256xf32>
    %912 = vector.extract_strided_slice %899 {offsets = [8, 0], sizes = [8, 1], strides = [1, 1]} : vector<16x1xf32> to vector<8x1xf32>
    %913 = vector.broadcast %912 : vector<8x1xf32> to vector<8x256xf32>
    %914 = arith.mulf %913, %897 : vector<8x256xf32>
    %915 = arith.addf %911, %914 : vector<8x256xf32>
    %c1_i32_111 = arith.constant 1 : i32
    %916 = tpu.dynamic_rotate %867 by %c1_i32_111 dim 1 : vector<16x256xf32>, i32 -> vector<16x256xf32>
    %c2_112 = arith.constant 2 : index
    %c0_113 = arith.constant 0 : index
    %917 = vector.load %arg11[%c2_112, %c0_113] : memref<7x256xf32, #tpu.memory_space<vmem>>, vector<1x256xf32>
    %918 = vector.broadcast %917 : vector<1x256xf32> to vector<16x256xf32>
    %919 = arith.mulf %916, %918 : vector<16x256xf32>
    %920 = vector.extract_strided_slice %919 {offsets = [0, 0], sizes = [8, 256], strides = [1, 1]} : vector<16x256xf32> to vector<8x256xf32>
    %921 = vector.extract_strided_slice %919 {offsets = [8, 0], sizes = [8, 256], strides = [1, 1]} : vector<16x256xf32> to vector<8x256xf32>
    %922 = vector.extract_strided_slice %24 {offsets = [0, 37], sizes = [16, 1], strides = [1, 1]} : vector<16x49xf32> to vector<16x1xf32>
    %923 = vector.extract_strided_slice %25 {offsets = [0, 37], sizes = [16, 1], strides = [1, 1]} : vector<16x49xf32> to vector<16x1xf32>
    %924 = vector.extract_strided_slice %922 {offsets = [0, 0], sizes = [8, 1], strides = [1, 1]} : vector<16x1xf32> to vector<8x1xf32>
    %925 = vector.broadcast %924 : vector<8x1xf32> to vector<8x256xf32>
    %926 = arith.mulf %925, %920 : vector<8x256xf32>
    %927 = arith.addf %907, %926 : vector<8x256xf32>
    %928 = vector.extract_strided_slice %923 {offsets = [0, 0], sizes = [8, 1], strides = [1, 1]} : vector<16x1xf32> to vector<8x1xf32>
    %929 = vector.broadcast %928 : vector<8x1xf32> to vector<8x256xf32>
    %930 = arith.mulf %929, %921 : vector<8x256xf32>
    %931 = arith.addf %927, %930 : vector<8x256xf32>
    %932 = vector.extract_strided_slice %922 {offsets = [8, 0], sizes = [8, 1], strides = [1, 1]} : vector<16x1xf32> to vector<8x1xf32>
    %933 = vector.broadcast %932 : vector<8x1xf32> to vector<8x256xf32>
    %934 = arith.mulf %933, %920 : vector<8x256xf32>
    %935 = arith.addf %915, %934 : vector<8x256xf32>
    %936 = vector.extract_strided_slice %923 {offsets = [8, 0], sizes = [8, 1], strides = [1, 1]} : vector<16x1xf32> to vector<8x1xf32>
    %937 = vector.broadcast %936 : vector<8x1xf32> to vector<8x256xf32>
    %938 = arith.mulf %937, %921 : vector<8x256xf32>
    %939 = arith.addf %935, %938 : vector<8x256xf32>
    %940 = vector.extract_strided_slice %867 {offsets = [0, 0], sizes = [8, 256], strides = [1, 1]} : vector<16x256xf32> to vector<8x256xf32>
    %941 = vector.extract_strided_slice %867 {offsets = [8, 0], sizes = [8, 256], strides = [1, 1]} : vector<16x256xf32> to vector<8x256xf32>
    %942 = vector.extract_strided_slice %24 {offsets = [0, 38], sizes = [16, 1], strides = [1, 1]} : vector<16x49xf32> to vector<16x1xf32>
    %943 = vector.extract_strided_slice %25 {offsets = [0, 38], sizes = [16, 1], strides = [1, 1]} : vector<16x49xf32> to vector<16x1xf32>
    %944 = vector.extract_strided_slice %942 {offsets = [0, 0], sizes = [8, 1], strides = [1, 1]} : vector<16x1xf32> to vector<8x1xf32>
    %945 = vector.broadcast %944 : vector<8x1xf32> to vector<8x256xf32>
    %946 = arith.mulf %945, %940 : vector<8x256xf32>
    %947 = arith.addf %931, %946 : vector<8x256xf32>
    %948 = vector.extract_strided_slice %943 {offsets = [0, 0], sizes = [8, 1], strides = [1, 1]} : vector<16x1xf32> to vector<8x1xf32>
    %949 = vector.broadcast %948 : vector<8x1xf32> to vector<8x256xf32>
    %950 = arith.mulf %949, %941 : vector<8x256xf32>
    %951 = arith.addf %947, %950 : vector<8x256xf32>
    %952 = vector.extract_strided_slice %942 {offsets = [8, 0], sizes = [8, 1], strides = [1, 1]} : vector<16x1xf32> to vector<8x1xf32>
    %953 = vector.broadcast %952 : vector<8x1xf32> to vector<8x256xf32>
    %954 = arith.mulf %953, %940 : vector<8x256xf32>
    %955 = arith.addf %939, %954 : vector<8x256xf32>
    %956 = vector.extract_strided_slice %943 {offsets = [8, 0], sizes = [8, 1], strides = [1, 1]} : vector<16x1xf32> to vector<8x1xf32>
    %957 = vector.broadcast %956 : vector<8x1xf32> to vector<8x256xf32>
    %958 = arith.mulf %957, %941 : vector<8x256xf32>
    %959 = arith.addf %955, %958 : vector<8x256xf32>
    %c255_i32_114 = arith.constant 255 : i32
    %960 = tpu.dynamic_rotate %867 by %c255_i32_114 dim 1 : vector<16x256xf32>, i32 -> vector<16x256xf32>
    %c4_115 = arith.constant 4 : index
    %c0_116 = arith.constant 0 : index
    %961 = vector.load %arg11[%c4_115, %c0_116] : memref<7x256xf32, #tpu.memory_space<vmem>>, vector<1x256xf32>
    %962 = vector.broadcast %961 : vector<1x256xf32> to vector<16x256xf32>
    %963 = arith.mulf %960, %962 : vector<16x256xf32>
    %964 = vector.extract_strided_slice %963 {offsets = [0, 0], sizes = [8, 256], strides = [1, 1]} : vector<16x256xf32> to vector<8x256xf32>
    %965 = vector.extract_strided_slice %963 {offsets = [8, 0], sizes = [8, 256], strides = [1, 1]} : vector<16x256xf32> to vector<8x256xf32>
    %966 = vector.extract_strided_slice %24 {offsets = [0, 39], sizes = [16, 1], strides = [1, 1]} : vector<16x49xf32> to vector<16x1xf32>
    %967 = vector.extract_strided_slice %25 {offsets = [0, 39], sizes = [16, 1], strides = [1, 1]} : vector<16x49xf32> to vector<16x1xf32>
    %968 = vector.extract_strided_slice %966 {offsets = [0, 0], sizes = [8, 1], strides = [1, 1]} : vector<16x1xf32> to vector<8x1xf32>
    %969 = vector.broadcast %968 : vector<8x1xf32> to vector<8x256xf32>
    %970 = arith.mulf %969, %964 : vector<8x256xf32>
    %971 = arith.addf %951, %970 : vector<8x256xf32>
    %972 = vector.extract_strided_slice %967 {offsets = [0, 0], sizes = [8, 1], strides = [1, 1]} : vector<16x1xf32> to vector<8x1xf32>
    %973 = vector.broadcast %972 : vector<8x1xf32> to vector<8x256xf32>
    %974 = arith.mulf %973, %965 : vector<8x256xf32>
    %975 = arith.addf %971, %974 : vector<8x256xf32>
    %976 = vector.extract_strided_slice %966 {offsets = [8, 0], sizes = [8, 1], strides = [1, 1]} : vector<16x1xf32> to vector<8x1xf32>
    %977 = vector.broadcast %976 : vector<8x1xf32> to vector<8x256xf32>
    %978 = arith.mulf %977, %964 : vector<8x256xf32>
    %979 = arith.addf %959, %978 : vector<8x256xf32>
    %980 = vector.extract_strided_slice %967 {offsets = [8, 0], sizes = [8, 1], strides = [1, 1]} : vector<16x1xf32> to vector<8x1xf32>
    %981 = vector.broadcast %980 : vector<8x1xf32> to vector<8x256xf32>
    %982 = arith.mulf %981, %965 : vector<8x256xf32>
    %983 = arith.addf %979, %982 : vector<8x256xf32>
    %c254_i32_117 = arith.constant 254 : i32
    %984 = tpu.dynamic_rotate %867 by %c254_i32_117 dim 1 : vector<16x256xf32>, i32 -> vector<16x256xf32>
    %c5_118 = arith.constant 5 : index
    %c0_119 = arith.constant 0 : index
    %985 = vector.load %arg11[%c5_118, %c0_119] : memref<7x256xf32, #tpu.memory_space<vmem>>, vector<1x256xf32>
    %986 = vector.broadcast %985 : vector<1x256xf32> to vector<16x256xf32>
    %987 = arith.mulf %984, %986 : vector<16x256xf32>
    %988 = vector.extract_strided_slice %987 {offsets = [0, 0], sizes = [8, 256], strides = [1, 1]} : vector<16x256xf32> to vector<8x256xf32>
    %989 = vector.extract_strided_slice %987 {offsets = [8, 0], sizes = [8, 256], strides = [1, 1]} : vector<16x256xf32> to vector<8x256xf32>
    %990 = vector.extract_strided_slice %24 {offsets = [0, 40], sizes = [16, 1], strides = [1, 1]} : vector<16x49xf32> to vector<16x1xf32>
    %991 = vector.extract_strided_slice %25 {offsets = [0, 40], sizes = [16, 1], strides = [1, 1]} : vector<16x49xf32> to vector<16x1xf32>
    %992 = vector.extract_strided_slice %990 {offsets = [0, 0], sizes = [8, 1], strides = [1, 1]} : vector<16x1xf32> to vector<8x1xf32>
    %993 = vector.broadcast %992 : vector<8x1xf32> to vector<8x256xf32>
    %994 = arith.mulf %993, %988 : vector<8x256xf32>
    %995 = arith.addf %975, %994 : vector<8x256xf32>
    %996 = vector.extract_strided_slice %991 {offsets = [0, 0], sizes = [8, 1], strides = [1, 1]} : vector<16x1xf32> to vector<8x1xf32>
    %997 = vector.broadcast %996 : vector<8x1xf32> to vector<8x256xf32>
    %998 = arith.mulf %997, %989 : vector<8x256xf32>
    %999 = arith.addf %995, %998 : vector<8x256xf32>
    %1000 = vector.extract_strided_slice %990 {offsets = [8, 0], sizes = [8, 1], strides = [1, 1]} : vector<16x1xf32> to vector<8x1xf32>
    %1001 = vector.broadcast %1000 : vector<8x1xf32> to vector<8x256xf32>
    %1002 = arith.mulf %1001, %988 : vector<8x256xf32>
    %1003 = arith.addf %983, %1002 : vector<8x256xf32>
    %1004 = vector.extract_strided_slice %991 {offsets = [8, 0], sizes = [8, 1], strides = [1, 1]} : vector<16x1xf32> to vector<8x1xf32>
    %1005 = vector.broadcast %1004 : vector<8x1xf32> to vector<8x256xf32>
    %1006 = arith.mulf %1005, %989 : vector<8x256xf32>
    %1007 = arith.addf %1003, %1006 : vector<8x256xf32>
    %c253_i32_120 = arith.constant 253 : i32
    %1008 = tpu.dynamic_rotate %867 by %c253_i32_120 dim 1 : vector<16x256xf32>, i32 -> vector<16x256xf32>
    %c6_121 = arith.constant 6 : index
    %c0_122 = arith.constant 0 : index
    %1009 = vector.load %arg11[%c6_121, %c0_122] : memref<7x256xf32, #tpu.memory_space<vmem>>, vector<1x256xf32>
    %1010 = vector.broadcast %1009 : vector<1x256xf32> to vector<16x256xf32>
    %1011 = arith.mulf %1008, %1010 : vector<16x256xf32>
    %1012 = vector.extract_strided_slice %1011 {offsets = [0, 0], sizes = [8, 256], strides = [1, 1]} : vector<16x256xf32> to vector<8x256xf32>
    %1013 = vector.extract_strided_slice %1011 {offsets = [8, 0], sizes = [8, 256], strides = [1, 1]} : vector<16x256xf32> to vector<8x256xf32>
    %1014 = vector.extract_strided_slice %24 {offsets = [0, 41], sizes = [16, 1], strides = [1, 1]} : vector<16x49xf32> to vector<16x1xf32>
    %1015 = vector.extract_strided_slice %25 {offsets = [0, 41], sizes = [16, 1], strides = [1, 1]} : vector<16x49xf32> to vector<16x1xf32>
    %1016 = vector.extract_strided_slice %1014 {offsets = [0, 0], sizes = [8, 1], strides = [1, 1]} : vector<16x1xf32> to vector<8x1xf32>
    %1017 = vector.broadcast %1016 : vector<8x1xf32> to vector<8x256xf32>
    %1018 = arith.mulf %1017, %1012 : vector<8x256xf32>
    %1019 = arith.addf %999, %1018 : vector<8x256xf32>
    %1020 = vector.extract_strided_slice %1015 {offsets = [0, 0], sizes = [8, 1], strides = [1, 1]} : vector<16x1xf32> to vector<8x1xf32>
    %1021 = vector.broadcast %1020 : vector<8x1xf32> to vector<8x256xf32>
    %1022 = arith.mulf %1021, %1013 : vector<8x256xf32>
    %1023 = arith.addf %1019, %1022 : vector<8x256xf32>
    %1024 = vector.extract_strided_slice %1014 {offsets = [8, 0], sizes = [8, 1], strides = [1, 1]} : vector<16x1xf32> to vector<8x1xf32>
    %1025 = vector.broadcast %1024 : vector<8x1xf32> to vector<8x256xf32>
    %1026 = arith.mulf %1025, %1012 : vector<8x256xf32>
    %1027 = arith.addf %1007, %1026 : vector<8x256xf32>
    %1028 = vector.extract_strided_slice %1015 {offsets = [8, 0], sizes = [8, 1], strides = [1, 1]} : vector<16x1xf32> to vector<8x1xf32>
    %1029 = vector.broadcast %1028 : vector<8x1xf32> to vector<8x256xf32>
    %1030 = arith.mulf %1029, %1013 : vector<8x256xf32>
    %1031 = arith.addf %1027, %1030 : vector<8x256xf32>
    %c208_i32 = arith.constant 208 : i32
    %1032 = tpu.dynamic_rotate %23 by %c208_i32 dim 1 : vector<16x256xf32>, i32 -> vector<16x256xf32>
    %c6_123 = arith.constant 6 : index
    %c0_124 = arith.constant 0 : index
    %1033 = vector.load %arg10[%c6_123, %c0_124] : memref<7x256xf32, #tpu.memory_space<vmem>>, vector<1x256xf32>
    %1034 = vector.broadcast %1033 : vector<1x256xf32> to vector<16x256xf32>
    %1035 = arith.mulf %1032, %1034 : vector<16x256xf32>
    %c3_i32_125 = arith.constant 3 : i32
    %1036 = tpu.dynamic_rotate %1035 by %c3_i32_125 dim 1 : vector<16x256xf32>, i32 -> vector<16x256xf32>
    %c0_126 = arith.constant 0 : index
    %c0_127 = arith.constant 0 : index
    %1037 = vector.load %arg11[%c0_126, %c0_127] : memref<7x256xf32, #tpu.memory_space<vmem>>, vector<1x256xf32>
    %1038 = vector.broadcast %1037 : vector<1x256xf32> to vector<16x256xf32>
    %1039 = arith.mulf %1036, %1038 : vector<16x256xf32>
    %1040 = vector.extract_strided_slice %1039 {offsets = [0, 0], sizes = [8, 256], strides = [1, 1]} : vector<16x256xf32> to vector<8x256xf32>
    %1041 = vector.extract_strided_slice %1039 {offsets = [8, 0], sizes = [8, 256], strides = [1, 1]} : vector<16x256xf32> to vector<8x256xf32>
    %1042 = vector.extract_strided_slice %24 {offsets = [0, 42], sizes = [16, 1], strides = [1, 1]} : vector<16x49xf32> to vector<16x1xf32>
    %1043 = vector.extract_strided_slice %25 {offsets = [0, 42], sizes = [16, 1], strides = [1, 1]} : vector<16x49xf32> to vector<16x1xf32>
    %1044 = vector.extract_strided_slice %1042 {offsets = [0, 0], sizes = [8, 1], strides = [1, 1]} : vector<16x1xf32> to vector<8x1xf32>
    %1045 = vector.broadcast %1044 : vector<8x1xf32> to vector<8x256xf32>
    %1046 = arith.mulf %1045, %1040 : vector<8x256xf32>
    %1047 = arith.addf %1023, %1046 : vector<8x256xf32>
    %1048 = vector.extract_strided_slice %1043 {offsets = [0, 0], sizes = [8, 1], strides = [1, 1]} : vector<16x1xf32> to vector<8x1xf32>
    %1049 = vector.broadcast %1048 : vector<8x1xf32> to vector<8x256xf32>
    %1050 = arith.mulf %1049, %1041 : vector<8x256xf32>
    %1051 = arith.addf %1047, %1050 : vector<8x256xf32>
    %1052 = vector.extract_strided_slice %1042 {offsets = [8, 0], sizes = [8, 1], strides = [1, 1]} : vector<16x1xf32> to vector<8x1xf32>
    %1053 = vector.broadcast %1052 : vector<8x1xf32> to vector<8x256xf32>
    %1054 = arith.mulf %1053, %1040 : vector<8x256xf32>
    %1055 = arith.addf %1031, %1054 : vector<8x256xf32>
    %1056 = vector.extract_strided_slice %1043 {offsets = [8, 0], sizes = [8, 1], strides = [1, 1]} : vector<16x1xf32> to vector<8x1xf32>
    %1057 = vector.broadcast %1056 : vector<8x1xf32> to vector<8x256xf32>
    %1058 = arith.mulf %1057, %1041 : vector<8x256xf32>
    %1059 = arith.addf %1055, %1058 : vector<8x256xf32>
    %c2_i32_128 = arith.constant 2 : i32
    %1060 = tpu.dynamic_rotate %1035 by %c2_i32_128 dim 1 : vector<16x256xf32>, i32 -> vector<16x256xf32>
    %c1_129 = arith.constant 1 : index
    %c0_130 = arith.constant 0 : index
    %1061 = vector.load %arg11[%c1_129, %c0_130] : memref<7x256xf32, #tpu.memory_space<vmem>>, vector<1x256xf32>
    %1062 = vector.broadcast %1061 : vector<1x256xf32> to vector<16x256xf32>
    %1063 = arith.mulf %1060, %1062 : vector<16x256xf32>
    %1064 = vector.extract_strided_slice %1063 {offsets = [0, 0], sizes = [8, 256], strides = [1, 1]} : vector<16x256xf32> to vector<8x256xf32>
    %1065 = vector.extract_strided_slice %1063 {offsets = [8, 0], sizes = [8, 256], strides = [1, 1]} : vector<16x256xf32> to vector<8x256xf32>
    %1066 = vector.extract_strided_slice %24 {offsets = [0, 43], sizes = [16, 1], strides = [1, 1]} : vector<16x49xf32> to vector<16x1xf32>
    %1067 = vector.extract_strided_slice %25 {offsets = [0, 43], sizes = [16, 1], strides = [1, 1]} : vector<16x49xf32> to vector<16x1xf32>
    %1068 = vector.extract_strided_slice %1066 {offsets = [0, 0], sizes = [8, 1], strides = [1, 1]} : vector<16x1xf32> to vector<8x1xf32>
    %1069 = vector.broadcast %1068 : vector<8x1xf32> to vector<8x256xf32>
    %1070 = arith.mulf %1069, %1064 : vector<8x256xf32>
    %1071 = arith.addf %1051, %1070 : vector<8x256xf32>
    %1072 = vector.extract_strided_slice %1067 {offsets = [0, 0], sizes = [8, 1], strides = [1, 1]} : vector<16x1xf32> to vector<8x1xf32>
    %1073 = vector.broadcast %1072 : vector<8x1xf32> to vector<8x256xf32>
    %1074 = arith.mulf %1073, %1065 : vector<8x256xf32>
    %1075 = arith.addf %1071, %1074 : vector<8x256xf32>
    %1076 = vector.extract_strided_slice %1066 {offsets = [8, 0], sizes = [8, 1], strides = [1, 1]} : vector<16x1xf32> to vector<8x1xf32>
    %1077 = vector.broadcast %1076 : vector<8x1xf32> to vector<8x256xf32>
    %1078 = arith.mulf %1077, %1064 : vector<8x256xf32>
    %1079 = arith.addf %1059, %1078 : vector<8x256xf32>
    %1080 = vector.extract_strided_slice %1067 {offsets = [8, 0], sizes = [8, 1], strides = [1, 1]} : vector<16x1xf32> to vector<8x1xf32>
    %1081 = vector.broadcast %1080 : vector<8x1xf32> to vector<8x256xf32>
    %1082 = arith.mulf %1081, %1065 : vector<8x256xf32>
    %1083 = arith.addf %1079, %1082 : vector<8x256xf32>
    %c1_i32_131 = arith.constant 1 : i32
    %1084 = tpu.dynamic_rotate %1035 by %c1_i32_131 dim 1 : vector<16x256xf32>, i32 -> vector<16x256xf32>
    %c2_132 = arith.constant 2 : index
    %c0_133 = arith.constant 0 : index
    %1085 = vector.load %arg11[%c2_132, %c0_133] : memref<7x256xf32, #tpu.memory_space<vmem>>, vector<1x256xf32>
    %1086 = vector.broadcast %1085 : vector<1x256xf32> to vector<16x256xf32>
    %1087 = arith.mulf %1084, %1086 : vector<16x256xf32>
    %1088 = vector.extract_strided_slice %1087 {offsets = [0, 0], sizes = [8, 256], strides = [1, 1]} : vector<16x256xf32> to vector<8x256xf32>
    %1089 = vector.extract_strided_slice %1087 {offsets = [8, 0], sizes = [8, 256], strides = [1, 1]} : vector<16x256xf32> to vector<8x256xf32>
    %1090 = vector.extract_strided_slice %24 {offsets = [0, 44], sizes = [16, 1], strides = [1, 1]} : vector<16x49xf32> to vector<16x1xf32>
    %1091 = vector.extract_strided_slice %25 {offsets = [0, 44], sizes = [16, 1], strides = [1, 1]} : vector<16x49xf32> to vector<16x1xf32>
    %1092 = vector.extract_strided_slice %1090 {offsets = [0, 0], sizes = [8, 1], strides = [1, 1]} : vector<16x1xf32> to vector<8x1xf32>
    %1093 = vector.broadcast %1092 : vector<8x1xf32> to vector<8x256xf32>
    %1094 = arith.mulf %1093, %1088 : vector<8x256xf32>
    %1095 = arith.addf %1075, %1094 : vector<8x256xf32>
    %1096 = vector.extract_strided_slice %1091 {offsets = [0, 0], sizes = [8, 1], strides = [1, 1]} : vector<16x1xf32> to vector<8x1xf32>
    %1097 = vector.broadcast %1096 : vector<8x1xf32> to vector<8x256xf32>
    %1098 = arith.mulf %1097, %1089 : vector<8x256xf32>
    %1099 = arith.addf %1095, %1098 : vector<8x256xf32>
    %1100 = vector.extract_strided_slice %1090 {offsets = [8, 0], sizes = [8, 1], strides = [1, 1]} : vector<16x1xf32> to vector<8x1xf32>
    %1101 = vector.broadcast %1100 : vector<8x1xf32> to vector<8x256xf32>
    %1102 = arith.mulf %1101, %1088 : vector<8x256xf32>
    %1103 = arith.addf %1083, %1102 : vector<8x256xf32>
    %1104 = vector.extract_strided_slice %1091 {offsets = [8, 0], sizes = [8, 1], strides = [1, 1]} : vector<16x1xf32> to vector<8x1xf32>
    %1105 = vector.broadcast %1104 : vector<8x1xf32> to vector<8x256xf32>
    %1106 = arith.mulf %1105, %1089 : vector<8x256xf32>
    %1107 = arith.addf %1103, %1106 : vector<8x256xf32>
    %1108 = vector.extract_strided_slice %1035 {offsets = [0, 0], sizes = [8, 256], strides = [1, 1]} : vector<16x256xf32> to vector<8x256xf32>
    %1109 = vector.extract_strided_slice %1035 {offsets = [8, 0], sizes = [8, 256], strides = [1, 1]} : vector<16x256xf32> to vector<8x256xf32>
    %1110 = vector.extract_strided_slice %24 {offsets = [0, 45], sizes = [16, 1], strides = [1, 1]} : vector<16x49xf32> to vector<16x1xf32>
    %1111 = vector.extract_strided_slice %25 {offsets = [0, 45], sizes = [16, 1], strides = [1, 1]} : vector<16x49xf32> to vector<16x1xf32>
    %1112 = vector.extract_strided_slice %1110 {offsets = [0, 0], sizes = [8, 1], strides = [1, 1]} : vector<16x1xf32> to vector<8x1xf32>
    %1113 = vector.broadcast %1112 : vector<8x1xf32> to vector<8x256xf32>
    %1114 = arith.mulf %1113, %1108 : vector<8x256xf32>
    %1115 = arith.addf %1099, %1114 : vector<8x256xf32>
    %1116 = vector.extract_strided_slice %1111 {offsets = [0, 0], sizes = [8, 1], strides = [1, 1]} : vector<16x1xf32> to vector<8x1xf32>
    %1117 = vector.broadcast %1116 : vector<8x1xf32> to vector<8x256xf32>
    %1118 = arith.mulf %1117, %1109 : vector<8x256xf32>
    %1119 = arith.addf %1115, %1118 : vector<8x256xf32>
    %1120 = vector.extract_strided_slice %1110 {offsets = [8, 0], sizes = [8, 1], strides = [1, 1]} : vector<16x1xf32> to vector<8x1xf32>
    %1121 = vector.broadcast %1120 : vector<8x1xf32> to vector<8x256xf32>
    %1122 = arith.mulf %1121, %1108 : vector<8x256xf32>
    %1123 = arith.addf %1107, %1122 : vector<8x256xf32>
    %1124 = vector.extract_strided_slice %1111 {offsets = [8, 0], sizes = [8, 1], strides = [1, 1]} : vector<16x1xf32> to vector<8x1xf32>
    %1125 = vector.broadcast %1124 : vector<8x1xf32> to vector<8x256xf32>
    %1126 = arith.mulf %1125, %1109 : vector<8x256xf32>
    %1127 = arith.addf %1123, %1126 : vector<8x256xf32>
    %c255_i32_134 = arith.constant 255 : i32
    %1128 = tpu.dynamic_rotate %1035 by %c255_i32_134 dim 1 : vector<16x256xf32>, i32 -> vector<16x256xf32>
    %c4_135 = arith.constant 4 : index
    %c0_136 = arith.constant 0 : index
    %1129 = vector.load %arg11[%c4_135, %c0_136] : memref<7x256xf32, #tpu.memory_space<vmem>>, vector<1x256xf32>
    %1130 = vector.broadcast %1129 : vector<1x256xf32> to vector<16x256xf32>
    %1131 = arith.mulf %1128, %1130 : vector<16x256xf32>
    %1132 = vector.extract_strided_slice %1131 {offsets = [0, 0], sizes = [8, 256], strides = [1, 1]} : vector<16x256xf32> to vector<8x256xf32>
    %1133 = vector.extract_strided_slice %1131 {offsets = [8, 0], sizes = [8, 256], strides = [1, 1]} : vector<16x256xf32> to vector<8x256xf32>
    %1134 = vector.extract_strided_slice %24 {offsets = [0, 46], sizes = [16, 1], strides = [1, 1]} : vector<16x49xf32> to vector<16x1xf32>
    %1135 = vector.extract_strided_slice %25 {offsets = [0, 46], sizes = [16, 1], strides = [1, 1]} : vector<16x49xf32> to vector<16x1xf32>
    %1136 = vector.extract_strided_slice %1134 {offsets = [0, 0], sizes = [8, 1], strides = [1, 1]} : vector<16x1xf32> to vector<8x1xf32>
    %1137 = vector.broadcast %1136 : vector<8x1xf32> to vector<8x256xf32>
    %1138 = arith.mulf %1137, %1132 : vector<8x256xf32>
    %1139 = arith.addf %1119, %1138 : vector<8x256xf32>
    %1140 = vector.extract_strided_slice %1135 {offsets = [0, 0], sizes = [8, 1], strides = [1, 1]} : vector<16x1xf32> to vector<8x1xf32>
    %1141 = vector.broadcast %1140 : vector<8x1xf32> to vector<8x256xf32>
    %1142 = arith.mulf %1141, %1133 : vector<8x256xf32>
    %1143 = arith.addf %1139, %1142 : vector<8x256xf32>
    %1144 = vector.extract_strided_slice %1134 {offsets = [8, 0], sizes = [8, 1], strides = [1, 1]} : vector<16x1xf32> to vector<8x1xf32>
    %1145 = vector.broadcast %1144 : vector<8x1xf32> to vector<8x256xf32>
    %1146 = arith.mulf %1145, %1132 : vector<8x256xf32>
    %1147 = arith.addf %1127, %1146 : vector<8x256xf32>
    %1148 = vector.extract_strided_slice %1135 {offsets = [8, 0], sizes = [8, 1], strides = [1, 1]} : vector<16x1xf32> to vector<8x1xf32>
    %1149 = vector.broadcast %1148 : vector<8x1xf32> to vector<8x256xf32>
    %1150 = arith.mulf %1149, %1133 : vector<8x256xf32>
    %1151 = arith.addf %1147, %1150 : vector<8x256xf32>
    %c254_i32_137 = arith.constant 254 : i32
    %1152 = tpu.dynamic_rotate %1035 by %c254_i32_137 dim 1 : vector<16x256xf32>, i32 -> vector<16x256xf32>
    %c5_138 = arith.constant 5 : index
    %c0_139 = arith.constant 0 : index
    %1153 = vector.load %arg11[%c5_138, %c0_139] : memref<7x256xf32, #tpu.memory_space<vmem>>, vector<1x256xf32>
    %1154 = vector.broadcast %1153 : vector<1x256xf32> to vector<16x256xf32>
    %1155 = arith.mulf %1152, %1154 : vector<16x256xf32>
    %1156 = vector.extract_strided_slice %1155 {offsets = [0, 0], sizes = [8, 256], strides = [1, 1]} : vector<16x256xf32> to vector<8x256xf32>
    %1157 = vector.extract_strided_slice %1155 {offsets = [8, 0], sizes = [8, 256], strides = [1, 1]} : vector<16x256xf32> to vector<8x256xf32>
    %1158 = vector.extract_strided_slice %24 {offsets = [0, 47], sizes = [16, 1], strides = [1, 1]} : vector<16x49xf32> to vector<16x1xf32>
    %1159 = vector.extract_strided_slice %25 {offsets = [0, 47], sizes = [16, 1], strides = [1, 1]} : vector<16x49xf32> to vector<16x1xf32>
    %1160 = vector.extract_strided_slice %1158 {offsets = [0, 0], sizes = [8, 1], strides = [1, 1]} : vector<16x1xf32> to vector<8x1xf32>
    %1161 = vector.broadcast %1160 : vector<8x1xf32> to vector<8x256xf32>
    %1162 = arith.mulf %1161, %1156 : vector<8x256xf32>
    %1163 = arith.addf %1143, %1162 : vector<8x256xf32>
    %1164 = vector.extract_strided_slice %1159 {offsets = [0, 0], sizes = [8, 1], strides = [1, 1]} : vector<16x1xf32> to vector<8x1xf32>
    %1165 = vector.broadcast %1164 : vector<8x1xf32> to vector<8x256xf32>
    %1166 = arith.mulf %1165, %1157 : vector<8x256xf32>
    %1167 = arith.addf %1163, %1166 : vector<8x256xf32>
    %1168 = vector.extract_strided_slice %1158 {offsets = [8, 0], sizes = [8, 1], strides = [1, 1]} : vector<16x1xf32> to vector<8x1xf32>
    %1169 = vector.broadcast %1168 : vector<8x1xf32> to vector<8x256xf32>
    %1170 = arith.mulf %1169, %1156 : vector<8x256xf32>
    %1171 = arith.addf %1151, %1170 : vector<8x256xf32>
    %1172 = vector.extract_strided_slice %1159 {offsets = [8, 0], sizes = [8, 1], strides = [1, 1]} : vector<16x1xf32> to vector<8x1xf32>
    %1173 = vector.broadcast %1172 : vector<8x1xf32> to vector<8x256xf32>
    %1174 = arith.mulf %1173, %1157 : vector<8x256xf32>
    %1175 = arith.addf %1171, %1174 : vector<8x256xf32>
    %c253_i32_140 = arith.constant 253 : i32
    %1176 = tpu.dynamic_rotate %1035 by %c253_i32_140 dim 1 : vector<16x256xf32>, i32 -> vector<16x256xf32>
    %c6_141 = arith.constant 6 : index
    %c0_142 = arith.constant 0 : index
    %1177 = vector.load %arg11[%c6_141, %c0_142] : memref<7x256xf32, #tpu.memory_space<vmem>>, vector<1x256xf32>
    %1178 = vector.broadcast %1177 : vector<1x256xf32> to vector<16x256xf32>
    %1179 = arith.mulf %1176, %1178 : vector<16x256xf32>
    %1180 = vector.extract_strided_slice %1179 {offsets = [0, 0], sizes = [8, 256], strides = [1, 1]} : vector<16x256xf32> to vector<8x256xf32>
    %1181 = vector.extract_strided_slice %1179 {offsets = [8, 0], sizes = [8, 256], strides = [1, 1]} : vector<16x256xf32> to vector<8x256xf32>
    %1182 = vector.extract_strided_slice %24 {offsets = [0, 48], sizes = [16, 1], strides = [1, 1]} : vector<16x49xf32> to vector<16x1xf32>
    %1183 = vector.extract_strided_slice %25 {offsets = [0, 48], sizes = [16, 1], strides = [1, 1]} : vector<16x49xf32> to vector<16x1xf32>
    %1184 = vector.extract_strided_slice %1182 {offsets = [0, 0], sizes = [8, 1], strides = [1, 1]} : vector<16x1xf32> to vector<8x1xf32>
    %1185 = vector.broadcast %1184 : vector<8x1xf32> to vector<8x256xf32>
    %1186 = arith.mulf %1185, %1180 : vector<8x256xf32>
    %1187 = arith.addf %1167, %1186 : vector<8x256xf32>
    %1188 = vector.extract_strided_slice %1183 {offsets = [0, 0], sizes = [8, 1], strides = [1, 1]} : vector<16x1xf32> to vector<8x1xf32>
    %1189 = vector.broadcast %1188 : vector<8x1xf32> to vector<8x256xf32>
    %1190 = arith.mulf %1189, %1181 : vector<8x256xf32>
    %1191 = arith.addf %1187, %1190 : vector<8x256xf32>
    %1192 = vector.extract_strided_slice %1182 {offsets = [8, 0], sizes = [8, 1], strides = [1, 1]} : vector<16x1xf32> to vector<8x1xf32>
    %1193 = vector.broadcast %1192 : vector<8x1xf32> to vector<8x256xf32>
    %1194 = arith.mulf %1193, %1180 : vector<8x256xf32>
    %1195 = arith.addf %1175, %1194 : vector<8x256xf32>
    %1196 = vector.extract_strided_slice %1183 {offsets = [8, 0], sizes = [8, 1], strides = [1, 1]} : vector<16x1xf32> to vector<8x1xf32>
    %1197 = vector.broadcast %1196 : vector<8x1xf32> to vector<8x256xf32>
    %1198 = arith.mulf %1197, %1181 : vector<8x256xf32>
    %1199 = arith.addf %1195, %1198 : vector<8x256xf32>
    %c0_143 = arith.constant 0 : index
    %c0_144 = arith.constant 0 : index
    %1200 = vector.load %arg6[%c0_143, %c0_144] : memref<16x1xf32, #tpu.memory_space<vmem>>, vector<8x1xf32>
    %1201 = vector.broadcast %1200 : vector<8x1xf32> to vector<8x256xf32>
    %1202 = arith.addf %1191, %1201 : vector<8x256xf32>
    %cst_145 = arith.constant 5.000000e-01 : f32
    %1203 = vector.broadcast %cst_145 : f32 to vector<8x256xf32>
    %1204 = arith.mulf %1203, %1202 : vector<8x256xf32>
    %cst_146 = arith.constant 0.707106769 : f32
    %1205 = vector.broadcast %cst_146 : f32 to vector<8x256xf32>
    %1206 = arith.mulf %1202, %1205 : vector<8x256xf32>
    %1207 = math.absf %1206 : vector<8x256xf32>
    %cst_147 = arith.constant 0.327591091 : f32
    %1208 = vector.broadcast %cst_147 : f32 to vector<8x256xf32>
    %1209 = arith.mulf %1208, %1207 : vector<8x256xf32>
    %cst_148 = arith.constant 1.000000e+00 : f32
    %1210 = vector.broadcast %cst_148 : f32 to vector<8x256xf32>
    %1211 = arith.addf %1210, %1209 : vector<8x256xf32>
    %cst_149 = arith.constant 1.000000e+00 : f32
    %1212 = vector.broadcast %cst_149 : f32 to vector<8x256xf32>
    %1213 = arith.divf %1212, %1211 : vector<8x256xf32>
    %cst_150 = arith.constant 1.06140542 : f32
    %1214 = vector.broadcast %cst_150 : f32 to vector<8x256xf32>
    %1215 = arith.mulf %1214, %1213 : vector<8x256xf32>
    %cst_151 = arith.constant -1.45315206 : f32
    %1216 = vector.broadcast %cst_151 : f32 to vector<8x256xf32>
    %1217 = arith.addf %1215, %1216 : vector<8x256xf32>
    %1218 = arith.mulf %1217, %1213 : vector<8x256xf32>
    %cst_152 = arith.constant 1.42141378 : f32
    %1219 = vector.broadcast %cst_152 : f32 to vector<8x256xf32>
    %1220 = arith.addf %1218, %1219 : vector<8x256xf32>
    %1221 = arith.mulf %1220, %1213 : vector<8x256xf32>
    %cst_153 = arith.constant -0.284496725 : f32
    %1222 = vector.broadcast %cst_153 : f32 to vector<8x256xf32>
    %1223 = arith.addf %1221, %1222 : vector<8x256xf32>
    %1224 = arith.mulf %1223, %1213 : vector<8x256xf32>
    %cst_154 = arith.constant 0.254829586 : f32
    %1225 = vector.broadcast %cst_154 : f32 to vector<8x256xf32>
    %1226 = arith.addf %1224, %1225 : vector<8x256xf32>
    %1227 = arith.mulf %1226, %1213 : vector<8x256xf32>
    %cst_155 = arith.constant 0.000000e+00 : f32
    %1228 = vector.broadcast %cst_155 : f32 to vector<8x256xf32>
    %1229 = arith.subf %1228, %1207 : vector<8x256xf32>
    %1230 = arith.mulf %1229, %1207 : vector<8x256xf32>
    %1231 = math.exp %1230 : vector<8x256xf32>
    %1232 = arith.mulf %1227, %1231 : vector<8x256xf32>
    %cst_156 = arith.constant 1.000000e+00 : f32
    %1233 = vector.broadcast %cst_156 : f32 to vector<8x256xf32>
    %1234 = arith.subf %1233, %1232 : vector<8x256xf32>
    %cst_157 = arith.constant 0.000000e+00 : f32
    %1235 = vector.broadcast %cst_157 : f32 to vector<8x256xf32>
    %1236 = arith.cmpf oge, %1206, %1235 : vector<8x256xf32>
    %cst_158 = arith.constant 0.000000e+00 : f32
    %1237 = vector.broadcast %cst_158 : f32 to vector<8x256xf32>
    %1238 = arith.subf %1237, %1234 : vector<8x256xf32>
    %1239 = arith.select %1236, %1234, %1238 : vector<8x256xi1>, vector<8x256xf32>
    %cst_159 = arith.constant 1.000000e+00 : f32
    %1240 = vector.broadcast %cst_159 : f32 to vector<8x256xf32>
    %1241 = arith.addf %1240, %1239 : vector<8x256xf32>
    %1242 = arith.mulf %1204, %1241 : vector<8x256xf32>
    %c8 = arith.constant 8 : index
    %c0_160 = arith.constant 0 : index
    %1243 = vector.load %arg6[%c8, %c0_160] : memref<16x1xf32, #tpu.memory_space<vmem>>, vector<8x1xf32>
    %1244 = vector.broadcast %1243 : vector<8x1xf32> to vector<8x256xf32>
    %1245 = arith.addf %1199, %1244 : vector<8x256xf32>
    %cst_161 = arith.constant 5.000000e-01 : f32
    %1246 = vector.broadcast %cst_161 : f32 to vector<8x256xf32>
    %1247 = arith.mulf %1246, %1245 : vector<8x256xf32>
    %cst_162 = arith.constant 0.707106769 : f32
    %1248 = vector.broadcast %cst_162 : f32 to vector<8x256xf32>
    %1249 = arith.mulf %1245, %1248 : vector<8x256xf32>
    %1250 = math.absf %1249 : vector<8x256xf32>
    %cst_163 = arith.constant 0.327591091 : f32
    %1251 = vector.broadcast %cst_163 : f32 to vector<8x256xf32>
    %1252 = arith.mulf %1251, %1250 : vector<8x256xf32>
    %cst_164 = arith.constant 1.000000e+00 : f32
    %1253 = vector.broadcast %cst_164 : f32 to vector<8x256xf32>
    %1254 = arith.addf %1253, %1252 : vector<8x256xf32>
    %cst_165 = arith.constant 1.000000e+00 : f32
    %1255 = vector.broadcast %cst_165 : f32 to vector<8x256xf32>
    %1256 = arith.divf %1255, %1254 : vector<8x256xf32>
    %cst_166 = arith.constant 1.06140542 : f32
    %1257 = vector.broadcast %cst_166 : f32 to vector<8x256xf32>
    %1258 = arith.mulf %1257, %1256 : vector<8x256xf32>
    %cst_167 = arith.constant -1.45315206 : f32
    %1259 = vector.broadcast %cst_167 : f32 to vector<8x256xf32>
    %1260 = arith.addf %1258, %1259 : vector<8x256xf32>
    %1261 = arith.mulf %1260, %1256 : vector<8x256xf32>
    %cst_168 = arith.constant 1.42141378 : f32
    %1262 = vector.broadcast %cst_168 : f32 to vector<8x256xf32>
    %1263 = arith.addf %1261, %1262 : vector<8x256xf32>
    %1264 = arith.mulf %1263, %1256 : vector<8x256xf32>
    %cst_169 = arith.constant -0.284496725 : f32
    %1265 = vector.broadcast %cst_169 : f32 to vector<8x256xf32>
    %1266 = arith.addf %1264, %1265 : vector<8x256xf32>
    %1267 = arith.mulf %1266, %1256 : vector<8x256xf32>
    %cst_170 = arith.constant 0.254829586 : f32
    %1268 = vector.broadcast %cst_170 : f32 to vector<8x256xf32>
    %1269 = arith.addf %1267, %1268 : vector<8x256xf32>
    %1270 = arith.mulf %1269, %1256 : vector<8x256xf32>
    %cst_171 = arith.constant 0.000000e+00 : f32
    %1271 = vector.broadcast %cst_171 : f32 to vector<8x256xf32>
    %1272 = arith.subf %1271, %1250 : vector<8x256xf32>
    %1273 = arith.mulf %1272, %1250 : vector<8x256xf32>
    %1274 = math.exp %1273 : vector<8x256xf32>
    %1275 = arith.mulf %1270, %1274 : vector<8x256xf32>
    %cst_172 = arith.constant 1.000000e+00 : f32
    %1276 = vector.broadcast %cst_172 : f32 to vector<8x256xf32>
    %1277 = arith.subf %1276, %1275 : vector<8x256xf32>
    %cst_173 = arith.constant 0.000000e+00 : f32
    %1278 = vector.broadcast %cst_173 : f32 to vector<8x256xf32>
    %1279 = arith.cmpf oge, %1249, %1278 : vector<8x256xf32>
    %cst_174 = arith.constant 0.000000e+00 : f32
    %1280 = vector.broadcast %cst_174 : f32 to vector<8x256xf32>
    %1281 = arith.subf %1280, %1277 : vector<8x256xf32>
    %1282 = arith.select %1279, %1277, %1281 : vector<8x256xi1>, vector<8x256xf32>
    %cst_175 = arith.constant 1.000000e+00 : f32
    %1283 = vector.broadcast %cst_175 : f32 to vector<8x256xf32>
    %1284 = arith.addf %1283, %1282 : vector<8x256xf32>
    %1285 = arith.mulf %1247, %1284 : vector<8x256xf32>
    %c0_176 = arith.constant 0 : index
    %c0_177 = arith.constant 0 : index
    %1286 = vector.load %arg7[%c0_176, %c0_177] : memref<8x8xf32, #tpu.memory_space<vmem>>, vector<8x8xf32>
    %cst_178 = arith.constant dense<0.000000e+00> : vector<8x256xf32>
    %1287 = tpu.matmul %1286, %1242, %cst_178 {dimension_numbers = #tpu.dot_dimension_numbers<[1], [0], [0], [1], [0, 0, 1, 1], [], []>} : vector<8x8xf32>, vector<8x256xf32>, vector<8x256xf32> -> vector<8x256xf32>
    %c0_179 = arith.constant 0 : index
    %c0_180 = arith.constant 0 : index
    %1288 = vector.load %arg8[%c0_179, %c0_180] : memref<8x8xf32, #tpu.memory_space<vmem>>, vector<8x8xf32>
    %cst_181 = arith.constant dense<0.000000e+00> : vector<8x256xf32>
    %1289 = tpu.matmul %1288, %1285, %cst_181 {dimension_numbers = #tpu.dot_dimension_numbers<[1], [0], [0], [1], [0, 0, 1, 1], [], []>} : vector<8x8xf32>, vector<8x256xf32>, vector<8x256xf32> -> vector<8x256xf32>
    %1290 = arith.addf %1287, %1289 : vector<8x256xf32>
    %c0_182 = arith.constant 0 : index
    %c0_183 = arith.constant 0 : index
    %1291 = vector.load %arg9[%c0_182, %c0_183] : memref<8x1xf32, #tpu.memory_space<vmem>>, vector<8x1xf32>
    %1292 = vector.broadcast %1291 : vector<8x1xf32> to vector<8x256xf32>
    %1293 = arith.addf %1290, %1292 : vector<8x256xf32>
    %c0_184 = arith.constant 0 : index
    %c0_185 = arith.constant 0 : index
    %1294 = vector.load %arg1[%c0_184, %c0_185] : memref<8x256xf32, #tpu.memory_space<vmem>>, vector<8x256xf32>
    %1295 = arith.addf %1293, %1294 : vector<8x256xf32>
    %c0_186 = arith.constant 0 : index
    %c0_187 = arith.constant 0 : index
    %1296 = vector.load %arg12[%c0_186, %c0_187] : memref<8x256xf32, #tpu.memory_space<vmem>>, vector<8x256xf32>
    tpu.vector_store %arg12[%c0_186, %c0_187], %1295 {strides = array<i32>} : memref<8x256xf32, #tpu.memory_space<vmem>>, vector<8x256xf32>,
    return
  }
  func.func @transform_0(%arg0: i32) -> (i32, i32) {
    %c0_i32 = arith.constant 0 : i32
    %c0_i32_0 = arith.constant 0 : i32
    return %c0_i32, %arg0 : i32, i32
  }
  func.func @transform_1(%arg0: i32) -> (i32, i32) {
    %c0_i32 = arith.constant 0 : i32
    %c0_i32_0 = arith.constant 0 : i32
    %c0_i32_1 = arith.constant 0 : i32
    return %c0_i32, %c0_i32_0 : i32, i32
  }
  func.func @transform_2(%arg0: i32) -> (i32, i32) {
    %c0_i32 = arith.constant 0 : i32
    %c0_i32_0 = arith.constant 0 : i32
    %c0_i32_1 = arith.constant 0 : i32
    return %c0_i32, %c0_i32_0 : i32, i32
  }
  func.func @transform_3(%arg0: i32) -> (i32, i32) {
    %c0_i32 = arith.constant 0 : i32
    %c0_i32_0 = arith.constant 0 : i32
    %c0_i32_1 = arith.constant 0 : i32
    return %c0_i32, %c0_i32_0 : i32, i32
  }
  func.func @transform_4(%arg0: i32) -> (i32, i32) {
    %c0_i32 = arith.constant 0 : i32
    %c0_i32_0 = arith.constant 0 : i32
    %c0_i32_1 = arith.constant 0 : i32
    return %c0_i32, %c0_i32_0 : i32, i32
  }
  func.func @transform_5(%arg0: i32) -> (i32, i32) {
    %c0_i32 = arith.constant 0 : i32
    %c0_i32_0 = arith.constant 0 : i32
    %c0_i32_1 = arith.constant 0 : i32
    return %c0_i32, %c0_i32_0 : i32, i32
  }
  func.func @transform_6(%arg0: i32) -> (i32, i32) {
    %c0_i32 = arith.constant 0 : i32
    %c0_i32_0 = arith.constant 0 : i32
    %c0_i32_1 = arith.constant 0 : i32
    return %c0_i32, %c0_i32_0 : i32, i32
  }
  func.func @transform_7(%arg0: i32) -> (i32, i32) {
    %c0_i32 = arith.constant 0 : i32
    %c0_i32_0 = arith.constant 0 : i32
    %c0_i32_1 = arith.constant 0 : i32
    return %c0_i32, %c0_i32_0 : i32, i32
  }
  func.func @transform_8(%arg0: i32) -> (i32, i32) {
    %c0_i32 = arith.constant 0 : i32
    %c0_i32_0 = arith.constant 0 : i32
    %c0_i32_1 = arith.constant 0 : i32
    return %c0_i32, %c0_i32_0 : i32, i32
  }
  func.func @transform_9(%arg0: i32) -> (i32, i32) {
    %c0_i32 = arith.constant 0 : i32
    %c0_i32_0 = arith.constant 0 : i32
    %c0_i32_1 = arith.constant 0 : i32
    return %c0_i32, %c0_i32_0 : i32, i32
  }
  func.func @transform_10(%arg0: i32) -> (i32, i32) {
    %c0_i32 = arith.constant 0 : i32
    %c0_i32_0 = arith.constant 0 : i32
    %c0_i32_1 = arith.constant 0 : i32
    return %c0_i32, %c0_i32_0 : i32, i32
  }
  func.func @transform_11(%arg0: i32) -> (i32, i32) {
    %c0_i32 = arith.constant 0 : i32
    %c0_i32_0 = arith.constant 0 : i32
    return %c0_i32, %arg0 : i32, i32
  }
}

</mosaic_0001>

<bundles_post_ra>
// kernel: tpu_custom_call.1
= control target key start
LH: loop header
LB: loop body
LE: loop exit
PB: predicated region body
PF: predicated region fallthrough
CT: control target
= control target key end

     0   :  { %16 = vsyncpa [#allocation3], 0  ;;  %s6983_s0 = inlined_call_operand.vmem [shape: f32[8,512], index: 0, kind: input, shape index: {}]   ;;  %s6984_s1 = inlined_call_operand.vmem [shape: f32[16,8], index: 1, kind: input, shape index: {}]   ;;  %s6985_s2 = inlined_call_operand.vmem [shape: f32[16,1], index: 2, kind: input, shape index: {}]   ;;  %s6986_s3 = inlined_call_operand.vmem [shape: f32[16,49], index: 3, kind: input, shape index: {}]   ;;  %s6987_s4 = inlined_call_operand.vmem [shape: f32[16,49], index: 4, kind: input, shape index: {}]   ;;  %s6988_s5 = inlined_call_operand.vmem [shape: f32[16,1], index: 5, kind: input, shape index: {}]   ;;  %s6989_s6 = inlined_call_operand.hbm [shape: f32[8,8], index: 6, kind: input, shape index: {}]   ;;  %s6990_s7 = inlined_call_operand.hbm [shape: f32[8,8], index: 7, kind: input, shape index: {}]   ;;  %s6991_s8 = inlined_call_operand.vmem [shape: f32[8,1], index: 8, kind: input, shape index: {}]   ;;  %s6992_s9 = inlined_call_operand.vmem [shape: f32[7,256], index: 9, kind: input, shape index: {}]   ;;  %s6993_s10 = inlined_call_operand.vmem [shape: f32[7,256], index: 10, kind: input, shape index: {}]   ;;  %s6994_s11 = inlined_call_operand.hbm [shape: f32[8,512], index: 11, kind: output, shape index: {}]  }
   0x1   :  { %17 = vsyncpa [#allocation6], 0 }
   0x2   :  { %18 = vsyncpa [#allocation4], 0 }
   0x3   :  { %20 = vsyncpa [#allocation4 + $0x1], 0  ;;  %s4006_s17 = smov 0   ;;  %s4008_s18 = smov 0  }
   0x4   :  { %s4010_s19 = smov 0   ;;  %s4012_s20 = smov 0  }
   0x5 LB: > { %7246 = sst [smem:[#allocation11_spill]] %s3875_s19  ;;  %s4027_s21 = sadd.s32 4294967295, %s3879_s20   ;;  %s3879_s20 = sphi %s4012_s20, %s7701_s20   ;;  %s3875_s19 = sphi %s4010_s19, %s7703_s19   ;;  %s3871_s18 = sphi %s4008_s18, %s7705_s18   ;;  %s3867_s17 = sphi %s4006_s17, %s7704_s17  }
   0x6   : > { %s3447_s22 = sadd.s32 4294967294, %s3879_s20   ;;  %s4031_s23 = sadd.s32 1, %s3879_s20  }
   0x7   : > { %7247 = sst [smem:[#allocation12_spill]] %s4031_s23  ;;  %s269_s24 = sadd.s32 1, %s3875_s19 }
   0x8   : > { %s266_s25 = ssub.s32 %s3879_s20, %s4031_s23  ;;  %p279_p0 = scmp.ne.s32.totalorder %s3875_s19, %s3871_s18 }
   0x9   : > { %p267_p1 = scmp.eq.s32.totalorder %s266_s25, 0  ;;  %p280_p2 = scmp.eq.s32.totalorder %s4027_s21, 1 }
   0xa   : > { %p285_p3 = scmp.ne.s32.totalorder %s3871_s18, %s3867_s17  ;;  %p286_p4 = scmp.eq.s32.totalorder %s3447_s22, 1 }
   0xb   : > { %s4042_s26 = scalar_select %p267_p1, %s3875_s19, %s269_s24  }
   0xc   : > { %p4044_p5 = por %p280_p2, %p279_p0  ;;  %p4048_p6 = por %p286_p4, %p285_p3 }
   0xd   : > { %7248 = sst [smem:[#allocation13_spill]] %s4042_s26  ;;  %p3448_p7 = scmp.ge.s32.totalorder %s3879_s20, 1 }
   0xe   : > { %s7249_s27 = scalar_select %p4044_p5, 1, 0 }
   0xf   : > { %s7250_s28 = scalar_select %p4048_p6, 1, 0 }
  0x10   : > { %p293_p8 = scmp.lt.s32.totalorder %s3879_s20, 3  ;;  %p6996_p9 = scmp.eq.s32.totalorder %s4027_s21, 0 }
  0x11   : > { %s3881_s30 = smov [#allocation2]   ;;  %s3882_s13 = smov [#allocation5]  }
  0x12   : > { %p4055_p10 = pnand %p3448_p7, %p293_p8  ;;  %s321_s12 = sshll.u32 %s3881_s30, 4  ;;  %s322_s12 = int_to_ptr.vmem [resolvable:$true] %s321_s12 }
  0x13   : > { %s332_s14 = sshll.u32 %s3882_s13, 4  ;;  %s3753_s24 = scalar_lea.hbm %s6989_s6, 128  ;;  %s4067_s14 = int_to_ptr.vmem [resolvable:$true] %s332_s14 }
  0x14   : > { %s7251_s29 = scalar_select %p4055_p10, 1, 0 }
  0x15   : > { %p3490_p11 = pneg %p4055_p10  ;;  %p3754_p13 = scmp.ne.s32.totalorder %s6989_s6, %s3753_s24 }
  0x16   : > { %p3760_p3 = scmp.lt.u32.totalorder %s3753_s24, %s6989_s6 }
  0x17   : > { %p4063_p12 = pnand %p6996_p9, %p3490_p11 }
  0x19   : > { %p3755_p0 = pneg %p4063_p12 }
  0x1b   : > { %p3756_p1 = pnand %p3755_p0, %p3754_p13 }
  0x1d   : > { %p3757_p2 = pneg %p3756_p1 }
  0x1f   : > { %p3762_p4 = pnand %p3760_p3, %p3757_p2 }
  0x21   : > { %3765 = shalt.err (!%p3762_p4)
}
  0x22   : > { %s3766_s19 = scalar_lea.vmem %s322_s12, 128  ;;  %p3774_p9 = scmp.lt.s32.totalorder %s322_s12, %s322_s12 }
  0x23   : > { %p3767_p7 = scmp.ne.s32.totalorder %s322_s12, %s3766_s19  ;;  %p3775_p6 = scmp.lt.s32.totalorder %s3766_s19, %s3766_s19 }
  0x25   : > { %p3769_p8 = pnand %p3767_p7, %p3755_p0  ;;  %p3776_p5 = por %p3775_p6, %p3774_p9 }
  0x27   : > { %p3770_p11 = pneg %p3769_p8 }
  0x29   : > { %p3777_p10 = pnand %p3776_p5, %p3770_p11 }
  0x2b   : > { %3780 = shalt.err (!%p3777_p10)
}
  0x2c   : > { %3493 = dma.hbm_to_vmem [thread:$0]  (!%p4063_p12), %s6989_s6, 128, %s322_s12, [#allocation3]  }
  0x2d   : > { %s3781_s25 = scalar_lea.hbm %s6990_s7, 128 }
  0x2e   : > { %p3782_p13 = scmp.ne.s32.totalorder %s6990_s7, %s3781_s25  ;;  %p3788_p9 = scmp.lt.u32.totalorder %s3781_s25, %s6990_s7 }
  0x30   : > { %p3784_p6 = pnand %p3782_p13, %p3755_p0 }
  0x32   : > { %p3785_p5 = pneg %p3784_p6 }
  0x34   : > { %p3790_p10 = pnand %p3788_p9, %p3785_p5 }
  0x36   : > { %3793 = shalt.err (!%p3790_p10)
}
  0x37   : > { %s3794_s12 = scalar_lea.vmem %s4067_s14, 128  ;;  %p3802_p4 = scmp.lt.s32.totalorder %s4067_s14, %s4067_s14 }
  0x38   : > { %p3795_p1 = scmp.ne.s32.totalorder %s4067_s14, %s3794_s12  ;;  %p3803_p7 = scmp.lt.s32.totalorder %s3794_s12, %s3794_s12 }
  0x3a   : > { %p3797_p2 = pnand %p3795_p1, %p3755_p0  ;;  %p3804_p8 = por %p3803_p7, %p3802_p4 }
  0x3c   : > { %p3798_p3 = pneg %p3797_p2 }
  0x3e   : > { %p3805_p11 = pnand %p3804_p8, %p3798_p3 }
  0x40   : > { %3808 = shalt.err (!%p3805_p11)
}
  0x41   : > { %3496 = dma.hbm_to_vmem [thread:$0]  (!%p4063_p12), %s6990_s7, 128, %s4067_s14, [#allocation6]  }
  0x42   : > { %p7253_p13 = scmp.ne.s32.totalorder %s7251_s29, 0 }
  0x44   : > { %363 = sbr.rel (%p7253_p13) target bundleno = 1711 (0x6af), region = 64 }
  0x4b   : > { %p7254_p6 = scmp.eq.s32.totalorder %s4027_s21, 0 }
  0x4d   : > { %3854 = dma.done.wait (%p7254_p6), [#allocation3], 128   ;;  %p7255_p0 = pmov %p7254_p6 }
  0x4f   : > { %3856 = vsyncadd (%p7255_p0), [#allocation3], 4294967168  ;;  %p7256_p5 = pmov %p7255_p0 }
  0x50   : > { %p7257_p9 = pmov %p7255_p0 }
  0x51   : > { %3858 = dma.done.wait (%p7256_p5), [#allocation6], 128  }
  0x52   : > { %3860 = vsyncadd (%p7257_p9), [#allocation6], 4294967168  ;;  %v7002_v0 = vmov 0   ;;  %s3456_s14 = sshll.u32 %s4027_s21, 1  ;;  %v7001_v1 = vmov 0.0   ;;  %v4134_v2 = vld [vmem:[%s6987_s4] sm:$0xff] }
  0x53   : > { %3603 = vset.pattern.permute.xlu1 %v7002_v0  ;;  %3602 = vset.pattern.permute.xlu0 %v7002_v0  ;;  %p408_p12 = scmp.lt.s32.totalorder %s3456_s14, 3  ;;  %v4147_v5 = vld [vmem:[%s6987_s4 + $0x8] sm:$0xff]  ;;  %v457_v8 = vld [vmem:[%s6985_s2] sm:$0xff]  ;;  %v3885_v16 = vmov 1   ;;  %v3886_v27 = vmov 2   ;;  %v3887_v42 = vmov 3  }
  0x54   : > { %540 = vmatprep.mubr.f32.mxu0 %v7001_v1  ;;  %3258 = vmatprep.mubr.f32.mxu1 %v7001_v1  ;;  %v458_v11 = vld [vmem:[%s6985_s2 + $0x8] sm:$0xff]  ;;  %v4160_v17 = vld [vmem:[%s6986_s3] sm:$0xff]  ;;  %v3888_v47 = vmov 4   ;;  %v3889_v51 = vmov 5   ;;  %vm469_vm0 = vcmask 64512   ;;  %v3890_v55 = vmov 6  }
  0x55   : > { %s7707_s14 = smov (!%p408_p12, %s3456_s14), 3  ;;  %628 = vperm.xlu1 %3603, %v4134_v2   ;;  %461 = vperm.xlu0 %3602, %v457_v8   ;;  %v4165_v20 = vld [vmem:[%s6986_s3 + $0x8] sm:$0xff]  ;;  %v455_v53 = vld [vmem:[%s6984_s1] sm:$0xff]  ;;  %v3891_v56 = vmov 7   ;;  %v3892_v57 = vmov 8   ;;  %v3893_v58 = vmov 9  }
  0x56   : > { %s3457_s29 = sshll.u32 %s7707_s14, 3  ;;  %v456_v54 = vld [vmem:[%s6984_s1 + $0x8] sm:$0xff]  ;;  %v3894_v59 = vmov 10   ;;  %v3895_v60 = vmov 11   ;;  %v3896_v61 = vmov 12   ;;  %v3897_v62 = vmov 13  }
  0x57   : > { %s4139_s25 = scalar_lea.vmem %s6983_s0, %s3457_s29  ;;  %v3898_v63 = vmov 14   ;;  %s3906_s19 = smov 32  }
  0x58   : > { %v415_v3 = vld [vmem:[%s4139_s25 + $0x8] sm:$0xff]  ;;  %v414_v4 = vld [vmem:[%s4139_s25] sm:$0xff]  ;;  %s3907_s12 = smov 48   ;;  %s7095_s23 = smov 3  }
  0x59   : > { %v422_v6 = vrot.slane %v415_v3, 4  ;;  %v416_v7 = vrot.slane %v414_v4, 4  ;;  %646 = vperm.xlu1 %3603, %v4147_v5   ;;  %466 = vperm.xlu0 %3602, %v458_v11   ;;  %s3909_s16 = smov 16   ;;  %s7091_s15 = smov 1  }
  0x5a   : > { %s3911_s22 = smov 127   ;;  %s7093_s30 = smov 2  }
  0x5b   : > { %v423_v9 = vadd.f32 %v422_v6, %v415_v3  ;;  %v417_v10 = vadd.f32 %v416_v7, %v414_v4  ;;  %v3901_v7 = vmov 17   ;;  %s7408_s14 = smov 125   ;;  %s3921_s29 = smov 112  }
  0x5c   : > { %s3924_s26 = smov 96   ;;  %s7546_s24 = smov 1  }
  0x5d   : > { %v424_v12 = vrot.slane %v423_v9, 2  ;;  %v418_v13 = vrot.slane %v417_v10, 2  ;;  %3605 = vset.pattern.permute.xlu1 %v3885_v16  ;;  %619 = vperm.xlu0 %3602, %v4160_v17   ;;  %p7699_p1 = scmp.ne.s32.totalorder %s7249_s27, 0 }
  0x5e   : > { %692 = vperm.xlu1 %3605, %v4134_v2  }
  0x5f   : > { %v425_v14 = vadd.f32 %v424_v12, %v423_v9  ;;  %v419_v15 = vadd.f32 %v418_v13, %v417_v10  ;;  %v3902_v10 = vmov 18   ;;  %v3903_v12 = vmov 19  }
  0x61   : > { %v426_v18 = vrot.slane %v425_v14, 1  ;;  %v420_v19 = vrot.slane %v419_v15, 1  ;;  %637 = vperm.xlu0 %3602, %v4165_v20  }
  0x62   : > { %700 = vperm.xlu1 %3605, %v4165_v20  }
  0x63   : > { %v427_v21 = vadd.f32 %v426_v18, %v425_v14  ;;  %v421_v22 = vadd.f32 %v420_v19, %v419_v15  ;;  %v3904_v15 = vmov 20   ;;  %v3905_v19 = vmov 21  }
  0x65   : > { %v430_v23 = vmul.f32 0.125, %v427_v21  ;;  %v429_v24 = vmul.f32 0.125, %v421_v22  ;;  %3604 = vset.pattern.permute.xlu0 %v3885_v16 }
  0x66   : > { %3606 = vset.pattern.permute.xlu1 %v3886_v27  ;;  %684 = vperm.xlu0 %3604, %v4160_v17  }
  0x67   : > { %v432_v25 = vsub.f32 %v415_v3, %v430_v23  ;;  %v431_v26 = vsub.f32 %v414_v4, %v429_v24  ;;  %746 = vperm.xlu1 %3606, %v4160_v17   ;;  %v3899_v3 = vmov 15   ;;  %v3900_v4 = vmov 16  }
  0x69   : > { %v434_v28 = vmul.f32 %v432_v25, %v432_v25  ;;  %v433_v29 = vmul.f32 %v431_v26, %v431_v26 }
  0x6a   : > { %708 = vperm.xlu0 %3604, %v4147_v5  }
  0x6b   : > { %v441_v30 = vrot.slane %v434_v28, 4  ;;  %v435_v31 = vrot.slane %v433_v29, 4  ;;  %762 = vperm.xlu1 %3606, %v4165_v20  }
  0x6d   : > { %v442_v32 = vadd.f32 %v441_v30, %v434_v28  ;;  %v436_v33 = vadd.f32 %v435_v31, %v433_v29 }
  0x6e   : > { %3607 = vset.pattern.permute.xlu0 %v3886_v27 }
  0x6f   : > { %v443_v34 = vrot.slane %v442_v32, 2  ;;  %v437_v35 = vrot.slane %v436_v33, 2  ;;  %770 = vperm.xlu1 %3606, %v4147_v5   ;;  %754 = vperm.xlu0 %3607, %v4134_v2  }
  0x71   : > { %v444_v36 = vadd.f32 %v443_v34, %v442_v32  ;;  %v438_v37 = vadd.f32 %v437_v35, %v436_v33 }
  0x73   : > { %v445_v38 = vrot.slane %v444_v36, 1  ;;  %v439_v39 = vrot.slane %v438_v37, 1  ;;  %3609 = vset.pattern.permute.xlu1 %v3887_v42  ;;  %3608 = vset.pattern.permute.xlu0 %v3887_v42 }
  0x74   : > { %786 = vperm.xlu1 %3609, %v4134_v2   ;;  %778 = vperm.xlu0 %3608, %v4160_v17  }
  0x75   : > { %v446_v40 = vadd.f32 %v445_v38, %v444_v36  ;;  %v440_v41 = vadd.f32 %v439_v39, %v438_v37 }
  0x77   : > { %v448_v43 = vmul.f32 0.125, %v446_v40  ;;  %v447_v44 = vmul.f32 0.125, %v440_v41 }
  0x78   : > { %794 = vperm.xlu1 %3609, %v4165_v20   ;;  %802 = vperm.xlu0 %3608, %v4147_v5  }
  0x79   : > { %v450_v45 = vadd.f32 1e-06, %v448_v43  ;;  %v449_v46 = vadd.f32 1e-06, %v447_v44 }
  0x7b   : > { %3719 = vrsqrt.f32 %v450_v45 }
  0x7c   : > { %3721 = vrsqrt.f32 %v449_v46  ;;  %3610 = vset.pattern.permute.xlu1 %v3888_v47  ;;  %3611 = vset.pattern.permute.xlu0 %v3888_v47 }
  0x7d   : > { %840 = vperm.xlu1 %3610, %v4160_v17   ;;  %848 = vperm.xlu0 %3611, %v4134_v2  }
  0x81   : > { %856 = vperm.xlu1 %3610, %v4165_v20   ;;  %3612 = vset.pattern.permute.xlu0 %v3889_v51 }
  0x82   : > { %902 = vperm.xlu0 %3612, %v4160_v17  }
  0x85   : > { %v3720_v48 = vpop.eup %3719  ;;  %864 = vperm.xlu1 %3610, %v4147_v5  }
  0x86   : > { %v3722_v49 = vpop.eup %3721  ;;  %v454_v50 = vmul.f32 %v3720_v48, %v432_v25  ;;  %926 = vperm.xlu0 %3612, %v4147_v5  }
  0x87   : > { %v453_v52 = vmul.f32 %v3722_v49, %v431_v26 }
  0x88   : > { %476 = vmatprep.subr.mxu0 %v454_v50 }
  0x89   : > { %477 = vmatpush1.msra.mxu0 %v453_v52  ;;  %3613 = vset.pattern.permute.xlu1 %v3889_v51 }
  0x8a   : > { %3458 = vmatmul.mubr.msk.f32.vlgmr.msra.gmra.mrb[0].mxu0 %vm469_vm0, %v455_v53  ;;  %910 = vperm.xlu1 %3613, %v4134_v2  }
  0x8b   : > { %546 = vmatprep.mubr.f32.mxu0 %v7001_v1  ;;  %3615 = vset.pattern.permute.xlu0 %v3890_v55 }
  0x8c   : > { %972 = vperm.xlu0 %3615, %v4134_v2  }
  0x8e   : > { %3459 = vmatmul.mubr.msk.f32.gmra.mrb[2].mxu0 %vm469_vm0, %v456_v54  ;;  %918 = vperm.xlu1 %3613, %v4165_v20  }
  0x90   : > { %3616 = vset.pattern.permute.xlu0 %v3891_v56 }
  0x91   : > { %1042 = vperm.xlu0 %3616, %v4160_v17  }
  0x92   : > { %3614 = vset.pattern.permute.xlu1 %v3890_v55 }
  0x93   : > { %964 = vperm.xlu1 %3614, %v4160_v17  }
  0x95   : > { %1066 = vperm.xlu0 %3616, %v4147_v5  }
  0x97   : > { %980 = vperm.xlu1 %3614, %v4165_v20  }
  0x99   : > { %3619 = vset.pattern.permute.xlu0 %v3892_v57 }
  0x9a   : > { %1098 = vperm.xlu0 %3619, %v4134_v2  }
  0x9b   : > { %988 = vperm.xlu1 %3614, %v4147_v5  }
  0x9e   : > { %3620 = vset.pattern.permute.xlu0 %v3893_v58 }
  0x9f   : > { %3617 = vset.pattern.permute.xlu1 %v3891_v56  ;;  %1138 = vperm.xlu0 %3620, %v4160_v17  }
  0xa0   : > { %1050 = vperm.xlu1 %3617, %v4134_v2  }
  0xa3   : > { %1162 = vperm.xlu0 %3620, %v4147_v5  }
  0xa4   : > { %1058 = vperm.xlu1 %3617, %v4165_v20  }
  0xa7   : > { %3623 = vset.pattern.permute.xlu0 %v3894_v59 }
  0xa8   : > { %3618 = vset.pattern.permute.xlu1 %v3892_v57  ;;  %1178 = vperm.xlu0 %3623, %v4134_v2  }
  0xa9   : > { %1090 = vperm.xlu1 %3618, %v4160_v17  }
  0xac   : > { %3624 = vset.pattern.permute.xlu0 %v3895_v60 }
  0xad   : > { %1106 = vperm.xlu1 %3618, %v4165_v20   ;;  %1218 = vperm.xlu0 %3624, %v4160_v17  }
  0xb1   : > { %1114 = vperm.xlu1 %3618, %v4147_v5   ;;  %1242 = vperm.xlu0 %3624, %v4147_v5  }
  0xb5   : > { %3621 = vset.pattern.permute.xlu1 %v3893_v58  ;;  %3627 = vset.pattern.permute.xlu0 %v3896_v61 }
  0xb6   : > { %1146 = vperm.xlu1 %3621, %v4134_v2   ;;  %1274 = vperm.xlu0 %3627, %v4134_v2  }
  0xba   : > { %1154 = vperm.xlu1 %3621, %v4165_v20   ;;  %3628 = vset.pattern.permute.xlu0 %v3897_v62 }
  0xbb   : > { %1314 = vperm.xlu0 %3628, %v4160_v17  }
  0xbe   : > { %3622 = vset.pattern.permute.xlu1 %v3894_v59 }
  0xbf   : > { %1170 = vperm.xlu1 %3622, %v4160_v17   ;;  %1338 = vperm.xlu0 %3628, %v4147_v5  }
  0xc3   : > { %1186 = vperm.xlu1 %3622, %v4165_v20   ;;  %3631 = vset.pattern.permute.xlu0 %v3898_v63 }
  0xc4   : > { %1400 = vperm.xlu0 %3631, %v4134_v2  }
  0xc7   : > { %1194 = vperm.xlu1 %3622, %v4147_v5  }
  0xc8   : > { %3632 = vset.pattern.permute.xlu0 %v3899_v3 }
  0xc9   : > { %1440 = vperm.xlu0 %3632, %v4160_v17  }
  0xcb   : > { %3625 = vset.pattern.permute.xlu1 %v3895_v60 }
  0xcc   : > { %1226 = vperm.xlu1 %3625, %v4134_v2  }
  0xcd   : > { %1464 = vperm.xlu0 %3632, %v4147_v5  }
  0xd0   : > { %1234 = vperm.xlu1 %3625, %v4165_v20  }
  0xd1   : > { %3635 = vset.pattern.permute.xlu0 %v3900_v4 }
  0xd2   : > { %1496 = vperm.xlu0 %3635, %v4134_v2  }
  0xd4   : > { %3626 = vset.pattern.permute.xlu1 %v3896_v61  ;;  %v4228_v6 = vpop.permute.xlu1 %628  ;;  %v462_v28 = vpop.permute.xlu0 %461 }
  0xd5   : > { %1266 = vperm.xlu1 %3626, %v4160_v17  }
  0xd6   : > { %3636 = vset.pattern.permute.xlu0 %v3901_v7 }
  0xd7   : > { %1520 = vperm.xlu0 %3636, %v4160_v17  }
  0xd8   : > { %v4231_v8 = vpop.permute.xlu1 %646  ;;  %v4283_v30 = vpop.permute.xlu0 %466 }
  0xd9   : > { %1282 = vperm.xlu1 %3626, %v4165_v20  }
  0xdb   : > { %1544 = vperm.xlu0 %3636, %v4147_v5  }
  0xdc   : > { %v4288_v32 = vpop.permute.xlu0 %619 }
  0xdd   : > { %1290 = vperm.xlu1 %3626, %v4147_v5   ;;  %v4237_v9 = vpop.permute.xlu1 %692 }
  0xde   : > { %7258 = vst [vmem:[#allocation14_spill] sm:$0xff] %v4237_v9 }
  0xdf   : > { %3639 = vset.pattern.permute.xlu0 %v3902_v10 }
  0xe0   : > { %1576 = vperm.xlu0 %3639, %v4134_v2   ;;  %v4296_v35 = vpop.permute.xlu0 %637 }
  0xe1   : > { %3629 = vset.pattern.permute.xlu1 %v3897_v62  ;;  %v4239_v11 = vpop.permute.xlu1 %700 }
  0xe2   : > { %1322 = vperm.xlu1 %3629, %v4134_v2  }
  0xe4   : > { %3640 = vset.pattern.permute.xlu0 %v3903_v12 }
  0xe5   : > { %1616 = vperm.xlu0 %3640, %v4160_v17   ;;  %v4301_v37 = vpop.permute.xlu0 %684 }
  0xe6   : > { %1330 = vperm.xlu1 %3629, %v4165_v20   ;;  %v4244_v13 = vpop.permute.xlu1 %746 }
  0xe9   : > { %1640 = vperm.xlu0 %3640, %v4147_v5   ;;  %v4306_v39 = vpop.permute.xlu0 %708 }
  0xea   : > { %3630 = vset.pattern.permute.xlu1 %v3898_v63  ;;  %v4247_v14 = vpop.permute.xlu1 %762  ;;  %7268 = vst [vmem:[#allocation24_spill] sm:$0xff] %v4306_v39 }
  0xeb   : > { %1392 = vperm.xlu1 %3630, %v4160_v17  }
  0xed   : > { %3643 = vset.pattern.permute.xlu0 %v3904_v15 }
  0xee   : > { %v4251_v16 = vpop.permute.xlu1 %770  ;;  %1672 = vperm.xlu0 %3643, %v4134_v2   ;;  %v4311_v41 = vpop.permute.xlu0 %754 }
  0xef   : > { %7259 = vst [vmem:[#allocation15_spill] sm:$0xff] %v4251_v16  ;;  %1408 = vperm.xlu1 %3630, %v4165_v20   ;;  %7270 = vst [vmem:[#allocation26_spill] sm:$0xff] %v4311_v41 }
  0xf2   : > { %3644 = vset.pattern.permute.xlu0 %v3905_v19 }
  0xf3   : > { %1416 = vperm.xlu1 %3630, %v4147_v5   ;;  %v4256_v18 = vpop.permute.xlu1 %786  ;;  %1712 = vperm.xlu0 %3644, %v4160_v17   ;;  %v4318_v44 = vpop.permute.xlu0 %778 }
  0xf7   : > { %3633 = vset.pattern.permute.xlu1 %v3899_v3  ;;  %v4259_v21 = vpop.permute.xlu1 %794  ;;  %v4324_v46 = vpop.permute.xlu0 %802 }
  0xf8   : > { %1448 = vperm.xlu1 %3633, %v4134_v2  }
  0xfc   : > { %1456 = vperm.xlu1 %3633, %v4165_v20   ;;  %v4263_v22 = vpop.permute.xlu1 %840  ;;  %v4328_v48 = vpop.permute.xlu0 %848 }
  0xfd   : > { %7274 = vst [vmem:[#allocation30_spill] sm:$0xff] %v4328_v48  ;;  %v7348_v48 = vmov 22  }
 0x100   : > { %3634 = vset.pattern.permute.xlu1 %v3900_v4  ;;  %v4265_v23 = vpop.permute.xlu1 %856 }
 0x101   : > { %1488 = vperm.xlu1 %3634, %v4160_v17   ;;  %v4332_v50 = vpop.permute.xlu0 %902 }
 0x102   : > { %7276 = vst [vmem:[#allocation32_spill] sm:$0xff] %v4332_v50  ;;  %v3917_v50 = vmov 24  }
 0x104   : > { %v4268_v24 = vpop.permute.xlu1 %864 }
 0x105   : > { %7260 = vst [vmem:[#allocation16_spill] sm:$0xff] %v4268_v24  ;;  %1504 = vperm.xlu1 %3634, %v4165_v20   ;;  %v4336_v52 = vpop.permute.xlu0 %926 }
 0x106   : > { %7278 = vst [vmem:[#allocation34_spill] sm:$0xff] %v4336_v52 }
 0x109   : > { %1512 = vperm.xlu1 %3634, %v4147_v5   ;;  %v4272_v25 = vpop.permute.xlu1 %910 }
 0x10a   : > { %7261 = vst [vmem:[#allocation17_spill] sm:$0xff] %v4272_v25 }
 0x10b   : > { %v4340_v54 = vpop.permute.xlu0 %972 }
 0x10c   : > { %7280 = vst [vmem:[#allocation36_spill] sm:$0xff] %v4340_v54 }
 0x10d   : > { %3637 = vset.pattern.permute.xlu1 %v3901_v7  ;;  %v4274_v26 = vpop.permute.xlu1 %918 }
 0x10e   : > { %7262 = vst [vmem:[#allocation18_spill] sm:$0xff] %v4274_v26  ;;  %1528 = vperm.xlu1 %3637, %v4134_v2  }
 0x110   : > { %v4346_v57 = vpop.permute.xlu0 %1042 }
 0x111   : > { %7283 = vst [vmem:[#allocation39_spill] sm:$0xff] %v4346_v57 }
 0x112   : > { %1536 = vperm.xlu1 %3637, %v4165_v20   ;;  %v4278_v27 = vpop.permute.xlu1 %964 }
 0x114   : > { %v4356_v3 = vpop.permute.xlu0 %1066 }
 0x115   : > { %7285 = vst [vmem:[#allocation41_spill] sm:$0xff] %v4356_v3 }
 0x116   : > { %3638 = vset.pattern.permute.xlu1 %v3902_v10  ;;  %v4280_v29 = vpop.permute.xlu1 %980 }
 0x117   : > { %1568 = vperm.xlu1 %3638, %v4160_v17  }
 0x119   : > { %v4365_v10 = vpop.permute.xlu0 %1098 }
 0x11a   : > { %v4285_v31 = vpop.permute.xlu1 %988  ;;  %7288 = vst [vmem:[#allocation44_spill] sm:$0xff] %v4365_v10 }
 0x11b   : > { %7263 = vst [vmem:[#allocation19_spill] sm:$0xff] %v4285_v31  ;;  %1584 = vperm.xlu1 %3638, %v4165_v20  }
 0x11f   : > { %1592 = vperm.xlu1 %3638, %v4147_v5   ;;  %v4291_v33 = vpop.permute.xlu1 %1050 }
 0x120   : > { %7264 = vst [vmem:[#allocation20_spill] sm:$0xff] %v4291_v33 }
 0x123   : > { %3641 = vset.pattern.permute.xlu1 %v3903_v12  ;;  %v4293_v34 = vpop.permute.xlu1 %1058 }
 0x124   : > { %7265 = vst [vmem:[#allocation21_spill] sm:$0xff] %v4293_v34  ;;  %1624 = vperm.xlu1 %3641, %v4134_v2  }
 0x128   : > { %1632 = vperm.xlu1 %3641, %v4165_v20   ;;  %v4299_v36 = vpop.permute.xlu1 %1090 }
 0x129   : > { %7266 = vst [vmem:[#allocation22_spill] sm:$0xff] %v4299_v36 }
 0x12c   : > { %3642 = vset.pattern.permute.xlu1 %v3904_v15  ;;  %v4303_v38 = vpop.permute.xlu1 %1106 }
 0x12d   : > { %7267 = vst [vmem:[#allocation23_spill] sm:$0xff] %v4303_v38  ;;  %1664 = vperm.xlu1 %3642, %v4160_v17  }
 0x130   : > { %v4308_v40 = vpop.permute.xlu1 %1114 }
 0x131   : > { %7269 = vst [vmem:[#allocation25_spill] sm:$0xff] %v4308_v40  ;;  %1680 = vperm.xlu1 %3642, %v4165_v20  }
 0x135   : > { %1688 = vperm.xlu1 %3642, %v4147_v5   ;;  %v4314_v42 = vpop.permute.xlu1 %1146 }
 0x136   : > { %7271 = vst [vmem:[#allocation27_spill] sm:$0xff] %v4314_v42 }
 0x139   : > { %3645 = vset.pattern.permute.xlu1 %v3905_v19  ;;  %v4316_v43 = vpop.permute.xlu1 %1154  ;;  %v4379_v19 = vpop.permute.xlu0 %1138 }
 0x13a   : > { %7272 = vst [vmem:[#allocation28_spill] sm:$0xff] %v4316_v43  ;;  %1720 = vperm.xlu1 %3645, %v4134_v2   ;;  %7291 = vst [vmem:[#allocation47_spill] sm:$0xff] %v4379_v19 }
 0x13e   : > { %1728 = vperm.xlu1 %3645, %v4165_v20   ;;  %v4322_v45 = vpop.permute.xlu1 %1170 }
 0x142   : > { %v4326_v47 = vpop.permute.xlu1 %1186 }
 0x143   : > { %7273 = vst [vmem:[#allocation29_spill] sm:$0xff] %v4326_v47 }
 0x146   : > { %v4330_v49 = vpop.permute.xlu1 %1194 }
 0x147   : > { %7275 = vst [vmem:[#allocation31_spill] sm:$0xff] %v4330_v49 }
 0x14b   : > { %v4334_v51 = vpop.permute.xlu1 %1226 }
 0x14c   : > { %7277 = vst [vmem:[#allocation33_spill] sm:$0xff] %v4334_v51 }
 0x14f   : > { %v4338_v53 = vpop.permute.xlu1 %1234 }
 0x150   : > { %7279 = vst [vmem:[#allocation35_spill] sm:$0xff] %v4338_v53 }
 0x154   : > { %v4342_v55 = vpop.permute.xlu1 %1266 }
 0x155   : > { %7281 = vst [vmem:[#allocation37_spill] sm:$0xff] %v4342_v55 }
 0x158   : > { %v4344_v56 = vpop.permute.xlu1 %1282 }
 0x159   : > { %7282 = vst [vmem:[#allocation38_spill] sm:$0xff] %v4344_v56 }
 0x15c   : > { %v4354_v61 = vpop.permute.xlu1 %1290 }
 0x15d   : > { %v542_v58 = vpop.f32.mrb[0].mxu0  ;;  %7284 = vst [vmem:[#allocation40_spill] sm:$0xff] %v4354_v61 }
 0x15e   : > { %v4348_v59 = vadd.f32 %v542_v58, %v462_v28  ;;  %v544_v60 = vpop.f32.mrb[1].mxu0 }
 0x15f   : > { %v4363_v7 = vadd.f32 %v544_v60, %v462_v28  ;;  %v4389_v60 = vpop.permute.xlu0 %1162 }
 0x160   : > { %995 = vrot.lane.b32.xlu0 %v4348_v59, %s3906_s19  ;;  %557 = vrot.lane.b32.xlu1 %v4348_v59, %s3907_s12  ;;  %7294 = vst [vmem:[#allocation50_spill] sm:$0xff] %v4389_v60 }
 0x161   : > { %v548_v62 = vpop.f32.mrb[2].mxu0  ;;  %v4361_v4 = vpop.permute.xlu1 %1322  ;;  %7287 = vst [vmem:[#allocation43_spill] sm:$0xff] %v4363_v7 }
 0x162   : > { %v550_v63 = vpop.f32.mrb[3].mxu0  ;;  %7286 = vst [vmem:[#allocation42_spill] sm:$0xff] %v4361_v4  ;;  %v4373_v15 = vadd.f32 %v548_v62, %v4283_v30 }
 0x163   : > { %v4395_v62 = vadd.f32 %v550_v63, %v4283_v30  ;;  %v4397_v1 = vpop.permute.xlu0 %1178 }
 0x164   : > { %1695 = vrot.lane.b32.xlu0 %v4348_v59, %s7095_s23  ;;  %1345 = vrot.lane.b32.xlu1 %v4348_v59, %s3909_s16  ;;  %7290 = vst [vmem:[#allocation46_spill] sm:$0xff] %v4373_v15  ;;  %7296 = vst [vmem:[#allocation52_spill] sm:$0xff] %v4397_v1 }
 0x165   : > { %v4370_v12 = vpop.permute.xlu1 %1330  ;;  %7295 = vst [vmem:[#allocation51_spill] sm:$0xff] %v4395_v62 }
 0x166   : > { %7289 = vst [vmem:[#allocation45_spill] sm:$0xff] %v4370_v12 }
 0x168   : > { %561 = vrot.lane.b32.xlu0 %v4363_v7, %s3907_s12  ;;  %1349 = vrot.lane.b32.xlu1 %v4363_v7, %s3909_s16 }
 0x16a   : > { %v4381_v28 = vpop.permute.xlu1 %1392 }
 0x16b   : > { %7292 = vst [vmem:[#allocation48_spill] sm:$0xff] %v4381_v28  ;;  %v4408_v28 = vpop.permute.xlu0 %1218 }
 0x16c   : > { %999 = vrot.lane.b32.xlu0 %v4363_v7, %s3906_s19  ;;  %559 = vrot.lane.b32.xlu1 %v4373_v15, %s3907_s12  ;;  %7299 = vst [vmem:[#allocation55_spill] sm:$0xff] %v4408_v28 }
 0x16e   : > { %v4387_v58 = vpop.permute.xlu1 %1408 }
 0x16f   : > { %7293 = vst [vmem:[#allocation49_spill] sm:$0xff] %v4387_v58  ;;  %v4414_v30 = vpop.permute.xlu0 %1242 }
 0x170   : > { %1699 = vrot.lane.b32.xlu0 %v4363_v7, %s7095_s23  ;;  %997 = vrot.lane.b32.xlu1 %v4373_v15, %s3906_s19  ;;  %7301 = vst [vmem:[#allocation57_spill] sm:$0xff] %v4414_v30 }
 0x172   : > { %v4399_v0 = vpop.permute.xlu1 %1416 }
 0x173   : > { %7297 = vst [vmem:[#allocation53_spill] sm:$0xff] %v4399_v0  ;;  %v4418_v0 = vpop.permute.xlu0 %1274 }
 0x174   : > { %1347 = vrot.lane.b32.xlu0 %v4373_v15, %s3909_s16  ;;  %1697 = vrot.lane.b32.xlu1 %v4373_v15, %s7095_s23  ;;  %7303 = vst [vmem:[#allocation59_spill] sm:$0xff] %v4418_v0 }
 0x177   : > { %v4404_v58 = vpop.permute.xlu1 %1448  ;;  %v4422_v61 = vpop.permute.xlu0 %1314 }
 0x178   : > { %1351 = vrot.lane.b32.xlu0 %v4395_v62, %s3909_s16  ;;  %563 = vrot.lane.b32.xlu1 %v4395_v62, %s3907_s12  ;;  %7298 = vst [vmem:[#allocation54_spill] sm:$0xff] %v4404_v58  ;;  %7305 = vst [vmem:[#allocation61_spill] sm:$0xff] %v4422_v61  ;;  %s7097_s12 = smov 125   ;;  %s3914_s16 = smov 126  }
 0x17b   : > { %v4410_v4 = vpop.permute.xlu1 %1456  ;;  %v4428_v55 = vpop.permute.xlu0 %1338 }
 0x17c   : > { %1001 = vrot.lane.b32.xlu1 %v4395_v62, %s3906_s19  ;;  %7300 = vst [vmem:[#allocation56_spill] sm:$0xff] %v4410_v4  ;;  %7308 = vst [vmem:[#allocation64_spill] sm:$0xff] %v4428_v55 }
 0x17f   : > { %v4432_v51 = vpop.permute.xlu0 %1400 }
 0x180   : > { %1701 = vrot.lane.b32.xlu1 %v4395_v62, %s7095_s23  ;;  %v4416_v63 = vpop.permute.xlu1 %1488  ;;  %7310 = vst [vmem:[#allocation66_spill] sm:$0xff] %v4432_v51 }
 0x181   : > { %7302 = vst [vmem:[#allocation58_spill] sm:$0xff] %v4416_v63 }
 0x183   : > { %v4436_v30 = vpop.permute.xlu0 %1440 }
 0x184   : > { %v4420_v12 = vpop.permute.xlu1 %1504  ;;  %7312 = vst [vmem:[#allocation68_spill] sm:$0xff] %v4436_v30 }
 0x185   : > { %7304 = vst [vmem:[#allocation60_spill] sm:$0xff] %v4420_v12 }
 0x187   : > { %v4440_v0 = vpop.permute.xlu0 %1464 }
 0x188   : > { %v4424_v58 = vpop.permute.xlu1 %1512  ;;  %7314 = vst [vmem:[#allocation70_spill] sm:$0xff] %v4440_v0 }
 0x189   : > { %7306 = vst [vmem:[#allocation62_spill] sm:$0xff] %v4424_v58 }
 0x18b   : > { %v4444_v61 = vpop.permute.xlu0 %1496 }
 0x18c   : > { %7316 = vst [vmem:[#allocation72_spill] sm:$0xff] %v4444_v61 }
 0x18d   : > { %v4426_v56 = vpop.permute.xlu1 %1528 }
 0x18e   : > { %7307 = vst [vmem:[#allocation63_spill] sm:$0xff] %v4426_v56 }
 0x18f   : > { %v4448_v56 = vpop.permute.xlu0 %1520 }
 0x190   : > { %7318 = vst [vmem:[#allocation74_spill] sm:$0xff] %v4448_v56 }
 0x191   : > { %v4430_v4 = vpop.permute.xlu1 %1536 }
 0x192   : > { %7309 = vst [vmem:[#allocation65_spill] sm:$0xff] %v4430_v4 }
 0x193   : > { %v4452_v4 = vpop.permute.xlu0 %1544 }
 0x194   : > { %7320 = vst [vmem:[#allocation76_spill] sm:$0xff] %v4452_v4  ;;  %v565_v4 = vlaneseq }
 0x196   : > { %v4434_v53 = vpop.permute.xlu1 %1568 }
 0x197   : > { %7311 = vst [vmem:[#allocation67_spill] sm:$0xff] %v4434_v53  ;;  %v4456_v53 = vpop.permute.xlu0 %1576 }
 0x198   : > { %7322 = vst [vmem:[#allocation78_spill] sm:$0xff] %v4456_v53 }
 0x19a   : > { %v4438_v63 = vpop.permute.xlu1 %1584 }
 0x19b   : > { %7313 = vst [vmem:[#allocation69_spill] sm:$0xff] %v4438_v63  ;;  %v4460_v63 = vpop.permute.xlu0 %1616 }
 0x19c   : > { %7324 = vst [vmem:[#allocation80_spill] sm:$0xff] %v4460_v63 }
 0x19e   : > { %v4442_v12 = vpop.permute.xlu1 %1592 }
 0x19f   : > { %7315 = vst [vmem:[#allocation71_spill] sm:$0xff] %v4442_v12  ;;  %v4464_v12 = vpop.permute.xlu0 %1640 }
 0x1a0   : > { %7326 = vst [vmem:[#allocation82_spill] sm:$0xff] %v4464_v12 }
 0x1a3   : > { %v4446_v58 = vpop.permute.xlu1 %1624  ;;  %v4466_v61 = vpop.permute.xlu0 %1672 }
 0x1a4   : > { %7317 = vst [vmem:[#allocation73_spill] sm:$0xff] %v4446_v58  ;;  %7327 = vst [vmem:[#allocation83_spill] sm:$0xff] %v4466_v61 }
 0x1a7   : > { %v4450_v55 = vpop.permute.xlu1 %1632 }
 0x1a8   : > { %7319 = vst [vmem:[#allocation75_spill] sm:$0xff] %v4450_v55  ;;  %v4472_v55 = vpop.permute.xlu0 %1712 }
 0x1a9   : > { %7330 = vst [vmem:[#allocation86_spill] sm:$0xff] %v4472_v55 }
 0x1ac   : > { %v4454_v51 = vpop.permute.xlu1 %1664 }
 0x1ad   : > { %7321 = vst [vmem:[#allocation77_spill] sm:$0xff] %v4454_v51  ;;  %v575_v51 = vshrl.u32 %v565_v4, 7 }
 0x1af   : > { %v4478_v63 = vsub.s32 0, %v575_v51  ;;  %v4489_v55 = vsub.s32 1, %v575_v51 }
 0x1b0   : > { %v4458_v30 = vpop.permute.xlu1 %1680 }
 0x1b1   : > { %7323 = vst [vmem:[#allocation79_spill] sm:$0xff] %v4458_v30  ;;  %v4476_v30 = vand.u32 127, %v565_v4  ;;  %7331 = vst [vmem:[#allocation87_spill] sm:$0xff] %v4478_v63 }
 0x1b2   : > { %7333 = vst [vmem:[#allocation89_spill] sm:$0xff] %v4489_v55 }
 0x1b3   : > { %vm567_vm1 = vcmp.lt.s32.totalorder %v4476_v30, 48  ;;  %vm1353_vm2 = vcmp.lt.s32.totalorder %v4476_v30, 16  ;;  %vm1003_vm3 = vcmp.lt.s32.totalorder %v4476_v30, 32  ;;  %vm596_vm4 = vcmp.lt.s32.totalorder %v4476_v30, 3 }
 0x1b4   : > { %v4462_v0 = vpop.permute.xlu1 %1688  ;;  %vm661_vm5 = vcmp.lt.s32.totalorder %v4476_v30, 2  ;;  %vm723_vm6 = vcmp.lt.s32.totalorder %v4476_v30, 1  ;;  %vm817_vm7 = vcmp.lt.s32.totalorder %v4476_v30, 127  ;;  %vm941_vm8 = vcmp.lt.s32.totalorder %v4476_v30, 125 }
 0x1b5   : > { %7325 = vst [vmem:[#allocation81_spill] sm:$0xff] %v4462_v0  ;;  %v572_v0 = vld [vmem:[%s6992_s9] ss:$8 sm:$0x3]  ;;  %vm879_vm9 = vcmp.lt.s32.totalorder %v4476_v30, 126  ;;  %vm2023_vm10 = vcmp.lt.s32.totalorder %v4476_v30, 112 }
 0x1b6   : > { %v581_v1 = vrot.slane %v572_v0, %v4489_v55  ;;  %vm2373_vm11 = vcmp.lt.s32.totalorder %v4476_v30, 96  ;;  %vm2723_vm12 = vcmp.lt.s32.totalorder %v4476_v30, 80 }
 0x1b9   : > { %v4468_v58 = vpop.permute.xlu1 %1720 }
 0x1ba   : > { %7328 = vst [vmem:[#allocation84_spill] sm:$0xff] %v4468_v58 }
 0x1bd   : > { %v4470_v56 = vpop.permute.xlu1 %1728 }
 0x1be   : > { %7329 = vst [vmem:[#allocation85_spill] sm:$0xff] %v4470_v56  ;;  %v577_v56 = vrot.slane %v572_v0, %v4478_v63 }
 0x1d2   : > { %v4474_v28 = vpop.permute.xlu0 %995  ;;  %v558_v53 = vpop.permute.xlu1 %557 }
 0x1d6   : > { %v4483_v12 = vpop.permute.xlu0 %1695  ;;  %v4485_v58 = vpop.permute.xlu1 %1345 }
 0x1d7   : > { %7332 = vst [vmem:[#allocation88_spill] sm:$0xff] %v4483_v12 }
 0x1da   : > { %v562_v61 = vpop.permute.xlu0 %561  ;;  %v4491_v49 = vpop.permute.xlu1 %1349 }
 0x1db   : > { %v570_v4 = vsel %vm567_vm1, %v562_v61, %v558_v53  ;;  %v568_v12 = vsel %vm567_vm1, %v558_v53, %v562_v61 }
 0x1dc   : > { %v4496_v47 = vmul.f32 %v577_v56, %v570_v4  ;;  %v4504_v42 = vmul.f32 %v581_v1, %v568_v12  ;;  %v3466_v12 = vld [vmem:[%s6992_s9 + $0x2] ss:$8 sm:$0x3] }
 0x1dd   : > { %v1364_v4 = vrot.slane %v3466_v12, %v4478_v63 }
 0x1de   : > { %v1000_v60 = vpop.permute.xlu0 %999  ;;  %715 = vrot.lane.b32.xlu1 %v4496_v47, %s7091_s15  ;;  %588 = vrot.lane.b32.xlu0 %v4496_v47, %s7095_s23  ;;  %v560_v51 = vpop.permute.xlu1 %559 }
 0x1e2   : > { %v4506_v43 = vpop.permute.xlu0 %1699  ;;  %719 = vrot.lane.b32.xlu1 %v4504_v42, %s7091_s15  ;;  %592 = vrot.lane.b32.xlu0 %v4504_v42, %s7095_s23  ;;  %v998_v0 = vpop.permute.xlu1 %997 }
 0x1e3   : > { %7334 = vst [vmem:[#allocation90_spill] sm:$0xff] %v4506_v43  ;;  %v1368_v43 = vrot.slane %v3466_v12, %v4489_v55 }
 0x1e6   : > { %v1348_v53 = vpop.permute.xlu0 %1347  ;;  %809 = vrot.lane.b32.xlu1 %v4496_v47, %s3911_s22  ;;  %v4514_v61 = vpop.permute.xlu1 %1697  ;;  %653 = vrot.lane.b32.xlu0 %v4496_v47, %s7093_s30 }
 0x1e7   : > { %7335 = vst [vmem:[#allocation91_spill] sm:$0xff] %v4514_v61  ;;  %v3465_v61 = vld [vmem:[%s6992_s9 + $0x1] ss:$8 sm:$0x3] }
 0x1ea   : > { %v1352_v40 = vpop.permute.xlu0 %1351  ;;  %813 = vrot.lane.b32.xlu1 %v4504_v42, %s3911_s22  ;;  %v564_v10 = vpop.permute.xlu1 %563  ;;  %657 = vrot.lane.b32.xlu0 %v4504_v42, %s7093_s30 }
 0x1eb   : > { %v1355_v19 = vsel %vm1353_vm2, %v1348_v53, %v1352_v40  ;;  %v1357_v3 = vsel %vm1353_vm2, %v1352_v40, %v1348_v53  ;;  %v569_v12 = vsel %vm567_vm1, %v560_v51, %v564_v10  ;;  %v571_v33 = vsel %vm567_vm1, %v564_v10, %v560_v51 }
 0x1ec   : > { %v4539_v31 = vmul.f32 %v1364_v4, %v1357_v3  ;;  %v4541_v54 = vmul.f32 %v1368_v43, %v1355_v19  ;;  %v4543_v52 = vmul.f32 %v577_v56, %v571_v33  ;;  %v4545_v25 = vmul.f32 %v581_v1, %v569_v12 }
 0x1ed   : > { %v1014_v40 = vrot.slane %v3465_v61, %v4478_v63  ;;  %v1018_v53 = vrot.slane %v3465_v61, %v4489_v55  ;;  %v1006_v10 = vsel %vm1003_vm3, %v1000_v60, %v4474_v28  ;;  %v7066_v51 = vmov 22  }
 0x1ee   : > { %7336 = vst [vmem:[#allocation92_spill] sm:$0xff] %v4539_v31  ;;  %7337 = vst [vmem:[#allocation93_spill] sm:$0xff] %v4541_v54  ;;  %933 = vrot.lane.b32.xlu1 %v4496_v47, %s7097_s12  ;;  %v1002_v24 = vpop.permute.xlu1 %1001  ;;  %871 = vrot.lane.b32.xlu0 %v4496_v47, %s3914_s16  ;;  %v1354_v61 = vsel %vm1353_vm2, %v4485_v58, %v4491_v49 }
 0x1ef   : > { %v1005_v33 = vsel %vm1003_vm3, %v998_v0, %v1002_v24  ;;  %v1007_v1 = vsel %vm1003_vm3, %v1002_v24, %v998_v0  ;;  %v4569_v19 = vmul.f32 %v1014_v40, %v1006_v10  ;;  %v1004_v24 = vsel %vm1003_vm3, %v4474_v28, %v1000_v60  ;;  %3646 = vset.pattern.permute.xlu1 %v7066_v51 }
 0x1f0   : > { %v4558_v56 = vmul.f32 %v1014_v40, %v1007_v1  ;;  %v4560_v3 = vmul.f32 %v1018_v53, %v1005_v33  ;;  %v4579_v0 = vmul.f32 %v1018_v53, %v1004_v24  ;;  %v1356_v28 = vsel %vm1353_vm2, %v4491_v49, %v4485_v58 }
 0x1f1   : > { %7340 = vst [vmem:[#allocation96_spill] sm:$0xff] %v4569_v19  ;;  %v4597_v60 = vmul.f32 %v1364_v4, %v1356_v28  ;;  %v4607_v12 = vmul.f32 %v1368_v43, %v1354_v61  ;;  %v4882_v26 = vmul.f32 %v4322_v45, %v4569_v19 }
 0x1f2   : > { %7338 = vst [vmem:[#allocation94_spill] sm:$0xff] %v4558_v56  ;;  %7339 = vst [vmem:[#allocation95_spill] sm:$0xff] %v4560_v3  ;;  %937 = vrot.lane.b32.xlu1 %v4504_v42, %s7097_s12  ;;  %875 = vrot.lane.b32.xlu0 %v4504_v42, %s3914_s16  ;;  %v4677_v43 = vpop.permute.xlu1 %1701 }
 0x1f3   : > { %7341 = vst [vmem:[#allocation97_spill] sm:$0xff] %v4579_v0  ;;  %7342 = vst [vmem:[#allocation98_spill] sm:$0xff] %v4597_v60 }
 0x1f4   : > { %7343 = vst [vmem:[#allocation99_spill] sm:$0xff] %v4607_v12  ;;  %7344 = vst [vmem:[#allocation100_spill] sm:$0xff] %v4677_v43 }
 0x1f5   : > { %7372 = vst [vmem:[#allocation127_spill] sm:$0xff] %v4882_v26 }
 0x1f6   : > { %1073 = vrot.lane.b32.xlu1 %v4569_v19, %s7093_s30  ;;  %1025 = vrot.lane.b32.xlu0 %v4569_v19, %s7095_s23 }
 0x1fa   : > { %1077 = vrot.lane.b32.xlu1 %v4579_v0, %s7093_s30  ;;  %1029 = vrot.lane.b32.xlu0 %v4579_v0, %s7095_s23 }
 0x1fe   : > { %1249 = vrot.lane.b32.xlu1 %v4569_v19, %s3914_s16  ;;  %1121 = vrot.lane.b32.xlu0 %v4569_v19, %s7091_s15 }
 0x202   : > { %1253 = vrot.lane.b32.xlu1 %v4579_v0, %s3914_s16  ;;  %1125 = vrot.lane.b32.xlu0 %v4579_v0, %s7091_s15 }
 0x206   : > { %1375 = vrot.lane.b32.xlu1 %v4597_v60, %s7095_s23  ;;  %1201 = vrot.lane.b32.xlu0 %v4569_v19, %s3911_s22 }
 0x20a   : > { %1379 = vrot.lane.b32.xlu1 %v4607_v12, %s7095_s23  ;;  %1205 = vrot.lane.b32.xlu0 %v4579_v0, %s3911_s22 }
 0x20e   : > { %1471 = vrot.lane.b32.xlu1 %v4597_v60, %s7091_s15  ;;  %1297 = vrot.lane.b32.xlu0 %v4569_v19, %s7097_s12 }
 0x212   : > { %1475 = vrot.lane.b32.xlu1 %v4607_v12, %s7091_s15  ;;  %1301 = vrot.lane.b32.xlu0 %v4579_v0, %s7097_s12 }
 0x216   : > { %1551 = vrot.lane.b32.xlu1 %v4597_v60, %s3911_s22  ;;  %1423 = vrot.lane.b32.xlu0 %v4597_v60, %s7093_s30 }
 0x21a   : > { %1555 = vrot.lane.b32.xlu1 %v4607_v12, %s3911_s22  ;;  %1427 = vrot.lane.b32.xlu0 %v4607_v12, %s7093_s30 }
 0x21e   : > { %1647 = vrot.lane.b32.xlu1 %v4597_v60, %s7097_s12  ;;  %1599 = vrot.lane.b32.xlu0 %v4597_v60, %s3914_s16 }
 0x222   : > { %1651 = vrot.lane.b32.xlu1 %v4607_v12, %s7097_s12  ;;  %1603 = vrot.lane.b32.xlu0 %v4607_v12, %s3914_s16 }
 0x226   : > { %590 = vrot.lane.b32.xlu1 %v4543_v52, %s7095_s23  ;;  %717 = vrot.lane.b32.xlu0 %v4543_v52, %s7091_s15 }
 0x22a   : > { %594 = vrot.lane.b32.xlu1 %v4545_v25, %s7095_s23  ;;  %721 = vrot.lane.b32.xlu0 %v4545_v25, %s7091_s15 }
 0x22e   : > { %655 = vrot.lane.b32.xlu1 %v4543_v52, %s7093_s30  ;;  %811 = vrot.lane.b32.xlu0 %v4543_v52, %s3911_s22 }
 0x232   : > { %659 = vrot.lane.b32.xlu1 %v4545_v25, %s7093_s30  ;;  %815 = vrot.lane.b32.xlu0 %v4545_v25, %s3911_s22 }
 0x236   : > { %873 = vrot.lane.b32.xlu1 %v4543_v52, %s3914_s16  ;;  %935 = vrot.lane.b32.xlu0 %v4543_v52, %s7097_s12 }
 0x23a   : > { %877 = vrot.lane.b32.xlu1 %v4545_v25, %s3914_s16  ;;  %939 = vrot.lane.b32.xlu0 %v4545_v25, %s7097_s12 }
 0x23e   : > { %1027 = vrot.lane.b32.xlu1 %v4558_v56, %s7095_s23  ;;  %1075 = vrot.lane.b32.xlu0 %v4558_v56, %s7093_s30 }
 0x242   : > { %1031 = vrot.lane.b32.xlu1 %v4560_v3, %s7095_s23  ;;  %1079 = vrot.lane.b32.xlu0 %v4560_v3, %s7093_s30 }
 0x246   : > { %1123 = vrot.lane.b32.xlu1 %v4558_v56, %s7091_s15  ;;  %1251 = vrot.lane.b32.xlu0 %v4558_v56, %s3914_s16 }
 0x24a   : > { %1127 = vrot.lane.b32.xlu1 %v4560_v3, %s7091_s15  ;;  %1255 = vrot.lane.b32.xlu0 %v4560_v3, %s3914_s16 }
 0x24e   : > { %1203 = vrot.lane.b32.xlu1 %v4558_v56, %s3911_s22  ;;  %1377 = vrot.lane.b32.xlu0 %v4539_v31, %s7095_s23 }
 0x250   : > { %v4683_v49 = vpop.permute.xlu0 %588  ;;  %v4685_v58 = vpop.permute.xlu1 %715 }
 0x252   : > { %1207 = vrot.lane.b32.xlu1 %v4560_v3, %s3911_s22  ;;  %1381 = vrot.lane.b32.xlu0 %v4541_v54, %s7095_s23 }
 0x254   : > { %v4691_v4 = vpop.permute.xlu0 %592  ;;  %v4693_v40 = vpop.permute.xlu1 %719 }
 0x255   : > { %v599_v36 = vsel %vm596_vm4, %v4691_v4, %v4683_v49 }
 0x256   : > { %1299 = vrot.lane.b32.xlu1 %v4558_v56, %s7097_s12  ;;  %1473 = vrot.lane.b32.xlu0 %v4539_v31, %s7091_s15 }
 0x258   : > { %v4699_v53 = vpop.permute.xlu1 %809  ;;  %v4701_v33 = vpop.permute.xlu0 %653 }
 0x25a   : > { %1303 = vrot.lane.b32.xlu1 %v4560_v3, %s7097_s12  ;;  %1477 = vrot.lane.b32.xlu0 %v4541_v54, %s7091_s15 }
 0x25c   : > { %v4707_v1 = vpop.permute.xlu1 %813  ;;  %v4709_v10 = vpop.permute.xlu0 %657 }
 0x25e   : > { %1425 = vrot.lane.b32.xlu1 %v4539_v31, %s7093_s30  ;;  %1553 = vrot.lane.b32.xlu0 %v4539_v31, %s3911_s22 }
 0x260   : > { %v4715_v24 = vpop.permute.xlu1 %933  ;;  %v4717_v28 = vpop.permute.xlu0 %871 }
 0x262   : > { %1429 = vrot.lane.b32.xlu1 %v4541_v54, %s7093_s30  ;;  %1557 = vrot.lane.b32.xlu0 %v4541_v54, %s3911_s22 }
 0x264   : > { %v4723_v61 = vpop.permute.xlu1 %937  ;;  %v4725_v51 = vpop.permute.xlu0 %875 }
 0x266   : > { %1601 = vrot.lane.b32.xlu1 %v4539_v31, %s3914_s16  ;;  %1649 = vrot.lane.b32.xlu0 %v4539_v31, %s7097_s12 }
 0x268   : > { %v4731_v43 = vpop.permute.xlu1 %1073  ;;  %v4733_v12 = vpop.permute.xlu0 %1025 }
 0x26a   : > { %1605 = vrot.lane.b32.xlu1 %v4541_v54, %s3914_s16  ;;  %1653 = vrot.lane.b32.xlu0 %v4541_v54, %s7097_s12  ;;  %s7544_s12 = smov 2  }
 0x26c   : > { %v4739_v3 = vpop.permute.xlu1 %1077  ;;  %v4741_v60 = vpop.permute.xlu0 %1029 }
 0x26e   : > { %1743 = vrot.lane.b32.xlu1 %v4348_v59, %s7093_s30  ;;  %1736 = vperm.xlu0 %3644, %v4147_v5  }
 0x270   : > { %v4746_v31 = vpop.permute.xlu1 %1249  ;;  %v4748_v56 = vpop.permute.xlu0 %1121 }
 0x271   : > { %7345 = vst [vmem:[#allocation101_spill] sm:$0xff] %v4746_v31  ;;  %7346 = vst [vmem:[#allocation102_spill] sm:$0xff] %v4748_v56  ;;  %v3916_v56 = vmov 23  }
 0x272   : > { %1747 = vrot.lane.b32.xlu1 %v4363_v7, %s7093_s30  ;;  %1745 = vrot.lane.b32.xlu0 %v4373_v15, %s7093_s30 }
 0x273   : > { %3647 = vset.pattern.permute.xlu0 %v7348_v48 }
 0x274   : > { %v4754_v54 = vpop.permute.xlu1 %1253  ;;  %v4757_v34 = vpop.permute.xlu0 %1125 }
 0x275   : > { %7347 = vst [vmem:[#allocation103_spill] sm:$0xff] %v4754_v54  ;;  %7349 = vst [vmem:[#allocation104_spill] sm:$0xff] %v4757_v34 }
 0x276   : > { %1760 = vperm.xlu1 %3646, %v4160_v17   ;;  %1749 = vrot.lane.b32.xlu0 %v4395_v62, %s7093_s30  ;;  %s7540_s30 = smov 3  }
 0x278   : > { %v4762_v31 = vpop.permute.xlu1 %1375  ;;  %v4764_v16 = vpop.permute.xlu0 %1201 }
 0x279   : > { %7350 = vst [vmem:[#allocation105_spill] sm:$0xff] %v4762_v31  ;;  %7351 = vst [vmem:[#allocation106_spill] sm:$0xff] %v4764_v16 }
 0x27a   : > { %1776 = vperm.xlu1 %3646, %v4165_v20   ;;  %1768 = vperm.xlu0 %3647, %v4134_v2  }
 0x27c   : > { %v4768_v41 = vpop.permute.xlu1 %1379  ;;  %v4770_v54 = vpop.permute.xlu0 %1205 }
 0x27d   : > { %7352 = vst [vmem:[#allocation107_spill] sm:$0xff] %v4768_v41  ;;  %7353 = vst [vmem:[#allocation108_spill] sm:$0xff] %v4770_v54  ;;  %v3460_v41 = vld [vmem:[%s6993_s10 + $0x1] ss:$8 sm:$0x3] }
 0x27e   : > { %1784 = vperm.xlu1 %3646, %v4147_v5   ;;  %1791 = vrot.lane.b32.xlu0 %v4348_v59, %s7091_s15  ;;  %v4838_v39 = vrot.slane %v3460_v41, %v4478_v63  ;;  %v4841_v9 = vrot.slane %v3460_v41, %v4489_v55  ;;  %v597_v41 = vsel %vm596_vm4, %v4683_v49, %v4691_v4 }
 0x27f   : > { %3648 = vset.pattern.permute.xlu0 %v3916_v56  ;;  %v4886_v49 = vmul.f32 %v4259_v21, %v4496_v47  ;;  %v4890_v4 = vmul.f32 %v4259_v21, %v4504_v42 }
 0x280   : > { %v4775_v48 = vpop.permute.xlu1 %1471  ;;  %v4777_v31 = vpop.permute.xlu0 %1297  ;;  %7366 = vst [vmem:[#allocation121_spill] sm:$0xff] %v4838_v39  ;;  %7367 = vst [vmem:[#allocation122_spill] sm:$0xff] %v4841_v9 }
 0x281   : > { %7354 = vst [vmem:[#allocation109_spill] sm:$0xff] %v4775_v48  ;;  %7355 = vst [vmem:[#allocation110_spill] sm:$0xff] %v4777_v31  ;;  %v601_v48 = vld [vmem:[%s6993_s10] ss:$8 sm:$0x3] }
 0x282   : > { %1793 = vrot.lane.b32.xlu1 %v4373_v15, %s7091_s15  ;;  %1795 = vrot.lane.b32.xlu0 %v4363_v7, %s7091_s15  ;;  %v4824_v31 = vrot.slane %v601_v48, %v4478_v63 }
 0x283   : > { %3649 = vset.pattern.permute.xlu1 %v3916_v56  ;;  %v3461_v56 = vld [vmem:[%s6993_s10 + $0x2] ss:$8 sm:$0x3] }
 0x284   : > { %v4783_v2 = vpop.permute.xlu1 %1475  ;;  %v4785_v20 = vpop.permute.xlu0 %1301  ;;  %7361 = vst [vmem:[#allocation116_spill] sm:$0xff] %v4824_v31  ;;  %v4830_v16 = vrot.slane %v3461_v56, %v4478_v63  ;;  %v4835_v34 = vrot.slane %v3461_v56, %v4489_v55  ;;  %v4857_v56 = vmul.f32 %v4318_v44, %v4496_v47  ;;  %v613_v21 = vmul.f32 %v4824_v31, %v599_v36 }
 0x285   : > { %7356 = vst [vmem:[#allocation111_spill] sm:$0xff] %v4783_v2  ;;  %7357 = vst [vmem:[#allocation112_spill] sm:$0xff] %v4785_v20  ;;  %v4827_v20 = vrot.slane %v601_v48, %v4489_v55  ;;  %v3463_v48 = vld [vmem:[%s6993_s10 + $0x5] ss:$8 sm:$0x3]  ;;  %v4926_v36 = vmul.f32 %v4256_v18, %v4545_v25 }
 0x286   : > { %1797 = vrot.lane.b32.xlu1 %v4395_v62, %s7091_s15  ;;  %1808 = vperm.xlu0 %3648, %v4160_v17   ;;  %v3462_v17 = vld [vmem:[%s6993_s10 + $0x4] ss:$8 sm:$0x3]  ;;  %7363 = vst [vmem:[#allocation118_spill] sm:$0xff] %v4830_v16  ;;  %7365 = vst [vmem:[#allocation120_spill] sm:$0xff] %v4835_v34  ;;  %v4900_v19 = vrot.slane %v3463_v48, %v4489_v55 }
 0x287   : > { %7362 = vst [vmem:[#allocation117_spill] sm:$0xff] %v4827_v20  ;;  %v4844_v57 = vrot.slane %v3462_v17, %v4478_v63  ;;  %7370 = vst [vmem:[#allocation125_spill] sm:$0xff] %v4857_v56  ;;  %v4868_v62 = vrot.slane %v3462_v17, %v4489_v55  ;;  %v4878_v56 = vmul.f32 %v4318_v44, %v4504_v42 }
 0x288   : > { %v4791_v5 = vpop.permute.xlu1 %1551  ;;  %v4799_v2 = vpop.permute.xlu0 %1423  ;;  %v4894_v17 = vmul.f32 %v4322_v45, %v4579_v0  ;;  %v4897_v44 = vrot.slane %v3463_v48, %v4478_v63  ;;  %7375 = vst [vmem:[#allocation130_spill] sm:$0xff] %v4900_v19  ;;  %v614_v42 = vmul.f32 %v4827_v20, %v597_v41  ;;  %v724_v45 = vsel %vm723_vm6, %v4685_v58, %v4693_v40 }
 0x289   : > { %7358 = vst [vmem:[#allocation113_spill] sm:$0xff] %v4791_v5  ;;  %7359 = vst [vmem:[#allocation114_spill] sm:$0xff] %v4799_v2  ;;  %v4810_v5 = vld [vmem:[%s6987_s4] sm:$0xff]  ;;  %v4820_v2 = vld [vmem:[%s6987_s4 + $0x8] sm:$0xff]  ;;  %v726_v48 = vsel %vm723_vm6, %v4693_v40, %v4685_v58  ;;  %v820_v58 = vsel %vm817_vm7, %v4707_v1, %v4699_v53 }
 0x28a   : > { %1816 = vperm.xlu1 %3649, %v4810_v5   ;;  %7360 = vst [vmem:[#allocation115_spill] sm:$0xff] %v4820_v2  ;;  %1832 = vperm.xlu0 %3648, %v4820_v2   ;;  %7368 = vst [vmem:[#allocation123_spill] sm:$0xff] %v4844_v57  ;;  %v4942_v40 = vld [vmem:[%s6986_s3] sm:$0xff]  ;;  %v836_v0 = vmul.f32 %v4868_v62, %v820_v58 }
 0x28b   : > { %7371 = vst [vmem:[#allocation126_spill] sm:$0xff] %v4868_v62  ;;  %7373 = vst [vmem:[#allocation128_spill] sm:$0xff] %v4894_v17  ;;  %v4922_v17 = vmul.f32 %v4256_v18, %v4543_v52  ;;  %v4947_v18 = vmul.f32 %v4324_v46, %v4543_v52 }
 0x28c   : > { %v4832_v54 = vpop.permute.xlu1 %1555  ;;  %v4852_v38 = vpop.permute.xlu0 %1427  ;;  %7374 = vst [vmem:[#allocation129_spill] sm:$0xff] %v4897_v44  ;;  %7380 = vst [vmem:[#allocation135_spill] sm:$0xff] %v4942_v40 }
 0x28d   : > { %7364 = vst [vmem:[#allocation119_spill] sm:$0xff] %v4832_v54  ;;  %v3464_v54 = vld [vmem:[%s6993_s10 + $0x6] ss:$8 sm:$0x3]  ;;  %7369 = vst [vmem:[#allocation124_spill] sm:$0xff] %v4852_v38 }
 0x28e   : > { %v4873_v38 = vld [vmem:[%s6986_s3 + $0x8] sm:$0xff]  ;;  %3651 = vset.pattern.permute.xlu0 %v3917_v50  ;;  %v4903_v26 = vrot.slane %v3464_v54, %v4478_v63  ;;  %v4929_v41 = vrot.slane %v3464_v54, %v4489_v55  ;;  %7381 = vst [vmem:[#allocation136_spill] sm:$0xff] %v4947_v18  ;;  %v741_v54 = vmul.f32 %v4830_v16, %v726_v48  ;;  %v3918_v48 = vmov 25  }
 0x28f   : > { %1824 = vperm.xlu1 %3649, %v4873_v38   ;;  %1848 = vperm.xlu0 %3651, %v4810_v5  }
 0x290   : > { %7376 = vst [vmem:[#allocation131_spill] sm:$0xff] %v4903_v26  ;;  %v4906_v47 = vpop.permute.xlu1 %1647  ;;  %v4918_v63 = vpop.permute.xlu0 %1599  ;;  %7379 = vst [vmem:[#allocation134_spill] sm:$0xff] %v4929_v41 }
 0x291   : > { %7377 = vst [vmem:[#allocation132_spill] sm:$0xff] %v4906_v47  ;;  %7378 = vst [vmem:[#allocation133_spill] sm:$0xff] %v4918_v63  ;;  %v818_v47 = vsel %vm817_vm7, %v4699_v53, %v4707_v1  ;;  %v742_v63 = vmul.f32 %v4835_v34, %v724_v45  ;;  %v662_v53 = vsel %vm661_vm5, %v4701_v33, %v4709_v10 }
 0x292   : > { %v664_v1 = vsel %vm661_vm5, %v4709_v10, %v4701_v33  ;;  %v835_v55 = vmul.f32 %v4844_v57, %v818_v47  ;;  %v942_v33 = vsel %vm941_vm8, %v4715_v24, %v4723_v61  ;;  %v944_v10 = vsel %vm941_vm8, %v4723_v61, %v4715_v24 }
 0x293   : > { %3650 = vset.pattern.permute.xlu1 %v3917_v50  ;;  %v4951_v50 = vmul.f32 %v4324_v46, %v4545_v25  ;;  %1871 = vrot.lane.b32.xlu0 %v4348_v59, %s3911_s22  ;;  %v4968_v25 = vmul.f32 %v4288_v32, %v613_v21  ;;  %v4971_v46 = vmul.f32 %v4288_v32, %v614_v42 }
 0x294   : > { %1840 = vperm.xlu1 %3650, %v4942_v40   ;;  %v4965_v52 = vpop.permute.xlu1 %1651  ;;  %v4973_v45 = vpop.permute.xlu0 %1603  ;;  %3652 = vset.pattern.permute.xlu0 %v3918_v48  ;;  %v4986_v32 = vmul.f32 %v4296_v35, %v613_v21  ;;  %v679_v47 = vmul.f32 %v4838_v39, %v664_v1  ;;  %v680_v58 = vmul.f32 %v4841_v9, %v662_v53 }
 0x295   : > { %7382 = vst [vmem:[#allocation137_spill] sm:$0xff] %v4951_v50  ;;  %7383 = vst [vmem:[#allocation138_spill] sm:$0xff] %v4965_v52  ;;  %v4989_v52 = vmul.f32 %v4296_v35, %v614_v42  ;;  %v4998_v50 = vmul.f32 %v4244_v13, %v742_v63  ;;  %v5001_v24 = vmul.f32 %v4247_v14, %v741_v54 }
 0x296   : > { %7384 = vst [vmem:[#allocation139_spill] sm:$0xff] %v4973_v45  ;;  %v4995_v45 = vmul.f32 %v4244_v13, %v741_v54  ;;  %v5004_v61 = vmul.f32 %v4247_v14, %v742_v63  ;;  %v880_v21 = vsel %vm879_vm9, %v4717_v28, %v4725_v51  ;;  %v882_v13 = vsel %vm879_vm9, %v4725_v51, %v4717_v28 }
 0x297   : > { %1875 = vrot.lane.b32.xlu0 %v4363_v7, %s3911_s22  ;;  %v959_v42 = vmul.f32 %v4903_v26, %v942_v33  ;;  %v960_v54 = vmul.f32 %v4929_v41, %v944_v10  ;;  %v5019_v63 = vmul.f32 %v4263_v22, %v835_v55  ;;  %v5022_v53 = vmul.f32 %v4263_v22, %v836_v0 }
 0x298   : > { %1856 = vperm.xlu1 %3650, %v4873_v38   ;;  %v591_v35 = vpop.permute.xlu1 %590  ;;  %v718_v14 = vpop.permute.xlu0 %717  ;;  %v5025_v1 = vmul.f32 %v4265_v23, %v835_v55  ;;  %v5028_v7 = vmul.f32 %v4265_v23, %v836_v0  ;;  %v5031_v18 = vmul.f32 %v4301_v37, %v679_v47  ;;  %v5034_v51 = vmul.f32 %v4301_v37, %v680_v58 }
 0x299   : > { %v5037_v28 = vmul.f32 %v4239_v11, %v679_v47  ;;  %v5040_v33 = vmul.f32 %v4239_v11, %v680_v58  ;;  %v897_v22 = vmul.f32 %v4897_v44, %v880_v21  ;;  %v898_v55 = vmul.f32 %v4900_v19, %v882_v13 }
 0x29a   : > { %v1081_v23 = vsel %vm661_vm5, %v4731_v43, %v4739_v3  ;;  %v1083_v37 = vsel %vm661_vm5, %v4739_v3, %v4731_v43  ;;  %v5055_v0 = vmul.f32 %v4278_v27, %v959_v42  ;;  %v5058_v10 = vmul.f32 %v4278_v27, %v960_v54 }
 0x29b   : > { %1888 = vperm.xlu0 %3652, %v4942_v40   ;;  %v5065_v13 = vmul.f32 %v4280_v29, %v959_v42  ;;  %v1035_v3 = vsel %vm596_vm4, %v4741_v60, %v4733_v12  ;;  %v1085_v42 = vmul.f32 %v1083_v37, %v4838_v39 }
 0x29c   : > { %1864 = vperm.xlu1 %3650, %v4820_v2   ;;  %v595_v11 = vpop.permute.xlu1 %594  ;;  %7385 = vst [vmem:[#allocation140_spill] sm:$0xff] %v5055_v0  ;;  %7386 = vst [vmem:[#allocation141_spill] sm:$0xff] %v5058_v10  ;;  %v722_v47 = vpop.permute.xlu0 %721  ;;  %v5074_v10 = vmul.f32 %v4280_v29, %v960_v54  ;;  %v1037_v0 = vmul.f32 %v1035_v3, %v4824_v31 }
 0x29d   : > { %v598_v58 = vsel %vm596_vm4, %v591_v35, %v595_v11  ;;  %v600_v21 = vsel %vm596_vm4, %v595_v11, %v591_v35  ;;  %7387 = vst [vmem:[#allocation142_spill] sm:$0xff] %v5065_v13  ;;  %v1033_v35 = vsel %vm596_vm4, %v4733_v12, %v4741_v60  ;;  %v1086_v11 = vmul.f32 %v1081_v23, %v4841_v9  ;;  %v7390_v23 = vld [vmem:[#allocation18_spill] sm:$0xff] }
 0x29e   : > { %v615_v43 = vmul.f32 %v4824_v31, %v600_v21  ;;  %v616_v27 = vmul.f32 %v4827_v20, %v598_v58  ;;  %7388 = vst [vmem:[#allocation143_spill] sm:$0xff] %v5074_v10  ;;  %v7389_v10 = vld [vmem:[#allocation32_spill] sm:$0xff]  ;;  %v5096_v37 = vmul.f32 %v7390_v23, %v897_v22 }
 0x29f   : > { %1912 = vperm.xlu0 %3652, %v4820_v2   ;;  %v5090_v60 = vmul.f32 %v7389_v10, %v897_v22  ;;  %v5093_v12 = vmul.f32 %v7389_v10, %v898_v55 }
 0x2a0   : > { %1873 = vrot.lane.b32.xlu1 %v4373_v15, %s3911_s22  ;;  %v631_v13 = vmul.f32 %v4228_v6, %v615_v43  ;;  %v632_v21 = vmul.f32 %v4228_v6, %v616_v27  ;;  %v649_v58 = vmul.f32 %v4231_v8, %v615_v43  ;;  %v650_v29 = vmul.f32 %v4231_v8, %v616_v27  ;;  %v656_v54 = vpop.permute.xlu1 %655  ;;  %v812_v40 = vpop.permute.xlu0 %811 }
 0x2a1   : > { %3653 = vset.pattern.permute.xlu1 %v3918_v48  ;;  %v5100_v6 = vmul.f32 %v7390_v23, %v898_v55  ;;  %v1038_v8 = vmul.f32 %v1033_v35, %v4827_v20  ;;  %v725_v43 = vsel %vm723_vm6, %v718_v14, %v722_v47  ;;  %v727_v27 = vsel %vm723_vm6, %v722_v47, %v718_v14  ;;  %v7391_v48 = vld [vmem:[#allocation51_spill] sm:$0xff]  ;;  %v7392_v55 = vld [vmem:[#allocation22_spill] sm:$0xff] }
 0x2a2   : > { %v633_v10 = vadd.f32 %v631_v13, %v4968_v25  ;;  %v634_v22 = vadd.f32 %v632_v21, %v4971_v46  ;;  %v651_v2 = vadd.f32 %v649_v58, %v4986_v32  ;;  %v652_v3 = vadd.f32 %v650_v29, %v4989_v52  ;;  %v7395_v20 = vld [vmem:[#allocation23_spill] sm:$0xff] }
 0x2a3   : > { %v5114_v23 = vmul.f32 %v7392_v55, %v1085_v42  ;;  %v5117_v35 = vmul.f32 %v7392_v55, %v1086_v11  ;;  %v5120_v31 = vmul.f32 %v7395_v20, %v1085_v42  ;;  %v5123_v25 = vmul.f32 %v7395_v20, %v1086_v11  ;;  %1921 = vrot.lane.b32.xlu0 %v4373_v15, %s3914_s16  ;;  %v7398_v52 = vld [vmem:[#allocation39_spill] sm:$0xff] }
 0x2a4   : > { %1877 = vrot.lane.b32.xlu1 %v7391_v48, %s3911_s22  ;;  %v660_v46 = vpop.permute.xlu1 %659  ;;  %v5128_v32 = vmul.f32 %v7398_v52, %v1037_v0  ;;  %v743_v14 = vmul.f32 %v4830_v16, %v727_v27  ;;  %v816_v47 = vpop.permute.xlu0 %815  ;;  %v7137_v21 = vmov 26   ;;  %v5137_v20 = vmul.f32 %v7398_v52, %v1038_v8 }
 0x2a5   : > { %7393 = vst [vmem:[#allocation32_spill] sm:$0xff] %v5114_v23  ;;  %7394 = vst [vmem:[#allocation18_spill] sm:$0xff] %v5117_v35  ;;  %v663_v13 = vsel %vm661_vm5, %v656_v54, %v660_v46  ;;  %v665_v42 = vsel %vm661_vm5, %v660_v46, %v656_v54  ;;  %3655 = vset.pattern.permute.xlu0 %v7137_v21  ;;  %v744_v11 = vmul.f32 %v4835_v34, %v725_v43  ;;  %v7400_v46 = vld [vmem:[#allocation14_spill] sm:$0xff]  ;;  %v7405_v35 = vld [vmem:[#allocation15_spill] sm:$0xff] }
 0x2a6   : > { %7396 = vst [vmem:[#allocation22_spill] sm:$0xff] %v5120_v31  ;;  %7397 = vst [vmem:[#allocation23_spill] sm:$0xff] %v5123_v25  ;;  %v681_v58 = vmul.f32 %v4838_v39, %v665_v42  ;;  %v682_v29 = vmul.f32 %v4841_v9, %v663_v13  ;;  %v689_v27 = vadd.f32 %v5031_v18, %v633_v10  ;;  %v7401_v31 = vld [vmem:[#allocation24_spill] sm:$0xff] }
 0x2a7   : > { %7399 = vst [vmem:[#allocation39_spill] sm:$0xff] %v5137_v20  ;;  %v690_v55 = vadd.f32 %v5034_v51, %v634_v22  ;;  %v705_v25 = vadd.f32 %v5037_v28, %v651_v2  ;;  %v706_v54 = vadd.f32 %v5040_v33, %v652_v3  ;;  %1925 = vrot.lane.b32.xlu0 %v7391_v48, %s3914_s16  ;;  %v7402_v10 = vld [vmem:[#allocation104_spill] sm:$0xff]  ;;  %v7403_v51 = vld [vmem:[#allocation102_spill] sm:$0xff] }
 0x2a8   : > { %1896 = vperm.xlu1 %3653, %v4810_v5   ;;  %v695_v21 = vmul.f32 %v7400_v46, %v681_v58  ;;  %v696_v52 = vmul.f32 %v7400_v46, %v682_v29  ;;  %v711_v43 = vmul.f32 %v7401_v31, %v681_v58  ;;  %v712_v42 = vmul.f32 %v7401_v31, %v682_v29  ;;  %v874_v18 = vpop.permute.xlu1 %873  ;;  %v7404_v33 = vld [vmem:[#allocation26_spill] sm:$0xff]  ;;  %v936_v31 = vpop.permute.xlu0 %935 }
 0x2a9   : > { %v1129_v2 = vsel %vm723_vm6, %v7403_v51, %v7402_v10  ;;  %v1131_v28 = vsel %vm723_vm6, %v7402_v10, %v7403_v51  ;;  %v757_v22 = vmul.f32 %v7404_v33, %v743_v14  ;;  %v819_v3 = vsel %vm817_vm7, %v812_v40, %v816_v47 }
 0x2aa   : > { %v697_v13 = vadd.f32 %v695_v21, %v689_v27  ;;  %v698_v58 = vadd.f32 %v696_v52, %v690_v55  ;;  %v713_v29 = vadd.f32 %v711_v43, %v705_v25  ;;  %v714_v46 = vadd.f32 %v712_v42, %v706_v54  ;;  %v7406_v55 = vld [vmem:[#allocation21_spill] sm:$0xff] }
 0x2ab   : > { %v758_v48 = vmul.f32 %v7404_v33, %v744_v11  ;;  %v773_v23 = vmul.f32 %v7405_v35, %v743_v14  ;;  %v774_v15 = vmul.f32 %v7405_v35, %v744_v11  ;;  %v821_v20 = vsel %vm817_vm7, %v816_v47, %v812_v40  ;;  %1944 = vperm.xlu0 %3655, %v4810_v5   ;;  %v7407_v43 = vld [vmem:[#allocation125_spill] sm:$0xff] }
 0x2ac   : > { %1904 = vperm.xlu1 %3653, %v4873_v38   ;;  %v751_v10 = vadd.f32 %v4995_v45, %v697_v13  ;;  %v752_v51 = vadd.f32 %v4998_v50, %v698_v58  ;;  %v767_v21 = vadd.f32 %v5001_v24, %v713_v29  ;;  %v768_v25 = vadd.f32 %v5004_v61, %v714_v46  ;;  %v878_v27 = vpop.permute.xlu1 %877  ;;  %v940_v47 = vpop.permute.xlu0 %939  ;;  %v7410_v13 = vld [vmem:[#allocation136_spill] sm:$0xff]  ;;  %v7411_v29 = vld [vmem:[#allocation137_spill] sm:$0xff] }
 0x2ad   : > { %v5176_v14 = vmul.f32 %v7406_v55, %v1037_v0  ;;  %v5179_v35 = vmul.f32 %v7406_v55, %v1038_v8  ;;  %v837_v40 = vmul.f32 %v4844_v57, %v819_v3  ;;  %v881_v45 = vsel %vm879_vm9, %v874_v18, %v878_v27  ;;  %v7414_v55 = vld [vmem:[#allocation43_spill] sm:$0xff] }
 0x2ae   : > { %v759_v50 = vadd.f32 %v757_v22, %v751_v10  ;;  %v760_v11 = vadd.f32 %v758_v48, %v752_v51  ;;  %v775_v24 = vadd.f32 %v773_v23, %v767_v21  ;;  %v776_v54 = vadd.f32 %v774_v15, %v768_v25  ;;  %v7413_v21 = vld [vmem:[#allocation16_spill] sm:$0xff] }
 0x2af   : > { %v5185_v61 = vmul.f32 %v1131_v28, %v4830_v16  ;;  %v5188_v52 = vmul.f32 %v1129_v2, %v4835_v34  ;;  %v838_v0 = vmul.f32 %v4868_v62, %v821_v20  ;;  %v883_v8 = vsel %vm879_vm9, %v878_v27, %v874_v18  ;;  %1967 = vrot.lane.b32.xlu0 %v4348_v59, %s7408_s14  ;;  %v7409_v28 = vld [vmem:[#allocation30_spill] sm:$0xff] }
 0x2b0   : > { %1919 = vrot.lane.b32.xlu1 %v4348_v59, %s3914_s16  ;;  %v783_v42 = vadd.f32 %v7407_v43, %v759_v50  ;;  %v784_v48 = vadd.f32 %v4878_v56, %v760_v11  ;;  %v799_v15 = vadd.f32 %v4886_v49, %v775_v24  ;;  %v800_v23 = vadd.f32 %v4890_v4, %v776_v54  ;;  %v1028_v2 = vpop.permute.xlu1 %1027  ;;  %v1076_v3 = vpop.permute.xlu0 %1075  ;;  %v7415_v24 = vld [vmem:[#allocation17_spill] sm:$0xff] }
 0x2b1   : > { %v851_v20 = vmul.f32 %v7409_v28, %v837_v40  ;;  %v943_v18 = vsel %vm941_vm8, %v936_v31, %v940_v47  ;;  %v945_v33 = vsel %vm941_vm8, %v940_v47, %v936_v31  ;;  %v899_v22 = vmul.f32 %v4897_v44, %v881_v45 }
 0x2b2   : > { %v3920_v56 = vmov 27   ;;  %v791_v49 = vadd.f32 %v4922_v17, %v783_v42  ;;  %v792_v4 = vadd.f32 %v4926_v36, %v784_v48  ;;  %v807_v58 = vadd.f32 %v7410_v13, %v799_v15  ;;  %v7416_v42 = vld [vmem:[#allocation34_spill] sm:$0xff]  ;;  %v7418_v13 = vld [vmem:[#allocation36_spill] sm:$0xff] }
 0x2b3   : > { %3656 = vset.pattern.permute.xlu0 %v3920_v56  ;;  %v808_v46 = vadd.f32 %v7411_v29, %v800_v23  ;;  %v7412_v10 = vmov 26   ;;  %v852_v51 = vmul.f32 %v7409_v28, %v838_v0  ;;  %v867_v31 = vmul.f32 %v7413_v21, %v837_v40  ;;  %v7417_v28 = vld [vmem:[#allocation135_spill] sm:$0xff]  ;;  %v7419_v29 = vld [vmem:[#allocation116_spill] sm:$0xff] }
 0x2b4   : > { %3654 = vset.pattern.permute.xlu1 %v7412_v10  ;;  %v868_v25 = vmul.f32 %v7413_v21, %v838_v0  ;;  %v900_v27 = vmul.f32 %v4900_v19, %v883_v8  ;;  %v845_v17 = vadd.f32 %v5019_v63, %v791_v49  ;;  %v846_v36 = vadd.f32 %v5022_v53, %v792_v4  ;;  %v1032_v50 = vpop.permute.xlu1 %1031  ;;  %v1080_v0 = vpop.permute.xlu0 %1079  ;;  %v7420_v21 = vld [vmem:[#allocation19_spill] sm:$0xff] }
 0x2b5   : > { %1923 = vrot.lane.b32.xlu1 %v7414_v55, %s3914_s16  ;;  %v861_v47 = vadd.f32 %v5025_v1, %v807_v58  ;;  %v862_v45 = vadd.f32 %v5028_v7, %v808_v46  ;;  %1971 = vrot.lane.b32.xlu0 %v7414_v55, %s7408_s14  ;;  %v961_v40 = vmul.f32 %v4903_v26, %v943_v18 }
 0x2b6   : > { %v962_v11 = vmul.f32 %v4929_v41, %v945_v33  ;;  %v913_v54 = vmul.f32 %v7415_v24, %v899_v22  ;;  %v1036_v63 = vsel %vm596_vm4, %v1032_v50, %v1028_v2  ;;  %v853_v8 = vadd.f32 %v851_v20, %v845_v17 }
 0x2b7   : > { %v854_v53 = vadd.f32 %v852_v51, %v846_v36  ;;  %v869_v43 = vadd.f32 %v867_v31, %v861_v47  ;;  %v870_v1 = vadd.f32 %v868_v25, %v862_v45  ;;  %v914_v7 = vmul.f32 %v7415_v24, %v900_v27  ;;  %v7422_v36 = vld [vmem:[#allocation140_spill] sm:$0xff]  ;;  %v7423_v47 = vld [vmem:[#allocation141_spill] sm:$0xff] }
 0x2b8   : > { %v929_v48 = vmul.f32 %v7416_v42, %v899_v22  ;;  %v930_v15 = vmul.f32 %v7416_v42, %v900_v27  ;;  %v1034_v23 = vsel %vm596_vm4, %v1028_v2, %v1032_v50  ;;  %v907_v18 = vadd.f32 %v5090_v60, %v853_v8  ;;  %v1124_v4 = vpop.permute.xlu1 %1123  ;;  %v5247_v60 = vpop.permute.xlu0 %1251  ;;  %v7421_v27 = vld [vmem:[#allocation117_spill] sm:$0xff]  ;;  %v7424_v50 = vld [vmem:[#allocation142_spill] sm:$0xff] }
 0x2b9   : > { %1936 = vperm.xlu1 %3654, %v7417_v28   ;;  %v908_v33 = vadd.f32 %v5093_v12, %v854_v53  ;;  %v923_v20 = vadd.f32 %v5096_v37, %v869_v43  ;;  %v924_v49 = vadd.f32 %v5100_v6, %v870_v1  ;;  %1984 = vperm.xlu0 %3656, %v7417_v28  }
 0x2ba   : > { %v975_v22 = vmul.f32 %v7418_v13, %v961_v40  ;;  %v1082_v58 = vsel %vm661_vm5, %v1076_v3, %v1080_v0  ;;  %v1084_v2 = vsel %vm661_vm5, %v1080_v0, %v1076_v3  ;;  %v1039_v46 = vmul.f32 %v1036_v63, %v7419_v29  ;;  %v7426_v63 = vld [vmem:[#allocation115_spill] sm:$0xff] }
 0x2bb   : > { %v915_v12 = vadd.f32 %v913_v54, %v907_v18  ;;  %v916_v10 = vadd.f32 %v914_v7, %v908_v33  ;;  %v931_v37 = vadd.f32 %v929_v48, %v923_v20  ;;  %v932_v51 = vadd.f32 %v930_v15, %v924_v49  ;;  %v7425_v54 = vld [vmem:[#allocation143_spill] sm:$0xff]  ;;  %v7428_v33 = vld [vmem:[#allocation41_spill] sm:$0xff] }
 0x2bc   : > { %v976_v6 = vmul.f32 %v7418_v13, %v962_v11  ;;  %v991_v31 = vmul.f32 %v7420_v21, %v961_v40  ;;  %v992_v25 = vmul.f32 %v7420_v21, %v962_v11  ;;  %v1040_v17 = vmul.f32 %v1034_v23, %v7421_v27  ;;  %v1128_v8 = vpop.permute.xlu1 %1127  ;;  %v7427_v11 = vld [vmem:[#allocation20_spill] sm:$0xff]  ;;  %v5262_v1 = vpop.permute.xlu0 %1255 }
 0x2bd   : > { %1952 = vperm.xlu1 %3654, %v4873_v38   ;;  %v969_v3 = vadd.f32 %v7422_v36, %v915_v12  ;;  %v970_v45 = vadd.f32 %v7423_v47, %v916_v10  ;;  %v985_v24 = vadd.f32 %v7424_v50, %v931_v37  ;;  %v986_v0 = vadd.f32 %v7425_v54, %v932_v51  ;;  %v7430_v37 = vld [vmem:[#allocation46_spill] sm:$0xff]  ;;  %v7431_v51 = vld [vmem:[#allocation47_spill] sm:$0xff]  ;;  %v7432_v21 = vld [vmem:[#allocation44_spill] sm:$0xff] }
 0x2be   : > { %2008 = vperm.xlu0 %3656, %v7426_v63   ;;  %v1087_v53 = vmul.f32 %v1084_v2, %v4838_v39  ;;  %v1088_v40 = vmul.f32 %v1082_v58, %v4841_v9  ;;  %v1053_v43 = vmul.f32 %v7427_v11, %v1039_v46  ;;  %v1132_v7 = vsel %vm723_vm6, %v1128_v8, %v1124_v4  ;;  %v7429_v2 = vld [vmem:[#allocation39_spill] sm:$0xff]  ;;  %v7433_v47 = vld [vmem:[#allocation25_spill] sm:$0xff]  ;;  %v7434_v54 = vld [vmem:[#allocation32_spill] sm:$0xff] }
 0x2bf   : > { %v977_v42 = vadd.f32 %v975_v22, %v969_v3  ;;  %v978_v48 = vadd.f32 %v976_v6, %v970_v45  ;;  %v993_v15 = vadd.f32 %v991_v31, %v985_v24  ;;  %v994_v23 = vadd.f32 %v992_v25, %v986_v0 }
 0x2c0   : > { %v1054_v18 = vmul.f32 %v7427_v11, %v1040_v17  ;;  %v1069_v20 = vmul.f32 %v7428_v33, %v1039_v46  ;;  %v1070_v49 = vmul.f32 %v7428_v33, %v1040_v17  ;;  %v1130_v13 = vsel %vm723_vm6, %v1124_v4, %v1128_v8  ;;  %v5278_v46 = vpop.permute.xlu1 %1203  ;;  %v5286_v25 = vpop.permute.xlu0 %1377  ;;  %v7435_v8 = vld [vmem:[#allocation18_spill] sm:$0xff]  ;;  %v7440_v33 = vld [vmem:[#allocation108_spill] sm:$0xff] }
 0x2c1   : > { %1960 = vperm.xlu1 %3654, %v7426_v63   ;;  %v1047_v58 = vadd.f32 %v5128_v32, %v977_v42  ;;  %v1048_v12 = vadd.f32 %v7429_v2, %v978_v48  ;;  %v1063_v22 = vadd.f32 %v5176_v14, %v993_v15  ;;  %v1064_v10 = vadd.f32 %v5179_v35, %v994_v23  ;;  %v7437_v42 = vld [vmem:[#allocation23_spill] sm:$0xff] }
 0x2c2   : > { %2017 = vrot.lane.b32.xlu0 %v7430_v37, %s3921_s29  ;;  %v1141_v6 = vmul.f32 %v7431_v51, %v5185_v61  ;;  %v1142_v4 = vmul.f32 %v7431_v51, %v5188_v52  ;;  %v1101_v32 = vmul.f32 %v7432_v21, %v1087_v53  ;;  %v1135_v31 = vmul.f32 %v1132_v7, %v4830_v16  ;;  %v7436_v7 = vld [vmem:[#allocation22_spill] sm:$0xff]  ;;  %v7438_v15 = vld [vmem:[#allocation51_spill] sm:$0xff] }
 0x2c3   : > { %v1055_v14 = vadd.f32 %v1053_v43, %v1047_v58  ;;  %v1056_v35 = vadd.f32 %v1054_v18, %v1048_v12  ;;  %v1071_v17 = vadd.f32 %v1069_v20, %v1063_v22  ;;  %v1072_v36 = vadd.f32 %v1070_v49, %v1064_v10  ;;  %v7441_v20 = vld [vmem:[#allocation106_spill] sm:$0xff] }
 0x2c4   : > { %v1102_v3 = vmul.f32 %v7432_v21, %v1088_v40  ;;  %v1117_v45 = vmul.f32 %v7433_v47, %v1087_v53  ;;  %v1118_v50 = vmul.f32 %v7433_v47, %v1088_v40  ;;  %v1136_v24 = vmul.f32 %v1130_v13, %v4835_v34  ;;  %v5300_v23 = vpop.permute.xlu1 %1207  ;;  %v7439_v53 = vld [vmem:[#allocation28_spill] sm:$0xff]  ;;  %v7442_v13 = vld [vmem:[#allocation27_spill] sm:$0xff]  ;;  %v5312_v51 = vpop.permute.xlu0 %1381  ;;  %v7443_v21 = vld [vmem:[#allocation50_spill] sm:$0xff] }
 0x2c5   : > { %1969 = vrot.lane.b32.xlu1 %v7430_v37, %s7408_s14  ;;  %v1095_v0 = vadd.f32 %v7434_v54, %v1055_v14  ;;  %v1096_v11 = vadd.f32 %v7435_v8, %v1056_v35  ;;  %v1111_v43 = vadd.f32 %v7436_v7, %v1071_v17  ;;  %v1112_v48 = vadd.f32 %v7437_v42, %v1072_v36  ;;  %v7444_v47 = vld [vmem:[#allocation103_spill] sm:$0xff]  ;;  %v7447_v54 = vld [vmem:[#allocation29_spill] sm:$0xff]  ;;  %v7449_v42 = vld [vmem:[#allocation94_spill] sm:$0xff] }
 0x2c6   : > { %2021 = vrot.lane.b32.xlu0 %v7438_v15, %s3921_s29  ;;  %v1157_v40 = vmul.f32 %v7439_v53, %v5185_v61  ;;  %v1158_v18 = vmul.f32 %v7439_v53, %v5188_v52  ;;  %v1209_v49 = vsel %vm817_vm7, %v7441_v20, %v7440_v33  ;;  %v1149_v58 = vmul.f32 %v7442_v13, %v1135_v31  ;;  %v7448_v8 = vld [vmem:[#allocation97_spill] sm:$0xff]  ;;  %v7469_v34 = vld [vmem:[#allocation40_spill] sm:$0xff] }
 0x2c7   : > { %3657 = vset.pattern.permute.xlu1 %v3920_v56  ;;  %v1103_v2 = vadd.f32 %v1101_v32, %v1095_v0  ;;  %v1104_v12 = vadd.f32 %v1102_v3, %v1096_v11  ;;  %v1119_v22 = vadd.f32 %v1117_v45, %v1111_v43  ;;  %v1120_v10 = vadd.f32 %v1118_v50, %v1112_v48  ;;  %v7445_v45 = vld [vmem:[#allocation101_spill] sm:$0xff]  ;;  %v7450_v48 = vld [vmem:[#allocation52_spill] sm:$0xff] }
 0x2c8   : > { %v1150_v61 = vmul.f32 %v7442_v13, %v1136_v24  ;;  %v1165_v14 = vmul.f32 %v7443_v21, %v1135_v31  ;;  %v1166_v52 = vmul.f32 %v7443_v21, %v1136_v24  ;;  %v1210_v35 = vsel %vm817_vm7, %v5278_v46, %v5300_v23  ;;  %v5323_v3 = vpop.permute.xlu1 %1299  ;;  %v7446_v24 = vld [vmem:[#allocation96_spill] sm:$0xff]  ;;  %v5350_v21 = vpop.permute.xlu0 %1473 }
 0x2c9   : > { %1973 = vrot.lane.b32.xlu1 %v7438_v15, %s7408_s14  ;;  %v1143_v56 = vadd.f32 %v1141_v6, %v1103_v2  ;;  %v1144_v32 = vadd.f32 %v1142_v4, %v1104_v12  ;;  %v1159_v17 = vadd.f32 %v1157_v40, %v1119_v22  ;;  %v1160_v36 = vadd.f32 %v1158_v18, %v1120_v10  ;;  %v7451_v18 = vld [vmem:[#allocation31_spill] sm:$0xff]  ;;  %v7453_v12 = vld [vmem:[#allocation128_spill] sm:$0xff] }
 0x2ca   : > { %v1257_v31 = vsel %vm879_vm9, %v7445_v45, %v7444_v47  ;;  %v1213_v50 = vmul.f32 %v1209_v49, %v4844_v57  ;;  %v1189_v0 = vmul.f32 %v7447_v54, %v7446_v24  ;;  %v1190_v11 = vmul.f32 %v7447_v54, %v7448_v8  ;;  %v7452_v2 = vld [vmem:[#allocation127_spill] sm:$0xff]  ;;  %7455 = vst [vmem:[#allocation24_spill] sm:$0xff] %v5350_v21  ;;  %v7458_v54 = vld [vmem:[#allocation112_spill] sm:$0xff]  ;;  %v7459_v8 = vld [vmem:[#allocation110_spill] sm:$0xff] }
 0x2cb   : > { %v1151_v7 = vadd.f32 %v1149_v58, %v1143_v56  ;;  %v1152_v6 = vadd.f32 %v1150_v61, %v1144_v32  ;;  %v1167_v4 = vadd.f32 %v1165_v14, %v1159_v17  ;;  %v1168_v43 = vadd.f32 %v1166_v52, %v1160_v36  ;;  %v7456_v56 = vld [vmem:[#allocation55_spill] sm:$0xff] }
 0x2cc   : > { %v1181_v53 = vmul.f32 %v7450_v48, %v7449_v42  ;;  %v1258_v40 = vsel %vm879_vm9, %v5247_v60, %v5262_v1  ;;  %v1197_v49 = vmul.f32 %v7451_v18, %v7449_v42  ;;  %v1215_v13 = vmul.f32 %v1210_v35, %v4844_v57  ;;  %v5352_v14 = vpop.permute.xlu1 %1303  ;;  %v7457_v17 = vld [vmem:[#allocation35_spill] sm:$0xff] }
 0x2cd   : > { %1992 = vperm.xlu1 %3657, %v4810_v5   ;;  %v1175_v58 = vadd.f32 %v7452_v2, %v1151_v7  ;;  %v5346_v22 = vadd.f32 %v7453_v12, %v1152_v6  ;;  %v1191_v10 = vadd.f32 %v1189_v0, %v1167_v4  ;;  %v5348_v61 = vadd.f32 %v1190_v11, %v1168_v43  ;;  %v7460_v4 = vld [vmem:[#allocation33_spill] sm:$0xff] }
 0x2ce   : > { %v1261_v52 = vmul.f32 %v1257_v31, %v4897_v44  ;;  %v1221_v32 = vmul.f32 %v7456_v56, %v1213_v50  ;;  %v1237_v35 = vmul.f32 %v7457_v17, %v1213_v50  ;;  %v1305_v7 = vsel %vm941_vm8, %v7459_v8, %v7458_v54  ;;  %v7461_v31 = vld [vmem:[#allocation57_spill] sm:$0xff] }
 0x2cf   : > { %7454 = vst [vmem:[#allocation14_spill] sm:$0xff] %v5348_v61  ;;  %v1183_v36 = vadd.f32 %v1181_v53, %v1175_v58  ;;  %v1199_v24 = vadd.f32 %v1197_v49, %v1191_v10  ;;  %v1263_v0 = vmul.f32 %v1258_v40, %v4897_v44  ;;  %v1229_v43 = vmul.f32 %v7460_v4, %v1215_v13  ;;  %v7463_v50 = vld [vmem:[#allocation37_spill] sm:$0xff]  ;;  %v7464_v49 = vld [vmem:[#allocation38_spill] sm:$0xff]  ;;  %v7466_v10 = vld [vmem:[#allocation107_spill] sm:$0xff] }
 0x2d0   : > { %v1245_v42 = vmul.f32 %v7461_v31, %v1215_v13  ;;  %v5365_v2 = vpop.permute.xlu1 %1425  ;;  %v1269_v53 = vmul.f32 %v7463_v50, %v1261_v52  ;;  %v1285_v58 = vmul.f32 %v7464_v49, %v1261_v52  ;;  %v1306_v12 = vsel %vm941_vm8, %v5323_v3, %v5352_v14  ;;  %v7465_v40 = vld [vmem:[#allocation105_spill] sm:$0xff]  ;;  %v7468_v44 = vld [vmem:[#allocation59_spill] sm:$0xff]  ;;  %v7473_v61 = vld [vmem:[#allocation114_spill] sm:$0xff] }
 0x2d1   : > { %2000 = vperm.xlu1 %3657, %v4873_v38   ;;  %v1223_v11 = vadd.f32 %v1221_v32, %v1183_v36  ;;  %v1239_v6 = vadd.f32 %v1237_v35, %v1199_v24  ;;  %7462 = vst [vmem:[#allocation104_spill] sm:$0xff] %v5365_v2  ;;  %v1385_v32 = vsel %vm596_vm4, %v7466_v10, %v7465_v40  ;;  %v5378_v24 = vpop.permute.xlu0 %1477  ;;  %v7474_v40 = vld [vmem:[#allocation124_spill] sm:$0xff] }
 0x2d2   : > { %v1309_v35 = vmul.f32 %v1305_v7, %v4903_v26  ;;  %7467 = vst [vmem:[#allocation102_spill] sm:$0xff] %v5378_v24  ;;  %v1277_v57 = vmul.f32 %v7468_v44, %v1263_v0  ;;  %v1293_v52 = vmul.f32 %v7469_v34, %v1263_v0  ;;  %v1386_v9 = vsel %vm596_vm4, %v5312_v51, %v5286_v25 }
 0x2d3   : > { %v1231_v36 = vadd.f32 %v1229_v43, %v1223_v11  ;;  %v1247_v13 = vadd.f32 %v1245_v42, %v1239_v6  ;;  %v1311_v7 = vmul.f32 %v1306_v12, %v4903_v26  ;;  %v1387_v11 = vmul.f32 %v1385_v32, %v7419_v29  ;;  %v7470_v6 = vld [vmem:[#allocation61_spill] sm:$0xff]  ;;  %v7475_v32 = vld [vmem:[#allocation42_spill] sm:$0xff] }
 0x2d4   : > { %v1317_v43 = vmul.f32 %v7470_v6, %v1309_v35  ;;  %v7471_v42 = vld [vmem:[#allocation45_spill] sm:$0xff]  ;;  %v5392_v34 = vpop.permute.xlu1 %1429  ;;  %v1433_v10 = vsel %vm661_vm5, %v7474_v40, %v7473_v61 }
 0x2d5   : > { %2015 = vrot.lane.b32.xlu1 %v4348_v59, %s3921_s29  ;;  %v1271_v49 = vadd.f32 %v1269_v53, %v1231_v36  ;;  %v1287_v31 = vadd.f32 %v1285_v58, %v1247_v13  ;;  %v1333_v27 = vmul.f32 %v7471_v42, %v1309_v35  ;;  %7472 = vst [vmem:[#allocation26_spill] sm:$0xff] %v5392_v34  ;;  %v7476_v13 = vld [vmem:[#allocation64_spill] sm:$0xff]  ;;  %v7481_v42 = vld [vmem:[#allocation111_spill] sm:$0xff] }
 0x2d6   : > { %v1389_v53 = vmul.f32 %v1386_v9, %v7419_v29  ;;  %v1325_v36 = vmul.f32 %v7475_v32, %v1311_v7  ;;  %v1341_v35 = vmul.f32 %v7476_v13, %v1311_v7  ;;  %v1434_v9 = vsel %vm661_vm5, %v5392_v34, %v5365_v2  ;;  %v7480_v29 = vld [vmem:[#allocation109_spill] sm:$0xff] }
 0x2d7   : > { %v1279_v17 = vadd.f32 %v1277_v57, %v1271_v49  ;;  %v1295_v0 = vadd.f32 %v1293_v52, %v1287_v31  ;;  %v5403_v57 = vpop.permute.xlu0 %1553  ;;  %v7478_v31 = vld [vmem:[#allocation48_spill] sm:$0xff]  ;;  %v7479_v52 = vld [vmem:[#allocation49_spill] sm:$0xff]  ;;  %v1437_v34 = vmul.f32 %v1434_v9, %v4838_v39 }
 0x2d8   : > { %7477 = vst [vmem:[#allocation15_spill] sm:$0xff] %v5403_v57  ;;  %v1395_v49 = vmul.f32 %v7478_v31, %v1387_v11  ;;  %v1411_v26 = vmul.f32 %v7479_v52, %v1387_v11  ;;  %v7483_v13 = vld [vmem:[#allocation53_spill] sm:$0xff]  ;;  %v1482_v11 = vsel %vm723_vm6, %v5378_v24, %v5350_v21 }
 0x2d9   : > { %2019 = vrot.lane.b32.xlu1 %v7414_v55, %s3921_s29  ;;  %v1319_v58 = vadd.f32 %v1317_v43, %v1279_v17  ;;  %v1335_v12 = vadd.f32 %v1333_v27, %v1295_v0  ;;  %v1481_v27 = vsel %vm723_vm6, %v7481_v42, %v7480_v29  ;;  %v1435_v17 = vmul.f32 %v1433_v10, %v4838_v39  ;;  %v7482_v0 = vld [vmem:[#allocation66_spill] sm:$0xff]  ;;  %v7484_v29 = vld [vmem:[#allocation68_spill] sm:$0xff]  ;;  %s3926_s29 = smov 80  }
 0x2da   : > { %v1403_v57 = vmul.f32 %v7482_v0, %v1389_v53  ;;  %v1419_v61 = vmul.f32 %v7483_v13, %v1389_v53  ;;  %v1483_v40 = vmul.f32 %v1481_v27, %v4830_v16  ;;  %v7485_v10 = vld [vmem:[#allocation56_spill] sm:$0xff]  ;;  %v1485_v53 = vmul.f32 %v1482_v11, %v4830_v16  ;;  %v5429_v13 = vpop.permute.xlu1 %1601 }
 0x2db   : > { %v1327_v43 = vadd.f32 %v1325_v36, %v1319_v58  ;;  %v1343_v7 = vadd.f32 %v1341_v35, %v1335_v12  ;;  %v1443_v42 = vmul.f32 %v7484_v29, %v1435_v17  ;;  %v1459_v58 = vmul.f32 %v7485_v10, %v1435_v17  ;;  %v5426_v36 = vpop.permute.xlu0 %1557  ;;  %7487 = vst [vmem:[#allocation125_spill] sm:$0xff] %v5429_v13  ;;  %v7491_v39 = vld [vmem:[#allocation60_spill] sm:$0xff] }
 0x2dc   : > { %7486 = vst [vmem:[#allocation21_spill] sm:$0xff] %v5426_v36  ;;  %v1507_v24 = vmul.f32 %v7491_v39, %v1483_v40  ;;  %v7493_v36 = vld [vmem:[#allocation62_spill] sm:$0xff] }
 0x2dd   : > { %v1397_v52 = vadd.f32 %v1395_v49, %v1327_v43  ;;  %v1413_v2 = vadd.f32 %v1411_v26, %v1343_v7  ;;  %v7488_v49 = vld [vmem:[#allocation54_spill] sm:$0xff] }
 0x2de   : > { %v1451_v26 = vmul.f32 %v7488_v49, %v1437_v34  ;;  %v7489_v43 = vld [vmem:[#allocation70_spill] sm:$0xff] }
 0x2df   : > { %v1405_v12 = vadd.f32 %v1403_v57, %v1397_v52  ;;  %v1421_v35 = vadd.f32 %v1419_v61, %v1413_v2  ;;  %v1467_v9 = vmul.f32 %v7489_v43, %v1437_v34  ;;  %v7490_v7 = vld [vmem:[#allocation58_spill] sm:$0xff]  ;;  %v7492_v57 = vld [vmem:[#allocation72_spill] sm:$0xff]  ;;  %v1515_v61 = vmul.f32 %v7493_v36, %v1485_v53  ;;  %v5437_v16 = vpop.permute.xlu0 %1649  ;;  %v7496_v34 = vld [vmem:[#allocation65_spill] sm:$0xff] }
 0x2e0   : > { %v1491_v27 = vmul.f32 %v7490_v7, %v1483_v40  ;;  %v1499_v52 = vmul.f32 %v7492_v57, %v1485_v53 }
 0x2e1   : > { %v1445_v0 = vadd.f32 %v1443_v42, %v1405_v12  ;;  %v1461_v21 = vadd.f32 %v1459_v58, %v1421_v35  ;;  %v5439_v42 = vpop.permute.xlu1 %1605  ;;  %v7494_v58 = vld [vmem:[#allocation98_spill] sm:$0xff] }
 0x2e2   : > { %v7495_v12 = vld [vmem:[#allocation74_spill] sm:$0xff]  ;;  %v1539_v13 = vmul.f32 %v7496_v34, %v7494_v58 }
 0x2e3   : > { %v1453_v29 = vadd.f32 %v1451_v26, %v1445_v0  ;;  %v1469_v17 = vadd.f32 %v1467_v9, %v1461_v21  ;;  %v1523_v35 = vmul.f32 %v7495_v12, %v7494_v58  ;;  %v5449_v26 = vpop.permute.xlu0 %1653 }
 0x2e5   : > { %v1493_v2 = vadd.f32 %v1491_v27, %v1453_v29  ;;  %v1509_v11 = vadd.f32 %v1507_v24, %v1469_v17  ;;  %v3922_v29 = vmov 28   ;;  %v5451_v24 = vpop.permute.xlu1 %1743 }
 0x2e6   : > { %3659 = vset.pattern.permute.xlu0 %v3922_v29  ;;  %3658 = vset.pattern.permute.xlu1 %v3922_v29 }
 0x2e7   : > { %v1501_v43 = vadd.f32 %v1499_v52, %v1493_v2  ;;  %v1517_v40 = vadd.f32 %v1515_v61, %v1509_v11 }
 0x2e9   : > { %v5445_v0 = vadd.f32 %v1523_v35, %v1501_v43  ;;  %v5447_v21 = vadd.f32 %v1539_v13, %v1517_v40  ;;  %v5455_v9 = vpop.permute.xlu1 %1747 }
 0x2ed   : > { %v5453_v53 = vpop.permute.xlu0 %1736 }
 0x2ee   : > { %7497 = vst [vmem:[#allocation30_spill] sm:$0xff] %v5453_v53 }
 0x2f1   : > { %v5457_v27 = vpop.permute.xlu0 %1745 }
 0x2f2   : > { %7498 = vst [vmem:[#allocation136_spill] sm:$0xff] %v5457_v27 }
 0x2f5   : > { %v5459_v17 = vpop.permute.xlu1 %1760  ;;  %v5461_v52 = vpop.permute.xlu0 %1749 }
 0x2f6   : > { %7499 = vst [vmem:[#allocation137_spill] sm:$0xff] %v5459_v17  ;;  %7500 = vst [vmem:[#allocation16_spill] sm:$0xff] %v5461_v52 }
 0x2f9   : > { %v5463_v43 = vpop.permute.xlu1 %1776  ;;  %v5465_v13 = vpop.permute.xlu0 %1768 }
 0x2fa   : > { %7501 = vst [vmem:[#allocation43_spill] sm:$0xff] %v5463_v43  ;;  %7502 = vst [vmem:[#allocation17_spill] sm:$0xff] %v5465_v13 }
 0x2fd   : > { %v5467_v61 = vpop.permute.xlu1 %1784  ;;  %v5469_v2 = vpop.permute.xlu0 %1791 }
 0x2fe   : > { %7503 = vst [vmem:[#allocation34_spill] sm:$0xff] %v5467_v61  ;;  %7504 = vst [vmem:[#allocation135_spill] sm:$0xff] %v5469_v2 }
 0x301   : > { %v5471_v11 = vpop.permute.xlu1 %1793  ;;  %v5473_v58 = vpop.permute.xlu0 %1795 }
 0x302   : > { %7505 = vst [vmem:[#allocation36_spill] sm:$0xff] %v5471_v11  ;;  %7506 = vst [vmem:[#allocation19_spill] sm:$0xff] %v5473_v58 }
 0x305   : > { %v5475_v35 = vpop.permute.xlu1 %1797  ;;  %v5477_v40 = vpop.permute.xlu0 %1808 }
 0x306   : > { %7507 = vst [vmem:[#allocation140_spill] sm:$0xff] %v5475_v35  ;;  %7508 = vst [vmem:[#allocation141_spill] sm:$0xff] %v5477_v40 }
 0x309   : > { %v5479_v29 = vpop.permute.xlu1 %1816  ;;  %v5481_v53 = vpop.permute.xlu0 %1832 }
 0x30a   : > { %7509 = vst [vmem:[#allocation142_spill] sm:$0xff] %v5479_v29  ;;  %7510 = vst [vmem:[#allocation143_spill] sm:$0xff] %v5481_v53 }
 0x30e   : > { %v5483_v17 = vpop.permute.xlu1 %1824  ;;  %v5485_v43 = vpop.permute.xlu0 %1848 }
 0x30f   : > { %7511 = vst [vmem:[#allocation115_spill] sm:$0xff] %v5483_v17  ;;  %7512 = vst [vmem:[#allocation20_spill] sm:$0xff] %v5485_v43 }
 0x312   : > { %v5489_v61 = vpop.permute.xlu0 %1871 }
 0x313   : > { %v5487_v13 = vpop.permute.xlu1 %1840  ;;  %7514 = vst [vmem:[#allocation39_spill] sm:$0xff] %v5489_v61 }
 0x314   : > { %7513 = vst [vmem:[#allocation41_spill] sm:$0xff] %v5487_v13 }
 0x316   : > { %v5493_v11 = vpop.permute.xlu0 %1875 }
 0x317   : > { %v5491_v2 = vpop.permute.xlu1 %1856  ;;  %7516 = vst [vmem:[#allocation47_spill] sm:$0xff] %v5493_v11 }
 0x318   : > { %7515 = vst [vmem:[#allocation46_spill] sm:$0xff] %v5491_v2 }
 0x31a   : > { %v5497_v35 = vpop.permute.xlu0 %1888 }
 0x31b   : > { %v5495_v58 = vpop.permute.xlu1 %1864  ;;  %7518 = vst [vmem:[#allocation25_spill] sm:$0xff] %v5497_v35 }
 0x31c   : > { %7517 = vst [vmem:[#allocation44_spill] sm:$0xff] %v5495_v58 }
 0x31e   : > { %v5501_v29 = vpop.permute.xlu0 %1912 }
 0x31f   : > { %v5499_v40 = vpop.permute.xlu1 %1873  ;;  %7520 = vst [vmem:[#allocation18_spill] sm:$0xff] %v5501_v29 }
 0x320   : > { %7519 = vst [vmem:[#allocation32_spill] sm:$0xff] %v5499_v40 }
 0x322   : > { %v5505_v17 = vpop.permute.xlu0 %1921 }
 0x323   : > { %v5503_v53 = vpop.permute.xlu1 %1877  ;;  %7522 = vst [vmem:[#allocation23_spill] sm:$0xff] %v5505_v17 }
 0x324   : > { %7521 = vst [vmem:[#allocation22_spill] sm:$0xff] %v5503_v53 }
 0x326   : > { %v5509_v13 = vpop.permute.xlu0 %1925 }
 0x327   : > { %v5507_v43 = vpop.permute.xlu1 %1896  ;;  %7524 = vst [vmem:[#allocation28_spill] sm:$0xff] %v5509_v13 }
 0x328   : > { %7523 = vst [vmem:[#allocation51_spill] sm:$0xff] %v5507_v43 }
 0x32a   : > { %v5513_v2 = vpop.permute.xlu0 %1944 }
 0x32b   : > { %v5511_v61 = vpop.permute.xlu1 %1904  ;;  %7526 = vst [vmem:[#allocation106_spill] sm:$0xff] %v5513_v2 }
 0x32c   : > { %7525 = vst [vmem:[#allocation108_spill] sm:$0xff] %v5511_v61  ;;  %v3467_v61 = vld [vmem:[%s6992_s9 + $0x4] ss:$8 sm:$0x3] }
 0x32e   : > { %v5517_v58 = vpop.permute.xlu0 %1967 }
 0x32f   : > { %v5515_v11 = vpop.permute.xlu1 %1919  ;;  %7528 = vst [vmem:[#allocation50_spill] sm:$0xff] %v5517_v58  ;;  %v7536_v58 = vld [vmem:[#allocation87_spill] sm:$0xff] }
 0x330   : > { %7527 = vst [vmem:[#allocation27_spill] sm:$0xff] %v5515_v11  ;;  %v2034_v11 = vrot.slane %v3467_v61, %v7536_v58 }
 0x332   : > { %v5521_v40 = vpop.permute.xlu0 %1971 }
 0x333   : > { %v5519_v35 = vpop.permute.xlu1 %1923  ;;  %7530 = vst [vmem:[#allocation101_spill] sm:$0xff] %v5521_v40 }
 0x334   : > { %7529 = vst [vmem:[#allocation103_spill] sm:$0xff] %v5519_v35 }
 0x338   : > { %v5523_v29 = vpop.permute.xlu1 %1936  ;;  %v5525_v53 = vpop.permute.xlu0 %1984 }
 0x339   : > { %7531 = vst [vmem:[#allocation96_spill] sm:$0xff] %v5523_v29  ;;  %7532 = vst [vmem:[#allocation29_spill] sm:$0xff] %v5525_v53 }
 0x33c   : > { %v5527_v17 = vpop.permute.xlu1 %1952 }
 0x33d   : > { %7533 = vst [vmem:[#allocation97_spill] sm:$0xff] %v5527_v17  ;;  %v5529_v43 = vpop.permute.xlu0 %2008  ;;  %v7538_v17 = vld [vmem:[#allocation89_spill] sm:$0xff] }
 0x33e   : > { %7534 = vst [vmem:[#allocation94_spill] sm:$0xff] %v5529_v43  ;;  %v2038_v35 = vrot.slane %v3467_v61, %v7538_v17  ;;  %v3923_v61 = vmov 29  }
 0x340   : > { %v5531_v13 = vpop.permute.xlu1 %1960 }
 0x341   : > { %7535 = vst [vmem:[#allocation52_spill] sm:$0xff] %v5531_v13  ;;  %v2018_v2 = vpop.permute.xlu0 %2017 }
 0x344   : > { %v5538_v40 = vpop.permute.xlu1 %1969 }
 0x345   : > { %7537 = vst [vmem:[#allocation31_spill] sm:$0xff] %v5538_v40  ;;  %v2022_v29 = vpop.permute.xlu0 %2021 }
 0x346   : > { %v2025_v53 = vsel %vm2023_vm10, %v2018_v2, %v2022_v29  ;;  %v2027_v13 = vsel %vm2023_vm10, %v2022_v29, %v2018_v2 }
 0x347   : > { %v5543_v43 = vmul.f32 %v2034_v11, %v2025_v53  ;;  %v5551_v27 = vmul.f32 %v2038_v35, %v2027_v13 }
 0x348   : > { %v5547_v52 = vpop.permute.xlu1 %1973 }
 0x349   : > { %7539 = vst [vmem:[#allocation127_spill] sm:$0xff] %v5543_v43  ;;  %2047 = vrot.lane.b32.xlu0 %v5543_v43, %s7540_s30  ;;  %7541 = vst [vmem:[#allocation128_spill] sm:$0xff] %v5551_v27 }
 0x34c   : > { %v5553_v58 = vpop.permute.xlu1 %1992 }
 0x34d   : > { %2051 = vrot.lane.b32.xlu0 %v5551_v27, %s7540_s30 }
 0x350   : > { %v5557_v40 = vpop.permute.xlu1 %2000 }
 0x351   : > { %7542 = vst [vmem:[#allocation55_spill] sm:$0xff] %v5557_v40  ;;  %2070 = vperm.xlu0 %3659, %v4810_v5   ;;  %v3925_v5 = vmov 30  }
 0x354   : > { %v2016_v53 = vpop.permute.xlu1 %2015 }
 0x355   : > { %3660 = vset.pattern.permute.xlu0 %v3923_v61 }
 0x358   : > { %v2020_v2 = vpop.permute.xlu1 %2019 }
 0x359   : > { %v2024_v29 = vsel %vm2023_vm10, %v2016_v53, %v2020_v2  ;;  %v2026_v13 = vsel %vm2023_vm10, %v2020_v2, %v2016_v53  ;;  %v1212_v2 = vsel %vm817_vm7, %v5300_v23, %v5278_v46 }
 0x35a   : > { %v5562_v17 = vmul.f32 %v2034_v11, %v2024_v29  ;;  %v5570_v40 = vmul.f32 %v2038_v35, %v2026_v13  ;;  %v3927_v11 = vmov 31   ;;  %v1211_v35 = vsel %vm817_vm7, %v7440_v33, %v7441_v20 }
 0x35b   : > { %v1216_v29 = vmul.f32 %v1212_v2, %v4868_v62 }
 0x35c   : > { %7543 = vst [vmem:[#allocation112_spill] sm:$0xff] %v5562_v17  ;;  %2093 = vrot.lane.b32.xlu0 %v5562_v17, %s7544_s12  ;;  %2045 = vrot.lane.b32.xlu1 %v5562_v17, %s7540_s30  ;;  %7545 = vst [vmem:[#allocation110_spill] sm:$0xff] %v5570_v40 }
 0x360   : > { %2097 = vrot.lane.b32.xlu0 %v5570_v40, %s7544_s12  ;;  %2049 = vrot.lane.b32.xlu1 %v5570_v40, %s7540_s30 }
 0x364   : > { %2110 = vperm.xlu0 %3660, %v7417_v28   ;;  %2062 = vperm.xlu1 %3658, %v7417_v28  }
 0x368   : > { %2134 = vperm.xlu0 %3660, %v7426_v63   ;;  %2078 = vperm.xlu1 %3658, %v4873_v38  }
 0x36c   : > { %2365 = vrot.lane.b32.xlu0 %v4348_v59, %s3924_s26  ;;  %2086 = vperm.xlu1 %3658, %v7426_v63   ;;  %v5594_v63 = vld [vmem:[%s6987_s4] sm:$0xff] }
 0x36d   : > { %3663 = vset.pattern.permute.xlu0 %v3925_v5  ;;  %7547 = vst [vmem:[#allocation33_spill] sm:$0xff] %v5594_v63 }
 0x370   : > { %2367 = vrot.lane.b32.xlu0 %v7430_v37, %s3924_s26  ;;  %2095 = vrot.lane.b32.xlu1 %v5543_v43, %s7544_s12 }
 0x371   : > { %3661 = vset.pattern.permute.xlu1 %v3923_v61  ;;  %v1214_v61 = vmul.f32 %v1211_v35, %v4868_v62 }
 0x373   : > { %v1222_v20 = vmul.f32 %v7456_v56, %v1214_v61  ;;  %v1260_v56 = vsel %vm879_vm9, %v5262_v1, %v5247_v60  ;;  %v5648_v60 = vld [vmem:[%s6986_s3 + $0x8] sm:$0xff] }
 0x374   : > { %2143 = vrot.lane.b32.xlu0 %v5543_v43, %s7546_s24  ;;  %2099 = vrot.lane.b32.xlu1 %v5551_v27, %s7544_s12  ;;  %v1264_v13 = vmul.f32 %v1260_v56, %v4900_v19  ;;  %7549 = vst [vmem:[#allocation37_spill] sm:$0xff] %v5648_v60  ;;  %v7555_v56 = vld [vmem:[#allocation117_spill] sm:$0xff] }
 0x378   : > { %2147 = vrot.lane.b32.xlu0 %v5551_v27, %s7546_s24  ;;  %2118 = vperm.xlu1 %3661, %v5594_v63  }
 0x37c   : > { %2166 = vperm.xlu0 %3663, %v5594_v63   ;;  %2126 = vperm.xlu1 %3661, %v4873_v38   ;;  %v7548_v38 = vld [vmem:[#allocation95_spill] sm:$0xff] }
 0x37d   : > { %v1182_v53 = vmul.f32 %v7450_v48, %v7548_v38  ;;  %v1259_v48 = vsel %vm879_vm9, %v7444_v47, %v7445_v45 }
 0x37e   : > { %v1262_v23 = vmul.f32 %v1259_v48, %v4900_v19 }
 0x37f   : > { %v1184_v33 = vadd.f32 %v1182_v53, %v5346_v22  ;;  %v1230_v22 = vmul.f32 %v7460_v4, %v1216_v29  ;;  %v3928_v4 = vmov 32  }
 0x380   : > { %2715 = vrot.lane.b32.xlu0 %v4348_v59, %s3926_s29  ;;  %2141 = vrot.lane.b32.xlu1 %v5562_v17, %s7546_s24  ;;  %v1270_v45 = vmul.f32 %v7463_v50, %v1262_v23  ;;  %v1278_v50 = vmul.f32 %v7468_v44, %v1264_v13  ;;  %v1198_v44 = vmul.f32 %v7451_v18, %v7548_v38 }
 0x381   : > { %3664 = vset.pattern.permute.xlu0 %v3927_v11  ;;  %3662 = vset.pattern.permute.xlu1 %v3925_v5  ;;  %v1224_v46 = vadd.f32 %v1222_v20, %v1184_v33  ;;  %v1307_v5 = vsel %vm941_vm8, %v7458_v54, %v7459_v8  ;;  %v1308_v54 = vsel %vm941_vm8, %v5352_v14, %v5323_v3  ;;  %v5661_v8 = vld [vmem:[%s6987_s4 + $0x8] sm:$0xff]  ;;  %v7551_v33 = vld [vmem:[#allocation107_spill] sm:$0xff]  ;;  %v7553_v20 = vld [vmem:[#allocation14_spill] sm:$0xff] }
 0x382   : > { %v1310_v1 = vmul.f32 %v1307_v5, %v4929_v41  ;;  %7550 = vst [vmem:[#allocation59_spill] sm:$0xff] %v5661_v8  ;;  %v1312_v2 = vmul.f32 %v1308_v54, %v4929_v41  ;;  %v7552_v3 = vld [vmem:[#allocation105_spill] sm:$0xff]  ;;  %v1200_v48 = vadd.f32 %v1198_v44, %v7553_v20  ;;  %v7557_v54 = vld [vmem:[#allocation124_spill] sm:$0xff]  ;;  %v7559_v44 = vld [vmem:[#allocation38_spill] sm:$0xff] }
 0x383   : > { %v1232_v47 = vadd.f32 %v1230_v22, %v1224_v46  ;;  %v1383_v14 = vsel %vm596_vm4, %v7552_v3, %v7551_v33  ;;  %v1286_v33 = vmul.f32 %v7559_v44, %v1262_v23  ;;  %v7560_v3 = vld [vmem:[#allocation122_spill] sm:$0xff]  ;;  %v7569_v44 = vld [vmem:[#allocation120_spill] sm:$0xff] }
 0x384   : > { %2717 = vrot.lane.b32.xlu0 %v7430_v37, %s3926_s29  ;;  %2369 = vrot.lane.b32.xlu1 %v7414_v55, %s3924_s26  ;;  %v1318_v53 = vmul.f32 %v7470_v6, %v1310_v1  ;;  %v7554_v6 = vld [vmem:[#allocation35_spill] sm:$0xff]  ;;  %v1388_v18 = vmul.f32 %v1383_v14, %v7555_v56  ;;  %v1326_v38 = vmul.f32 %v7475_v32, %v1312_v2  ;;  %v7556_v32 = vld [vmem:[#allocation57_spill] sm:$0xff]  ;;  %v7561_v14 = vld [vmem:[#allocation66_spill] sm:$0xff] }
 0x385   : > { %v1238_v22 = vmul.f32 %v7554_v6, %v1214_v61 }
 0x388   : > { %2190 = vperm.xlu0 %3664, %v7417_v28   ;;  %2371 = vrot.lane.b32.xlu1 %v7438_v15, %s3924_s26  ;;  %s3477_s26 = sshll.u32 %s4027_s21, 8 }
 0x38c   : > { %2225 = vrot.lane.b32.xlu0 %v5570_v40, %s3911_s22  ;;  %2145 = vrot.lane.b32.xlu1 %v5570_v40, %s7546_s24 }
 0x390   : > { %2198 = vperm.xlu0 %3664, %v5594_v63   ;;  %2158 = vperm.xlu1 %3662, %v7417_v28   ;;  %v1272_v28 = vadd.f32 %v1270_v45, %v1232_v47  ;;  %v1384_v47 = vsel %vm596_vm4, %v5286_v25, %v5312_v51  ;;  %v1240_v45 = vadd.f32 %v1238_v22, %v1200_v48  ;;  %v7562_v48 = vld [vmem:[#allocation26_spill] sm:$0xff] }
 0x391   : > { %v1390_v61 = vmul.f32 %v1384_v47, %v7555_v56 }
 0x392   : > { %v1280_v35 = vadd.f32 %v1278_v50, %v1272_v28  ;;  %v3929_v28 = vmov 33   ;;  %v1246_v50 = vmul.f32 %v7556_v32, %v1216_v29  ;;  %v7563_v29 = vld [vmem:[#allocation104_spill] sm:$0xff]  ;;  %v7567_v32 = vld [vmem:[#allocation109_spill] sm:$0xff] }
 0x393   : > { %v1404_v20 = vmul.f32 %v7561_v14, %v1390_v61  ;;  %v7570_v14 = vld [vmem:[#allocation102_spill] sm:$0xff] }
 0x394   : > { %3668 = vset.pattern.permute.xlu0 %v3928_v4  ;;  %2174 = vperm.xlu1 %3662, %v5648_v60   ;;  %v1320_v46 = vadd.f32 %v1318_v53, %v1280_v35  ;;  %v7558_v35 = vld [vmem:[#allocation114_spill] sm:$0xff]  ;;  %v1248_v51 = vadd.f32 %v1246_v50, %v1240_v45  ;;  %v7565_v45 = vld [vmem:[#allocation40_spill] sm:$0xff] }
 0x395   : > { %2254 = vperm.xlu0 %3668, %v5648_v60   ;;  %v1431_v25 = vsel %vm661_vm5, %v7558_v35, %v7557_v54 }
 0x396   : > { %v1328_v5 = vadd.f32 %v1326_v38, %v1320_v46  ;;  %v1432_v46 = vsel %vm661_vm5, %v7563_v29, %v7562_v48  ;;  %v1288_v6 = vadd.f32 %v1286_v33, %v1248_v51  ;;  %v7564_v38 = vld [vmem:[#allocation68_spill] sm:$0xff]  ;;  %v7568_v51 = vld [vmem:[#allocation45_spill] sm:$0xff] }
 0x397   : > { %v1438_v23 = vmul.f32 %v1432_v46, %v7560_v3 }
 0x398   : > { %2182 = vperm.xlu1 %3662, %v5661_v8  }
 0x399   : > { %2273 = vrot.lane.b32.xlu0 %v5570_v40, %s3914_s16  ;;  %v1452_v33 = vmul.f32 %v7488_v49, %v1438_v23 }
 0x39c   : > { %2719 = vrot.lane.b32.xlu1 %v7414_v55, %s3926_s29 }
 0x39d   : > { %2246 = vperm.xlu0 %3668, %v5594_v63   ;;  %3665 = vset.pattern.permute.xlu1 %v3927_v11  ;;  %v1396_v11 = vmul.f32 %v7478_v31, %v1388_v18  ;;  %v1436_v31 = vmul.f32 %v1431_v25, %v7560_v3  ;;  %v7204_v25 = vmov 34  }
 0x39f   : > { %v1398_v53 = vadd.f32 %v1396_v11, %v1328_v5  ;;  %v1444_v47 = vmul.f32 %v7564_v38, %v1436_v31  ;;  %v1294_v5 = vmul.f32 %v7565_v45, %v1264_v13  ;;  %v7566_v11 = vld [vmem:[#allocation111_spill] sm:$0xff]  ;;  %v7573_v45 = vld [vmem:[#allocation49_spill] sm:$0xff] }
 0x3a0   : > { %2721 = vrot.lane.b32.xlu1 %v7438_v15, %s3926_s29  ;;  %v1479_v50 = vsel %vm723_vm6, %v7567_v32, %v7566_v11 }
 0x3a1   : > { %3671 = vset.pattern.permute.xlu0 %v3929_v28  ;;  %v1406_v22 = vadd.f32 %v1404_v20, %v1398_v53  ;;  %v1296_v54 = vadd.f32 %v1294_v5, %v1288_v6  ;;  %v1334_v53 = vmul.f32 %v7568_v51, %v1310_v1  ;;  %v1484_v13 = vmul.f32 %v1479_v50, %v7569_v44  ;;  %v7571_v20 = vld [vmem:[#allocation24_spill] sm:$0xff] }
 0x3a2   : > { %2310 = vperm.xlu0 %3671, %v5661_v8   ;;  %v1480_v48 = vsel %vm723_vm6, %v7571_v20, %v7570_v14  ;;  %v1412_v5 = vmul.f32 %v7573_v45, %v1388_v18 }
 0x3a3   : > { %v1446_v35 = vadd.f32 %v1444_v47, %v1406_v22  ;;  %v1336_v29 = vadd.f32 %v1334_v53, %v1296_v54  ;;  %v1492_v1 = vmul.f32 %v7490_v7, %v1484_v13  ;;  %v1486_v6 = vmul.f32 %v1480_v48, %v7569_v44  ;;  %v7572_v22 = vld [vmem:[#allocation64_spill] sm:$0xff]  ;;  %v7574_v7 = vld [vmem:[#allocation119_spill] sm:$0xff]  ;;  %v7575_v54 = vld [vmem:[#allocation113_spill] sm:$0xff] }
 0x3a4   : > { %2206 = vperm.xlu1 %3665, %v5648_v60   ;;  %v1342_v49 = vmul.f32 %v7572_v22, %v1312_v2  ;;  %v1559_v2 = vsel %vm817_vm7, %v7575_v54, %v7574_v7  ;;  %v7577_v53 = vld [vmem:[#allocation99_spill] sm:$0xff]  ;;  %v7579_v48 = vld [vmem:[#allocation92_spill] sm:$0xff] }
 0x3a5   : > { %v1454_v46 = vadd.f32 %v1452_v33, %v1446_v35  ;;  %v1500_v11 = vmul.f32 %v7492_v57, %v1486_v6  ;;  %v7576_v35 = vld [vmem:[#allocation53_spill] sm:$0xff]  ;;  %v1524_v33 = vmul.f32 %v7495_v12, %v7577_v53  ;;  %v1561_v57 = vsel %vm817_vm7, %v7574_v7, %v7575_v54  ;;  %v7582_v22 = vld [vmem:[#allocation15_spill] sm:$0xff] }
 0x3a6   : > { %2321 = vrot.lane.b32.xlu0 %v5570_v40, %s7408_s14  ;;  %v1344_v38 = vadd.f32 %v1342_v49, %v1336_v29  ;;  %v1420_v51 = vmul.f32 %v7576_v35, %v1390_v61  ;;  %v7580_v29 = vld [vmem:[#allocation63_spill] sm:$0xff]  ;;  %v1460_v61 = vmul.f32 %v7485_v10, %v1436_v31  ;;  %v5758_v12 = vmul.f32 %v1561_v57, %v4868_v62  ;;  %v5774_v31 = vld [vmem:[%s6986_s3] sm:$0xff] }
 0x3a7   : > { %v1494_v47 = vadd.f32 %v1492_v1, %v1454_v46  ;;  %v1531_v46 = vmul.f32 %v7580_v29, %v7579_v48  ;;  %v7581_v1 = vld [vmem:[#allocation21_spill] sm:$0xff]  ;;  %7584 = vst [vmem:[#allocation61_spill] sm:$0xff] %v5774_v31 }
 0x3a8   : > { %2214 = vperm.xlu1 %3665, %v5661_v8   ;;  %v1414_v32 = vadd.f32 %v1412_v5, %v1344_v38  ;;  %v1560_v49 = vsel %vm817_vm7, %v7582_v22, %v7581_v1  ;;  %v7583_v38 = vld [vmem:[#allocation93_spill] sm:$0xff]  ;;  %v1562_v45 = vsel %vm817_vm7, %v7581_v1, %v7582_v22  ;;  %v7590_v22 = vld [vmem:[#allocation78_spill] sm:$0xff] }
 0x3a9   : > { %v1502_v50 = vadd.f32 %v1500_v11, %v1494_v47  ;;  %v1532_v47 = vmul.f32 %v7580_v29, %v7583_v38  ;;  %v1533_v5 = vadd.f32 %v1531_v46, %v5445_v0  ;;  %v7587_v0 = vld [vmem:[#allocation133_spill] sm:$0xff] }
 0x3aa   : > { %2294 = vperm.xlu0 %3671, %v5594_v63   ;;  %v1422_v18 = vadd.f32 %v1420_v51, %v1414_v32  ;;  %v7585_v32 = vld [vmem:[#allocation67_spill] sm:$0xff]  ;;  %v5789_v51 = vmul.f32 %v1562_v45, %v4868_v62  ;;  %v7617_v63 = vld [vmem:[#allocation140_spill] sm:$0xff] }
 0x3ab   : > { %v1526_v14 = vadd.f32 %v1524_v33, %v1502_v50  ;;  %v1572_v54 = vmul.f32 %v7585_v32, %v5758_v12  ;;  %v7588_v33 = vld [vmem:[#allocation70_spill] sm:$0xff] }
 0x3ac   : > { %3666 = vset.pattern.permute.xlu1 %v3928_v4  ;;  %v1462_v11 = vadd.f32 %v1460_v61, %v1422_v18  ;;  %v1468_v57 = vmul.f32 %v7588_v33, %v1438_v23  ;;  %v7589_v61 = vld [vmem:[#allocation129_spill] sm:$0xff]  ;;  %v1508_v23 = vmul.f32 %v7491_v39, %v1484_v13  ;;  %v1580_v45 = vmul.f32 %v7590_v22, %v5789_v51  ;;  %v7592_v13 = vld [vmem:[#allocation80_spill] sm:$0xff]  ;;  %v7593_v33 = vld [vmem:[#allocation138_spill] sm:$0xff] }
 0x3ad   : > { %2262 = vperm.xlu1 %3666, %v5661_v8   ;;  %v1534_v10 = vadd.f32 %v1532_v47, %v1526_v14 }
 0x3ae   : > { %3674 = vset.pattern.permute.xlu0 %v7204_v25  ;;  %v1470_v29 = vadd.f32 %v1468_v57, %v1462_v11  ;;  %v7594_v57 = vld [vmem:[#allocation132_spill] sm:$0xff] }
 0x3af   : > { %2358 = vperm.xlu0 %3674, %v5661_v8   ;;  %v1574_v46 = vadd.f32 %v1572_v54, %v1534_v10 }
 0x3b1   : > { %2221 = vrot.lane.b32.xlu1 %v5562_v17, %s3911_s22  ;;  %v1582_v54 = vadd.f32 %v1580_v45, %v1574_v46 }
 0x3b2   : > { %3667 = vset.pattern.permute.xlu1 %v3929_v28 }
 0x3b5   : > { %2302 = vperm.xlu1 %3667, %v5648_v60  }
 0x3b9   : > { %2223 = vrot.lane.b32.xlu1 %v5543_v43, %s3911_s22 }
 0x3ba   : > { %3669 = vset.pattern.permute.xlu1 %v3928_v4  ;;  %v7578_v4 = vld [vmem:[#allocation123_spill] sm:$0xff] }
 0x3bb   : > { %v5752_v20 = vmul.f32 %v1559_v2, %v7578_v4  ;;  %v5780_v7 = vmul.f32 %v1560_v49, %v7578_v4  ;;  %v7586_v2 = vld [vmem:[#allocation139_spill] sm:$0xff]  ;;  %v5818_v39 = vpop.permute.xlu0 %2047 }
 0x3bc   : > { %v1607_v35 = vsel %vm879_vm9, %v7587_v0, %v7586_v2  ;;  %v1609_v18 = vsel %vm879_vm9, %v7586_v2, %v7587_v0 }
 0x3bd   : > { %2227 = vrot.lane.b32.xlu1 %v5551_v27, %s3911_s22  ;;  %v1571_v50 = vmul.f32 %v7585_v32, %v5752_v20  ;;  %v5799_v1 = vmul.f32 %v1607_v35, %v7589_v61  ;;  %v1579_v49 = vmul.f32 %v7590_v22, %v5780_v7  ;;  %v5806_v47 = vmul.f32 %v1609_v18, %v4900_v19 }
 0x3be   : > { %v1516_v18 = vmul.f32 %v7493_v36, %v1486_v6 }
 0x3bf   : > { %v1573_v14 = vadd.f32 %v1571_v50, %v1533_v5  ;;  %v7591_v5 = vld [vmem:[#allocation125_spill] sm:$0xff]  ;;  %v1510_v50 = vadd.f32 %v1508_v23, %v1470_v29  ;;  %v1619_v2 = vmul.f32 %v7592_v13, %v5799_v1  ;;  %v1620_v35 = vmul.f32 %v7592_v13, %v5806_v47  ;;  %v7595_v23 = vld [vmem:[#allocation131_spill] sm:$0xff] }
 0x3c0   : > { %v1608_v11 = vsel %vm879_vm9, %v7591_v5, %v5439_v42  ;;  %v1610_v32 = vsel %vm879_vm9, %v5439_v42, %v7591_v5  ;;  %v1655_v42 = vsel %vm941_vm8, %v7594_v57, %v7593_v33  ;;  %v1657_v29 = vsel %vm941_vm8, %v7593_v33, %v7594_v57  ;;  %v7596_v5 = vld [vmem:[#allocation73_spill] sm:$0xff] }
 0x3c1   : > { %2238 = vperm.xlu1 %3669, %v5774_v31   ;;  %v1581_v10 = vadd.f32 %v1579_v49, %v1573_v14  ;;  %v5824_v0 = vmul.f32 %v1608_v11, %v7589_v61  ;;  %v5834_v14 = vmul.f32 %v1610_v32, %v4900_v19  ;;  %v1518_v22 = vadd.f32 %v1516_v18, %v1510_v50  ;;  %v5859_v50 = vpop.permute.xlu0 %2051  ;;  %v7599_v33 = vld [vmem:[#allocation77_spill] sm:$0xff]  ;;  %v7600_v18 = vld [vmem:[#allocation76_spill] sm:$0xff] }
 0x3c2   : > { %v1622_v49 = vadd.f32 %v1620_v35, %v1582_v54  ;;  %v5843_v45 = vmul.f32 %v1655_v42, %v7595_v23  ;;  %v5849_v6 = vmul.f32 %v1657_v29, %v4929_v41  ;;  %v1540_v11 = vmul.f32 %v7496_v34, %v7577_v53  ;;  %v7597_v34 = vld [vmem:[#allocation88_spill] sm:$0xff]  ;;  %v7598_v53 = vld [vmem:[#allocation90_spill] sm:$0xff] }
 0x3c3   : > { %v1621_v46 = vadd.f32 %v1619_v2, %v1581_v10  ;;  %v1627_v36 = vmul.f32 %v7596_v5, %v5824_v0  ;;  %v1656_v10 = vsel %vm941_vm8, %v5437_v16, %v5449_v26  ;;  %v1628_v32 = vmul.f32 %v7596_v5, %v5834_v14 }
 0x3c4   : > { %v1542_v13 = vadd.f32 %v1540_v11, %v1518_v22  ;;  %v1705_v35 = vsel %vm596_vm4, %v7598_v53, %v7597_v34  ;;  %v1667_v57 = vmul.f32 %v7599_v33, %v5843_v45  ;;  %v5874_v42 = vmul.f32 %v1656_v10, %v7595_v23 }
 0x3c5   : > { %2269 = vrot.lane.b32.xlu1 %v5562_v17, %s3914_s16  ;;  %v1629_v54 = vadd.f32 %v1627_v36, %v1621_v46  ;;  %v1630_v2 = vadd.f32 %v1628_v32, %v1622_v49  ;;  %v1668_v29 = vmul.f32 %v7599_v33, %v5849_v6  ;;  %v1548_v22 = vmul.f32 %v7600_v18, %v7583_v38  ;;  %v7604_v33 = vld [vmem:[#allocation69_spill] sm:$0xff] }
 0x3c6   : > { %3670 = vset.pattern.permute.xlu1 %v7204_v25 }
 0x3c7   : > { %v1669_v36 = vadd.f32 %v1667_v57, %v1629_v54  ;;  %v1550_v10 = vadd.f32 %v1548_v22, %v1542_v13  ;;  %v1670_v32 = vadd.f32 %v1668_v29, %v1630_v2  ;;  %v1588_v2 = vmul.f32 %v7604_v33, %v5758_v12 }
 0x3c9   : > { %2350 = vperm.xlu1 %3670, %v5648_v60  }
 0x3cd   : > { %2271 = vrot.lane.b32.xlu1 %v5543_v43, %s3914_s16 }
 0x3ce   : > { %3672 = vset.pattern.permute.xlu1 %v3929_v28  ;;  %v1658_v28 = vsel %vm941_vm8, %v5449_v26, %v5437_v16  ;;  %v1547_v16 = vmul.f32 %v7600_v18, %v7579_v48  ;;  %v1703_v26 = vsel %vm596_vm4, %v7597_v34, %v7598_v53  ;;  %v7601_v48 = vld [vmem:[#allocation116_spill] sm:$0xff]  ;;  %v1587_v18 = vmul.f32 %v7604_v33, %v5752_v20  ;;  %v5918_v22 = vpop.permute.xlu1 %2045 }
 0x3cf   : > { %v5885_v46 = vmul.f32 %v1658_v28, %v4929_v41  ;;  %v5893_v11 = vmul.f32 %v1705_v35, %v7601_v48  ;;  %v5897_v34 = vmul.f32 %v1703_v26, %v7555_v56  ;;  %v7602_v28 = vld [vmem:[#allocation91_spill] sm:$0xff]  ;;  %v7603_v53 = vld [vmem:[#allocation100_spill] sm:$0xff]  ;;  %v1590_v20 = vadd.f32 %v1588_v2, %v1550_v10 }
 0x3d0   : > { %v5889_v49 = vpop.permute.xlu0 %2070  ;;  %v1549_v5 = vadd.f32 %v1547_v16, %v5447_v21  ;;  %v1706_v38 = vsel %vm596_vm4, %v7603_v53, %v7602_v28  ;;  %v7605_v21 = vld [vmem:[#allocation83_spill] sm:$0xff]  ;;  %v1704_v13 = vsel %vm596_vm4, %v7602_v28, %v7603_v53  ;;  %v7606_v28 = vld [vmem:[#allocation86_spill] sm:$0xff] }
 0x3d1   : > { %2275 = vrot.lane.b32.xlu1 %v5551_v27, %s3914_s16  ;;  %v1675_v54 = vmul.f32 %v7605_v21, %v5874_v42  ;;  %v1676_v35 = vmul.f32 %v7605_v21, %v5885_v46  ;;  %v5916_v26 = vmul.f32 %v1706_v38, %v7601_v48  ;;  %v1715_v12 = vmul.f32 %v7606_v28, %v5893_v11 }
 0x3d2   : > { %v1589_v57 = vadd.f32 %v1587_v18, %v1549_v5  ;;  %v5927_v53 = vmul.f32 %v1704_v13, %v7555_v56  ;;  %v7607_v5 = vld [vmem:[#allocation71_spill] sm:$0xff]  ;;  %v7205_v38 = vmov 35   ;;  %v1716_v10 = vmul.f32 %v7606_v28, %v5897_v34 }
 0x3d3   : > { %v1677_v16 = vadd.f32 %v1675_v54, %v1669_v36  ;;  %v1678_v29 = vadd.f32 %v1676_v35, %v1670_v32  ;;  %v1595_v36 = vmul.f32 %v7607_v5, %v5780_v7  ;;  %v1596_v32 = vmul.f32 %v7607_v5, %v5789_v51  ;;  %v7608_v54 = vld [vmem:[#allocation84_spill] sm:$0xff]  ;;  %v7609_v28 = vld [vmem:[#allocation75_spill] sm:$0xff] }
 0x3d4   : > { %v5920_v25 = vpop.permute.xlu0 %2093  ;;  %v1753_v18 = vsel %vm661_vm5, %v5455_v9, %v5451_v24  ;;  %v1723_v13 = vmul.f32 %v7608_v54, %v5916_v26  ;;  %v1724_v35 = vmul.f32 %v7608_v54, %v5927_v53  ;;  %v1635_v51 = vmul.f32 %v7609_v28, %v5799_v1  ;;  %v7614_v1 = vld [vmem:[#allocation135_spill] sm:$0xff] }
 0x3d5   : > { %2286 = vperm.xlu1 %3672, %v5774_v31   ;;  %v1597_v33 = vadd.f32 %v1595_v36, %v1589_v57  ;;  %v1717_v21 = vadd.f32 %v1715_v12, %v1677_v16  ;;  %v1598_v7 = vadd.f32 %v1596_v32, %v1590_v20  ;;  %v1718_v2 = vadd.f32 %v1716_v10, %v1678_v29  ;;  %v7610_v12 = vld [vmem:[#allocation82_spill] sm:$0xff]  ;;  %v7611_v29 = vld [vmem:[#allocation121_spill] sm:$0xff]  ;;  %v7612_v36 = vld [vmem:[#allocation136_spill] sm:$0xff] }
 0x3d6   : > { %v1636_v57 = vmul.f32 %v7609_v28, %v5806_v47  ;;  %v1751_v16 = vsel %vm661_vm5, %v5451_v24, %v5455_v9  ;;  %v1643_v20 = vmul.f32 %v7610_v12, %v5824_v0  ;;  %v5956_v5 = vmul.f32 %v1753_v18, %v7611_v29  ;;  %v7613_v10 = vld [vmem:[#allocation16_spill] sm:$0xff]  ;;  %v7615_v54 = vld [vmem:[#allocation19_spill] sm:$0xff]  ;;  %v5966_v28 = vpop.permute.xlu1 %2049 }
 0x3d7   : > { %v1754_v32 = vsel %vm661_vm5, %v7613_v10, %v7612_v36  ;;  %v1801_v47 = vsel %vm723_vm6, %v7615_v54, %v7614_v1  ;;  %v1637_v24 = vadd.f32 %v1635_v51, %v1597_v33  ;;  %v1752_v9 = vsel %vm661_vm5, %v7612_v36, %v7613_v10  ;;  %v7619_v36 = vld [vmem:[#allocation118_spill] sm:$0xff] }
 0x3d8   : > { %v1725_v0 = vadd.f32 %v1723_v13, %v1717_v21  ;;  %v1799_v18 = vsel %vm723_vm6, %v7614_v1, %v7615_v54  ;;  %v1638_v40 = vadd.f32 %v1636_v57, %v1598_v7  ;;  %v1726_v8 = vadd.f32 %v1724_v35, %v1718_v2  ;;  %v7618_v13 = vld [vmem:[#allocation137_spill] sm:$0xff] }
 0x3d9   : > { %2317 = vrot.lane.b32.xlu1 %v5562_v17, %s7408_s14  ;;  %v5979_v17 = vmul.f32 %v1751_v16, %v7560_v3  ;;  %v5988_v21 = vmul.f32 %v1754_v32, %v7611_v29  ;;  %v1763_v51 = vmul.f32 %v7618_v13, %v5956_v5  ;;  %v5993_v7 = vmul.f32 %v1801_v47, %v7619_v36 }
 0x3da   : > { %3673 = vset.pattern.permute.xlu1 %v7205_v38  ;;  %v5968_v38 = vpop.permute.xlu0 %2097  ;;  %v7620_v35 = vmov 34   ;;  %v1644_v57 = vmul.f32 %v7610_v12, %v5834_v14  ;;  %v6003_v16 = vmul.f32 %v1752_v9, %v7560_v3  ;;  %v6008_v32 = vmul.f32 %v1799_v18, %v7569_v44  ;;  %v7622_v9 = vld [vmem:[#allocation79_spill] sm:$0xff] }
 0x3db   : > { %v1764_v10 = vmul.f32 %v7618_v13, %v5979_v17  ;;  %v1645_v47 = vadd.f32 %v1643_v20, %v1637_v24  ;;  %v1683_v18 = vmul.f32 %v7622_v9, %v5843_v45  ;;  %v7623_v13 = vld [vmem:[#allocation17_spill] sm:$0xff] }
 0x3dc   : > { %v7624_v20 = vld [vmem:[#allocation141_spill] sm:$0xff] }
 0x3dd   : > { %2428 = vperm.xlu1 %3673, %v5648_v60   ;;  %v7616_v60 = vld [vmem:[#allocation36_spill] sm:$0xff]  ;;  %v1766_v14 = vadd.f32 %v1764_v10, %v1726_v8  ;;  %v1811_v24 = vmul.f32 %v7624_v20, %v5993_v7  ;;  %v1812_v8 = vmul.f32 %v7624_v20, %v6008_v32  ;;  %v1685_v45 = vadd.f32 %v1683_v18, %v1645_v47 }
 0x3de   : > { %v1802_v33 = vsel %vm723_vm6, %v7617_v63, %v7616_v60  ;;  %v1800_v2 = vsel %vm723_vm6, %v7616_v60, %v7617_v63  ;;  %v1765_v63 = vadd.f32 %v1763_v51, %v1725_v0  ;;  %v1684_v0 = vmul.f32 %v7622_v9, %v5849_v6  ;;  %v7628_v9 = vld [vmem:[#allocation47_spill] sm:$0xff] }
 0x3df   : > { %v6015_v60 = vmul.f32 %v1802_v33, %v7619_v36  ;;  %v6018_v12 = vmul.f32 %v1800_v2, %v7569_v44  ;;  %v7629_v36 = vld [vmem:[#allocation39_spill] sm:$0xff] }
 0x3e1   : > { %2319 = vrot.lane.b32.xlu1 %v5543_v43, %s7408_s14  ;;  %v1771_v43 = vmul.f32 %v7623_v13, %v5988_v21 }
 0x3e2   : > { %3675 = vset.pattern.permute.xlu1 %v7620_v35  ;;  %v1646_v35 = vadd.f32 %v1644_v57, %v1638_v40  ;;  %v1772_v40 = vmul.f32 %v7623_v13, %v6003_v16  ;;  %v7627_v57 = vld [vmem:[#allocation142_spill] sm:$0xff]  ;;  %v1879_v13 = vsel %vm817_vm7, %v7629_v36, %v7628_v9 }
 0x3e3   : > { %v6010_v1 = vpop.permute.xlu0 %2110  ;;  %v6012_v54 = vpop.permute.xlu1 %2062  ;;  %v1773_v2 = vadd.f32 %v1771_v43, %v1765_v63  ;;  %v1819_v10 = vmul.f32 %v7627_v57, %v6015_v60  ;;  %v1820_v6 = vmul.f32 %v7627_v57, %v6018_v12  ;;  %v1881_v43 = vsel %vm817_vm7, %v7628_v9, %v7629_v36  ;;  %v7631_v63 = vld [vmem:[#allocation81_spill] sm:$0xff] }
 0x3e4   : > { %7621 = vst [vmem:[#allocation42_spill] sm:$0xff] %v6010_v1  ;;  %v1774_v44 = vadd.f32 %v1772_v40, %v1766_v14  ;;  %v7633_v40 = vld [vmem:[#allocation32_spill] sm:$0xff]  ;;  %v6068_v9 = vmul.f32 %v1879_v13, %v7578_v4  ;;  %v7637_v1 = vld [vmem:[#allocation27_spill] sm:$0xff] }
 0x3e5   : > { %2323 = vrot.lane.b32.xlu1 %v5551_v27, %s7408_s14  ;;  %v1686_v27 = vadd.f32 %v1684_v0, %v1646_v35  ;;  %v1813_v20 = vadd.f32 %v1811_v24, %v1773_v2  ;;  %v1691_v35 = vmul.f32 %v7631_v63, %v5874_v42  ;;  %v7632_v0 = vld [vmem:[#allocation22_spill] sm:$0xff] }
 0x3e6   : > { %v1814_v14 = vadd.f32 %v1812_v8, %v1774_v44  ;;  %v1880_v24 = vsel %vm817_vm7, %v7633_v40, %v7632_v0  ;;  %v1882_v44 = vsel %vm817_vm7, %v7632_v0, %v7633_v40  ;;  %v7642_v40 = vld [vmem:[#allocation25_spill] sm:$0xff] }
 0x3e7   : > { %v6034_v33 = vpop.permute.xlu0 %2134  ;;  %v6036_v51 = vpop.permute.xlu1 %2078  ;;  %v1821_v36 = vadd.f32 %v1819_v10, %v1813_v20  ;;  %v1693_v42 = vadd.f32 %v1691_v35, %v1685_v45  ;;  %v6083_v20 = vmul.f32 %v1880_v24, %v7578_v4  ;;  %v6092_v35 = vmul.f32 %v1882_v44, %v4868_v62  ;;  %v7645_v4 = vld [vmem:[#allocation28_spill] sm:$0xff] }
 0x3e8   : > { %7625 = vst [vmem:[#allocation48_spill] sm:$0xff] %v6034_v33  ;;  %7626 = vst [vmem:[#allocation56_spill] sm:$0xff] %v6036_v51  ;;  %v7630_v33 = vld [vmem:[#allocation41_spill] sm:$0xff]  ;;  %v1692_v51 = vmul.f32 %v7631_v63, %v5885_v46  ;;  %v1822_v8 = vadd.f32 %v1820_v6, %v1814_v14  ;;  %v7229_v46 = vmov 36  }
 0x3e9   : > { %2334 = vperm.xlu1 %3675, %v5774_v31   ;;  %v1843_v47 = vmul.f32 %v7630_v33, %v4348_v59  ;;  %v1844_v18 = vmul.f32 %v7630_v33, %v7414_v55  ;;  %v6075_v33 = vmul.f32 %v1881_v43, %v4868_v62  ;;  %v7636_v31 = vld [vmem:[#allocation103_spill] sm:$0xff]  ;;  %7638 = vst [vmem:[#allocation60_spill] sm:$0xff] %v6083_v20  ;;  %v7639_v6 = vld [vmem:[#allocation85_spill] sm:$0xff]  ;;  %7640 = vst [vmem:[#allocation72_spill] sm:$0xff] %v6092_v35 }
 0x3ea   : > { %v1694_v10 = vadd.f32 %v1692_v51, %v1686_v27  ;;  %v1929_v45 = vsel %vm879_vm9, %v7636_v31, %v7637_v1  ;;  %v1731_v43 = vmul.f32 %v7639_v6, %v5893_v11  ;;  %v1732_v27 = vmul.f32 %v7639_v6, %v5897_v34  ;;  %v7641_v51 = vld [vmem:[#allocation20_spill] sm:$0xff] }
 0x3eb   : > { %v6061_v2 = vpop.permute.xlu0 %2365  ;;  %v6063_v57 = vpop.permute.xlu1 %2086  ;;  %7635 = vst [vmem:[#allocation58_spill] sm:$0xff] %v6075_v33  ;;  %v1845_v13 = vadd.f32 %v1843_v47, %v1821_v36  ;;  %v1846_v63 = vadd.f32 %v1844_v18, %v1822_v8  ;;  %v1851_v47 = vmul.f32 %v7641_v51, %v7430_v37  ;;  %v1852_v18 = vmul.f32 %v7641_v51, %v7438_v15  ;;  %v7643_v8 = vld [vmem:[#allocation51_spill] sm:$0xff] }
 0x3ec   : > { %7634 = vst [vmem:[#allocation54_spill] sm:$0xff] %v6063_v57  ;;  %v1927_v57 = vsel %vm879_vm9, %v7637_v1, %v7636_v31  ;;  %v1891_v31 = vmul.f32 %v7642_v40, %v6068_v9  ;;  %v1733_v11 = vadd.f32 %v1731_v43, %v1693_v42  ;;  %v1892_v24 = vmul.f32 %v7642_v40, %v6075_v33  ;;  %v7646_v42 = vld [vmem:[#allocation23_spill] sm:$0xff] }
 0x3ed   : > { %3676 = vset.pattern.permute.xlu1 %v7229_v46  ;;  %v6105_v1 = vmul.f32 %v1927_v57, %v7589_v61  ;;  %v6112_v36 = vmul.f32 %v1929_v45, %v4900_v19  ;;  %v1734_v34 = vadd.f32 %v1732_v27, %v1694_v10  ;;  %v1853_v44 = vadd.f32 %v1851_v47, %v1845_v13  ;;  %v7644_v46 = vld [vmem:[#allocation30_spill] sm:$0xff] }
 0x3ee   : > { %v1899_v6 = vmul.f32 %v7643_v8, %v6083_v20  ;;  %v1739_v62 = vmul.f32 %v7644_v46, %v5916_v26  ;;  %v1854_v57 = vadd.f32 %v1852_v18, %v1846_v63  ;;  %v1928_v43 = vsel %vm879_vm9, %v7646_v42, %v7645_v4  ;;  %v7647_v63 = vld [vmem:[#allocation96_spill] sm:$0xff]  ;;  %v7648_v18 = vld [vmem:[#allocation43_spill] sm:$0xff] }
 0x3ef   : > { %v6094_v14 = vpop.permute.xlu0 %2367  ;;  %v6096_v0 = vpop.permute.xlu1 %2095  ;;  %v1900_v51 = vmul.f32 %v7643_v8, %v6092_v35  ;;  %v1740_v10 = vmul.f32 %v7644_v46, %v5927_v53  ;;  %v1893_v13 = vadd.f32 %v1891_v31, %v1853_v44  ;;  %v1930_v26 = vsel %vm879_vm9, %v7645_v4, %v7646_v42 }
 0x3f0   : > { %v1939_v27 = vmul.f32 %v7647_v63, %v6105_v1  ;;  %v1741_v47 = vadd.f32 %v1739_v62, %v1733_v11  ;;  %v1779_v8 = vmul.f32 %v7648_v18, %v5956_v5  ;;  %v1894_v35 = vadd.f32 %v1892_v24, %v1854_v57  ;;  %v7649_v62 = vld [vmem:[#allocation101_spill] sm:$0xff]  ;;  %v7650_v11 = vld [vmem:[#allocation50_spill] sm:$0xff]  ;;  %v7651_v24 = vld [vmem:[#allocation31_spill] sm:$0xff] }
 0x3f1   : > { %v1940_v20 = vmul.f32 %v7647_v63, %v6112_v36  ;;  %v1742_v33 = vadd.f32 %v1740_v10, %v1734_v34  ;;  %v1780_v53 = vmul.f32 %v7648_v18, %v5979_v17  ;;  %v6143_v46 = vmul.f32 %v1928_v43, %v7589_v61  ;;  %v7653_v18 = vld [vmem:[#allocation106_spill] sm:$0xff] }
 0x3f2   : > { %v1901_v31 = vadd.f32 %v1899_v6, %v1893_v13  ;;  %v6146_v4 = vmul.f32 %v1930_v26, %v4900_v19  ;;  %v1902_v44 = vadd.f32 %v1900_v51, %v1894_v35  ;;  %v1975_v5 = vsel %vm941_vm8, %v7650_v11, %v7649_v62  ;;  %v7652_v6 = vld [vmem:[#allocation34_spill] sm:$0xff] }
 0x3f3   : > { %v6124_v40 = vpop.permute.xlu0 %2143  ;;  %v6126_v45 = vpop.permute.xlu1 %2099  ;;  %v1976_v34 = vsel %vm941_vm8, %v7651_v24, %v5547_v52  ;;  %v1787_v42 = vmul.f32 %v7652_v6, %v5988_v21  ;;  %v1977_v35 = vsel %vm941_vm8, %v7649_v62, %v7650_v11  ;;  %v1978_v51 = vsel %vm941_vm8, %v5547_v52, %v7651_v24 }
 0x3f4   : > { %v1941_v43 = vadd.f32 %v1939_v27, %v1901_v31  ;;  %v1781_v10 = vadd.f32 %v1779_v8, %v1741_v47  ;;  %v1788_v13 = vmul.f32 %v7652_v6, %v6003_v16  ;;  %v1942_v26 = vadd.f32 %v1940_v20, %v1902_v44  ;;  %v7654_v44 = vld [vmem:[#allocation115_spill] sm:$0xff]  ;;  %v7655_v6 = vld [vmem:[#allocation29_spill] sm:$0xff] }
 0x3f5   : > { %v1782_v63 = vadd.f32 %v1780_v53, %v1742_v33  ;;  %v1947_v21 = vmul.f32 %v7653_v18, %v6143_v46  ;;  %v6175_v19 = vmul.f32 %v1975_v5, %v7595_v23  ;;  %v6178_v62 = vmul.f32 %v1976_v34, %v7595_v23 }
 0x3f6   : > { %v1948_v27 = vmul.f32 %v7653_v18, %v6146_v4  ;;  %v6183_v52 = vmul.f32 %v1977_v35, %v4929_v41  ;;  %v6186_v47 = vmul.f32 %v1978_v51, %v4929_v41  ;;  %v2055_v16 = vsel %vm596_vm4, %v5966_v28, %v5918_v22  ;;  %v7656_v51 = vld [vmem:[#allocation143_spill] sm:$0xff] }
 0x3f7   : > { %v6156_v57 = vpop.permute.xlu0 %2147  ;;  %v6158_v17 = vpop.permute.xlu1 %2118  ;;  %v1789_v8 = vadd.f32 %v1787_v42, %v1781_v10  ;;  %v1949_v53 = vadd.f32 %v1947_v21, %v1941_v43  ;;  %v1790_v31 = vadd.f32 %v1788_v13, %v1782_v63  ;;  %v1827_v11 = vmul.f32 %v7654_v44, %v5993_v7  ;;  %v3468_v7 = vld [vmem:[%s6992_s9 + $0x5] ss:$8 sm:$0x3] }
 0x3f8   : > { %v1950_v5 = vadd.f32 %v1948_v27, %v1942_v26  ;;  %v2053_v24 = vsel %vm596_vm4, %v5918_v22, %v5966_v28  ;;  %v1828_v34 = vmul.f32 %v7654_v44, %v6008_v32  ;;  %v1987_v35 = vmul.f32 %v7655_v6, %v6175_v19  ;;  %v7658_v27 = vld [vmem:[#allocation87_spill] sm:$0xff] }
 0x3f9   : > { %v1995_v42 = vmul.f32 %v5553_v58, %v6178_v62  ;;  %v6209_v43 = vmul.f32 %v2055_v16, %v7601_v48  ;;  %v1835_v10 = vmul.f32 %v7656_v51, %v6015_v60  ;;  %v1836_v22 = vmul.f32 %v7656_v51, %v6018_v12  ;;  %v7659_v16 = vld [vmem:[#allocation89_spill] sm:$0xff] }
 0x3fa   : > { %v1988_v28 = vmul.f32 %v7655_v6, %v6183_v52  ;;  %v1996_v32 = vmul.f32 %v5553_v58, %v6186_v47  ;;  %v1989_v63 = vadd.f32 %v1987_v35, %v1949_v53  ;;  %v2056_v18 = vsel %vm596_vm4, %v5859_v50, %v5818_v39 }
 0x3fb   : > { %v6192_v33 = vpop.permute.xlu0 %2166  ;;  %v6194_v20 = vpop.permute.xlu1 %2126  ;;  %v6229_v60 = vmul.f32 %v2053_v24, %v7555_v56  ;;  %v2065_v12 = vmul.f32 %v6012_v54, %v6209_v43  ;;  %v2384_v58 = vrot.slane %v3468_v7, %v7658_v27  ;;  %v6236_v44 = vrot.slane %v3468_v7, %v7659_v16  ;;  %v7660_v24 = vld [vmem:[#allocation46_spill] sm:$0xff]  ;;  %v7680_v27 = vld [vmem:[#allocation52_spill] sm:$0xff] }
 0x3fc   : > { %v1990_v21 = vadd.f32 %v1988_v28, %v1950_v5  ;;  %v1829_v53 = vadd.f32 %v1827_v11, %v1789_v8  ;;  %v1830_v6 = vadd.f32 %v1828_v34, %v1790_v31  ;;  %v1997_v35 = vadd.f32 %v1995_v42, %v1989_v63 }
 0x3fd   : > { %v2066_v51 = vmul.f32 %v6012_v54, %v6229_v60  ;;  %v2054_v5 = vsel %vm596_vm4, %v5818_v39, %v5859_v50  ;;  %v6247_v28 = vmul.f32 %v2056_v18, %v7601_v48  ;;  %v2103_v54 = vsel %vm661_vm5, %v5968_v38, %v5920_v25 }
 0x3fe   : > { %v1998_v41 = vadd.f32 %v1996_v32, %v1990_v21  ;;  %v2067_v31 = vadd.f32 %v2065_v12, %v1997_v35  ;;  %v2102_v50 = vsel %vm661_vm5, %v6096_v0, %v6126_v45  ;;  %v2104_v11 = vsel %vm661_vm5, %v6126_v45, %v6096_v0 }
 0x3ff   : > { %v6222_v13 = vpop.permute.xlu0 %2715  ;;  %v2142_v26 = vpop.permute.xlu1 %2141  ;;  %v1837_v32 = vadd.f32 %v1835_v10, %v1829_v53  ;;  %v6275_v63 = vmul.f32 %v2054_v5, %v7555_v56  ;;  %v1838_v12 = vadd.f32 %v1836_v22, %v1830_v6  ;;  %v1860_v21 = vmul.f32 %v7660_v24, %v7414_v55  ;;  %v7661_v22 = vld [vmem:[#allocation44_spill] sm:$0xff] }
 0x400   : > { %7657 = vst [vmem:[#allocation62_spill] sm:$0xff] %v6222_v13  ;;  %v1859_v13 = vmul.f32 %v7660_v24, %v4348_v59  ;;  %v2068_v18 = vadd.f32 %v2066_v51, %v1998_v41  ;;  %v2073_v0 = vmul.f32 %v5889_v49, %v6247_v28  ;;  %v6292_v41 = vmul.f32 %v2103_v54, %v7611_v29  ;;  %v7662_v24 = vld [vmem:[#allocation42_spill] sm:$0xff] }
 0x401   : > { %v2074_v53 = vmul.f32 %v5889_v49, %v6275_v63  ;;  %v6298_v55 = vmul.f32 %v2102_v50, %v7560_v3  ;;  %v1867_v6 = vmul.f32 %v7661_v22, %v7430_v37  ;;  %v1868_v49 = vmul.f32 %v7661_v22, %v7438_v15  ;;  %v7666_v22 = vld [vmem:[#allocation120_spill] sm:$0xff] }
 0x402   : > { %v2075_v51 = vadd.f32 %v2073_v0, %v2067_v31  ;;  %v2113_v5 = vmul.f32 %v7662_v24, %v6292_v41  ;;  %v2150_v37 = vsel %vm723_vm6, %v6124_v40, %v6156_v57  ;;  %v2152_v15 = vsel %vm723_vm6, %v6156_v57, %v6124_v40  ;;  %v7663_v31 = vld [vmem:[#allocation33_spill] sm:$0xff]  ;;  %v7665_v57 = vld [vmem:[#allocation118_spill] sm:$0xff] }
 0x403   : > { %v6249_v7 = vpop.permute.xlu0 %2717  ;;  %v2370_v8 = vpop.permute.xlu1 %2369 }
 0x404   : > { %v2374_v59 = vsel %vm2373_vm11, %v6061_v2, %v2370_v8  ;;  %v2376_v39 = vsel %vm2373_vm11, %v2370_v8, %v6061_v2  ;;  %v2101_v2 = vsel %vm661_vm5, %v5920_v25, %v5968_v38  ;;  %v6295_v25 = vmul.f32 %v2104_v11, %v7611_v29 }
 0x405   : > { %v6269_v34 = vmul.f32 %v2384_v58, %v2374_v59  ;;  %v6272_v42 = vmul.f32 %v6236_v44, %v2376_v39  ;;  %v1861_v38 = vadd.f32 %v1859_v13, %v1837_v32  ;;  %v6303_v35 = vmul.f32 %v2101_v2, %v7560_v3  ;;  %v7664_v59 = vld [vmem:[#allocation37_spill] sm:$0xff] }
 0x406   : > { %v2076_v8 = vadd.f32 %v2074_v53, %v2068_v18  ;;  %v2121_v50 = vmul.f32 %v6158_v17, %v6295_v25  ;;  %v2122_v11 = vmul.f32 %v6158_v17, %v6298_v55  ;;  %v2115_v18 = vadd.f32 %v2113_v5, %v2075_v51  ;;  %v7667_v51 = vld [vmem:[#allocation108_spill] sm:$0xff] }
 0x407   : > { %v2191_v45 = vpop.permute.xlu0 %2190  ;;  %2399 = vrot.lane.b32.xlu0 %v6272_v42, %s7540_s30  ;;  %2395 = vrot.lane.b32.xlu1 %v6269_v34, %s7540_s30  ;;  %v2372_v10 = vpop.permute.xlu1 %2371  ;;  %v2114_v13 = vmul.f32 %v7662_v24, %v6303_v35  ;;  %v6343_v3 = vmul.f32 %v2152_v15, %v7665_v57  ;;  %v6346_v17 = vmul.f32 %v2150_v37, %v7666_v22 }
 0x408   : > { %v2375_v54 = vsel %vm2373_vm11, %v6094_v14, %v2372_v10  ;;  %v1907_v5 = vmul.f32 %v7667_v51, %v6068_v9  ;;  %v2123_v37 = vadd.f32 %v2121_v50, %v2115_v18 }
 0x409   : > { %v6332_v0 = vmul.f32 %v2384_v58, %v2375_v54  ;;  %v2116_v29 = vadd.f32 %v2114_v13, %v2076_v8  ;;  %v1862_v58 = vadd.f32 %v1860_v21, %v1838_v12  ;;  %v7668_v54 = vld [vmem:[#allocation58_spill] sm:$0xff]  ;;  %v1869_v12 = vadd.f32 %v1867_v6, %v1861_v38 }
 0x40a   : > { %v2170_v50 = vmul.f32 %v6192_v33, %v6346_v17 }
 0x40b   : > { %2342 = vperm.xlu0 %3674, %v7663_v31   ;;  %2476 = vperm.xlu1 %3676, %v7664_v59   ;;  %v2146_v39 = vpop.permute.xlu1 %2145  ;;  %v6334_v40 = vpop.permute.xlu0 %2225  ;;  %v1870_v21 = vadd.f32 %v1868_v49, %v1862_v58  ;;  %v1909_v18 = vadd.f32 %v1907_v5, %v1869_v12  ;;  %v7672_v49 = vld [vmem:[#allocation110_spill] sm:$0xff]  ;;  %v7675_v5 = vld [vmem:[#allocation72_spill] sm:$0xff]  ;;  %v7677_v12 = vld [vmem:[#allocation127_spill] sm:$0xff] }
 0x40c   : > { %v2149_v32 = vsel %vm723_vm6, %v2142_v26, %v2146_v39  ;;  %v2151_v2 = vsel %vm723_vm6, %v2146_v39, %v2142_v26  ;;  %v2377_v26 = vsel %vm2373_vm11, %v2372_v10, %v6094_v14  ;;  %v1908_v39 = vmul.f32 %v7667_v51, %v7668_v54  ;;  %v7670_v14 = vld [vmem:[#allocation59_spill] sm:$0xff] }
 0x40d   : > { %v6337_v53 = vmul.f32 %v2151_v2, %v7665_v57  ;;  %v6340_v24 = vmul.f32 %v2149_v32, %v7666_v22  ;;  %v7669_v32 = vmov 35   ;;  %v2124_v2 = vadd.f32 %v2122_v11, %v2116_v29  ;;  %v7679_v57 = vld [vmem:[#allocation61_spill] sm:$0xff] }
 0x40e   : > { %v6362_v9 = vmul.f32 %v6236_v44, %v2377_v26  ;;  %v2169_v10 = vmul.f32 %v6192_v33, %v6343_v3  ;;  %v1910_v51 = vadd.f32 %v1908_v39, %v1870_v21  ;;  %v7671_v44 = vld [vmem:[#allocation112_spill] sm:$0xff]  ;;  %v2194_v26 = vmul.f32 %v2191_v45, %v7672_v49 }
 0x40f   : > { %3677 = vset.pattern.permute.xlu0 %v7669_v32  ;;  %2397 = vrot.lane.b32.xlu1 %v6332_v0, %s7540_s30  ;;  %v2159_v15 = vpop.permute.xlu1 %2158  ;;  %v2199_v54 = vpop.permute.xlu0 %2198  ;;  %v2193_v6 = vmul.f32 %v2191_v45, %v7671_v44  ;;  %v7673_v33 = vld [vmem:[#allocation60_spill] sm:$0xff] }
 0x410   : > { %v2161_v8 = vmul.f32 %v2159_v15, %v6337_v53  ;;  %v2162_v13 = vmul.f32 %v2159_v15, %v6340_v24  ;;  %2436 = vperm.xlu0 %3677, %v7670_v14   ;;  %3678 = vset.pattern.permute.xlu1 %v7669_v32  ;;  %v7674_v15 = vld [vmem:[#allocation18_spill] sm:$0xff]  ;;  %v2201_v21 = vmul.f32 %v2199_v54, %v7677_v12  ;;  %v7678_v45 = vld [vmem:[#allocation128_spill] sm:$0xff] }
 0x411   : > { %v1916_v39 = vmul.f32 %v7674_v15, %v7675_v5 }
 0x412   : > { %v2163_v29 = vadd.f32 %v2161_v8, %v2123_v37  ;;  %v2164_v11 = vadd.f32 %v2162_v13, %v2124_v2  ;;  %v1915_v37 = vmul.f32 %v7674_v15, %v7673_v33  ;;  %v7676_v2 = vld [vmem:[#allocation97_spill] sm:$0xff]  ;;  %v1963_v15 = vmul.f32 %v7680_v27, %v6143_v46 }
 0x413   : > { %2401 = vrot.lane.b32.xlu1 %v6362_v9, %s7540_s30  ;;  %v6371_v38 = vpop.permute.xlu1 %2174  ;;  %v1955_v8 = vmul.f32 %v7676_v2, %v6105_v1  ;;  %v1956_v13 = vmul.f32 %v7676_v2, %v6112_v36  ;;  %v1918_v22 = vadd.f32 %v1916_v39, %v1910_v51  ;;  %v1964_v1 = vmul.f32 %v7680_v27, %v6146_v4  ;;  %v7684_v2 = vld [vmem:[#allocation56_spill] sm:$0xff] }
 0x414   : > { %v2171_v58 = vadd.f32 %v2169_v10, %v2163_v29  ;;  %v2172_v32 = vadd.f32 %v2170_v50, %v2164_v11  ;;  %2447 = vrot.lane.b32.xlu0 %v6272_v42, %s7544_s12  ;;  %v2202_v10 = vmul.f32 %v2199_v54, %v7678_v45  ;;  %v1917_v11 = vadd.f32 %v1915_v37, %v1909_v18  ;;  %v7681_v18 = vld [vmem:[#allocation55_spill] sm:$0xff] }
 0x415   : > { %v2003_v51 = vmul.f32 %v7681_v18, %v6175_v19 }
 0x416   : > { %v2195_v50 = vadd.f32 %v2193_v6, %v2171_v58  ;;  %v2196_v29 = vadd.f32 %v2194_v26, %v2172_v32  ;;  %v1957_v54 = vadd.f32 %v1955_v8, %v1917_v11  ;;  %v1958_v6 = vadd.f32 %v1956_v13, %v1918_v22 }
 0x417   : > { %2412 = vperm.xlu1 %3678, %v7679_v57   ;;  %v2183_v33 = vpop.permute.xlu1 %2182  ;;  %v2004_v26 = vmul.f32 %v7681_v18, %v6183_v52  ;;  %v3933_v58 = vmov 37   ;;  %v7683_v52 = vld [vmem:[#allocation94_spill] sm:$0xff]  ;;  %v2081_v8 = vmul.f32 %v7684_v2, %v6209_v43  ;;  %v2082_v13 = vmul.f32 %v7684_v2, %v6229_v60 }
 0x418   : > { %2420 = vperm.xlu0 %3677, %v7663_v31   ;;  %v6393_v36 = vadd.f32 %v2201_v21, %v2195_v50  ;;  %v6395_v5 = vadd.f32 %v2202_v10, %v2196_v29  ;;  %v1965_v4 = vadd.f32 %v1963_v15, %v1957_v54  ;;  %v1966_v27 = vadd.f32 %v1964_v1, %v1958_v6 }
 0x419   : > { %v7682_v31 = vmov 36   ;;  %v2011_v37 = vmul.f32 %v7683_v52, %v6178_v62  ;;  %v2012_v39 = vmul.f32 %v7683_v52, %v6186_v47  ;;  %v2129_v60 = vmul.f32 %v6194_v20, %v6292_v41 }
 0x41a   : > { %v2005_v22 = vadd.f32 %v2003_v51, %v1965_v4  ;;  %v2006_v32 = vadd.f32 %v2004_v26, %v1966_v27  ;;  %v2130_v11 = vmul.f32 %v6194_v20, %v6303_v35  ;;  %v3934_v6 = vmov 38   ;;  %v7686_v20 = vld [vmem:[#allocation48_spill] sm:$0xff] }
 0x41b   : > { %2443 = vrot.lane.b32.xlu1 %v6269_v34, %s7544_s12  ;;  %v6403_v46 = vpop.permute.xlu1 %2719  ;;  %v2137_v35 = vmul.f32 %v7686_v20, %v6295_v25  ;;  %v2138_v18 = vmul.f32 %v7686_v20, %v6298_v55  ;;  %v2177_v51 = vmul.f32 %v6371_v38, %v6337_v53  ;;  %v2178_v26 = vmul.f32 %v6371_v38, %v6340_v24 }
 0x41c   : > { %3680 = vset.pattern.permute.xlu0 %v7682_v31  ;;  %3679 = vset.pattern.permute.xlu1 %v3933_v58  ;;  %v2013_v21 = vadd.f32 %v2011_v37, %v2005_v22  ;;  %v2014_v10 = vadd.f32 %v2012_v39, %v2006_v32  ;;  %v2186_v22 = vmul.f32 %v2183_v33, %v6346_v17  ;;  %v7687_v39 = vld [vmem:[#allocation123_spill] sm:$0xff] }
 0x41d   : > { %2484 = vperm.xlu0 %3680, %v7670_v14  }
 0x41e   : > { %v2083_v29 = vadd.f32 %v2081_v8, %v2013_v21  ;;  %v2084_v43 = vadd.f32 %v2082_v13, %v2014_v10  ;;  %v7688_v8 = vld [vmem:[#allocation126_spill] sm:$0xff] }
 0x41f   : > { %2524 = vperm.xlu1 %3679, %v7664_v59   ;;  %v6409_v19 = vpop.permute.xlu1 %2721  ;;  %v7685_v59 = vld [vmem:[#allocation54_spill] sm:$0xff] }
 0x420   : > { %v2089_v50 = vmul.f32 %v7685_v59, %v6247_v28  ;;  %v2090_v62 = vmul.f32 %v7685_v59, %v6275_v63  ;;  %v6435_v28 = vld [vmem:[%s6987_s4] sm:$0xff] }
 0x421   : > { %2495 = vrot.lane.b32.xlu0 %v6272_v42, %s7546_s24 }
 0x422   : > { %v2091_v63 = vadd.f32 %v2089_v50, %v2083_v29  ;;  %v2092_v15 = vadd.f32 %v2090_v62, %v2084_v43  ;;  %v3935_v43 = vmov 39  }
 0x423   : > { %2445 = vrot.lane.b32.xlu1 %v6332_v0, %s7544_s12  ;;  %v2207_v47 = vpop.permute.xlu1 %2206 }
 0x424   : > { %3681 = vset.pattern.permute.xlu1 %v7682_v31  ;;  %v2131_v54 = vadd.f32 %v2129_v60, %v2091_v63  ;;  %v2132_v41 = vadd.f32 %v2130_v11, %v2092_v15  ;;  %v2185_v31 = vmul.f32 %v2183_v33, %v6343_v3  ;;  %v2209_v55 = vmul.f32 %v2207_v47, %v7671_v44 }
 0x425   : > { %2468 = vperm.xlu0 %3680, %v6435_v28   ;;  %v2210_v53 = vmul.f32 %v2207_v47, %v7672_v49 }
 0x426   : > { %v2139_v4 = vadd.f32 %v2137_v35, %v2131_v54  ;;  %v2140_v27 = vadd.f32 %v2138_v18, %v2132_v41 }
 0x427   : > { %2449 = vrot.lane.b32.xlu1 %v6362_v9, %s7544_s12  ;;  %v2215_v1 = vpop.permute.xlu1 %2214 }
 0x428   : > { %v2179_v32 = vadd.f32 %v2177_v51, %v2139_v4  ;;  %v2180_v52 = vadd.f32 %v2178_v26, %v2140_v27  ;;  %v2217_v3 = vmul.f32 %v2215_v1, %v7677_v12  ;;  %v2218_v17 = vmul.f32 %v2215_v1, %v7678_v45  ;;  %v2255_v12 = vpop.permute.xlu0 %2254  ;;  %v6474_v45 = vld [vmem:[%s6986_s3 + $0x8] sm:$0xff] }
 0x429   : > { %3683 = vset.pattern.permute.xlu0 %v3934_v6 }
 0x42a   : > { %2564 = vperm.xlu0 %3683, %v7670_v14   ;;  %v2187_v24 = vadd.f32 %v2185_v31, %v2179_v32  ;;  %v2188_v38 = vadd.f32 %v2186_v22, %v2180_v52  ;;  %v3936_v31 = vmov 40  }
 0x42b   : > { %2460 = vperm.xlu1 %3681, %v7679_v57  }
 0x42c   : > { %v2263_v25 = vpop.permute.xlu1 %2262  ;;  %v2211_v49 = vadd.f32 %v2209_v55, %v2187_v24  ;;  %v2212_v37 = vadd.f32 %v2210_v53, %v2188_v38  ;;  %v2274_v60 = vpop.permute.xlu0 %2273  ;;  %v7689_v24 = vld [vmem:[#allocation130_spill] sm:$0xff] }
 0x42e   : > { %3684 = vset.pattern.permute.xlu0 %v3933_v58  ;;  %v2219_v21 = vadd.f32 %v2217_v3, %v2211_v49  ;;  %v2220_v10 = vadd.f32 %v2218_v17, %v2212_v37 }
 0x42f   : > { %2532 = vperm.xlu0 %3684, %v7670_v14   ;;  %2491 = vrot.lane.b32.xlu1 %v6269_v34, %s7546_s24 }
 0x430   : > { %v2222_v33 = vpop.permute.xlu1 %2221  ;;  %3682 = vset.pattern.permute.xlu1 %v3934_v6  ;;  %v2247_v41 = vpop.permute.xlu0 %2246 }
 0x431   : > { %v2229_v44 = vsel %vm817_vm7, %v2222_v33, %v6334_v40  ;;  %v2231_v14 = vsel %vm817_vm7, %v6334_v40, %v2222_v33 }
 0x432   : > { %v2233_v2 = vmul.f32 %v2229_v44, %v7687_v39  ;;  %v2234_v13 = vmul.f32 %v2231_v14, %v7688_v8  ;;  %v6512_v44 = vld [vmem:[%s6987_s4 + $0x8] sm:$0xff] }
 0x433   : > { %2516 = vperm.xlu0 %3684, %v6435_v28   ;;  %2556 = vperm.xlu1 %3682, %v6474_v45  }
 0x434   : > { %v2257_v59 = vmul.f32 %v2255_v12, %v2233_v2  ;;  %v2258_v40 = vmul.f32 %v2255_v12, %v2234_v13  ;;  %v2303_v50 = vpop.permute.xlu1 %2302  ;;  %v2311_v49 = vpop.permute.xlu0 %2310 }
 0x436   : > { %v2259_v62 = vadd.f32 %v2257_v59, %v2219_v21  ;;  %v2260_v47 = vadd.f32 %v2258_v40, %v2220_v10  ;;  %v3937_v21 = vmov 41  }
 0x437   : > { %2571 = vrot.lane.b32.xlu0 %v6269_v34, %s3911_s22  ;;  %2493 = vrot.lane.b32.xlu1 %v6332_v0, %s7546_s24 }
 0x438   : > { %v2224_v29 = vpop.permute.xlu1 %2223  ;;  %3689 = vset.pattern.permute.xlu0 %v3935_v43  ;;  %3685 = vset.pattern.permute.xlu1 %v3933_v58  ;;  %v2322_v12 = vpop.permute.xlu0 %2321 }
 0x43b   : > { %2577 = vrot.lane.b32.xlu0 %v6362_v9, %s3911_s22  ;;  %2497 = vrot.lane.b32.xlu1 %v6362_v9, %s7546_s24 }
 0x43c   : > { %v2228_v11 = vpop.permute.xlu1 %2227 }
 0x43d   : > { %v2230_v63 = vsel %vm817_vm7, %v2224_v29, %v2228_v11  ;;  %v2232_v15 = vsel %vm817_vm7, %v2228_v11, %v2224_v29 }
 0x43e   : > { %v2235_v1 = vmul.f32 %v2230_v63, %v7687_v39  ;;  %v2236_v54 = vmul.f32 %v2232_v15, %v7688_v8 }
 0x43f   : > { %2588 = vperm.xlu0 %3689, %v7679_v57   ;;  %2508 = vperm.xlu1 %3685, %v7679_v57  }
 0x440   : > { %v2239_v58 = vpop.permute.xlu1 %2238  ;;  %v2249_v18 = vmul.f32 %v2247_v41, %v2235_v1  ;;  %v2250_v51 = vmul.f32 %v2247_v41, %v2236_v54  ;;  %v2265_v26 = vmul.f32 %v2263_v25, %v2235_v1  ;;  %v2266_v22 = vmul.f32 %v2263_v25, %v2236_v54 }
 0x441   : > { %v2241_v20 = vmul.f32 %v2239_v58, %v2233_v2  ;;  %v2242_v35 = vmul.f32 %v2239_v58, %v2234_v13 }
 0x442   : > { %v2267_v3 = vadd.f32 %v2265_v26, %v2259_v62  ;;  %v2268_v17 = vadd.f32 %v2266_v22, %v2260_v47 }
 0x443   : > { %v2243_v4 = vadd.f32 %v2241_v20, %v6393_v36  ;;  %v2244_v27 = vadd.f32 %v2242_v35, %v6395_v5  ;;  %3690 = vset.pattern.permute.xlu0 %v3936_v31  ;;  %3686 = vset.pattern.permute.xlu1 %v3935_v43 }
 0x444   : > { %2652 = vperm.xlu0 %3690, %v6474_v45   ;;  %2604 = vperm.xlu1 %3686, %v6474_v45   ;;  %v2270_v32 = vpop.permute.xlu1 %2269 }
 0x445   : > { %v2277_v52 = vsel %vm879_vm9, %v2270_v32, %v2274_v60  ;;  %v2279_v55 = vsel %vm879_vm9, %v2274_v60, %v2270_v32  ;;  %v2251_v36 = vadd.f32 %v2249_v18, %v2243_v4  ;;  %v2252_v53 = vadd.f32 %v2250_v51, %v2244_v27  ;;  %v6538_v51 = vld [vmem:[%s6986_s3] sm:$0xff]  ;;  %v7690_v27 = vld [vmem:[#allocation134_spill] sm:$0xff] }
 0x446   : > { %v2281_v5 = vmul.f32 %v2277_v52, %v7589_v61  ;;  %v2282_v38 = vmul.f32 %v2279_v55, %v7689_v24  ;;  %v6549_v52 = vld [vmem:[%s6992_s9 + $0x6] ss:$8 sm:$0x3] }
 0x448   : > { %v2305_v25 = vmul.f32 %v2303_v50, %v2281_v5  ;;  %v2306_v33 = vmul.f32 %v2303_v50, %v2282_v38  ;;  %2625 = vrot.lane.b32.xlu0 %v6362_v9, %s3914_s16  ;;  %2612 = vperm.xlu1 %3686, %v6512_v44   ;;  %v2351_v14 = vpop.permute.xlu1 %2350  ;;  %v2295_v50 = vpop.permute.xlu0 %2294 }
 0x44a   : > { %v2307_v37 = vadd.f32 %v2305_v25, %v2267_v3  ;;  %v2308_v2 = vadd.f32 %v2306_v33, %v2268_v17  ;;  %v6560_v3 = vrot.slane %v6549_v52, %v7659_v16 }
 0x44c   : > { %2636 = vperm.xlu0 %3690, %v7679_v57   ;;  %3687 = vset.pattern.permute.xlu1 %v3934_v6  ;;  %v2272_v13 = vpop.permute.xlu1 %2271 }
 0x44d   : > { %2540 = vperm.xlu1 %3687, %v7679_v57  }
 0x450   : > { %3693 = vset.pattern.permute.xlu0 %v3937_v21  ;;  %v2276_v10 = vpop.permute.xlu1 %2275 }
 0x451   : > { %v2278_v59 = vsel %vm879_vm9, %v2272_v13, %v2276_v10  ;;  %v2280_v40 = vsel %vm879_vm9, %v2276_v10, %v2272_v13  ;;  %2700 = vperm.xlu0 %3693, %v6474_v45   ;;  %2575 = vrot.lane.b32.xlu1 %v6272_v42, %s3911_s22 }
 0x452   : > { %v2283_v6 = vmul.f32 %v2278_v59, %v7589_v61  ;;  %v2284_v57 = vmul.f32 %v2280_v40, %v7689_v24 }
 0x454   : > { %v2313_v62 = vmul.f32 %v2311_v49, %v2283_v6  ;;  %v2314_v47 = vmul.f32 %v2311_v49, %v2284_v57  ;;  %v2287_v29 = vpop.permute.xlu1 %2286  ;;  %v2297_v1 = vmul.f32 %v2295_v50, %v2283_v6  ;;  %v2298_v41 = vmul.f32 %v2295_v50, %v2284_v57 }
 0x455   : > { %v2289_v60 = vmul.f32 %v2287_v29, %v2281_v5  ;;  %v2290_v11 = vmul.f32 %v2287_v29, %v2282_v38  ;;  %2673 = vrot.lane.b32.xlu0 %v6362_v9, %s7408_s14  ;;  %2548 = vperm.xlu1 %3687, %v6435_v28   ;;  %v2727_v5 = vsel %vm2723_vm12, %v6409_v19, %v6249_v7  ;;  %v3938_v38 = vmov 42  }
 0x456   : > { %v2315_v63 = vadd.f32 %v2313_v62, %v2307_v37  ;;  %v2316_v15 = vadd.f32 %v2314_v47, %v2308_v2  ;;  %v6564_v33 = vmul.f32 %v6560_v3, %v2727_v5  ;;  %v2359_v2 = vpop.permute.xlu0 %2358  ;;  %v3939_v62 = vmov 43  }
 0x457   : > { %v2291_v54 = vadd.f32 %v2289_v60, %v2251_v36  ;;  %v2292_v58 = vadd.f32 %v2290_v11, %v2252_v53  ;;  %v3940_v60 = vmov 44  }
 0x458   : > { %v2318_v20 = vpop.permute.xlu1 %2317 }
 0x459   : > { %v2325_v35 = vsel %vm941_vm8, %v2318_v20, %v2322_v12  ;;  %v2327_v18 = vsel %vm941_vm8, %v2322_v12, %v2318_v20  ;;  %2684 = vperm.xlu0 %3693, %v6538_v51   ;;  %2573 = vrot.lane.b32.xlu1 %v6332_v0, %s3911_s22  ;;  %v2299_v26 = vadd.f32 %v2297_v1, %v2291_v54 }
 0x45a   : > { %v2329_v4 = vmul.f32 %v2325_v35, %v7595_v23  ;;  %v2330_v22 = vmul.f32 %v2327_v18, %v7690_v27  ;;  %3688 = vset.pattern.permute.xlu1 %v3936_v31  ;;  %v2300_v32 = vadd.f32 %v2298_v41, %v2292_v58  ;;  %v7691_v18 = vld [vmem:[#allocation87_spill] sm:$0xff] }
 0x45c   : > { %v2353_v55 = vmul.f32 %v2351_v14, %v2329_v4  ;;  %v2354_v36 = vmul.f32 %v2351_v14, %v2330_v22  ;;  %v2429_v53 = vpop.permute.xlu1 %2428 }
 0x45d   : > { %3696 = vset.pattern.permute.xlu0 %v3938_v38  ;;  %2660 = vperm.xlu1 %3688, %v6512_v44  }
 0x45e   : > { %2778 = vperm.xlu0 %3696, %v6474_v45   ;;  %v2355_v17 = vadd.f32 %v2353_v55, %v2315_v63  ;;  %v2356_v25 = vadd.f32 %v2354_v36, %v2316_v15  ;;  %v3941_v55 = vmov 45  }
 0x460   : > { %v2320_v14 = vpop.permute.xlu1 %2319 }
 0x461   : > { %2619 = vrot.lane.b32.xlu1 %v6269_v34, %s3914_s16 }
 0x462   : > { %2751 = vrot.lane.b32.xlu0 %v6564_v33, %s7540_s30  ;;  %3691 = vset.pattern.permute.xlu1 %v3935_v43 }
 0x464   : > { %v2324_v49 = vpop.permute.xlu1 %2323 }
 0x465   : > { %v2326_v16 = vsel %vm941_vm8, %v2320_v14, %v2324_v49  ;;  %v2328_v37 = vsel %vm941_vm8, %v2324_v49, %v2320_v14  ;;  %2623 = vrot.lane.b32.xlu1 %v6272_v42, %s3914_s16 }
 0x466   : > { %2762 = vperm.xlu0 %3696, %v6538_v51   ;;  %v2331_v13 = vmul.f32 %v2326_v16, %v7595_v23  ;;  %v2332_v12 = vmul.f32 %v2328_v37, %v7690_v27  ;;  %v2725_v16 = vsel %vm2723_vm12, %v6249_v7, %v6409_v19  ;;  %v3942_v37 = vmov 47  }
 0x467   : > { %v3943_v19 = vmov 46  }
 0x468   : > { %v2361_v10 = vmul.f32 %v2359_v2, %v2331_v13  ;;  %v2362_v59 = vmul.f32 %v2359_v2, %v2332_v12  ;;  %v2335_v43 = vpop.permute.xlu1 %2334 }
 0x469   : > { %v2337_v40 = vmul.f32 %v2335_v43, %v2329_v4  ;;  %v2338_v6 = vmul.f32 %v2335_v43, %v2330_v22  ;;  %2596 = vperm.xlu1 %3691, %v6435_v28   ;;  %v7692_v4 = vld [vmem:[#allocation62_spill] sm:$0xff] }
 0x46a   : > { %v2363_v57 = vadd.f32 %v2361_v10, %v2355_v17  ;;  %v2364_v50 = vadd.f32 %v2362_v59, %v2356_v25  ;;  %3699 = vset.pattern.permute.xlu0 %v3939_v62  ;;  %v2724_v22 = vsel %vm2723_vm12, %v7692_v4, %v6403_v46 }
 0x46b   : > { %v2339_v47 = vadd.f32 %v2337_v40, %v2299_v26  ;;  %v2340_v29 = vadd.f32 %v2338_v6, %v2300_v32  ;;  %2826 = vperm.xlu0 %3699, %v6474_v45   ;;  %v2734_v26 = vrot.slane %v6549_v52, %v7691_v18  ;;  %v2726_v32 = vsel %vm2723_vm12, %v6403_v46, %v7692_v4 }
 0x46c   : > { %v6626_v52 = vmul.f32 %v6560_v3, %v2726_v32 }
 0x46d   : > { %2621 = vrot.lane.b32.xlu1 %v6332_v0, %s3914_s16  ;;  %v6623_v36 = vmul.f32 %v2734_v26, %v2724_v22  ;;  %v6643_v2 = vmul.f32 %v2734_v26, %v2725_v16 }
 0x46e   : > { %3692 = vset.pattern.permute.xlu1 %v3937_v21 }
 0x46f   : > { %2799 = vrot.lane.b32.xlu0 %v6564_v33, %s7544_s12 }
 0x471   : > { %2708 = vperm.xlu1 %3692, %v6512_v44  }
 0x473   : > { %2810 = vperm.xlu0 %3699, %v6538_v51  }
 0x475   : > { %2667 = vrot.lane.b32.xlu1 %v6269_v34, %s7408_s14 }
 0x476   : > { %3694 = vset.pattern.permute.xlu1 %v3936_v31 }
 0x477   : > { %3702 = vset.pattern.permute.xlu0 %v3940_v60 }
 0x478   : > { %2874 = vperm.xlu0 %3702, %v6474_v45  }
 0x479   : > { %v2400_v11 = vpop.permute.xlu0 %2399  ;;  %2671 = vrot.lane.b32.xlu1 %v6272_v42, %s7408_s14  ;;  %v2396_v63 = vpop.permute.xlu1 %2395 }
 0x47a   : > { %v2403_v15 = vsel %vm596_vm4, %v2396_v63, %v2400_v11  ;;  %v2405_v1 = vsel %vm596_vm4, %v2400_v11, %v2396_v63 }
 0x47b   : > { %v2407_v54 = vmul.f32 %v2405_v1, %v7601_v48  ;;  %v2408_v31 = vmul.f32 %v2403_v15, %v7555_v56 }
 0x47c   : > { %2847 = vrot.lane.b32.xlu0 %v6564_v33, %s7546_s24 }
 0x47d   : > { %v2431_v58 = vmul.f32 %v2429_v53, %v2407_v54  ;;  %v2432_v41 = vmul.f32 %v2429_v53, %v2408_v31  ;;  %2644 = vperm.xlu1 %3694, %v6435_v28  }
 0x47f   : > { %v2433_v20 = vadd.f32 %v2431_v58, %v2363_v57  ;;  %v2434_v35 = vadd.f32 %v2432_v41, %v2364_v50 }
 0x480   : > { %2858 = vperm.xlu0 %3702, %v6538_v51  }
 0x481   : > { %2669 = vrot.lane.b32.xlu1 %v6332_v0, %s7408_s14 }
 0x482   : > { %3695 = vset.pattern.permute.xlu1 %v3938_v38 }
 0x484   : > { %3705 = vset.pattern.permute.xlu0 %v3941_v55 }
 0x485   : > { %2906 = vperm.xlu0 %3705, %v6474_v45   ;;  %2786 = vperm.xlu1 %3695, %v6512_v44  }
 0x489   : > { %2925 = vrot.lane.b32.xlu0 %v6626_v52, %s3911_s22  ;;  %2745 = vrot.lane.b32.xlu1 %v6623_v36, %s7540_s30 }
 0x48a   : > { %v2343_v53 = vpop.permute.xlu0 %2342  ;;  %v2477_v46 = vpop.permute.xlu1 %2476  ;;  %3697 = vset.pattern.permute.xlu1 %v3937_v21 }
 0x48b   : > { %v2345_v5 = vmul.f32 %v2343_v53, %v2331_v13  ;;  %v2346_v17 = vmul.f32 %v2343_v53, %v2332_v12 }
 0x48d   : > { %v2347_v25 = vadd.f32 %v2345_v5, %v2339_v47  ;;  %v2348_v14 = vadd.f32 %v2346_v17, %v2340_v29  ;;  %2898 = vperm.xlu0 %3705, %v6435_v28   ;;  %2749 = vrot.lane.b32.xlu1 %v6626_v52, %s7540_s30 }
 0x48e   : > { %v2398_v3 = vpop.permute.xlu1 %2397 }
 0x48f   : > { %v2437_v49 = vpop.permute.xlu0 %2436 }
 0x491   : > { %3710 = vset.pattern.permute.xlu0 %v3942_v37  ;;  %2692 = vperm.xlu1 %3697, %v6435_v28  }
 0x492   : > { %3010 = vperm.xlu0 %3710, %v6512_v44   ;;  %v2402_v21 = vpop.permute.xlu1 %2401 }
 0x493   : > { %v2404_v13 = vsel %vm596_vm4, %v2398_v3, %v2402_v21  ;;  %v2406_v12 = vsel %vm596_vm4, %v2402_v21, %v2398_v3  ;;  %v2448_v10 = vpop.permute.xlu0 %2447 }
 0x494   : > { %v2409_v59 = vmul.f32 %v2406_v12, %v7601_v48  ;;  %v2410_v7 = vmul.f32 %v2404_v13, %v7555_v56 }
 0x495   : > { %2747 = vrot.lane.b32.xlu1 %v6643_v2, %s7540_s30 }
 0x496   : > { %3711 = vset.pattern.permute.xlu0 %v3943_v19  ;;  %v2413_v43 = vpop.permute.xlu1 %2412  ;;  %v2439_v40 = vmul.f32 %v2437_v49, %v2409_v59  ;;  %v2440_v6 = vmul.f32 %v2437_v49, %v2410_v7  ;;  %3698 = vset.pattern.permute.xlu1 %v3939_v62  ;;  %v3944_v49 = vmov 48  }
 0x497   : > { %v2415_v57 = vmul.f32 %v2413_v43, %v2407_v54  ;;  %v2416_v50 = vmul.f32 %v2413_v43, %v2408_v31  ;;  %v2421_v47 = vpop.permute.xlu0 %2420  ;;  %2962 = vperm.xlu0 %3711, %v6512_v44   ;;  %v7693_v31 = vld [vmem:[#allocation121_spill] sm:$0xff] }
 0x498   : > { %v2423_v29 = vmul.f32 %v2421_v47, %v2409_v59  ;;  %v2424_v11 = vmul.f32 %v2421_v47, %v2410_v7  ;;  %v2441_v63 = vadd.f32 %v2439_v40, %v2433_v20  ;;  %v2442_v15 = vadd.f32 %v2440_v6, %v2434_v35  ;;  %v7694_v20 = vld [vmem:[#allocation122_spill] sm:$0xff] }
 0x499   : > { %v2417_v1 = vadd.f32 %v2415_v57, %v2347_v25  ;;  %v2418_v58 = vadd.f32 %v2416_v50, %v2348_v14  ;;  %2834 = vperm.xlu1 %3698, %v6512_v44  }
 0x49a   : > { %v2444_v41 = vpop.permute.xlu1 %2443 }
 0x49b   : > { %v2425_v18 = vadd.f32 %v2423_v29, %v2417_v1  ;;  %v2426_v26 = vadd.f32 %v2424_v11, %v2418_v58  ;;  %v2451_v4 = vsel %vm661_vm5, %v2444_v41, %v2448_v10  ;;  %v2453_v54 = vsel %vm661_vm5, %v2448_v10, %v2444_v41  ;;  %2973 = vrot.lane.b32.xlu0 %v6626_v52, %s3914_s16  ;;  %v3127_v1 = vld [vmem:[%s6988_s5 + $0x8] sm:$0xff] }
 0x49c   : > { %v2455_v22 = vmul.f32 %v2453_v54, %v7693_v31  ;;  %v2456_v35 = vmul.f32 %v2451_v4, %v7694_v20  ;;  %v2485_v14 = vpop.permute.xlu0 %2484  ;;  %v7695_v10 = vmov 0  }
 0x49d   : > { %2793 = vrot.lane.b32.xlu1 %v6623_v36, %s7544_s12 }
 0x49e   : > { %v2479_v32 = vmul.f32 %v2477_v46, %v2455_v22  ;;  %v2480_v53 = vmul.f32 %v2477_v46, %v2456_v35  ;;  %v2525_v5 = vpop.permute.xlu1 %2524  ;;  %3700 = vset.pattern.permute.xlu1 %v3938_v38 }
 0x49f   : > { %2946 = vperm.xlu0 %3711, %v6435_v28  }
 0x4a0   : > { %v2481_v17 = vadd.f32 %v2479_v32, %v2441_v63  ;;  %v2482_v25 = vadd.f32 %v2480_v53, %v2442_v15  ;;  %v2496_v46 = vpop.permute.xlu0 %2495  ;;  %v7697_v53 = vld [vmem:[#allocation120_spill] sm:$0xff] }
 0x4a1   : > { %2797 = vrot.lane.b32.xlu1 %v6626_v52, %s7544_s12 }
 0x4a2   : > { %v2446_v3 = vpop.permute.xlu1 %2445 }
 0x4a3   : > { %3714 = vset.pattern.permute.xlu0 %v3944_v49 }
 0x4a4   : > { %3058 = vperm.xlu0 %3714, %v6512_v44   ;;  %v2469_v57 = vpop.permute.xlu0 %2468 }
 0x4a5   : > { %2770 = vperm.xlu1 %3700, %v6435_v28  }
 0x4a6   : > { %v2450_v16 = vpop.permute.xlu1 %2449 }
 0x4a7   : > { %v2452_v38 = vsel %vm661_vm5, %v2446_v3, %v2450_v16  ;;  %v2454_v21 = vsel %vm661_vm5, %v2450_v16, %v2446_v3 }
 0x4a8   : > { %v2457_v13 = vmul.f32 %v2454_v21, %v7693_v31  ;;  %v2458_v12 = vmul.f32 %v2452_v38, %v7694_v20  ;;  %3021 = vrot.lane.b32.xlu0 %v6626_v52, %s7408_s14 }
 0x4a9   : > { %2795 = vrot.lane.b32.xlu1 %v6643_v2, %s7544_s12  ;;  %3716 = vset.pattern.permute.xlu0 %v7695_v10  ;;  %v2565_v3 = vpop.permute.xlu0 %2564  ;;  %s6941_s12 = scalar_lea.hbm %s6994_s11, %s3477_s26 }
 0x4aa   : > { %v2487_v59 = vmul.f32 %v2485_v14, %v2457_v13  ;;  %v2488_v7 = vmul.f32 %v2485_v14, %v2458_v12  ;;  %v2461_v43 = vpop.permute.xlu1 %2460  ;;  %3701 = vset.pattern.permute.xlu1 %v3940_v60  ;;  %v2471_v29 = vmul.f32 %v2469_v57, %v2457_v13  ;;  %v2472_v11 = vmul.f32 %v2469_v57, %v2458_v12 }
 0x4ab   : > { %v2463_v40 = vmul.f32 %v2461_v43, %v2455_v22  ;;  %v2464_v6 = vmul.f32 %v2461_v43, %v2456_v35  ;;  %v7696_v35 = vld [vmem:[#allocation118_spill] sm:$0xff] }
 0x4ac   : > { %v2489_v50 = vadd.f32 %v2487_v59, %v2481_v17  ;;  %v2490_v47 = vadd.f32 %v2488_v7, %v2482_v25  ;;  %3019 = vrot.lane.b32.xlu0 %v6643_v2, %s7408_s14 }
 0x4ad   : > { %v2465_v63 = vadd.f32 %v2463_v40, %v2425_v18  ;;  %v2466_v15 = vadd.f32 %v2464_v6, %v2426_v26  ;;  %2882 = vperm.xlu1 %3701, %v6512_v44   ;;  %v3065_v26 = vld [vmem:[%s6988_s5] sm:$0xff] }
 0x4ae   : > { %v2492_v58 = vpop.permute.xlu1 %2491  ;;  %v2533_v21 = vpop.permute.xlu0 %2532 }
 0x4af   : > { %v2499_v41 = vsel %vm723_vm6, %v2492_v58, %v2496_v46  ;;  %v2501_v4 = vsel %vm723_vm6, %v2496_v46, %v2492_v58  ;;  %v2473_v54 = vadd.f32 %v2471_v29, %v2465_v63  ;;  %v2474_v22 = vadd.f32 %v2472_v11, %v2466_v15 }
 0x4b0   : > { %v2503_v32 = vmul.f32 %v2501_v4, %v7696_v35  ;;  %v2504_v18 = vmul.f32 %v2499_v41, %v7697_v53  ;;  %3130 = vperm.xlu0 %3716, %v3127_v1   ;;  %v2567_v4 = vmul.f32 %v2565_v3, %v6332_v0 }
 0x4b1   : > { %2841 = vrot.lane.b32.xlu1 %v6623_v36, %s7546_s24 }
 0x4b2   : > { %v2527_v17 = vmul.f32 %v2525_v5, %v2503_v32  ;;  %v2528_v25 = vmul.f32 %v2525_v5, %v2504_v18  ;;  %v2557_v14 = vpop.permute.xlu1 %2556  ;;  %3703 = vset.pattern.permute.xlu1 %v3939_v62 }
 0x4b3   : > { %v2560_v29 = vmul.f32 %v2557_v14, %v6272_v42 }
 0x4b4   : > { %v2529_v46 = vadd.f32 %v2527_v17, %v2489_v50  ;;  %v2530_v16 = vadd.f32 %v2528_v25, %v2490_v47  ;;  %3068 = vperm.xlu0 %3716, %v3065_v26   ;;  %v2517_v50 = vpop.permute.xlu0 %2516  ;;  %v2559_v47 = vmul.f32 %v2557_v14, %v6269_v34  ;;  %v2568_v26 = vmul.f32 %v2565_v3, %v6362_v9 }
 0x4b5   : > { %2845 = vrot.lane.b32.xlu1 %v6626_v52, %s7546_s24 }
 0x4b6   : > { %v2494_v38 = vpop.permute.xlu1 %2493 }
 0x4b8   : > { %v2572_v14 = vpop.permute.xlu0 %2571 }
 0x4b9   : > { %2818 = vperm.xlu1 %3703, %v6435_v28  }
 0x4ba   : > { %v2498_v13 = vpop.permute.xlu1 %2497 }
 0x4bb   : > { %v2500_v12 = vsel %vm723_vm6, %v2494_v38, %v2498_v13  ;;  %v2502_v5 = vsel %vm723_vm6, %v2498_v13, %v2494_v38 }
 0x4bc   : > { %v2505_v62 = vmul.f32 %v2502_v5, %v7696_v35  ;;  %v2506_v59 = vmul.f32 %v2500_v12, %v7697_v53 }
 0x4bd   : > { %2843 = vrot.lane.b32.xlu1 %v6643_v2, %s7546_s24 }
 0x4be   : > { %v2535_v7 = vmul.f32 %v2533_v21, %v2505_v62  ;;  %v2536_v43 = vmul.f32 %v2533_v21, %v2506_v59  ;;  %v2509_v40 = vpop.permute.xlu1 %2508  ;;  %3704 = vset.pattern.permute.xlu1 %v3941_v55  ;;  %v2519_v15 = vmul.f32 %v2517_v50, %v2505_v62  ;;  %v2520_v1 = vmul.f32 %v2517_v50, %v2506_v59 }
 0x4bf   : > { %v2511_v6 = vmul.f32 %v2509_v40, %v2503_v32  ;;  %v2512_v57 = vmul.f32 %v2509_v40, %v2504_v18 }
 0x4c0   : > { %v2537_v11 = vadd.f32 %v2535_v7, %v2529_v46  ;;  %v2538_v63 = vadd.f32 %v2536_v43, %v2530_v16 }
 0x4c1   : > { %v2513_v58 = vadd.f32 %v2511_v6, %v2473_v54  ;;  %v2514_v41 = vadd.f32 %v2512_v57, %v2474_v22  ;;  %2914 = vperm.xlu1 %3704, %v6512_v44   ;;  %v2578_v22 = vpop.permute.xlu0 %2577 }
 0x4c2   : > { %v2561_v17 = vadd.f32 %v2559_v47, %v2537_v11  ;;  %v2562_v32 = vadd.f32 %v2560_v29, %v2538_v63 }
 0x4c3   : > { %v2605_v18 = vpop.permute.xlu1 %2604  ;;  %v2521_v25 = vadd.f32 %v2519_v15, %v2513_v58  ;;  %v2522_v38 = vadd.f32 %v2520_v1, %v2514_v41 }
 0x4c4   : > { %v2569_v21 = vadd.f32 %v2567_v4, %v2561_v17  ;;  %v2570_v13 = vadd.f32 %v2568_v26, %v2562_v32 }
 0x4c5   : > { %3706 = vset.pattern.permute.xlu1 %v3943_v19 }
 0x4c6   : > { %2954 = vperm.xlu1 %3706, %v6474_v45  }
 0x4c7   : > { %v2613_v54 = vpop.permute.xlu1 %2612 }
 0x4ca   : > { %3707 = vset.pattern.permute.xlu1 %v3940_v60 }
 0x4cb   : > { %2866 = vperm.xlu1 %3707, %v6435_v28  }
 0x4cc   : > { %v2541_v44 = vpop.permute.xlu1 %2540 }
 0x4cd   : > { %v2543_v3 = vmul.f32 %v2541_v44, %v6269_v34  ;;  %v2544_v46 = vmul.f32 %v2541_v44, %v6272_v42  ;;  %v2589_v34 = vpop.permute.xlu0 %2588 }
 0x4cf   : > { %v2545_v16 = vadd.f32 %v2543_v3, %v2521_v25  ;;  %v2546_v12 = vadd.f32 %v2544_v46, %v2522_v38  ;;  %3708 = vset.pattern.permute.xlu1 %v3941_v55 }
 0x4d0   : > { %2890 = vperm.xlu1 %3708, %v6538_v51   ;;  %v2576_v5 = vpop.permute.xlu1 %2575 }
 0x4d1   : > { %v2579_v62 = vsel %vm817_vm7, %v2572_v14, %v2576_v5  ;;  %v2581_v60 = vsel %vm817_vm7, %v2576_v5, %v2572_v14 }
 0x4d2   : > { %v2583_v59 = vmul.f32 %v2579_v62, %v7687_v39  ;;  %v2584_v7 = vmul.f32 %v2581_v60, %v7688_v8 }
 0x4d4   : > { %v2591_v43 = vmul.f32 %v2589_v34, %v2583_v59  ;;  %v2592_v42 = vmul.f32 %v2589_v34, %v2584_v7  ;;  %v2607_v40 = vmul.f32 %v2605_v18, %v2583_v59  ;;  %v2608_v6 = vmul.f32 %v2605_v18, %v2584_v7  ;;  %2921 = vrot.lane.b32.xlu1 %v6623_v36, %s3911_s22  ;;  %v2549_v55 = vpop.permute.xlu1 %2548  ;;  %v2653_v18 = vpop.permute.xlu0 %2652 }
 0x4d5   : > { %v2551_v57 = vmul.f32 %v2549_v55, %v6332_v0  ;;  %v2552_v50 = vmul.f32 %v2549_v55, %v6362_v9  ;;  %3709 = vset.pattern.permute.xlu1 %v3942_v37 }
 0x4d6   : > { %v2609_v47 = vadd.f32 %v2607_v40, %v2569_v21  ;;  %v2610_v29 = vadd.f32 %v2608_v6, %v2570_v13 }
 0x4d7   : > { %v2553_v11 = vadd.f32 %v2551_v57, %v2545_v16  ;;  %v2554_v63 = vadd.f32 %v2552_v50, %v2546_v12 }
 0x4d8   : > { %3002 = vperm.xlu1 %3709, %v6474_v45   ;;  %v2574_v15 = vpop.permute.xlu1 %2573  ;;  %v2626_v13 = vpop.permute.xlu0 %2625 }
 0x4d9   : > { %v2580_v1 = vsel %vm817_vm7, %v2574_v15, %v2578_v22  ;;  %v2582_v58 = vsel %vm817_vm7, %v2578_v22, %v2574_v15  ;;  %v2593_v41 = vadd.f32 %v2591_v43, %v2553_v11  ;;  %v2594_v4 = vadd.f32 %v2592_v42, %v2554_v63 }
 0x4da   : > { %v2585_v0 = vmul.f32 %v2580_v1, %v7687_v39  ;;  %v2586_v9 = vmul.f32 %v2582_v58, %v7688_v8 }
 0x4dc   : > { %v2615_v26 = vmul.f32 %v2613_v54, %v2585_v0  ;;  %v2616_v17 = vmul.f32 %v2613_v54, %v2586_v9  ;;  %2923 = vrot.lane.b32.xlu1 %v6643_v2, %s3911_s22  ;;  %v2661_v32 = vpop.permute.xlu1 %2660  ;;  %v2637_v62 = vpop.permute.xlu0 %2636 }
 0x4dd   : > { %3712 = vset.pattern.permute.xlu1 %v3943_v19 }
 0x4de   : > { %v2617_v25 = vadd.f32 %v2615_v26, %v2609_v47  ;;  %v2618_v38 = vadd.f32 %v2616_v17, %v2610_v29 }
 0x4e0   : > { %2927 = vrot.lane.b32.xlu1 %v6564_v33, %s3911_s22  ;;  %v2620_v21 = vpop.permute.xlu1 %2619 }
 0x4e4   : > { %2938 = vperm.xlu1 %3712, %v6538_v51   ;;  %v2624_v14 = vpop.permute.xlu1 %2623 }
 0x4e5   : > { %v2627_v54 = vsel %vm879_vm9, %v2620_v21, %v2624_v14  ;;  %v2629_v44 = vsel %vm879_vm9, %v2624_v14, %v2620_v21 }
 0x4e6   : > { %v2631_v22 = vmul.f32 %v2627_v54, %v7589_v61  ;;  %v2632_v19 = vmul.f32 %v2629_v44, %v7689_v24 }
 0x4e8   : > { %v2655_v3 = vmul.f32 %v2653_v18, %v2631_v22  ;;  %v2656_v46 = vmul.f32 %v2653_v18, %v2632_v19  ;;  %2969 = vrot.lane.b32.xlu1 %v6623_v36, %s3914_s16  ;;  %v2597_v16 = vpop.permute.xlu1 %2596  ;;  %v2639_v7 = vmul.f32 %v2637_v62, %v2631_v22  ;;  %v2640_v34 = vmul.f32 %v2637_v62, %v2632_v19 }
 0x4e9   : > { %v2599_v12 = vmul.f32 %v2597_v16, %v2585_v0  ;;  %v2600_v5 = vmul.f32 %v2597_v16, %v2586_v9  ;;  %3713 = vset.pattern.permute.xlu1 %v3944_v49 }
 0x4ea   : > { %v2657_v60 = vadd.f32 %v2655_v3, %v2617_v25  ;;  %v2658_v59 = vadd.f32 %v2656_v46, %v2618_v38 }
 0x4eb   : > { %v2601_v43 = vadd.f32 %v2599_v12, %v2593_v41  ;;  %v2602_v42 = vadd.f32 %v2600_v5, %v2594_v4 }
 0x4ec   : > { %3050 = vperm.xlu1 %3713, %v6474_v45   ;;  %v2622_v40 = vpop.permute.xlu1 %2621  ;;  %v2701_v45 = vpop.permute.xlu0 %2700 }
 0x4ed   : > { %v2628_v6 = vsel %vm879_vm9, %v2622_v40, %v2626_v13  ;;  %v2630_v55 = vsel %vm879_vm9, %v2626_v13, %v2622_v40  ;;  %v2641_v57 = vadd.f32 %v2639_v7, %v2601_v43  ;;  %v2642_v50 = vadd.f32 %v2640_v34, %v2602_v42 }
 0x4ee   : > { %v2633_v47 = vmul.f32 %v2628_v6, %v7589_v61  ;;  %v2634_v29 = vmul.f32 %v2630_v55, %v7689_v24 }
 0x4f0   : > { %v2663_v11 = vmul.f32 %v2661_v32, %v2633_v47  ;;  %v2664_v63 = vmul.f32 %v2661_v32, %v2634_v29  ;;  %2971 = vrot.lane.b32.xlu1 %v6643_v2, %s3914_s16  ;;  %v2709_v15 = vpop.permute.xlu1 %2708  ;;  %v2674_v4 = vpop.permute.xlu0 %2673 }
 0x4f1   : > { %3715 = vset.pattern.permute.xlu1 %v3942_v37 }
 0x4f2   : > { %v2665_v1 = vadd.f32 %v2663_v11, %v2657_v60  ;;  %v2666_v58 = vadd.f32 %v2664_v63, %v2658_v59 }
 0x4f4   : > { %2975 = vrot.lane.b32.xlu1 %v6564_v33, %s3914_s16  ;;  %v2668_v41 = vpop.permute.xlu1 %2667  ;;  %v2685_v13 = vpop.permute.xlu0 %2684 }
 0x4f8   : > { %2986 = vperm.xlu1 %3715, %v6538_v51   ;;  %v2672_v0 = vpop.permute.xlu1 %2671  ;;  %v2779_v42 = vpop.permute.xlu0 %2778 }
 0x4f9   : > { %v2675_v9 = vsel %vm941_vm8, %v2668_v41, %v2672_v0  ;;  %v2677_v26 = vsel %vm941_vm8, %v2672_v0, %v2668_v41 }
 0x4fa   : > { %v2679_v17 = vmul.f32 %v2675_v9, %v7595_v23  ;;  %v2680_v37 = vmul.f32 %v2677_v26, %v7690_v27 }
 0x4fc   : > { %v2703_v32 = vmul.f32 %v2701_v45, %v2679_v17  ;;  %v2704_v18 = vmul.f32 %v2701_v45, %v2680_v37  ;;  %3017 = vrot.lane.b32.xlu1 %v6623_v36, %s7408_s14  ;;  %v2645_v25 = vpop.permute.xlu1 %2644  ;;  %v2687_v44 = vmul.f32 %v2685_v13, %v2679_v17  ;;  %v2688_v22 = vmul.f32 %v2685_v13, %v2680_v37 }
 0x4fd   : > { %v2647_v38 = vmul.f32 %v2645_v25, %v2633_v47  ;;  %v2648_v21 = vmul.f32 %v2645_v25, %v2634_v29 }
 0x4fe   : > { %v2705_v14 = vadd.f32 %v2703_v32, %v2665_v1  ;;  %v2706_v54 = vadd.f32 %v2704_v18, %v2666_v58 }
 0x4ff   : > { %v2649_v19 = vadd.f32 %v2647_v38, %v2641_v57  ;;  %v2650_v3 = vadd.f32 %v2648_v21, %v2642_v50  ;;  %v2752_v57 = vpop.permute.xlu0 %2751 }
 0x500   : > { %2994 = vperm.xlu1 %3715, %v6435_v28   ;;  %v2670_v46 = vpop.permute.xlu1 %2669 }
 0x501   : > { %v2676_v16 = vsel %vm941_vm8, %v2670_v46, %v2674_v4  ;;  %v2678_v12 = vsel %vm941_vm8, %v2674_v4, %v2670_v46  ;;  %v2689_v5 = vadd.f32 %v2687_v44, %v2649_v19  ;;  %v2690_v62 = vadd.f32 %v2688_v22, %v2650_v3 }
 0x502   : > { %v2681_v60 = vmul.f32 %v2676_v16, %v7595_v23  ;;  %v2682_v59 = vmul.f32 %v2678_v12, %v7690_v27 }
 0x503   : > { %v2763_v58 = vpop.permute.xlu0 %2762 }
 0x504   : > { %v2711_v7 = vmul.f32 %v2709_v15, %v2681_v60  ;;  %v2712_v34 = vmul.f32 %v2709_v15, %v2682_v59  ;;  %3023 = vrot.lane.b32.xlu1 %v6564_v33, %s7408_s14  ;;  %v2787_v43 = vpop.permute.xlu1 %2786  ;;  %s404_s14 = sand.u32 1, %s3871_s18  }
 0x505   : > { %3717 = vset.pattern.permute.xlu1 %v3944_v49  ;;  %s3455_s24 = sshll.u32 %s404_s14, 4  ;;  %s3352_s21 = scalar_lea.sflag [#allocation4], %s404_s14 }
 0x506   : > { %v2713_v40 = vadd.f32 %v2711_v7, %v2705_v14  ;;  %v2714_v6 = vadd.f32 %v2712_v34, %v2706_v54  ;;  %s406_s13 = scalar_lea.vmem [#allocation7], %s3455_s24 }
 0x507   : > { %v2827_v54 = vpop.permute.xlu0 %2826  ;;  %s3366_s19 = sshll.u32 %s406_s13, 4  ;;  %s6943_s19 = int_to_ptr.vmem [resolvable:$true] %s3366_s19 }
 0x508   : > { %3034 = vperm.xlu1 %3717, %v6538_v51   ;;  %v2746_v55 = vpop.permute.xlu1 %2745  ;;  %s3809_s23 = scalar_lea.vmem %s6943_s19, 256 }
 0x509   : > { %p3810_p10 = scmp.ne.s32.totalorder %s6943_s19, %s3809_s23 }
 0x50b   : > { %v2800_v3 = vpop.permute.xlu0 %2799  ;;  %p3811_p2 = pnand %p3810_p10, %p7699_p1 }
 0x50c   : > { %3042 = vperm.xlu1 %3717, %v6435_v28   ;;  %v2750_v50 = vpop.permute.xlu1 %2749 }
 0x50d   : > { %v2753_v47 = vsel %vm596_vm4, %v2746_v55, %v2750_v50  ;;  %v2755_v29 = vsel %vm596_vm4, %v2750_v50, %v2746_v55  ;;  %p3812_p3 = pneg %p3811_p2 }
 0x50e   : > { %v2757_v11 = vmul.f32 %v2755_v29, %v7601_v48  ;;  %v2758_v49 = vmul.f32 %v2753_v47, %v7555_v56 }
 0x50f   : > { %v2811_v34 = vpop.permute.xlu0 %2810 }
 0x510   : > { %v2781_v63 = vmul.f32 %v2779_v42, %v2757_v11  ;;  %v2782_v15 = vmul.f32 %v2779_v42, %v2758_v49  ;;  %v2693_v45 = vpop.permute.xlu1 %2692  ;;  %3718 = vset.pattern.permute.xlu1 %v7695_v10  ;;  %v2765_v4 = vmul.f32 %v2763_v58, %v2757_v11  ;;  %v2766_v0 = vmul.f32 %v2763_v58, %v2758_v49 }
 0x511   : > { %v2695_v51 = vmul.f32 %v2693_v45, %v2681_v60  ;;  %v2696_v1 = vmul.f32 %v2693_v45, %v2682_v59 }
 0x512   : > { %v2783_v28 = vadd.f32 %v2781_v63, %v2713_v40  ;;  %v2784_v41 = vadd.f32 %v2782_v15, %v2714_v6 }
 0x513   : > { %v2697_v9 = vadd.f32 %v2695_v51, %v2689_v5  ;;  %v2698_v26 = vadd.f32 %v2696_v1, %v2690_v62 }
 0x514   : > { %v2748_v17 = vpop.permute.xlu1 %2747 }
 0x515   : > { %v2754_v37 = vsel %vm596_vm4, %v2748_v17, %v2752_v57  ;;  %v2756_v32 = vsel %vm596_vm4, %v2752_v57, %v2748_v17  ;;  %v2767_v18 = vadd.f32 %v2765_v4, %v2697_v9  ;;  %v2768_v25 = vadd.f32 %v2766_v0, %v2698_v26  ;;  %v2875_v26 = vpop.permute.xlu0 %2874 }
 0x516   : > { %v2759_v10 = vmul.f32 %v2756_v32, %v7601_v48  ;;  %v2760_v38 = vmul.f32 %v2754_v37, %v7555_v56 }
 0x518   : > { %v2789_v21 = vmul.f32 %v2787_v43, %v2759_v10  ;;  %v2790_v13 = vmul.f32 %v2787_v43, %v2760_v38  ;;  %v2835_v14 = vpop.permute.xlu1 %2834 }
 0x51a   : > { %v2791_v44 = vadd.f32 %v2789_v21, %v2783_v28  ;;  %v2792_v22 = vadd.f32 %v2790_v13, %v2784_v41 }
 0x51c   : > { %v2794_v19 = vpop.permute.xlu1 %2793 }
 0x520   : > { %v2798_v46 = vpop.permute.xlu1 %2797 }
 0x521   : > { %v2801_v16 = vsel %vm661_vm5, %v2794_v19, %v2798_v46  ;;  %v2803_v12 = vsel %vm661_vm5, %v2798_v46, %v2794_v19 }
 0x522   : > { %v2805_v5 = vmul.f32 %v2803_v12, %v7693_v31  ;;  %v2806_v48 = vmul.f32 %v2801_v16, %v7694_v20 }
 0x524   : > { %v2829_v56 = vmul.f32 %v2827_v54, %v2805_v5  ;;  %v2830_v62 = vmul.f32 %v2827_v54, %v2806_v48  ;;  %v2771_v60 = vpop.permute.xlu1 %2770  ;;  %v2813_v40 = vmul.f32 %v2811_v34, %v2805_v5  ;;  %v2814_v6 = vmul.f32 %v2811_v34, %v2806_v48 }
 0x525   : > { %v2773_v59 = vmul.f32 %v2771_v60, %v2759_v10  ;;  %v2774_v7 = vmul.f32 %v2771_v60, %v2760_v38  ;;  %v2848_v10 = vpop.permute.xlu0 %2847  ;;  %v3339_v60 = vld [vmem:[%s6991_s8] sm:$0xff] }
 0x526   : > { %v2831_v43 = vadd.f32 %v2829_v56, %v2791_v44  ;;  %v2832_v42 = vadd.f32 %v2830_v62, %v2792_v22  ;;  %3342 = vperm.xlu1 %3718, %v3339_v60  }
 0x527   : > { %v2775_v55 = vadd.f32 %v2773_v59, %v2767_v18  ;;  %v2776_v57 = vadd.f32 %v2774_v7, %v2768_v25 }
 0x528   : > { %v2796_v50 = vpop.permute.xlu1 %2795 }
 0x529   : > { %v2802_v47 = vsel %vm661_vm5, %v2796_v50, %v2800_v3  ;;  %v2804_v29 = vsel %vm661_vm5, %v2800_v3, %v2796_v50  ;;  %v2815_v11 = vadd.f32 %v2813_v40, %v2775_v55  ;;  %v2816_v49 = vadd.f32 %v2814_v6, %v2776_v57  ;;  %v2859_v62 = vpop.permute.xlu0 %2858 }
 0x52a   : > { %v2807_v63 = vmul.f32 %v2804_v29, %v7693_v31  ;;  %v2808_v15 = vmul.f32 %v2802_v47, %v7694_v20 }
 0x52c   : > { %v2837_v45 = vmul.f32 %v2835_v14, %v2807_v63  ;;  %v2838_v51 = vmul.f32 %v2835_v14, %v2808_v15  ;;  %v2883_v1 = vpop.permute.xlu1 %2882 }
 0x52d   : > { %v2907_v7 = vpop.permute.xlu0 %2906 }
 0x52e   : > { %v2839_v58 = vadd.f32 %v2837_v45, %v2831_v43  ;;  %v2840_v28 = vadd.f32 %v2838_v51, %v2832_v42 }
 0x530   : > { %v2842_v41 = vpop.permute.xlu1 %2841 }
 0x534   : > { %v2846_v4 = vpop.permute.xlu1 %2845 }
 0x535   : > { %v2849_v0 = vsel %vm723_vm6, %v2842_v41, %v2846_v4  ;;  %v2851_v9 = vsel %vm723_vm6, %v2846_v4, %v2842_v41  ;;  %v2910_v41 = vmul.f32 %v2907_v7, %v6626_v52 }
 0x536   : > { %v2853_v17 = vmul.f32 %v2851_v9, %v7696_v35  ;;  %v2854_v31 = vmul.f32 %v2849_v0, %v7697_v53 }
 0x538   : > { %v2819_v37 = vpop.permute.xlu1 %2818  ;;  %v2877_v38 = vmul.f32 %v2875_v26, %v2853_v17  ;;  %v2878_v21 = vmul.f32 %v2875_v26, %v2854_v31  ;;  %v2862_v45 = vmul.f32 %v2859_v62, %v2854_v31 }
 0x539   : > { %v2821_v20 = vmul.f32 %v2819_v37, %v2807_v63  ;;  %v2822_v32 = vmul.f32 %v2819_v37, %v2808_v15  ;;  %v2861_v15 = vmul.f32 %v2859_v62, %v2853_v17 }
 0x53a   : > { %v2879_v19 = vadd.f32 %v2877_v38, %v2839_v58  ;;  %v2880_v3 = vadd.f32 %v2878_v21, %v2840_v28  ;;  %v2909_v28 = vmul.f32 %v2907_v7, %v6623_v36 }
 0x53b   : > { %v2823_v18 = vadd.f32 %v2821_v20, %v2815_v11  ;;  %v2824_v25 = vadd.f32 %v2822_v32, %v2816_v49 }
 0x53c   : > { %v2844_v13 = vpop.permute.xlu1 %2843 }
 0x53d   : > { %v2850_v14 = vsel %vm723_vm6, %v2844_v13, %v2848_v10  ;;  %v2852_v54 = vsel %vm723_vm6, %v2848_v10, %v2844_v13  ;;  %v2863_v26 = vadd.f32 %v2861_v15, %v2823_v18  ;;  %v2864_v17 = vadd.f32 %v2862_v45, %v2824_v25 }
 0x53e   : > { %v2855_v44 = vmul.f32 %v2852_v54, %v7696_v35  ;;  %v2856_v22 = vmul.f32 %v2850_v14, %v7697_v53  ;;  %v2926_v35 = vpop.permute.xlu0 %2925 }
 0x540   : > { %v2885_v46 = vmul.f32 %v2883_v1, %v2855_v44  ;;  %v2886_v16 = vmul.f32 %v2883_v1, %v2856_v22  ;;  %v2915_v12 = vpop.permute.xlu1 %2914 }
 0x541   : > { %v2917_v14 = vmul.f32 %v2915_v12, %v6643_v2  ;;  %v2918_v54 = vmul.f32 %v2915_v12, %v6564_v33 }
 0x542   : > { %v2887_v5 = vadd.f32 %v2885_v46, %v2879_v19  ;;  %v2888_v48 = vadd.f32 %v2886_v16, %v2880_v3  ;;  %v2899_v42 = vpop.permute.xlu0 %2898 }
 0x543   : > { %v2901_v4 = vmul.f32 %v2899_v42, %v6643_v2  ;;  %v2902_v0 = vmul.f32 %v2899_v42, %v6564_v33 }
 0x544   : > { %v2911_v21 = vadd.f32 %v2909_v28, %v2887_v5  ;;  %v2912_v13 = vadd.f32 %v2910_v41, %v2888_v48 }
 0x545   : > { %v2955_v56 = vpop.permute.xlu1 %2954 }
 0x546   : > { %v6837_v6 = vpop.permute.xlu0 %3010  ;;  %v2919_v12 = vadd.f32 %v2917_v14, %v2911_v21  ;;  %v2920_v62 = vadd.f32 %v2918_v54, %v2912_v13 }
 0x54a   : > { %v2867_v59 = vpop.permute.xlu1 %2866  ;;  %v2963_v57 = vpop.permute.xlu0 %2962 }
 0x54b   : > { %v2869_v31 = vmul.f32 %v2867_v59, %v2855_v44  ;;  %v2870_v37 = vmul.f32 %v2867_v59, %v2856_v22 }
 0x54d   : > { %v2871_v3 = vadd.f32 %v2869_v31, %v2863_v26  ;;  %v2872_v46 = vadd.f32 %v2870_v37, %v2864_v17 }
 0x54e   : > { %v2974_v29 = vpop.permute.xlu0 %2973 }
 0x54f   : > { %v2891_v34 = vpop.permute.xlu1 %2890 }
 0x550   : > { %v2893_v25 = vmul.f32 %v2891_v34, %v6623_v36  ;;  %v2894_v44 = vmul.f32 %v2891_v34, %v6626_v52 }
 0x552   : > { %v6841_v49 = vpop.permute.xlu0 %2946  ;;  %v2895_v34 = vadd.f32 %v2893_v25, %v2871_v3 }
 0x553   : > { %v2922_v43 = vpop.permute.xlu1 %2921 }
 0x554   : > { %v2929_v51 = vsel %vm817_vm7, %v2922_v43, %v2926_v35  ;;  %v2931_v1 = vsel %vm817_vm7, %v2926_v35, %v2922_v43  ;;  %v2903_v28 = vadd.f32 %v2901_v4, %v2895_v34 }
 0x555   : > { %v2933_v20 = vmul.f32 %v2929_v51, %v7687_v39  ;;  %v2934_v32 = vmul.f32 %v2931_v1, %v7688_v8 }
 0x556   : > { %v6851_v9 = vpop.permute.xlu0 %3058 }
 0x557   : > { %v6835_v53 = vpop.permute.xlu1 %3002  ;;  %v2957_v2 = vmul.f32 %v2955_v56, %v2933_v20  ;;  %v2958_v48 = vmul.f32 %v2955_v56, %v2934_v32 }
 0x55a   : > { %v3022_v52 = vpop.permute.xlu0 %3021 }
 0x55b   : > { %v2924_v40 = vpop.permute.xlu1 %2923 }
 0x55f   : > { %v2928_v55 = vpop.permute.xlu1 %2927 }
 0x560   : > { %v2930_v10 = vsel %vm817_vm7, %v2924_v40, %v2928_v55  ;;  %v2932_v38 = vsel %vm817_vm7, %v2928_v55, %v2924_v40  ;;  %v2959_v55 = vadd.f32 %v2957_v2, %v2919_v12 }
 0x561   : > { %v2935_v16 = vmul.f32 %v2930_v10, %v7687_v39  ;;  %v2936_v5 = vmul.f32 %v2932_v38, %v7688_v8  ;;  %v2896_v39 = vadd.f32 %v2894_v44, %v2872_v46 }
 0x563   : > { %v2939_v50 = vpop.permute.xlu1 %2938  ;;  %v2965_v35 = vmul.f32 %v2963_v57, %v2935_v16  ;;  %v2966_v43 = vmul.f32 %v2963_v57, %v2936_v5  ;;  %v2904_v41 = vadd.f32 %v2902_v0, %v2896_v39  ;;  %v2949_v17 = vmul.f32 %v6841_v49, %v2935_v16 }
 0x565   : > { %v2967_v57 = vadd.f32 %v2965_v35, %v2959_v55 }
 0x567   : > { %v2970_v47 = vpop.permute.xlu1 %2969 }
 0x568   : > { %v2977_v22 = vsel %vm879_vm9, %v2970_v47, %v2974_v29  ;;  %v2979_v19 = vsel %vm879_vm9, %v2974_v29, %v2970_v47  ;;  %v2960_v47 = vadd.f32 %v2958_v48, %v2920_v62  ;;  %v2941_v29 = vmul.f32 %v2939_v50, %v2933_v20 }
 0x569   : > { %v2981_v60 = vmul.f32 %v2977_v22, %v7589_v61  ;;  %v2982_v59 = vmul.f32 %v2979_v19, %v7689_v24 }
 0x56a   : > { %v2968_v26 = vadd.f32 %v2966_v43, %v2960_v47  ;;  %v2943_v31 = vadd.f32 %v2941_v29, %v2903_v28 }
 0x56b   : > { %v6839_v11 = vpop.permute.xlu1 %3050  ;;  %v3005_v15 = vmul.f32 %v6835_v53, %v2981_v60  ;;  %v3006_v45 = vmul.f32 %v6835_v53, %v2982_v59  ;;  %v3020_v53 = vpop.permute.xlu0 %3019 }
 0x56c   : > { %v2951_v44 = vadd.f32 %v2949_v17, %v2943_v31 }
 0x56d   : > { %v3007_v20 = vadd.f32 %v3005_v15, %v2967_v57 }
 0x56f   : > { %v2972_v63 = vpop.permute.xlu1 %2971 }
 0x573   : > { %v2976_v58 = vpop.permute.xlu1 %2975 }
 0x574   : > { %v2978_v33 = vsel %vm879_vm9, %v2972_v63, %v2976_v58  ;;  %v2980_v36 = vsel %vm879_vm9, %v2976_v58, %v2972_v63  ;;  %v2942_v63 = vmul.f32 %v2939_v50, %v2934_v32  ;;  %v2950_v50 = vmul.f32 %v6841_v49, %v2936_v5 }
 0x575   : > { %v2983_v42 = vmul.f32 %v2978_v33, %v7589_v61  ;;  %v2984_v40 = vmul.f32 %v2980_v36, %v7689_v24  ;;  %v3008_v32 = vadd.f32 %v3006_v45, %v2968_v26  ;;  %v3131_v36 = vpop.permute.xlu0 %3130 }
 0x576   : > { %v2944_v37 = vadd.f32 %v2942_v63, %v2904_v41 }
 0x577   : > { %v2987_v18 = vpop.permute.xlu1 %2986  ;;  %v3013_v61 = vmul.f32 %v6837_v6, %v2983_v42  ;;  %v3014_v24 = vmul.f32 %v6837_v6, %v2984_v40 }
 0x578   : > { %v2989_v38 = vmul.f32 %v2987_v18, %v2981_v60  ;;  %v2990_v21 = vmul.f32 %v2987_v18, %v2982_v59  ;;  %v2952_v22 = vadd.f32 %v2950_v50, %v2944_v37 }
 0x579   : > { %v3015_v14 = vadd.f32 %v3013_v61, %v3007_v20  ;;  %v3016_v49 = vadd.f32 %v3014_v24, %v3008_v32  ;;  %v3069_v55 = vpop.permute.xlu0 %3068 }
 0x57a   : > { %v2991_v2 = vadd.f32 %v2989_v38, %v2951_v44  ;;  %v2992_v30 = vadd.f32 %v2990_v21, %v2952_v22 }
 0x57b   : > { %v3018_v7 = vpop.permute.xlu1 %3017 }
 0x57c   : > { %v3025_v8 = vsel %vm941_vm8, %v3018_v7, %v3022_v52  ;;  %v3027_v56 = vsel %vm941_vm8, %v3022_v52, %v3018_v7 }
 0x57d   : > { %v3029_v51 = vmul.f32 %v3025_v8, %v7595_v23  ;;  %v3030_v1 = vmul.f32 %v3027_v56, %v7690_v27 }
 0x57f   : > { %v2995_v58 = vpop.permute.xlu1 %2994  ;;  %v3053_v10 = vmul.f32 %v6839_v11, %v3029_v51  ;;  %v3054_v4 = vmul.f32 %v6839_v11, %v3030_v1 }
 0x580   : > { %v2997_v19 = vmul.f32 %v2995_v58, %v2983_v42  ;;  %v2998_v3 = vmul.f32 %v2995_v58, %v2984_v40 }
 0x581   : > { %v3055_v46 = vadd.f32 %v3053_v10, %v3015_v14  ;;  %v3056_v16 = vadd.f32 %v3054_v4, %v3016_v49 }
 0x582   : > { %v2999_v12 = vadd.f32 %v2997_v19, %v2991_v2 }
 0x583   : > { %v3024_v0 = vpop.permute.xlu1 %3023 }
 0x584   : > { %v3026_v13 = vsel %vm941_vm8, %v3020_v53, %v3024_v0  ;;  %v3028_v6 = vsel %vm941_vm8, %v3024_v0, %v3020_v53 }
 0x585   : > { %v3031_v54 = vmul.f32 %v3026_v13, %v7595_v23  ;;  %v3032_v25 = vmul.f32 %v3028_v6, %v7690_v27  ;;  %v3000_v27 = vadd.f32 %v2998_v3, %v2992_v30 }
 0x587   : > { %v3061_v11 = vmul.f32 %v6851_v9, %v3031_v54  ;;  %v3062_v18 = vmul.f32 %v6851_v9, %v3032_v25  ;;  %v3035_v5 = vpop.permute.xlu1 %3034 }
 0x588   : > { %v3037_v48 = vmul.f32 %v3035_v5, %v3029_v51  ;;  %v3038_v33 = vmul.f32 %v3035_v5, %v3030_v1 }
 0x589   : > { %v3063_v52 = vadd.f32 %v3061_v11, %v3055_v46  ;;  %v3064_v23 = vadd.f32 %v3062_v18, %v3056_v16 }
 0x58a   : > { %v3039_v7 = vadd.f32 %v3037_v48, %v2999_v12  ;;  %v3040_v34 = vadd.f32 %v3038_v33, %v3000_v27 }
 0x58b   : > { %v6899_v62 = vadd.f32 %v3131_v36, %v3063_v52  ;;  %v6901_v60 = vadd.f32 %v3131_v36, %v3064_v23  ;;  %v3043_v59 = vpop.permute.xlu1 %3042 }
 0x58c   : > { %v3045_v9 = vmul.f32 %v3043_v59, %v3031_v54  ;;  %v3046_v39 = vmul.f32 %v3043_v59, %v3032_v25 }
 0x58d   : > { %v6904_v8 = vmul.f32 0.70710677, %v6899_v62  ;;  %v6907_v56 = vmul.f32 0.70710677, %v6901_v60 }
 0x58e   : > { %v3047_v35 = vadd.f32 %v3045_v9, %v3039_v7  ;;  %v3048_v43 = vadd.f32 %v3046_v39, %v3040_v34 }
 0x58f   : > { %v3139_v42 = vand.u32 2147483647, %v6904_v8  ;;  %v3140_v40 = vand.u32 2147483647, %v6907_v56  ;;  %vm3179_vm13 = vcmp.ge.f32.partialorder %v6904_v8, 0.0  ;;  %vm3180_vm14 = vcmp.ge.f32.partialorder %v6907_v56, 0.0 }
 0x590   : > { %v6911_v47 = vadd.f32 %v3069_v55, %v3047_v35  ;;  %v6913_v29 = vadd.f32 %v3069_v55, %v3048_v43 }
 0x591   : > { %v3141_v63 = vmul.f32 0.3275911, %v3139_v42  ;;  %v3142_v15 = vmul.f32 0.3275911, %v3140_v40  ;;  %v3167_v17 = vsub.f32 0.0, %v3139_v42  ;;  %v3168_v50 = vsub.f32 0.0, %v3140_v40 }
 0x592   : > { %v6916_v45 = vmul.f32 0.70710677, %v6911_v47  ;;  %v6919_v51 = vmul.f32 0.70710677, %v6913_v29 }
 0x593   : > { %v3143_v1 = vadd.f32 1.0, %v3141_v63  ;;  %v3144_v58 = vadd.f32 1.0, %v3142_v15  ;;  %v3169_v37 = vmul.f32 %v3167_v17, %v3139_v42  ;;  %v3170_v20 = vmul.f32 %v3168_v50, %v3140_v40 }
 0x594   : > { %v3077_v28 = vand.u32 2147483647, %v6916_v45  ;;  %v3078_v41 = vand.u32 2147483647, %v6919_v51  ;;  %vm3117_vm15 = vcmp.ge.f32.partialorder %v6916_v45, 0.0  ;;  %vm3118_vm1 = vcmp.ge.f32.partialorder %v6919_v51, 0.0 }
 0x595   : > { %3723 = vrcp.f32 %v3143_v1  ;;  %v3171_v21 = vmul.f32 1.442695, %v3169_v37  ;;  %v3173_v14 = vmul.f32 1.442695, %v3170_v20  ;;  %v3189_v51 = vld [vmem:[#allocation2] sm:$0xff] }
 0x596   : > { %3725 = vrcp.f32 %v3144_v58  ;;  %v3079_v57 = vmul.f32 0.3275911, %v3077_v28  ;;  %v3080_v26 = vmul.f32 0.3275911, %v3078_v41  ;;  %v3105_v32 = vsub.f32 0.0, %v3077_v28 }
 0x597   : > { %v3106_v4 = vsub.f32 0.0, %v3078_v41 }
 0x598   : > { %v3081_v61 = vadd.f32 1.0, %v3079_v57  ;;  %v3082_v24 = vadd.f32 1.0, %v3080_v26  ;;  %v3107_v49 = vmul.f32 %v3105_v32, %v3077_v28 }
 0x599   : > { %v3108_v44 = vmul.f32 %v3106_v4, %v3078_v41 }
 0x59a   : > { %3727 = vrcp.f32 %v3081_v61  ;;  %v3109_v16 = vmul.f32 1.442695, %v3107_v49 }
 0x59b   : > { %3729 = vrcp.f32 %v3082_v24  ;;  %v3111_v30 = vmul.f32 1.442695, %v3108_v44 }
 0x59c   : > { %3731 = vpow2.f32 %v3171_v21 }
 0x59d   : > { %3733 = vpow2.f32 %v3173_v14  ;;  %v3136_v14 = vmul.f32 0.5, %v6901_v60  ;;  %v3074_v60 = vmul.f32 0.5, %v6913_v29 }
 0x59e   : > { %3735 = vpow2.f32 %v3109_v16 }
 0x59f   : > { %v3724_v31 = vpop.eup %3723  ;;  %3737 = vpow2.f32 %v3111_v30  ;;  %v3751_v30 = vld [vmem:[%s4139_s25] sm:$0xff] }
 0x5a0   : > { %v3726_v53 = vpop.eup %3725  ;;  %v3149_v10 = vmul.f32 1.0614054, %v3724_v31 }
 0x5a1   : > { %v3150_v0 = vmul.f32 1.0614054, %v3726_v53 }
 0x5a2   : > { %v3151_v38 = vadd.f32 -1.4531521, %v3149_v10 }
 0x5a3   : > { %v3152_v13 = vadd.f32 -1.4531521, %v3150_v0 }
 0x5a4   : > { %v3728_v6 = vpop.eup %3727  ;;  %v3153_v54 = vmul.f32 %v3724_v31, %v3151_v38  ;;  %v3135_v38 = vmul.f32 0.5, %v6899_v62 }
 0x5a5   : > { %v3730_v25 = vpop.eup %3729  ;;  %v3154_v22 = vmul.f32 %v3726_v53, %v3152_v13  ;;  %v3087_v19 = vmul.f32 1.0614054, %v3728_v6 }
 0x5a6   : > { %v3155_v3 = vadd.f32 1.4214138, %v3153_v54  ;;  %v3088_v11 = vmul.f32 1.0614054, %v3730_v25  ;;  %v3732_v55 = vpop.eup %3731 }
 0x5a7   : > { %v3156_v18 = vadd.f32 1.4214138, %v3154_v22  ;;  %v3089_v46 = vadd.f32 -1.4531521, %v3087_v19  ;;  %v3734_v1 = vpop.eup %3733  ;;  %v3190_v22 = vld [vmem:[#allocation5] sm:$0xff]  ;;  %v3073_v19 = vmul.f32 0.5, %v6911_v47  ;;  %v3343_v47 = vpop.permute.xlu1 %3342 }
 0x5a8   : > { %v3157_v5 = vmul.f32 %v3724_v31, %v3155_v3  ;;  %v3090_v2 = vadd.f32 -1.4531521, %v3088_v11  ;;  %v3736_v50 = vpop.eup %3735 }
 0x5a9   : > { %v3158_v48 = vmul.f32 %v3726_v53, %v3156_v18  ;;  %v3091_v33 = vmul.f32 %v3728_v6, %v3089_v46  ;;  %v3738_v32 = vpop.eup %3737  ;;  %v7698_v46 = vmov 0.0  }
 0x5aa   : > { %v3159_v36 = vadd.f32 -0.28449672, %v3157_v5  ;;  %v3092_v52 = vmul.f32 %v3730_v25, %v3090_v2 }
 0x5ab   : > { %v3160_v23 = vadd.f32 -0.28449672, %v3158_v48  ;;  %v3093_v12 = vadd.f32 1.4214138, %v3091_v33  ;;  %v3752_v33 = vld [vmem:[%s4139_s25 + $0x8] sm:$0xff]  ;;  %s3945_s25 = smov [#allocation7]  }
 0x5ac   : > { %v3161_v27 = vmul.f32 %v3724_v31, %v3159_v36  ;;  %v3094_v59 = vadd.f32 1.4214138, %v3092_v52  ;;  %s3813_s15 = sshll.u32 %s3945_s25, 4  ;;  %s3814_s15 = int_to_ptr.vmem [resolvable:$false] %s3813_s15 }
 0x5ad   : > { %v3162_v7 = vmul.f32 %v3726_v53, %v3160_v23  ;;  %v3095_v34 = vmul.f32 %v3728_v6, %v3093_v12  ;;  %s3815_s22 = scalar_lea.vmem %s3814_s15, 512  ;;  %p3816_p4 = scmp.lt.s32.totalorder %s6943_s19, %s3814_s15 }
 0x5ae   : > { %v3163_v9 = vadd.f32 0.2548296, %v3161_v27  ;;  %v3096_v39 = vmul.f32 %v3730_v25, %v3094_v59  ;;  %p3817_p7 = scmp.lt.s32.totalorder %s3815_s22, %s3809_s23 }
 0x5af   : > { %v3164_v35 = vadd.f32 0.2548296, %v3162_v7  ;;  %v3097_v43 = vadd.f32 -0.28449672, %v3095_v34 }
 0x5b0   : > { %v3165_v42 = vmul.f32 %v3724_v31, %v3163_v9  ;;  %v3098_v40 = vadd.f32 -0.28449672, %v3096_v39  ;;  %p3818_p8 = por %p3817_p7, %p3816_p4 }
 0x5b1   : > { %v3166_v63 = vmul.f32 %v3726_v53, %v3164_v35  ;;  %v3099_v15 = vmul.f32 %v3728_v6, %v3097_v43 }
 0x5b2   : > { %v3175_v58 = vmul.f32 %v3732_v55, %v3165_v42  ;;  %v3100_v28 = vmul.f32 %v3730_v25, %v3098_v40  ;;  %p3819_p11 = pnand %p3818_p8, %p3812_p3 }
 0x5b3   : > { %v3176_v41 = vmul.f32 %v3734_v1, %v3166_v63  ;;  %v3101_v57 = vadd.f32 0.2548296, %v3099_v15 }
 0x5b4   : > { %v3177_v26 = vsub.f32 1.0, %v3175_v58  ;;  %v3102_v61 = vadd.f32 0.2548296, %v3100_v28 }
 0x5b5   : > { %v3178_v24 = vsub.f32 1.0, %v3176_v41  ;;  %v3103_v17 = vmul.f32 %v3728_v6, %v3101_v57 }
 0x5b6   : > { %v3181_v37 = vsub.f32 0.0, %v3177_v26  ;;  %v3104_v20 = vmul.f32 %v3730_v25, %v3102_v61 }
 0x5b7   : > { %v3182_v31 = vsub.f32 0.0, %v3178_v24  ;;  %v3113_v10 = vmul.f32 %v3736_v50, %v3103_v17 }
 0x5b8   : > { %v3183_v53 = vsel %vm3179_vm13, %v3177_v26, %v3181_v37  ;;  %v3114_v4 = vmul.f32 %v3738_v32, %v3104_v20 }
 0x5b9   : > { %v3184_v0 = vsel %vm3180_vm14, %v3178_v24, %v3182_v31  ;;  %v3185_v21 = vadd.f32 1.0, %v3183_v53  ;;  %v3115_v13 = vsub.f32 1.0, %v3113_v10 }
 0x5ba   : > { %v3186_v6 = vadd.f32 1.0, %v3184_v0  ;;  %v3116_v49 = vsub.f32 1.0, %v3114_v4 }
 0x5bb   : > { %v3187_v54 = vmul.f32 %v3185_v21, %v3135_v38  ;;  %v3119_v25 = vsub.f32 0.0, %v3115_v13 }
 0x5bc   : > { %v3188_v8 = vmul.f32 %v3186_v6, %v3136_v14  ;;  %v3120_v44 = vsub.f32 0.0, %v3116_v49 }
 0x5bd   : > { %v3121_v56 = vsel %vm3117_vm15, %v3115_v13, %v3119_v25 }
 0x5be   : > { %3194 = vmatprep.subr.mxu1 %v3188_v8  ;;  %v3122_v62 = vsel %vm3118_vm1, %v3116_v49, %v3120_v44  ;;  %v3123_v3 = vadd.f32 1.0, %v3121_v56 }
 0x5bf   : > { %3195 = vmatpush1.msra.mxu1 %v3187_v54  ;;  %v3124_v11 = vadd.f32 1.0, %v3122_v62 }
 0x5c0   : > { %3470 = vmatmul.mubr.msk.f32.vlgmr.msra.gmra.mrb[0].mxu1 %vm469_vm0, %v3190_v22  ;;  %v3125_v45 = vmul.f32 %v3123_v3, %v3073_v19 }
 0x5c1   : > { %v3126_v18 = vmul.f32 %v3124_v11, %v3074_v60  ;;  %3332 = vmatprep.mubr.f32.mxu1 %v7698_v46 }
 0x5c3   : > { %3268 = vmatprep.subr.mxu1 %v3126_v18 }
 0x5c4   : > { %3269 = vmatpush1.msra.mxu1 %v3125_v45 }
 0x5c8   : > { %3471 = vmatmul.mubr.msk.f32.vlgmr.msra.gmra.mrb[0].mxu1 %vm469_vm0, %v3189_v51 }
 0x69b   : > { %v3334_v16 = vpop.f32.mrb[0].mxu1 }
 0x69c   : > { %v3345_v29 = vadd.f32 %v3343_v47, %v3334_v16  ;;  %v3336_v5 = vpop.f32.mrb[1].mxu1 }
 0x69d   : > { %v3346_v2 = vadd.f32 %v3343_v47, %v3336_v5 }
 0x69e   : > { %v3347_v48 = vadd.f32 %v3751_v30, %v3345_v29 }
 0x69f   : > { %v3348_v36 = vadd.f32 %v3752_v33, %v3346_v2 }
 0x6a0   : > { %3349 = vst [vmem:[%s406_s13] sm:$0xff] %v3347_v48 }
 0x6a1   : > { %3350 = vst [vmem:[%s406_s13 + $0x8] sm:$0xff] %v3348_v36 }
 0x6a2   : > { %3822 = shalt.err (!%p3819_p11)
}
 0x6a3   : > { %s3823_s16 = scalar_lea.hbm %s6941_s12, 256  ;;  %s3827_s26 = scalar_lea.hbm %s6994_s11, 512 }
 0x6a4   : > { %p3824_p13 = scmp.ne.s32.totalorder %s6941_s12, %s3823_s16  ;;  %p3828_p5 = scmp.lt.u32.totalorder %s6941_s12, %s6994_s11 }
 0x6a5   : > { %p3829_p9 = scmp.lt.u32.totalorder %s3827_s26, %s3823_s16  ;;  %p3831_p10 = scmp.lt.u32.totalorder %s3823_s16, %s6941_s12 }
 0x6a6   : > { %p3825_p6 = pnand %p3824_p13, %p7699_p1 }
 0x6a7   : > { %p3830_p12 = por %p3829_p9, %p3828_p5 }
 0x6a8   : > { %p3826_p0 = pneg %p3825_p6 }
 0x6a9   : > { %p3832_p2 = por %p3831_p10, %p3830_p12 }
 0x6ab   : > { %p3833_p3 = pnand %p3832_p2, %p3826_p0 }
 0x6ad   : > { %3836 = shalt.err (!%p3833_p3)
}
 0x6ae   : > { %3488 = dma.vmem_to_hbm [thread:$0]  (%p7699_p1), %s6943_s19, 256, %s6941_s12, %s3352_s21  }
 0x6af PF: > { %p3505_p4 = scmp.ge.s32.totalorder %s3879_s20, 2  ;;  %s3378_s30 = sand.u32 1, %s3867_s17  }
 0x6b0   : > { %p7700_p7 = scmp.ne.s32.totalorder %s7250_s28, 0  ;;  %s3379_s23 = scalar_lea.sflag [#allocation4], %s3378_s30 }
 0x6b2   : > { %p3498_p8 = pnand %p3505_p4, %p7700_p7 }
 0x6b4   : > { %3862 = dma.done.wait (!%p3498_p8), %s3379_s23, 256  }
 0x6b5   : > { %3864 = vsyncadd (!%p3498_p8), %s3379_s23, 4294967040  ;;  %s7701_s20 = sld [smem:[#allocation12_spill]]  ;;  %s7702_s25 = sld [smem:[#allocation11_spill]] }
 0x6b6   : > { %s7703_s19 = sld [smem:[#allocation13_spill]]  ;;  %s7704_s17 = smov %s3871_s18 }
 0x6bb   : > { %p23_p11 = scmp.ge.s32.totalorder %s7701_s20, 4   ;;  %s7705_s18 = smov %s7702_s25 }
 0x6bd   :  { %25 = sbr.rel (!%p23_p11) target bundleno = 5 (0x5), region = 118 }
 0x6c4   :  { %3384 = vsyncpa [#allocation3], 1 }
 0x6c5   :  { %3386 = vsyncpa [#allocation3 + $0x1], 1 }
 0x6c6   :  { %3387 = vsyncpa [#allocation6], 1 }
 0x6c7   :  { %3388 = vsyncpa [#allocation4], 1 }
 0x6c8   :  { %3390 = vsyncpa [#allocation4 + $0x1], 1 }

</bundles_post_ra>
